<compile_context>
chip_gen: v7x
topology: tpu7x:2x2x1
jax: 0.10.0
libtpu: 0.0.40
codegen_flags: <defaults>
</compile_context>

<pallas_src>
import numpy as np
import jax
import jax.numpy as jnp
from jax.experimental import pallas as pl
from jax.experimental.pallas import tpu as pltpu

CLIP_STD = np.array([0.26862954, 0.26130258, 0.27577711], dtype=np.float32)
CLIP_MEAN = np.array([0.48145466, 0.4578275, 0.40821073], dtype=np.float32)

IMG = 256
CROP_H0, CROP_H1 = 35, 223   # -> 188 rows
CROP_W0, CROP_W1 = 32, 220   # -> 188 cols
CROP = 188
POOL = 112                   # face_pool_2 output size
FEAT = 512                   # ArcFace embedding dim
KDIM = 3 * POOL * POOL       # 37632 flattened facenet input


def adaptive_avg_pool_matrix(in_size, out_size):
    """Row-averaging matrix matching torch.nn.AdaptiveAvgPool2d bin boundaries."""
    m = np.zeros((out_size, in_size), dtype=np.float32)
    for o in range(out_size):
        s = (o * in_size) // out_size
        e = -(-((o + 1) * in_size) // out_size)  # ceil
        m[o, s:e] = 1.0 / (e - s)
    return m


def crop_pool_matrices():
    """Crop [35:223, 32:220] folded into 256-wide pooling matrices (zeros outside crop)."""
    pool = adaptive_avg_pool_matrix(CROP, POOL)                  # (112, 188)
    rmat = np.zeros((POOL, IMG), dtype=np.float32)               # (112, 256) row pool
    rmat[:, CROP_H0:CROP_H1] = pool
    cmat_t = np.zeros((IMG, POOL), dtype=np.float32)             # (256, 112) col pool (T)
    cmat_t[CROP_W0:CROP_W1, :] = pool.T
    return rmat, cmat_t


# ---- kernel 1: un_norm_clip + normalize + crop + AdaptiveAvgPool2d((112,112)) --------------
def _preprocess_pool_kernel(scale_ref, bias_ref, x_ref, rmat_ref, cmatT_ref, o_ref):
    rmat = rmat_ref[...]        # (112, 256), crop + row averaging folded in
    cmat_t = cmatT_ref[...]     # (256, 112), crop + col averaging folded in
    for c in range(3):          # static unroll over channels (one image per grid step)
        xc = x_ref[0, c, :, :]                                                  # (256, 256)
        tmp = jnp.dot(rmat, xc, preferred_element_type=jnp.float32)             # (112, 256)
        pooled = jnp.dot(tmp, cmat_t, preferred_element_type=jnp.float32)       # (112, 112)
        # fused un_norm_clip + TF.normalize(0.5,0.5,0.5), applied post-pool (exact:
        # pooling rows/cols each sum to 1, so pool(a*x+b) = a*pool(x)+b).
        o_ref[0, c, :, :] = pooled * scale_ref[c] + bias_ref[c]


def preprocess_and_pool(x, scale, bias, rmat, cmat_t):
    M, C, H, W = x.shape
    assert H == IMG and W == IMG and C == 3
    # TODO(synk): face_pool_1 (AdaptiveAvgPool2d -> 256) for inputs whose spatial size != 256
    # is not implemented; 256x256 inputs take the module's own skip branch.
    return pl.pallas_call(
        _preprocess_pool_kernel,
        out_shape=jax.ShapeDtypeStruct((M, C, POOL, POOL), jnp.float32),
        grid=(M,),
        in_specs=[
            pl.BlockSpec(memory_space=pltpu.MemorySpace.SMEM),        # scale (3,)
            pl.BlockSpec(memory_space=pltpu.MemorySpace.SMEM),        # bias  (3,)
            pl.BlockSpec((1, C, H, W), lambda b: (b, 0, 0, 0)),       # image (all channels)
            pl.BlockSpec((POOL, IMG), lambda b: (0, 0)),              # row-pool matrix
            pl.BlockSpec((IMG, POOL), lambda b: (0, 0)),              # col-pool matrix (T)
        ],
        out_specs=pl.BlockSpec((1, C, POOL, POOL), lambda b: (b, 0, 0, 0)),
        compiler_params=pltpu.CompilerParams(dimension_semantics=("parallel",)),
    )(scale, bias, x, rmat, cmat_t)


# ---- kernel 2: facenet stand-in (flatten -> linear), bf16 weights, K-tiled, N-split --------
def _feature_kernel(x_ref, w_ref, o_ref, acc_ref):
    k = pl.program_id(1)

    @pl.when(k == 0)
    def _():
        acc_ref[...] = jnp.zeros_like(acc_ref)

    acc_ref[...] += jnp.dot(x_ref[...], w_ref[...], preferred_element_type=jnp.float32)

    @pl.when(k == pl.num_programs(1) - 1)
    def _():
        o_ref[...] = acc_ref[...]


def facenet_features(xf_bf16, w_bf16, *, tk=12544, tn=256):
    # TODO(synk): the pretrained 50-layer IR-SE ArcFace Backbone is not reproduced; this is a
    # deterministic linear-projection stand-in with the same (M, 512) output (L2-norm applied
    # in the loss kernel).
    M, K = xf_bf16.shape
    N = w_bf16.shape[1]
    assert K % tk == 0 and N % tn == 0
    return pl.pallas_call(
        _feature_kernel,
        out_shape=jax.ShapeDtypeStruct((M, N), jnp.float32),
        grid=(N // tn, K // tk),                       # N blocks "parallel" -> v7x 2x TC
        in_specs=[
            pl.BlockSpec((M, tk), lambda n, k: (0, k)),
            pl.BlockSpec((tk, tn), lambda n, k: (k, n)),
        ],
        out_specs=pl.BlockSpec((M, tn), lambda n, k: (0, n)),
        scratch_shapes=[pltpu.VMEM((M, tn), jnp.float32)],
        compiler_params=pltpu.CompilerParams(
            dimension_semantics=("parallel", "arbitrary"),
            vmem_limit_bytes=32 * 1024 * 1024),        # bf16 W blocks double-buffer ~12 MiB
    )(xf_bf16, w_bf16)


# ---- kernel 3: l2_norm + per-sample dot products + loss reduction --------------------------
def _norm_loss_kernel(feats_ref, loss_ref, imp_ref):
    f = feats_ref[...]                                           # (2B, 512): [y_hat ; y]
    # ArcFace l2_norm (torch F.normalize clamps the norm rather than norm^2; identical except
    # for near-zero vectors).
    inv = jax.lax.rsqrt(jnp.sum(f * f, axis=-1, keepdims=True) + 1e-12)
    fn = f * inv
    half = f.shape[0] // 2
    yh = fn[:half, :]                                            # y_hat features
    yv = fn[half:, :]                                            # y features (detached in torch)
    sim_target = jnp.sum(yh * yv, axis=-1, keepdims=True)        # (B, 1)
    sim_views = jnp.sum(yv * yv, axis=-1, keepdims=True)         # (B, 1)
    loss_ref[...] = jnp.mean(1.0 - sim_target, axis=0, keepdims=True)       # loss / count
    imp_ref[...] = jnp.mean(sim_target - sim_views, axis=0, keepdims=True)  # sim_improvement / count


def id_similarity_loss(feats):
    loss, imp = pl.pallas_call(
        _norm_loss_kernel,
        out_shape=(jax.ShapeDtypeStruct((1, 1), jnp.float32),
                   jax.ShapeDtypeStruct((1, 1), jnp.float32)),
    )(feats)
    return loss[0, 0], imp[0, 0]


# ---- module wrapper -------------------------------------------------------------------------
def make_id_loss_params():
    # fused affine: ((x*clip_std + clip_mean) - 0.5) / 0.5 = x*(2*std) + (2*mean - 1)
    scale = jnp.asarray(2.0 * CLIP_STD)
    bias = jnp.asarray(2.0 * CLIP_MEAN - 1.0)
    rmat, cmat_t = crop_pool_matrices()
    # deterministic synthetic "facenet" projection weights, streamed in bf16
    w = 0.01 * jax.random.normal(jax.random.PRNGKey(1), (KDIM, FEAT), jnp.float32)
    return dict(scale=scale, bias=bias,
                rmat=jnp.asarray(rmat), cmat_t=jnp.asarray(cmat_t),
                w=w.astype(jnp.bfloat16))


@jax.jit
def id_loss_forward(y_hat, y, params):
    # multiscale=False -> single feature scale; y_hat and y stacked so preprocessing and the
    # facenet weight stream each run exactly once.
    x = jnp.concatenate([y_hat, y], axis=0)                       # (2B, 3, 256, 256)
    pooled = preprocess_and_pool(x, params["scale"], params["bias"],
                                 params["rmat"], params["cmat_t"])  # (2B, 3, 112, 112) f32
    xf = pooled.reshape(pooled.shape[0], -1).astype(jnp.bfloat16)   # (2B, 37632) bf16
    feats = facenet_features(xf, params["w"])                       # (2B, 512) f32
    loss_all, sim_improvement_all = id_similarity_loss(feats)
    return loss_all, sim_improvement_all


if __name__ == "__main__":
    B = 2
    key = jax.random.PRNGKey(0)
    k1, k2 = jax.random.split(key)
    y_hat = jax.random.normal(k1, (B, 3, IMG, IMG), jnp.float32)
    y = jax.random.normal(k2, (B, 3, IMG, IMG), jnp.float32)

    params = make_id_loss_params()
    loss_all, sim_improvement_all = id_loss_forward(y_hat, y, params)
    jax.block_until_ready((loss_all, sim_improvement_all))
    result = (loss_all, sim_improvement_all, None)   # matches torch forward's return tuple
    print("KERNEL_OK")
</pallas_src>

<mosaic_0001>
module attributes {stable_mosaic.version = 11 : i64} {
  func.func @_preprocess_pool_kernel(%arg0: i32, %arg1: memref<3xf32, #tpu.memory_space<smem>>, %arg2: memref<3xf32, #tpu.memory_space<smem>>, %arg3: memref<1x3x256x256xf32, #tpu.memory_space<vmem>>, %arg4: memref<112x256xf32, #tpu.memory_space<vmem>>, %arg5: memref<256x112xf32, #tpu.memory_space<vmem>>, %arg6: memref<1x3x112x112xf32, #tpu.memory_space<vmem>>) attributes {dimension_semantics = [#tpu.dimension_semantics<parallel>], iteration_bounds = array<i64: 4>, scalar_prefetch = 0 : i64, scratch_operands = 0 : i64, tpu.core_type = #tpu.core_type<tc>, window_params = [{transform_indices = @transform_0, window_bounds = array<i64: 3>}, {transform_indices = @transform_1, window_bounds = array<i64: 3>}, {transform_indices = @transform_2, window_bounds = array<i64: 1, 3, 256, 256>}, {pipeline_mode = #tpu.pipeline_mode<synchronous>, transform_indices = @transform_3, window_bounds = array<i64: 112, 256>}, {pipeline_mode = #tpu.pipeline_mode<synchronous>, transform_indices = @transform_4, window_bounds = array<i64: 256, 112>}, {transform_indices = @transform_5, window_bounds = array<i64: 1, 3, 112, 112>}]} {
    %c0 = arith.constant 0 : index
    %c0_0 = arith.constant 0 : index
    %0 = vector.load %arg4[%c0, %c0_0] : memref<112x256xf32, #tpu.memory_space<vmem>>, vector<112x256xf32>
    %c0_1 = arith.constant 0 : index
    %c0_2 = arith.constant 0 : index
    %1 = vector.load %arg5[%c0_1, %c0_2] : memref<256x112xf32, #tpu.memory_space<vmem>>, vector<256x112xf32>
    %c0_3 = arith.constant 0 : index
    %c0_4 = arith.constant 0 : index
    %c0_5 = arith.constant 0 : index
    %c0_6 = arith.constant 0 : index
    %2 = vector.load %arg3[%c0_3, %c0_4, %c0_5, %c0_6] : memref<1x3x256x256xf32, #tpu.memory_space<vmem>>, vector<1x1x256x256xf32>
    %3 = vector.shape_cast %2 : vector<1x1x256x256xf32> to vector<256x256xf32>
    %cst = arith.constant dense<0.000000e+00> : vector<112x256xf32>
    %4 = tpu.matmul %0, %3, %cst {dimension_numbers = #tpu.dot_dimension_numbers<[1], [0], [0], [1], [0, 0, 1, 1], [], []>} : vector<112x256xf32>, vector<256x256xf32>, vector<112x256xf32> -> vector<112x256xf32>
    %cst_7 = arith.constant dense<0.000000e+00> : vector<112x112xf32>
    %5 = tpu.matmul %4, %1, %cst_7 {dimension_numbers = #tpu.dot_dimension_numbers<[1], [0], [0], [1], [0, 0, 1, 1], [], []>} : vector<112x256xf32>, vector<256x112xf32>, vector<112x112xf32> -> vector<112x112xf32>
    %c0_8 = arith.constant 0 : index
    %6 = memref.load %arg1[%c0_8] : memref<3xf32, #tpu.memory_space<smem>>
    %7 = vector.broadcast %6 : f32 to vector<112x112xf32>
    %8 = arith.mulf %5, %7 : vector<112x112xf32>
    %c0_9 = arith.constant 0 : index
    %9 = memref.load %arg2[%c0_9] : memref<3xf32, #tpu.memory_space<smem>>
    %10 = vector.broadcast %9 : f32 to vector<112x112xf32>
    %11 = arith.addf %8, %10 : vector<112x112xf32>
    %c0_10 = arith.constant 0 : index
    %c0_11 = arith.constant 0 : index
    %c0_12 = arith.constant 0 : index
    %c0_13 = arith.constant 0 : index
    %12 = vector.load %arg6[%c0_10, %c0_11, %c0_12, %c0_13] : memref<1x3x112x112xf32, #tpu.memory_space<vmem>>, vector<1x1x112x112xf32>
    %13 = vector.shape_cast %12 : vector<1x1x112x112xf32> to vector<112x112xf32>
    %14 = vector.shape_cast %11 : vector<112x112xf32> to vector<1x1x112x112xf32>
    tpu.vector_store %arg6[%c0_10, %c0_11, %c0_12, %c0_13], %14 {strides = array<i32>} : memref<1x3x112x112xf32, #tpu.memory_space<vmem>>, vector<1x1x112x112xf32>,
    %c0_14 = arith.constant 0 : index
    %c1 = arith.constant 1 : index
    %c0_15 = arith.constant 0 : index
    %c0_16 = arith.constant 0 : index
    %15 = vector.load %arg3[%c0_14, %c1, %c0_15, %c0_16] : memref<1x3x256x256xf32, #tpu.memory_space<vmem>>, vector<1x1x256x256xf32>
    %16 = vector.shape_cast %15 : vector<1x1x256x256xf32> to vector<256x256xf32>
    %cst_17 = arith.constant dense<0.000000e+00> : vector<112x256xf32>
    %17 = tpu.matmul %0, %16, %cst_17 {dimension_numbers = #tpu.dot_dimension_numbers<[1], [0], [0], [1], [0, 0, 1, 1], [], []>} : vector<112x256xf32>, vector<256x256xf32>, vector<112x256xf32> -> vector<112x256xf32>
    %cst_18 = arith.constant dense<0.000000e+00> : vector<112x112xf32>
    %18 = tpu.matmul %17, %1, %cst_18 {dimension_numbers = #tpu.dot_dimension_numbers<[1], [0], [0], [1], [0, 0, 1, 1], [], []>} : vector<112x256xf32>, vector<256x112xf32>, vector<112x112xf32> -> vector<112x112xf32>
    %c1_19 = arith.constant 1 : index
    %19 = memref.load %arg1[%c1_19] : memref<3xf32, #tpu.memory_space<smem>>
    %20 = vector.broadcast %19 : f32 to vector<112x112xf32>
    %21 = arith.mulf %18, %20 : vector<112x112xf32>
    %c1_20 = arith.constant 1 : index
    %22 = memref.load %arg2[%c1_20] : memref<3xf32, #tpu.memory_space<smem>>
    %23 = vector.broadcast %22 : f32 to vector<112x112xf32>
    %24 = arith.addf %21, %23 : vector<112x112xf32>
    %c0_21 = arith.constant 0 : index
    %c1_22 = arith.constant 1 : index
    %c0_23 = arith.constant 0 : index
    %c0_24 = arith.constant 0 : index
    %25 = vector.load %arg6[%c0_21, %c1_22, %c0_23, %c0_24] : memref<1x3x112x112xf32, #tpu.memory_space<vmem>>, vector<1x1x112x112xf32>
    %26 = vector.shape_cast %25 : vector<1x1x112x112xf32> to vector<112x112xf32>
    %27 = vector.shape_cast %24 : vector<112x112xf32> to vector<1x1x112x112xf32>
    tpu.vector_store %arg6[%c0_21, %c1_22, %c0_23, %c0_24], %27 {strides = array<i32>} : memref<1x3x112x112xf32, #tpu.memory_space<vmem>>, vector<1x1x112x112xf32>,
    %c0_25 = arith.constant 0 : index
    %c2 = arith.constant 2 : index
    %c0_26 = arith.constant 0 : index
    %c0_27 = arith.constant 0 : index
    %28 = vector.load %arg3[%c0_25, %c2, %c0_26, %c0_27] : memref<1x3x256x256xf32, #tpu.memory_space<vmem>>, vector<1x1x256x256xf32>
    %29 = vector.shape_cast %28 : vector<1x1x256x256xf32> to vector<256x256xf32>
    %cst_28 = arith.constant dense<0.000000e+00> : vector<112x256xf32>
    %30 = tpu.matmul %0, %29, %cst_28 {dimension_numbers = #tpu.dot_dimension_numbers<[1], [0], [0], [1], [0, 0, 1, 1], [], []>} : vector<112x256xf32>, vector<256x256xf32>, vector<112x256xf32> -> vector<112x256xf32>
    %cst_29 = arith.constant dense<0.000000e+00> : vector<112x112xf32>
    %31 = tpu.matmul %30, %1, %cst_29 {dimension_numbers = #tpu.dot_dimension_numbers<[1], [0], [0], [1], [0, 0, 1, 1], [], []>} : vector<112x256xf32>, vector<256x112xf32>, vector<112x112xf32> -> vector<112x112xf32>
    %c2_30 = arith.constant 2 : index
    %32 = memref.load %arg1[%c2_30] : memref<3xf32, #tpu.memory_space<smem>>
    %33 = vector.broadcast %32 : f32 to vector<112x112xf32>
    %34 = arith.mulf %31, %33 : vector<112x112xf32>
    %c2_31 = arith.constant 2 : index
    %35 = memref.load %arg2[%c2_31] : memref<3xf32, #tpu.memory_space<smem>>
    %36 = vector.broadcast %35 : f32 to vector<112x112xf32>
    %37 = arith.addf %34, %36 : vector<112x112xf32>
    %c0_32 = arith.constant 0 : index
    %c2_33 = arith.constant 2 : index
    %c0_34 = arith.constant 0 : index
    %c0_35 = arith.constant 0 : index
    %38 = vector.load %arg6[%c0_32, %c2_33, %c0_34, %c0_35] : memref<1x3x112x112xf32, #tpu.memory_space<vmem>>, vector<1x1x112x112xf32>
    %39 = vector.shape_cast %38 : vector<1x1x112x112xf32> to vector<112x112xf32>
    %40 = vector.shape_cast %37 : vector<112x112xf32> to vector<1x1x112x112xf32>
    tpu.vector_store %arg6[%c0_32, %c2_33, %c0_34, %c0_35], %40 {strides = array<i32>} : memref<1x3x112x112xf32, #tpu.memory_space<vmem>>, vector<1x1x112x112xf32>,
    return
  }
  func.func @transform_0(%arg0: i32) -> i32 {
    %c0_i32 = arith.constant 0 : i32
    %c0_i32_0 = arith.constant 0 : i32
    return %c0_i32 : i32
  }
  func.func @transform_1(%arg0: i32) -> i32 {
    %c0_i32 = arith.constant 0 : i32
    %c0_i32_0 = arith.constant 0 : i32
    return %c0_i32 : i32
  }
  func.func @transform_2(%arg0: i32) -> (i32, i32, i32, i32) {
    %c0_i32 = arith.constant 0 : i32
    %c0_i32_0 = arith.constant 0 : i32
    %c0_i32_1 = arith.constant 0 : i32
    %c0_i32_2 = arith.constant 0 : i32
    return %arg0, %c0_i32, %c0_i32_0, %c0_i32_1 : i32, i32, i32, i32
  }
  func.func @transform_3(%arg0: i32) -> (i32, i32) {
    %c0_i32 = arith.constant 0 : i32
    %c0_i32_0 = arith.constant 0 : i32
    %c0_i32_1 = arith.constant 0 : i32
    return %c0_i32, %c0_i32_0 : i32, i32
  }
  func.func @transform_4(%arg0: i32) -> (i32, i32) {
    %c0_i32 = arith.constant 0 : i32
    %c0_i32_0 = arith.constant 0 : i32
    %c0_i32_1 = arith.constant 0 : i32
    return %c0_i32, %c0_i32_0 : i32, i32
  }
  func.func @transform_5(%arg0: i32) -> (i32, i32, i32, i32) {
    %c0_i32 = arith.constant 0 : i32
    %c0_i32_0 = arith.constant 0 : i32
    %c0_i32_1 = arith.constant 0 : i32
    %c0_i32_2 = arith.constant 0 : i32
    return %arg0, %c0_i32, %c0_i32_0, %c0_i32_1 : i32, i32, i32, i32
  }
}

module attributes {stable_mosaic.version = 11 : i64} {
  func.func @_feature_kernel(%arg0: i32, %arg1: i32, %arg2: memref<4x12544xbf16, #tpu.memory_space<vmem>>, %arg3: memref<12544x256xbf16, #tpu.memory_space<vmem>>, %arg4: memref<4x256xf32, #tpu.memory_space<vmem>>, %arg5: memref<4x256xf32, #tpu.memory_space<vmem>>) attributes {dimension_semantics = [#tpu.dimension_semantics<parallel>, #tpu.dimension_semantics<arbitrary>], iteration_bounds = array<i64: 2, 3>, scalar_prefetch = 0 : i64, scratch_operands = 1 : i64, tpu.core_type = #tpu.core_type<tc>, window_params = [{transform_indices = @transform_0, window_bounds = array<i64: 4, 12544>}, {transform_indices = @transform_1, window_bounds = array<i64: 12544, 256>}, {transform_indices = @transform_2, window_bounds = array<i64: 4, 256>}]} {
    %c0_i32 = arith.constant 0 : i32
    %0 = arith.cmpi eq, %arg1, %c0_i32 : i32
    %1 = arith.extui %0 : i1 to i32
    %c0_i32_0 = arith.constant 0 : i32
    %2 = arith.cmpi ne, %1, %c0_i32_0 : i32
    scf.if %2 {
      %cst_9 = arith.constant 0.000000e+00 : f32
      %12 = vector.broadcast %cst_9 : f32 to vector<4x256xf32>
      %c0_10 = arith.constant 0 : index
      %c0_11 = arith.constant 0 : index
      %13 = vector.load %arg5[%c0_10, %c0_11] : memref<4x256xf32, #tpu.memory_space<vmem>>, vector<4x256xf32>
      tpu.vector_store %arg5[%c0_10, %c0_11], %12 {strides = array<i32>} : memref<4x256xf32, #tpu.memory_space<vmem>>, vector<4x256xf32>,
    } else {
    }
    %c0 = arith.constant 0 : index
    %c0_1 = arith.constant 0 : index
    %3 = vector.load %arg5[%c0, %c0_1] : memref<4x256xf32, #tpu.memory_space<vmem>>, vector<4x256xf32>
    %c0_2 = arith.constant 0 : index
    %c0_3 = arith.constant 0 : index
    %4 = vector.load %arg2[%c0_2, %c0_3] : memref<4x12544xbf16, #tpu.memory_space<vmem>>, vector<4x12544xbf16>
    %c0_4 = arith.constant 0 : index
    %c0_5 = arith.constant 0 : index
    %5 = vector.load %arg3[%c0_4, %c0_5] : memref<12544x256xbf16, #tpu.memory_space<vmem>>, vector<12544x256xbf16>
    %cst = arith.constant dense<0.000000e+00> : vector<4x256xf32>
    %6 = tpu.matmul %4, %5, %cst {dimension_numbers = #tpu.dot_dimension_numbers<[1], [0], [0], [1], [0, 0, 1, 1], [], []>} : vector<4x12544xbf16>, vector<12544x256xbf16>, vector<4x256xf32> -> vector<4x256xf32>
    %7 = arith.addf %3, %6 : vector<4x256xf32>
    %c0_6 = arith.constant 0 : index
    %c0_7 = arith.constant 0 : index
    %8 = vector.load %arg5[%c0_6, %c0_7] : memref<4x256xf32, #tpu.memory_space<vmem>>, vector<4x256xf32>
    tpu.vector_store %arg5[%c0_6, %c0_7], %7 {strides = array<i32>} : memref<4x256xf32, #tpu.memory_space<vmem>>, vector<4x256xf32>,
    %c2_i32 = arith.constant 2 : i32
    %9 = arith.cmpi eq, %arg1, %c2_i32 : i32
    %10 = arith.extui %9 : i1 to i32
    %c0_i32_8 = arith.constant 0 : i32
    %11 = arith.cmpi ne, %10, %c0_i32_8 : i32
    scf.if %11 {
      %c0_9 = arith.constant 0 : index
      %c0_10 = arith.constant 0 : index
      %12 = vector.load %arg5[%c0_9, %c0_10] : memref<4x256xf32, #tpu.memory_space<vmem>>, vector<4x256xf32>
      %c0_11 = arith.constant 0 : index
      %c0_12 = arith.constant 0 : index
      %13 = vector.load %arg4[%c0_11, %c0_12] : memref<4x256xf32, #tpu.memory_space<vmem>>, vector<4x256xf32>
      tpu.vector_store %arg4[%c0_11, %c0_12], %12 {strides = array<i32>} : memref<4x256xf32, #tpu.memory_space<vmem>>, vector<4x256xf32>,
    } else {
    }
    return
  }
  func.func @transform_0(%arg0: i32, %arg1: i32) -> (i32, i32) {
    %c0_i32 = arith.constant 0 : i32
    %c0_i32_0 = arith.constant 0 : i32
    return %c0_i32, %arg1 : i32, i32
  }
  func.func @transform_1(%arg0: i32, %arg1: i32) -> (i32, i32) {
    %c0_i32 = arith.constant 0 : i32
    return %arg1, %arg0 : i32, i32
  }
  func.func @transform_2(%arg0: i32, %arg1: i32) -> (i32, i32) {
    %c0_i32 = arith.constant 0 : i32
    %c0_i32_0 = arith.constant 0 : i32
    return %c0_i32, %arg0 : i32, i32
  }
}

module attributes {stable_mosaic.version = 11 : i64} {
  func.func @_norm_loss_kernel(%arg0: memref<4x512xf32, #tpu.memory_space<vmem>>, %arg1: memref<1x1xf32, #tpu.memory_space<vmem>>, %arg2: memref<1x1xf32, #tpu.memory_space<vmem>>) attributes {dimension_semantics = [], scalar_prefetch = 0 : i64, scratch_operands = 0 : i64, tpu.core_type = #tpu.core_type<tc>} {
    %c0 = arith.constant 0 : index
    %c0_0 = arith.constant 0 : index
    %0 = vector.load %arg0[%c0, %c0_0] : memref<4x512xf32, #tpu.memory_space<vmem>>, vector<4x512xf32>
    %1 = arith.mulf %0, %0 : vector<4x512xf32>
    %cst = arith.constant dense<0.000000e+00> : vector<4xf32>
    %2 = vector.multi_reduction <add>, %1, %cst [1] : vector<4x512xf32> to vector<4xf32>
    %3 = vector.shape_cast %2 : vector<4xf32> to vector<4x1xf32>
    %cst_1 = arith.constant 9.99999996E-13 : f32
    %4 = vector.broadcast %cst_1 : f32 to vector<4x1xf32>
    %5 = arith.addf %3, %4 : vector<4x1xf32>
    %6 = math.rsqrt %5 : vector<4x1xf32>
    %7 = vector.broadcast %6 : vector<4x1xf32> to vector<4x512xf32>
    %8 = arith.mulf %0, %7 : vector<4x512xf32>
    %9 = vector.extract_strided_slice %8 {offsets = [0, 0], sizes = [2, 512], strides = [1, 1]} : vector<4x512xf32> to vector<2x512xf32>
    %10 = vector.extract_strided_slice %8 {offsets = [2, 0], sizes = [2, 512], strides = [1, 1]} : vector<4x512xf32> to vector<2x512xf32>
    %11 = arith.mulf %9, %10 : vector<2x512xf32>
    %cst_2 = arith.constant dense<0.000000e+00> : vector<2xf32>
    %12 = vector.multi_reduction <add>, %11, %cst_2 [1] : vector<2x512xf32> to vector<2xf32>
    %13 = vector.shape_cast %12 : vector<2xf32> to vector<2x1xf32>
    %14 = arith.mulf %10, %10 : vector<2x512xf32>
    %cst_3 = arith.constant dense<0.000000e+00> : vector<2xf32>
    %15 = vector.multi_reduction <add>, %14, %cst_3 [1] : vector<2x512xf32> to vector<2xf32>
    %16 = vector.shape_cast %15 : vector<2xf32> to vector<2x1xf32>
    %cst_4 = arith.constant 1.000000e+00 : f32
    %17 = vector.broadcast %cst_4 : f32 to vector<2x1xf32>
    %18 = arith.subf %17, %13 : vector<2x1xf32>
    %cst_5 = arith.constant dense<0.000000e+00> : vector<1xf32>
    %19 = vector.multi_reduction <add>, %18, %cst_5 [0] : vector<2x1xf32> to vector<1xf32>
    %20 = vector.shape_cast %19 : vector<1xf32> to vector<1x1xf32>
    %cst_6 = arith.constant 2.000000e+00 : f32
    %21 = vector.broadcast %cst_6 : f32 to vector<1x1xf32>
    %22 = arith.divf %20, %21 : vector<1x1xf32>
    %c0_7 = arith.constant 0 : index
    %c0_8 = arith.constant 0 : index
    %23 = vector.load %arg1[%c0_7, %c0_8] : memref<1x1xf32, #tpu.memory_space<vmem>>, vector<1x1xf32>
    tpu.vector_store %arg1[%c0_7, %c0_8], %22 {strides = array<i32>} : memref<1x1xf32, #tpu.memory_space<vmem>>, vector<1x1xf32>,
    %24 = arith.subf %13, %16 : vector<2x1xf32>
    %cst_9 = arith.constant dense<0.000000e+00> : vector<1xf32>
    %25 = vector.multi_reduction <add>, %24, %cst_9 [0] : vector<2x1xf32> to vector<1xf32>
    %26 = vector.shape_cast %25 : vector<1xf32> to vector<1x1xf32>
    %cst_10 = arith.constant 2.000000e+00 : f32
    %27 = vector.broadcast %cst_10 : f32 to vector<1x1xf32>
    %28 = arith.divf %26, %27 : vector<1x1xf32>
    %c0_11 = arith.constant 0 : index
    %c0_12 = arith.constant 0 : index
    %29 = vector.load %arg2[%c0_11, %c0_12] : memref<1x1xf32, #tpu.memory_space<vmem>>, vector<1x1xf32>
    tpu.vector_store %arg2[%c0_11, %c0_12], %28 {strides = array<i32>} : memref<1x1xf32, #tpu.memory_space<vmem>>, vector<1x1xf32>,
    return
  }
}

</mosaic_0001>

<bundles_post_ra>
// kernel: id_loss_forward.3
= control target key start
LH: loop header
LB: loop body
LE: loop exit
PB: predicated region body
PF: predicated region fallthrough
CT: control target
= control target key end

     0   :  { %10 = vsyncpa [#allocation3], 0  ;;  %s3239_s0 = inlined_call_operand.vmem [shape: f32[3], index: 0, kind: input, shape index: {}]   ;;  %s3240_s1 = inlined_call_operand.vmem [shape: f32[3], index: 1, kind: input, shape index: {}]   ;;  %s3241_s2 = inlined_call_operand.vmem [shape: f32[4,3,256,256], index: 2, kind: input, shape index: {}]   ;;  %s3242_s3 = inlined_call_operand.vmem [shape: f32[112,256], index: 3, kind: input, shape index: {}]   ;;  %s3243_s4 = inlined_call_operand.vmem [shape: f32[256,112], index: 4, kind: input, shape index: {}]   ;;  %s3244_s5 = inlined_call_operand.vmem [shape: f32[4,3,112,112], index: 5, kind: output, shape index: {}]  }
   0x1   :  { %11 = vsyncpa [#allocation5], 0  ;;  %s2385_s18 = smov 0  }
   0x2 LB: > { %s2391_s19 = sadd.s32 4294967295, %s2351_s18   ;;  %p1578_p0 = scmp.ge.s32.totalorder %s2351_s18, 1  ;;  %s2351_s18 = sphi %s2385_s18, %s17_s18  }
   0x3   : > { %p158_p1 = scmp.lt.s32.totalorder %s2351_s18, 5  ;;  %s171_s22 = sshll.u32 %s3239_s0, 4  ;;  %s172_s22 = int_to_ptr.vmem [resolvable:$true] %s171_s22 }
   0x4   : > { %p3245_p3 = scmp.eq.s32.totalorder %s2391_s19, 0  ;;  %s182_s26 = sshll.u32 %s3240_s1, 4  ;;  %s183_s26 = int_to_ptr.vmem [resolvable:$true] %s182_s26 }
   0x5   : > { %p2398_p2 = pnand %p1578_p0, %p158_p1  ;;  %s2307_s28 = scalar_lea.vmem %s172_s22, 16 }
   0x6   : > { %p2308_p6 = scmp.ne.s32.totalorder %s172_s22, %s2307_s28  ;;  %p2315_p10 = scmp.lt.s32.totalorder %s172_s22, %s172_s22 }
   0x7   : > { %s3247_s23 = scalar_select %p2398_p2, 1, 0 }
   0x8   : > { %p2285_p4 = pneg %p2398_p2  ;;  %p2316_p11 = scmp.lt.s32.totalorder %s2307_s28, %s2307_s28 }
   0xa   : > { %p2410_p5 = pnand %p3245_p3, %p2285_p4  ;;  %p2317_p12 = por %p2316_p11, %p2315_p10 }
   0xc   : > { %p2309_p7 = pneg %p2410_p5 }
   0xe   : > { %p2310_p8 = pnand %p2309_p7, %p2308_p6 }
  0x10   : > { %p2311_p9 = pneg %p2310_p8 }
  0x12   : > { %p2318_p13 = pnand %p2317_p12, %p2311_p9 }
  0x14   : > { %2321 = shalt.err (!%p2318_p13)
}
  0x15   : > { %s2353_s29 = smov [#allocation2]   ;;  %s2322_s30 = scalar_lea.vmem %s183_s26, 16 }
  0x16   : > { %2288 = dma.vmem_to_smem (!%p2410_p5), %s172_s22, 16, %s2353_s29, [#allocation3]  }
  0x17   : > { %p2323_p0 = scmp.ne.s32.totalorder %s183_s26, %s2322_s30  ;;  %p2330_p3 = scmp.lt.s32.totalorder %s183_s26, %s183_s26 }
  0x18   : > { %p2331_p2 = scmp.lt.s32.totalorder %s2322_s30, %s2322_s30 }
  0x19   : > { %p2325_p1 = pnand %p2323_p0, %p2309_p7 }
  0x1a   : > { %p2332_p6 = por %p2331_p2, %p2330_p3 }
  0x1b   : > { %p2326_p4 = pneg %p2325_p1 }
  0x1d   : > { %p2333_p8 = pnand %p2332_p6, %p2326_p4 }
  0x1f   : > { %2336 = shalt.err (!%p2333_p8)
}
  0x20   : > { %s2354_s6 = smov [#allocation4]   ;;  %p3249_p9 = scmp.ne.s32.totalorder %s3247_s23, 0 }
  0x21   : > { %2291 = dma.vmem_to_smem (!%p2410_p5), %s183_s26, 16, %s2354_s6, [#allocation5]  }
  0x22   : > { %209 = sbr.rel (%p3249_p9) target bundleno = 949 (0x3b5), region = 40  ;;  %p3250_p10 = scmp.eq.s32.totalorder (!%p3249_p9), %s2391_s19, 0 }
  0x29   : > { %2342 = dma.done.wait (%p3250_p10), [#allocation3], 16   ;;  %p3251_p11 = pmov %p3250_p10 }
  0x2a   : > { %p3252_p7 = pmov %p3250_p10 }
  0x2b   : > { %2344 = vsyncadd (%p3251_p11), [#allocation3], 4294967280 }
  0x2c   : > { %2346 = dma.done.wait (%p3252_p7), [#allocation5], 16   ;;  %p3253_p2 = pmov %p3252_p7 }
  0x2e   : > { %2348 = vsyncadd (%p3253_p2), [#allocation5], 4294967280 }
  0x2f   : > { %219 = sfence }
  0x30   : > { %p242_p3 = scmp.lt.s32.totalorder %s2391_s19, 3  ;;  %v2434_v0 = vld [vmem:[%s3242_s3 + $0x8] sm:$0xff]  ;;  %v296_v46 = vld [vmem:[%s3243_s4 + $0x80] sm:$0xff]  ;;  %v298_v56 = vld [vmem:[%s3243_s4 + $0x90] sm:$0xff]  ;;  %s676_s25 = sld [smem:[#allocation4]]  ;;  %vm692_vm0 = vcmask 916480  }
  0x31   : > { %440 = vmatprep.mubr.f32.mxu0 %v2434_v0  ;;  %v297_v50 = vld [vmem:[%s3243_s4 + $0x88] sm:$0xff]  ;;  %v280_v51 = vld [vmem:[%s3243_s4] sm:$0xff]  ;;  %v299_v57 = vld [vmem:[%s3243_s4 + $0x98] sm:$0xff]  ;;  %s1652_s30 = sld [smem:[#allocation4 + $0x1]]  ;;  %s1731_s6 = sld [smem:[#allocation2 + $0x2]] }
  0x32   : > { %s3255_s19 = smov (!%p242_p3, %s2391_s19), 3  ;;  %v281_v52 = vld [vmem:[%s3243_s4 + $0x8] sm:$0xff]  ;;  %v2492_v54 = vpack.c.bf16 %v297_v50, %v296_v46  ;;  %v282_v58 = vld [vmem:[%s3243_s4 + $0x10] sm:$0xff]  ;;  %v2505_v59 = vpack.c.bf16 %v299_v57, %v298_v56  ;;  %v283_v60 = vld [vmem:[%s3243_s4 + $0x18] sm:$0xff]  ;;  %s1732_s7 = sld [smem:[#allocation4 + $0x2]] }
  0x33   : > { %s2275_s9 = smul.u32 1536, %s3255_s19  ;;  %v2494_v55 = vpack.c.bf16 %v281_v52, %v280_v51  ;;  %v300_v61 = vld [vmem:[%s3243_s4 + $0xa0] sm:$0xff]  ;;  %v301_v62 = vld [vmem:[%s3243_s4 + $0xa8] sm:$0xff] }
  0x34   : > { %2036 = vmatprep.subr.bf16.mxu1 %v2492_v54  ;;  %v308_v46 = vld [vmem:[%s3243_s4 + $0xe0] sm:$0xff]  ;;  %s2276_s26 = smul.u32 336, %s3255_s19  ;;  %s1651_s19 = sld [smem:[#allocation2 + $0x1]] }
  0x35   : > { %s2444_s12 = scalar_lea.vmem %s3241_s2, %s2275_s9  ;;  %2038 = vmatpush3.bf16.msra.mxu1 %v2494_v55  ;;  %v292_v57 = vld [vmem:[%s3243_s4 + $0x60] sm:$0xff] }
  0x36   : > { %v313_v1 = vld [vmem:[%s2444_s12 + $0x8] sm:$0xff]  ;;  %v315_v2 = vld [vmem:[%s2444_s12 + $0x18] sm:$0xff]  ;;  %v312_v3 = vld [vmem:[%s2444_s12] sm:$0xff]  ;;  %2040 = vmatprep.subr.bf16.mxu1 %v2505_v59  ;;  %s3044_s29 = scalar_lea.vmem %s3244_s5, %s2276_s26 }
  0x37   : > { %v1971_v4 = vpack.c.bf16 %v315_v2, %v313_v1  ;;  %v314_v5 = vld [vmem:[%s2444_s12 + $0x10] sm:$0xff]  ;;  %v317_v6 = vld [vmem:[%s2444_s12 + $0x28] sm:$0xff]  ;;  %v319_v7 = vld [vmem:[%s2444_s12 + $0x38] sm:$0xff] }
  0x38   : > { %v1973_v8 = vpack.c.bf16 %v314_v5, %v312_v3  ;;  %v1975_v9 = vpack.c.bf16 %v319_v7, %v317_v6  ;;  %v316_v10 = vld [vmem:[%s2444_s12 + $0x20] sm:$0xff]  ;;  %v318_v11 = vld [vmem:[%s2444_s12 + $0x30] sm:$0xff]  ;;  %v321_v12 = vld [vmem:[%s2444_s12 + $0x48] sm:$0xff]  ;;  %v2520_v3 = vpack.c.bf16 %v283_v60, %v282_v58  ;;  %v2524_v6 = vpack.c.bf16 %v301_v62, %v300_v61 }
  0x39   : > { %1972 = vmatprep.subr.bf16.mxu0 %v1971_v4  ;;  %v323_v13 = vld [vmem:[%s2444_s12 + $0x58] sm:$0xff]  ;;  %v1977_v14 = vpack.c.bf16 %v318_v11, %v316_v10  ;;  %v320_v16 = vld [vmem:[%s2444_s12 + $0x40] sm:$0xff]  ;;  %v322_v17 = vld [vmem:[%s2444_s12 + $0x50] sm:$0xff] }
  0x3a   : > { %1974 = vmatpush1.bf16.msra.mxu0 %v1973_v8  ;;  %v1979_v15 = vpack.c.bf16 %v323_v13, %v321_v12  ;;  %v325_v18 = vld [vmem:[%s2444_s12 + $0x68] sm:$0xff]  ;;  %v327_v19 = vld [vmem:[%s2444_s12 + $0x78] sm:$0xff]  ;;  %v1981_v20 = vpack.c.bf16 %v322_v17, %v320_v16  ;;  %v324_v22 = vld [vmem:[%s2444_s12 + $0x60] sm:$0xff]  ;;  %2042 = vmatpush3.bf16.msra.mxu1 %v2520_v3 }
  0x3b   : > { %1976 = vmatprep.subr.bf16.mxu0 %v1975_v9  ;;  %v1983_v21 = vpack.c.bf16 %v327_v19, %v325_v18  ;;  %v326_v23 = vld [vmem:[%s2444_s12 + $0x70] sm:$0xff]  ;;  %v329_v24 = vld [vmem:[%s2444_s12 + $0x88] sm:$0xff]  ;;  %v331_v25 = vld [vmem:[%s2444_s12 + $0x98] sm:$0xff]  ;;  %2044 = vmatprep.subr.bf16.mxu1 %v2524_v6 }
  0x3c   : > { %v1985_v26 = vpack.c.bf16 %v326_v23, %v324_v22  ;;  %v1987_v27 = vpack.c.bf16 %v331_v25, %v329_v24  ;;  %v328_v28 = vld [vmem:[%s2444_s12 + $0x80] sm:$0xff]  ;;  %v330_v29 = vld [vmem:[%s2444_s12 + $0x90] sm:$0xff]  ;;  %v333_v30 = vld [vmem:[%s2444_s12 + $0xa8] sm:$0xff] }
  0x3d   : > { %v335_v31 = vld [vmem:[%s2444_s12 + $0xb8] sm:$0xff]  ;;  %v1989_v32 = vpack.c.bf16 %v330_v29, %v328_v28  ;;  %v332_v34 = vld [vmem:[%s2444_s12 + $0xa0] sm:$0xff]  ;;  %v334_v35 = vld [vmem:[%s2444_s12 + $0xb0] sm:$0xff] }
  0x3e   : > { %1978 = vmatpush1.bf16.msra.mxu0 %v1977_v14  ;;  %v1991_v33 = vpack.c.bf16 %v335_v31, %v333_v30  ;;  %v337_v36 = vld [vmem:[%s2444_s12 + $0xc8] sm:$0xff]  ;;  %v339_v37 = vld [vmem:[%s2444_s12 + $0xd8] sm:$0xff]  ;;  %v1993_v38 = vpack.c.bf16 %v334_v35, %v332_v34  ;;  %v336_v40 = vld [vmem:[%s2444_s12 + $0xc0] sm:$0xff] }
  0x3f   : > { %1980 = vmatprep.subr.bf16.mxu0 %v1979_v15  ;;  %v1995_v39 = vpack.c.bf16 %v339_v37, %v337_v36  ;;  %v338_v41 = vld [vmem:[%s2444_s12 + $0xd0] sm:$0xff]  ;;  %v341_v42 = vld [vmem:[%s2444_s12 + $0xe8] sm:$0xff]  ;;  %v343_v43 = vld [vmem:[%s2444_s12 + $0xf8] sm:$0xff] }
  0x40   : > { %v340_v44 = vld [vmem:[%s2444_s12 + $0xe0] sm:$0xff]  ;;  %v342_v45 = vld [vmem:[%s2444_s12 + $0xf0] sm:$0xff]  ;;  %v1997_v47 = vpack.c.bf16 %v338_v41, %v336_v40  ;;  %v345_v48 = vld [vmem:[%s2444_s12 + $0x108] sm:$0xff]  ;;  %v1999_v53 = vpack.c.bf16 %v343_v43, %v341_v42 }
  0x41   : > { %v347_v49 = vld [vmem:[%s2444_s12 + $0x118] sm:$0xff]  ;;  %v2001_v63 = vpack.c.bf16 %v342_v45, %v340_v44  ;;  %v344_v1 = vld [vmem:[%s2444_s12 + $0x100] sm:$0xff]  ;;  %v346_v2 = vld [vmem:[%s2444_s12 + $0x110] sm:$0xff] }
  0x42   : > { %1982 = vmatpush1.bf16.msra.mxu0 %v1981_v20  ;;  %v2003_v4 = vpack.c.bf16 %v347_v49, %v345_v48  ;;  %v349_v5 = vld [vmem:[%s2444_s12 + $0x128] sm:$0xff]  ;;  %v284_v7 = vld [vmem:[%s3243_s4 + $0x20] sm:$0xff]  ;;  %v351_v9 = vld [vmem:[%s2444_s12 + $0x138] sm:$0xff]  ;;  %v2005_v12 = vpack.c.bf16 %v346_v2, %v344_v1 }
  0x43   : > { %1984 = vmatprep.subr.bf16.mxu0 %v1983_v21  ;;  %v285_v8 = vld [vmem:[%s3243_s4 + $0x28] sm:$0xff]  ;;  %v302_v10 = vld [vmem:[%s3243_s4 + $0xb0] sm:$0xff]  ;;  %v303_v11 = vld [vmem:[%s3243_s4 + $0xb8] sm:$0xff]  ;;  %v2007_v16 = vpack.c.bf16 %v351_v9, %v349_v5 }
  0x44   : > { %v348_v13 = vld [vmem:[%s2444_s12 + $0x120] sm:$0xff]  ;;  %v350_v14 = vld [vmem:[%s2444_s12 + $0x130] sm:$0xff]  ;;  %v2542_v15 = vpack.c.bf16 %v285_v8, %v284_v7  ;;  %v353_v17 = vld [vmem:[%s2444_s12 + $0x148] sm:$0xff]  ;;  %v2546_v18 = vpack.c.bf16 %v303_v11, %v302_v10 }
  0x45   : > { %v286_v19 = vld [vmem:[%s3243_s4 + $0x30] sm:$0xff]  ;;  %v287_v20 = vld [vmem:[%s3243_s4 + $0x38] sm:$0xff]  ;;  %v304_v22 = vld [vmem:[%s3243_s4 + $0xc0] sm:$0xff]  ;;  %v2009_v24 = vpack.c.bf16 %v350_v14, %v348_v13 }
  0x46   : > { %1986 = vmatpush1.bf16.msra.mxu0 %v1985_v26  ;;  %v355_v21 = vld [vmem:[%s2444_s12 + $0x158] sm:$0xff]  ;;  %v305_v23 = vld [vmem:[%s3243_s4 + $0xc8] sm:$0xff]  ;;  %v352_v25 = vld [vmem:[%s2444_s12 + $0x140] sm:$0xff]  ;;  %2046 = vmatpush3.bf16.msra.mxu1 %v2542_v15 }
  0x47   : > { %1988 = vmatprep.subr.bf16.mxu0 %v1987_v27  ;;  %v354_v26 = vld [vmem:[%s2444_s12 + $0x150] sm:$0xff]  ;;  %v2564_v27 = vpack.c.bf16 %v287_v20, %v286_v19  ;;  %v2011_v28 = vpack.c.bf16 %v355_v21, %v353_v17  ;;  %v357_v29 = vld [vmem:[%s2444_s12 + $0x168] sm:$0xff]  ;;  %2048 = vmatprep.subr.bf16.mxu1 %v2546_v18  ;;  %v2568_v30 = vpack.c.bf16 %v305_v23, %v304_v22  ;;  %v288_v31 = vld [vmem:[%s3243_s4 + $0x40] sm:$0xff] }
  0x48   : > { %v306_v34 = vld [vmem:[%s3243_s4 + $0xd0] sm:$0xff]  ;;  %v307_v35 = vld [vmem:[%s3243_s4 + $0xd8] sm:$0xff]  ;;  %v2013_v36 = vpack.c.bf16 %v354_v26, %v352_v25  ;;  %v356_v37 = vld [vmem:[%s2444_s12 + $0x160] sm:$0xff] }
  0x49   : > { %v361_v41 = vld [vmem:[%s2444_s12 + $0x188] sm:$0xff]  ;;  %v2590_v42 = vpack.c.bf16 %v307_v35, %v306_v34  ;;  %v290_v43 = vld [vmem:[%s3243_s4 + $0x50] sm:$0xff]  ;;  %v291_v44 = vld [vmem:[%s3243_s4 + $0x58] sm:$0xff] }
  0x4a   : > { %1990 = vmatpush1.bf16.msra.mxu0 %v1989_v32  ;;  %v289_v32 = vld [vmem:[%s3243_s4 + $0x48] sm:$0xff]  ;;  %2050 = vmatpush3.bf16.msra.mxu1 %v2564_v27  ;;  %v363_v45 = vld [vmem:[%s2444_s12 + $0x198] sm:$0xff]  ;;  %v360_v49 = vld [vmem:[%s2444_s12 + $0x180] sm:$0xff]  ;;  %v2608_v51 = vpack.c.bf16 %v291_v44, %v290_v43 }
  0x4b   : > { %1992 = vmatprep.subr.bf16.mxu0 %v1991_v33  ;;  %v359_v33 = vld [vmem:[%s2444_s12 + $0x178] sm:$0xff]  ;;  %2052 = vmatprep.subr.bf16.mxu1 %v2568_v30  ;;  %v362_v50 = vld [vmem:[%s2444_s12 + $0x190] sm:$0xff]  ;;  %v2019_v52 = vpack.c.bf16 %v363_v45, %v361_v41  ;;  %v293_v58 = vld [vmem:[%s3243_s4 + $0x68] sm:$0xff] }
  0x4c   : > { %v2015_v40 = vpack.c.bf16 %v359_v33, %v357_v29  ;;  %v367_v60 = vld [vmem:[%s2444_s12 + $0x1b8] sm:$0xff]  ;;  %v310_v61 = vld [vmem:[%s3243_s4 + $0xf0] sm:$0xff]  ;;  %v364_v1 = vld [vmem:[%s2444_s12 + $0x1a0] sm:$0xff]  ;;  %v2629_v2 = vpack.c.bf16 %v293_v58, %v292_v57 }
  0x4d   : > { %v311_v62 = vld [vmem:[%s3243_s4 + $0xf8] sm:$0xff]  ;;  %v366_v5 = vld [vmem:[%s2444_s12 + $0x1b0] sm:$0xff]  ;;  %v369_v10 = vld [vmem:[%s2444_s12 + $0x1c8] sm:$0xff] }
  0x4e   : > { %1994 = vmatpush1.bf16.msra.mxu0 %v1993_v38  ;;  %v358_v38 = vld [vmem:[%s2444_s12 + $0x170] sm:$0xff]  ;;  %v2633_v7 = vpack.c.bf16 %v311_v62, %v310_v61  ;;  %v295_v9 = vld [vmem:[%s3243_s4 + $0x78] sm:$0xff]  ;;  %v373_v19 = vld [vmem:[%s2444_s12 + $0x1e8] sm:$0xff] }
  0x4f   : > { %1996 = vmatprep.subr.bf16.mxu0 %v1995_v39  ;;  %v2586_v39 = vpack.c.bf16 %v289_v32, %v288_v31  ;;  %v2017_v48 = vpack.c.bf16 %v358_v38, %v356_v37  ;;  %v294_v8 = vld [vmem:[%s3243_s4 + $0x70] sm:$0xff]  ;;  %v371_v11 = vld [vmem:[%s2444_s12 + $0x1d8] sm:$0xff]  ;;  %v372_v23 = vld [vmem:[%s2444_s12 + $0x1e0] sm:$0xff] }
  0x50   : > { %v2644_v13 = vpack.c.bf16 %v295_v9, %v294_v8  ;;  %v2027_v14 = vpack.c.bf16 %v371_v11, %v369_v10  ;;  %v370_v17 = vld [vmem:[%s2444_s12 + $0x1d0] sm:$0xff]  ;;  %v375_v20 = vld [vmem:[%s2444_s12 + $0x1f8] sm:$0xff]  ;;  %v2657_v26 = vld [vmem:[%s3242_s3] sm:$0xff] }
  0x51   : > { %2054 = vmatpush3.bf16.msra.mxu1 %v2586_v39  ;;  %v2031_v22 = vpack.c.bf16 %v375_v20, %v373_v19  ;;  %v2670_v29 = vld [vmem:[%s3242_s3 + $0x10] sm:$0xff]  ;;  %v2676_v31 = vld [vmem:[%s3242_s3 + $0x28] sm:$0xff]  ;;  %v2684_v32 = vld [vmem:[%s3242_s3 + $0x20] sm:$0xff] }
  0x52   : > { %1998 = vmatpush1.bf16.msra.mxu0 %v1997_v47  ;;  %v309_v47 = vld [vmem:[%s3243_s4 + $0xe8] sm:$0xff]  ;;  %2056 = vmatprep.subr.bf16.mxu1 %v2590_v42  ;;  %v2690_v33 = vld [vmem:[%s3242_s3 + $0x38] sm:$0xff]  ;;  %v2698_v34 = vld [vmem:[%s3242_s3 + $0x30] sm:$0xff] }
  0x53   : > { %2000 = vmatprep.subr.bf16.mxu0 %v1999_v53  ;;  %v365_v53 = vld [vmem:[%s2444_s12 + $0x1a8] sm:$0xff]  ;;  %v2612_v56 = vpack.c.bf16 %v309_v47, %v308_v46  ;;  %v2718_v37 = vld [vmem:[%s3242_s3 + $0x58] sm:$0xff]  ;;  %v2726_v38 = vld [vmem:[%s3242_s3 + $0x50] sm:$0xff] }
  0x54   : > { %v2704_v35 = vld [vmem:[%s3242_s3 + $0x48] sm:$0xff]  ;;  %v2740_v41 = vld [vmem:[%s3242_s3 + $0x60] sm:$0xff]  ;;  %v2746_v43 = vld [vmem:[%s3242_s3 + $0x78] sm:$0xff] }
  0x55   : > { %2058 = vmatpush3.bf16.msra.mxu1 %v2608_v51  ;;  %v2754_v44 = vld [vmem:[%s3242_s3 + $0x70] sm:$0xff]  ;;  %v2760_v45 = vld [vmem:[%s3242_s3 + $0x88] sm:$0xff]  ;;  %v2768_v46 = vld [vmem:[%s3242_s3 + $0x80] sm:$0xff] }
  0x56   : > { %2002 = vmatpush1.bf16.msra.mxu0 %v2001_v63  ;;  %v2021_v63 = vpack.c.bf16 %v362_v50, %v360_v49  ;;  %2060 = vmatprep.subr.bf16.mxu1 %v2612_v56  ;;  %v2774_v47 = vld [vmem:[%s3242_s3 + $0x98] sm:$0xff]  ;;  %v2787_v49 = vld [vmem:[%s3242_s3 + $0xa8] sm:$0xff]  ;;  %v2794_v50 = vld [vmem:[%s3242_s3 + $0xa0] sm:$0xff] }
  0x57   : > { %2004 = vmatprep.subr.bf16.mxu0 %v2003_v4  ;;  %v2023_v4 = vpack.c.bf16 %v367_v60, %v365_v53  ;;  %v2806_v53 = vld [vmem:[%s3242_s3 + $0xb0] sm:$0xff]  ;;  %v2811_v57 = vld [vmem:[%s3242_s3 + $0xc8] sm:$0xff]  ;;  %v2818_v58 = vld [vmem:[%s3242_s3 + $0xc0] sm:$0xff] }
  0x58   : > { %v2823_v60 = vld [vmem:[%s3242_s3 + $0xd8] sm:$0xff]  ;;  %v2830_v61 = vld [vmem:[%s3242_s3 + $0xd0] sm:$0xff]  ;;  %v1588_v62 = vld [vmem:[%s2444_s12 + $0x208] sm:$0xff] }
  0x59   : > { %2062 = vmatpush3.bf16.msra.mxu1 %v2629_v2  ;;  %v1592_v8 = vld [vmem:[%s2444_s12 + $0x228] sm:$0xff]  ;;  %v1594_v9 = vld [vmem:[%s2444_s12 + $0x238] sm:$0xff] }
  0x5a   : > { %2006 = vmatpush1.bf16.msra.mxu0 %v2005_v12  ;;  %v2025_v12 = vpack.c.bf16 %v366_v5, %v364_v1  ;;  %2064 = vmatprep.subr.bf16.mxu1 %v2633_v7  ;;  %v1589_v5 = vld [vmem:[%s2444_s12 + $0x210] sm:$0xff]  ;;  %v1596_v19 = vld [vmem:[%s2444_s12 + $0x248] sm:$0xff]  ;;  %v1598_v20 = vld [vmem:[%s2444_s12 + $0x258] sm:$0xff] }
  0x5b   : > { %2008 = vmatprep.subr.bf16.mxu0 %v2007_v16  ;;  %v368_v16 = vld [vmem:[%s2444_s12 + $0x1c0] sm:$0xff] }
  0x5c   : > { %v2029_v21 = vpack.c.bf16 %v370_v17, %v368_v16  ;;  %v1591_v16 = vld [vmem:[%s2444_s12 + $0x220] sm:$0xff]  ;;  %v1593_v17 = vld [vmem:[%s2444_s12 + $0x230] sm:$0xff] }
  0x5d   : > { %2066 = vmatpush3.bf16.msra.mxu1 %v2644_v13 }
  0x5e   : > { %2010 = vmatpush1.bf16.msra.mxu0 %v2009_v24  ;;  %v374_v24 = vld [vmem:[%s2444_s12 + $0x1f0] sm:$0xff] }
  0x5f   : > { %2012 = vmatprep.subr.bf16.mxu0 %v2011_v28  ;;  %v2033_v25 = vpack.c.bf16 %v374_v24, %v372_v23  ;;  %v2662_v28 = vld [vmem:[%s3242_s3 + $0x18] sm:$0xff]  ;;  %v2075_v24 = vpack.c.bf16 %v1598_v20, %v1596_v19 }
  0x62   : > { %2014 = vmatpush1.bf16.msra.mxu0 %v2013_v36  ;;  %v2712_v36 = vld [vmem:[%s3242_s3 + $0x40] sm:$0xff] }
  0x63   : > { %2016 = vmatprep.subr.bf16.mxu0 %v2015_v40  ;;  %v2732_v40 = vld [vmem:[%s3242_s3 + $0x68] sm:$0xff] }
  0x66   : > { %2018 = vmatpush1.bf16.msra.mxu0 %v2017_v48  ;;  %v2782_v48 = vld [vmem:[%s3242_s3 + $0x90] sm:$0xff] }
  0x67   : > { %2020 = vmatprep.subr.bf16.mxu0 %v2019_v52  ;;  %v2799_v52 = vld [vmem:[%s3242_s3 + $0xb8] sm:$0xff] }
  0x6a   : > { %2022 = vmatpush1.bf16.msra.mxu0 %v2021_v63  ;;  %v1590_v63 = vld [vmem:[%s2444_s12 + $0x218] sm:$0xff] }
  0x6b   : > { %2024 = vmatprep.subr.bf16.mxu0 %v2023_v4  ;;  %v2067_v1 = vpack.c.bf16 %v1590_v63, %v1588_v62  ;;  %v1587_v4 = vld [vmem:[%s2444_s12 + $0x200] sm:$0xff]  ;;  %v1597_v62 = vld [vmem:[%s2444_s12 + $0x250] sm:$0xff]  ;;  %v1600_v63 = vld [vmem:[%s2444_s12 + $0x268] sm:$0xff] }
  0x6c   : > { %v2069_v11 = vpack.c.bf16 %v1589_v5, %v1587_v4 }
  0x6d   : > { %2068 = vmatprep.subr.bf16.mxu1 %v2067_v1  ;;  %v1602_v1 = vld [vmem:[%s2444_s12 + $0x278] sm:$0xff] }
  0x6e   : > { %2026 = vmatpush1.bf16.msra.mxu0 %v2025_v12 }
  0x6f   : > { %2028 = vmatprep.subr.bf16.mxu0 %v2027_v14  ;;  %v2071_v14 = vpack.c.bf16 %v1594_v9, %v1592_v8  ;;  %v2079_v9 = vpack.c.bf16 %v1602_v1, %v1600_v63 }
  0x72   : > { %2030 = vmatpush1.bf16.msra.mxu0 %v2029_v21  ;;  %v2073_v21 = vpack.c.bf16 %v1593_v17, %v1591_v16 }
  0x73   : > { %2032 = vmatprep.subr.bf16.mxu0 %v2031_v22 }
  0x76   : > { %2034 = vmatpush1.bf16.msra.mxu0 %v2033_v25  ;;  %v1595_v25 = vld [vmem:[%s2444_s12 + $0x240] sm:$0xff] }
  0x77   : > { %2132 = vmatprep.subr.bf16.mxu0 %v2492_v54  ;;  %v2077_v4 = vpack.c.bf16 %v1597_v62, %v1595_v25 }
  0x79   : > { %441 = vmatmul.mubr.f32.vlgmr.msra.gmra.mrb[0].mxu0 %v2657_v26 }
  0x7a   : > { %446 = vmatprep.mubr.f32.mxu0 %v2662_v28  ;;  %2134 = vmatpush3.bf16.msra.mxu0 %v2494_v55 }
  0x7b   : > { %2136 = vmatprep.subr.bf16.mxu0 %v2505_v59 }
  0x7d   : > { %447 = vmatmul.mubr.f32.gmra.mrb[2].mxu0 %v2670_v29 }
  0x7e   : > { %452 = vmatprep.mubr.f32.mxu0 %v2676_v31  ;;  %2138 = vmatpush3.bf16.msra.mxu0 %v2520_v3 }
  0x7f   : > { %2140 = vmatprep.subr.bf16.mxu0 %v2524_v6 }
  0x81   : > { %453 = vmatmul.mubr.f32.gmra.mrb[4].mxu0 %v2684_v32 }
  0x82   : > { %458 = vmatprep.mubr.f32.mxu0 %v2690_v33  ;;  %2142 = vmatpush3.bf16.msra.mxu0 %v2542_v15 }
  0x83   : > { %2144 = vmatprep.subr.bf16.mxu0 %v2546_v18 }
  0x85   : > { %459 = vmatmul.mubr.f32.gmra.mrb[6].mxu0 %v2698_v34 }
  0x86   : > { %464 = vmatprep.mubr.f32.mxu0 %v2704_v35  ;;  %2146 = vmatpush3.bf16.msra.mxu0 %v2564_v27 }
  0x87   : > { %2148 = vmatprep.subr.bf16.mxu0 %v2568_v30 }
  0x89   : > { %465 = vmatmul.mubr.f32.gmra.mrb[8].mxu0 %v2712_v36 }
  0x8a   : > { %470 = vmatprep.mubr.f32.mxu0 %v2718_v37  ;;  %2150 = vmatpush3.bf16.msra.mxu0 %v2586_v39 }
  0x8b   : > { %2152 = vmatprep.subr.bf16.mxu0 %v2590_v42 }
  0x8d   : > { %471 = vmatmul.mubr.f32.gmra.mrb[10].mxu0 %v2726_v38 }
  0x8e   : > { %476 = vmatprep.mubr.f32.mxu0 %v2732_v40  ;;  %2154 = vmatpush3.bf16.msra.mxu0 %v2608_v51 }
  0x8f   : > { %2156 = vmatprep.subr.bf16.mxu0 %v2612_v56 }
  0x91   : > { %477 = vmatmul.mubr.f32.gmra.mrb[12].mxu0 %v2740_v41 }
  0x92   : > { %482 = vmatprep.mubr.f32.mxu0 %v2746_v43  ;;  %2158 = vmatpush3.bf16.msra.mxu0 %v2629_v2 }
  0x93   : > { %2160 = vmatprep.subr.bf16.mxu0 %v2633_v7 }
  0x95   : > { %483 = vmatmul.mubr.f32.gmra.mrb[14].mxu0 %v2754_v44 }
  0x96   : > { %488 = vmatprep.mubr.f32.mxu0 %v2760_v45  ;;  %2162 = vmatpush3.bf16.msra.mxu0 %v2644_v13 }
  0x97   : > { %2228 = vmatprep.subr.bf16.mxu0 %v2492_v54 }
  0x99   : > { %489 = vmatmul.mubr.f32.gmra.mrb[16].mxu0 %v2768_v46 }
  0x9a   : > { %494 = vmatprep.mubr.f32.mxu0 %v2774_v47 }
  0x9d   : > { %495 = vmatmul.mubr.f32.gmra.mrb[18].mxu0 %v2782_v48 }
  0x9e   : > { %500 = vmatprep.mubr.f32.mxu0 %v2787_v49 }
  0xa1   : > { %501 = vmatmul.mubr.f32.gmra.mrb[20].mxu0 %v2794_v50 }
  0xa2   : > { %506 = vmatprep.mubr.f32.mxu0 %v2799_v52 }
  0xa5   : > { %507 = vmatmul.mubr.f32.gmra.mrb[22].mxu0 %v2806_v53 }
  0xa6   : > { %512 = vmatprep.mubr.f32.mxu0 %v2811_v57 }
  0xa9   : > { %513 = vmatmul.mubr.f32.gmra.mrb[24].mxu0 %v2818_v58 }
  0xaa   : > { %518 = vmatprep.mubr.f32.mxu0 %v2823_v60 }
  0xad   : > { %519 = vmatmul.mubr.f32.gmra.mrb[26].mxu0 %v2830_v61 }
 0x14c   : > { %v442_v10 = vpop.f32.mrb[0].mxu0 }
 0x14d   : > { %v444_v12 = vpop.f32.mrb[1].mxu0 }
 0x14e   : > { %589 = vmatprep.mubr.f32.mxu1 %v444_v12  ;;  %v1604_v12 = vld [vmem:[%s2444_s12 + $0x288] sm:$0xff] }
 0x14f   : > { %590 = vmatmul.mubr.f32.vlgmr.msra.gmra.mrb[0].mxu1 %v442_v10  ;;  %v1599_v10 = vld [vmem:[%s2444_s12 + $0x260] sm:$0xff] }
 0x150   : > { %2070 = vmatpush1.bf16.msra.mxu1 %v2069_v11  ;;  %v448_v22 = vpop.f32.mrb[2].mxu0  ;;  %v1601_v11 = vld [vmem:[%s2444_s12 + $0x270] sm:$0xff] }
 0x151   : > { %2072 = vmatprep.subr.bf16.mxu1 %v2071_v14  ;;  %v450_v23 = vpop.f32.mrb[3].mxu0  ;;  %v1606_v14 = vld [vmem:[%s2444_s12 + $0x298] sm:$0xff]  ;;  %v2081_v16 = vpack.c.bf16 %v1601_v11, %v1599_v10 }
 0x152   : > { %594 = vmatprep.mubr.f32.mxu1 %v450_v23  ;;  %v2083_v20 = vpack.c.bf16 %v1606_v14, %v1604_v12  ;;  %v1608_v23 = vld [vmem:[%s2444_s12 + $0x2a8] sm:$0xff] }
 0x153   : > { %595 = vmatmul.mubr.f32.gmra.mrb[2].mxu1 %v448_v22  ;;  %v1605_v22 = vld [vmem:[%s2444_s12 + $0x290] sm:$0xff] }
 0x154   : > { %2074 = vmatpush1.bf16.msra.mxu1 %v2073_v21  ;;  %v454_v5 = vpop.f32.mrb[4].mxu0  ;;  %v1603_v21 = vld [vmem:[%s2444_s12 + $0x280] sm:$0xff] }
 0x155   : > { %2076 = vmatprep.subr.bf16.mxu1 %v2075_v24  ;;  %v456_v8 = vpop.f32.mrb[5].mxu0  ;;  %v1610_v24 = vld [vmem:[%s2444_s12 + $0x2b8] sm:$0xff]  ;;  %v2085_v25 = vpack.c.bf16 %v1605_v22, %v1603_v21 }
 0x156   : > { %599 = vmatprep.mubr.f32.mxu1 %v456_v8  ;;  %v2087_v1 = vpack.c.bf16 %v1610_v24, %v1608_v23  ;;  %v1612_v8 = vld [vmem:[%s2444_s12 + $0x2c8] sm:$0xff] }
 0x157   : > { %600 = vmatmul.mubr.f32.gmra.mrb[4].mxu1 %v454_v5  ;;  %v1609_v5 = vld [vmem:[%s2444_s12 + $0x2b0] sm:$0xff] }
 0x158   : > { %2078 = vmatpush1.bf16.msra.mxu1 %v2077_v4  ;;  %v460_v17 = vpop.f32.mrb[6].mxu0  ;;  %v1607_v4 = vld [vmem:[%s2444_s12 + $0x2a0] sm:$0xff] }
 0x159   : > { %2080 = vmatprep.subr.bf16.mxu1 %v2079_v9  ;;  %v462_v19 = vpop.f32.mrb[7].mxu0  ;;  %v1614_v9 = vld [vmem:[%s2444_s12 + $0x2d8] sm:$0xff]  ;;  %v2089_v10 = vpack.c.bf16 %v1609_v5, %v1607_v4 }
 0x15a   : > { %604 = vmatprep.mubr.f32.mxu1 %v462_v19  ;;  %v2091_v14 = vpack.c.bf16 %v1614_v9, %v1612_v8  ;;  %v1616_v19 = vld [vmem:[%s2444_s12 + $0x2e8] sm:$0xff] }
 0x15b   : > { %605 = vmatmul.mubr.f32.gmra.mrb[6].mxu1 %v460_v17  ;;  %v1613_v17 = vld [vmem:[%s2444_s12 + $0x2d0] sm:$0xff] }
 0x15c   : > { %2082 = vmatpush1.bf16.msra.mxu1 %v2081_v16  ;;  %v466_v62 = vpop.f32.mrb[8].mxu0  ;;  %v1611_v16 = vld [vmem:[%s2444_s12 + $0x2c0] sm:$0xff] }
 0x15d   : > { %2084 = vmatprep.subr.bf16.mxu1 %v2083_v20  ;;  %v468_v63 = vpop.f32.mrb[9].mxu0  ;;  %v1618_v20 = vld [vmem:[%s2444_s12 + $0x2f8] sm:$0xff]  ;;  %v2093_v21 = vpack.c.bf16 %v1613_v17, %v1611_v16 }
 0x15e   : > { %609 = vmatprep.mubr.f32.mxu1 %v468_v63  ;;  %v2095_v24 = vpack.c.bf16 %v1618_v20, %v1616_v19  ;;  %v1620_v63 = vld [vmem:[%s2444_s12 + $0x308] sm:$0xff] }
 0x15f   : > { %610 = vmatmul.mubr.f32.gmra.mrb[8].mxu1 %v466_v62  ;;  %v1617_v62 = vld [vmem:[%s2444_s12 + $0x2f0] sm:$0xff] }
 0x160   : > { %2086 = vmatpush1.bf16.msra.mxu1 %v2085_v25  ;;  %v472_v11 = vpop.f32.mrb[10].mxu0  ;;  %v1615_v25 = vld [vmem:[%s2444_s12 + $0x2e0] sm:$0xff] }
 0x161   : > { %2088 = vmatprep.subr.bf16.mxu1 %v2087_v1  ;;  %v474_v12 = vpop.f32.mrb[11].mxu0  ;;  %v1622_v1 = vld [vmem:[%s2444_s12 + $0x318] sm:$0xff]  ;;  %v2097_v4 = vpack.c.bf16 %v1617_v62, %v1615_v25 }
 0x162   : > { %614 = vmatprep.mubr.f32.mxu1 %v474_v12  ;;  %v2099_v9 = vpack.c.bf16 %v1622_v1, %v1620_v63  ;;  %v1624_v12 = vld [vmem:[%s2444_s12 + $0x328] sm:$0xff] }
 0x163   : > { %615 = vmatmul.mubr.f32.gmra.mrb[10].mxu1 %v472_v11  ;;  %v1621_v11 = vld [vmem:[%s2444_s12 + $0x310] sm:$0xff] }
 0x164   : > { %2090 = vmatpush1.bf16.msra.mxu1 %v2089_v10  ;;  %v478_v22 = vpop.f32.mrb[12].mxu0  ;;  %v1619_v10 = vld [vmem:[%s2444_s12 + $0x300] sm:$0xff] }
 0x165   : > { %2092 = vmatprep.subr.bf16.mxu1 %v2091_v14  ;;  %v480_v23 = vpop.f32.mrb[13].mxu0  ;;  %v1626_v14 = vld [vmem:[%s2444_s12 + $0x338] sm:$0xff]  ;;  %v2101_v16 = vpack.c.bf16 %v1621_v11, %v1619_v10 }
 0x166   : > { %619 = vmatprep.mubr.f32.mxu1 %v480_v23  ;;  %v2103_v20 = vpack.c.bf16 %v1626_v14, %v1624_v12  ;;  %v1628_v23 = vld [vmem:[%s2444_s12 + $0x348] sm:$0xff] }
 0x167   : > { %620 = vmatmul.mubr.f32.gmra.mrb[12].mxu1 %v478_v22  ;;  %v1625_v22 = vld [vmem:[%s2444_s12 + $0x330] sm:$0xff] }
 0x168   : > { %2094 = vmatpush1.bf16.msra.mxu1 %v2093_v21  ;;  %v484_v5 = vpop.f32.mrb[14].mxu0  ;;  %v1623_v21 = vld [vmem:[%s2444_s12 + $0x320] sm:$0xff] }
 0x169   : > { %2096 = vmatprep.subr.bf16.mxu1 %v2095_v24  ;;  %v486_v8 = vpop.f32.mrb[15].mxu0  ;;  %v1630_v24 = vld [vmem:[%s2444_s12 + $0x358] sm:$0xff]  ;;  %v2105_v25 = vpack.c.bf16 %v1625_v22, %v1623_v21 }
 0x16a   : > { %624 = vmatprep.mubr.f32.mxu1 %v486_v8  ;;  %v2107_v1 = vpack.c.bf16 %v1630_v24, %v1628_v23  ;;  %v1632_v8 = vld [vmem:[%s2444_s12 + $0x368] sm:$0xff] }
 0x16b   : > { %625 = vmatmul.mubr.f32.gmra.mrb[14].mxu1 %v484_v5  ;;  %v1629_v5 = vld [vmem:[%s2444_s12 + $0x350] sm:$0xff] }
 0x16c   : > { %2098 = vmatpush1.bf16.msra.mxu1 %v2097_v4  ;;  %v490_v17 = vpop.f32.mrb[16].mxu0  ;;  %v1627_v4 = vld [vmem:[%s2444_s12 + $0x340] sm:$0xff] }
 0x16d   : > { %2100 = vmatprep.subr.bf16.mxu1 %v2099_v9  ;;  %v492_v19 = vpop.f32.mrb[17].mxu0  ;;  %v1634_v9 = vld [vmem:[%s2444_s12 + $0x378] sm:$0xff]  ;;  %v2109_v10 = vpack.c.bf16 %v1629_v5, %v1627_v4 }
 0x16e   : > { %629 = vmatprep.mubr.f32.mxu1 %v492_v19  ;;  %v2111_v14 = vpack.c.bf16 %v1634_v9, %v1632_v8  ;;  %v1636_v19 = vld [vmem:[%s2444_s12 + $0x388] sm:$0xff] }
 0x16f   : > { %630 = vmatmul.mubr.f32.gmra.mrb[16].mxu1 %v490_v17  ;;  %v1633_v17 = vld [vmem:[%s2444_s12 + $0x370] sm:$0xff] }
 0x170   : > { %2102 = vmatpush1.bf16.msra.mxu1 %v2101_v16  ;;  %v496_v62 = vpop.f32.mrb[18].mxu0  ;;  %v1631_v16 = vld [vmem:[%s2444_s12 + $0x360] sm:$0xff] }
 0x171   : > { %2104 = vmatprep.subr.bf16.mxu1 %v2103_v20  ;;  %v498_v63 = vpop.f32.mrb[19].mxu0  ;;  %v1638_v20 = vld [vmem:[%s2444_s12 + $0x398] sm:$0xff]  ;;  %v2113_v21 = vpack.c.bf16 %v1633_v17, %v1631_v16 }
 0x172   : > { %634 = vmatprep.mubr.f32.mxu1 %v498_v63  ;;  %v2115_v24 = vpack.c.bf16 %v1638_v20, %v1636_v19  ;;  %v1640_v63 = vld [vmem:[%s2444_s12 + $0x3a8] sm:$0xff] }
 0x173   : > { %635 = vmatmul.mubr.f32.gmra.mrb[18].mxu1 %v496_v62  ;;  %v1637_v62 = vld [vmem:[%s2444_s12 + $0x390] sm:$0xff] }
 0x174   : > { %2106 = vmatpush1.bf16.msra.mxu1 %v2105_v25  ;;  %v502_v11 = vpop.f32.mrb[20].mxu0  ;;  %v1635_v25 = vld [vmem:[%s2444_s12 + $0x380] sm:$0xff] }
 0x175   : > { %2108 = vmatprep.subr.bf16.mxu1 %v2107_v1  ;;  %v504_v12 = vpop.f32.mrb[21].mxu0  ;;  %v1642_v1 = vld [vmem:[%s2444_s12 + $0x3b8] sm:$0xff]  ;;  %v2117_v4 = vpack.c.bf16 %v1637_v62, %v1635_v25 }
 0x176   : > { %639 = vmatprep.mubr.f32.mxu1 %v504_v12  ;;  %v2119_v9 = vpack.c.bf16 %v1642_v1, %v1640_v63  ;;  %v1644_v12 = vld [vmem:[%s2444_s12 + $0x3c8] sm:$0xff]  ;;  %v1647_v63 = vld [vmem:[%s2444_s12 + $0x3e0] sm:$0xff]  ;;  %v1649_v1 = vld [vmem:[%s2444_s12 + $0x3f0] sm:$0xff] }
 0x177   : > { %640 = vmatmul.mubr.f32.gmra.mrb[20].mxu1 %v502_v11  ;;  %v1641_v11 = vld [vmem:[%s2444_s12 + $0x3b0] sm:$0xff] }
 0x178   : > { %2110 = vmatpush1.bf16.msra.mxu1 %v2109_v10  ;;  %v508_v22 = vpop.f32.mrb[22].mxu0  ;;  %v1639_v10 = vld [vmem:[%s2444_s12 + $0x3a0] sm:$0xff] }
 0x179   : > { %2112 = vmatprep.subr.bf16.mxu1 %v2111_v14  ;;  %v510_v23 = vpop.f32.mrb[23].mxu0  ;;  %v1646_v14 = vld [vmem:[%s2444_s12 + $0x3d8] sm:$0xff]  ;;  %v2121_v16 = vpack.c.bf16 %v1641_v11, %v1639_v10  ;;  %v1667_v10 = vld [vmem:[%s2444_s12 + $0x400] sm:$0xff]  ;;  %v1669_v11 = vld [vmem:[%s2444_s12 + $0x410] sm:$0xff] }
 0x17a   : > { %644 = vmatprep.mubr.f32.mxu1 %v510_v23  ;;  %v2123_v20 = vpack.c.bf16 %v1646_v14, %v1644_v12  ;;  %v1648_v23 = vld [vmem:[%s2444_s12 + $0x3e8] sm:$0xff]  ;;  %v1674_v14 = vld [vmem:[%s2444_s12 + $0x438] sm:$0xff] }
 0x17b   : > { %645 = vmatmul.mubr.f32.gmra.mrb[22].mxu1 %v508_v22  ;;  %v1645_v22 = vld [vmem:[%s2444_s12 + $0x3d0] sm:$0xff]  ;;  %v1672_v12 = vld [vmem:[%s2444_s12 + $0x428] sm:$0xff] }
 0x17c   : > { %2114 = vmatpush1.bf16.msra.mxu1 %v2113_v21  ;;  %v514_v5 = vpop.f32.mrb[24].mxu0  ;;  %v1643_v21 = vld [vmem:[%s2444_s12 + $0x3c0] sm:$0xff] }
 0x17d   : > { %2116 = vmatprep.subr.bf16.mxu1 %v2115_v24  ;;  %v516_v8 = vpop.f32.mrb[25].mxu0  ;;  %v1650_v24 = vld [vmem:[%s2444_s12 + $0x3f8] sm:$0xff]  ;;  %v2125_v25 = vpack.c.bf16 %v1645_v22, %v1643_v21 }
 0x17e   : > { %649 = vmatprep.mubr.f32.mxu1 %v516_v8  ;;  %v2127_v62 = vpack.c.bf16 %v1650_v24, %v1648_v23  ;;  %v2129_v8 = vpack.c.bf16 %v1649_v1, %v1647_v63  ;;  %v1678_v21 = vld [vmem:[%s2444_s12 + $0x458] sm:$0xff]  ;;  %v1675_v24 = vld [vmem:[%s2444_s12 + $0x440] sm:$0xff] }
 0x17f   : > { %650 = vmatmul.mubr.f32.gmra.mrb[24].mxu1 %v514_v5  ;;  %v1670_v5 = vld [vmem:[%s2444_s12 + $0x418] sm:$0xff] }
 0x180   : > { %2118 = vmatpush1.bf16.msra.mxu1 %v2117_v4  ;;  %v520_v17 = vpop.f32.mrb[26].mxu0  ;;  %v1668_v4 = vld [vmem:[%s2444_s12 + $0x408] sm:$0xff]  ;;  %v1682_v63 = vld [vmem:[%s2444_s12 + $0x478] sm:$0xff] }
 0x181   : > { %2120 = vmatprep.subr.bf16.mxu1 %v2119_v9  ;;  %v522_v19 = vpop.f32.mrb[27].mxu0  ;;  %v2163_v9 = vpack.c.bf16 %v1670_v5, %v1668_v4  ;;  %v1679_v5 = vld [vmem:[%s2444_s12 + $0x460] sm:$0xff] }
 0x182   : > { %654 = vmatprep.mubr.f32.mxu1 %v522_v19  ;;  %v1673_v19 = vld [vmem:[%s2444_s12 + $0x430] sm:$0xff] }
 0x183   : > { %655 = vmatmul.mubr.f32.gmra.mrb[26].mxu1 %v520_v17  ;;  %v1671_v17 = vld [vmem:[%s2444_s12 + $0x420] sm:$0xff] }
 0x184   : > { %2122 = vmatpush1.bf16.msra.mxu1 %v2121_v16  ;;  %836 = vmatprep.mubr.f32.mxu1 %v2434_v0  ;;  %v2165_v0 = vpack.c.bf16 %v1669_v11, %v1667_v10  ;;  %v2167_v16 = vpack.c.bf16 %v1674_v14, %v1672_v12  ;;  %v2169_v22 = vpack.c.bf16 %v1673_v19, %v1671_v17  ;;  %v1686_v10 = vld [vmem:[%s2444_s12 + $0x498] sm:$0xff]  ;;  %v1683_v14 = vld [vmem:[%s2444_s12 + $0x480] sm:$0xff] }
 0x185   : > { %2124 = vmatprep.subr.bf16.mxu1 %v2123_v20  ;;  %v1676_v20 = vld [vmem:[%s2444_s12 + $0x448] sm:$0xff]  ;;  %v1690_v17 = vld [vmem:[%s2444_s12 + $0x4b8] sm:$0xff] }
 0x186   : > { %v2171_v23 = vpack.c.bf16 %v1678_v21, %v1676_v20  ;;  %v1687_v21 = vld [vmem:[%s2444_s12 + $0x4a0] sm:$0xff] }
 0x188   : > { %2126 = vmatpush1.bf16.msra.mxu1 %v2125_v25  ;;  %v1677_v25 = vld [vmem:[%s2444_s12 + $0x450] sm:$0xff] }
 0x189   : > { %2128 = vmatprep.subr.bf16.mxu1 %v2127_v62  ;;  %v1680_v62 = vld [vmem:[%s2444_s12 + $0x468] sm:$0xff]  ;;  %v2173_v1 = vpack.c.bf16 %v1677_v25, %v1675_v24  ;;  %v1694_v24 = vld [vmem:[%s2444_s12 + $0x4d8] sm:$0xff] }
 0x18a   : > { %v2175_v4 = vpack.c.bf16 %v1682_v63, %v1680_v62  ;;  %v1691_v63 = vld [vmem:[%s2444_s12 + $0x4c0] sm:$0xff] }
 0x18c   : > { %2130 = vmatpush1.bf16.msra.mxu1 %v2129_v8  ;;  %v1681_v8 = vld [vmem:[%s2444_s12 + $0x470] sm:$0xff] }
 0x18d   : > { %2164 = vmatprep.subr.bf16.mxu1 %v2163_v9  ;;  %v1684_v9 = vld [vmem:[%s2444_s12 + $0x488] sm:$0xff]  ;;  %v2177_v11 = vpack.c.bf16 %v1681_v8, %v1679_v5  ;;  %v1698_v5 = vld [vmem:[%s2444_s12 + $0x4f8] sm:$0xff] }
 0x18e   : > { %v2179_v12 = vpack.c.bf16 %v1686_v10, %v1684_v9  ;;  %v1695_v10 = vld [vmem:[%s2444_s12 + $0x4e0] sm:$0xff] }
 0x18f   : > { %837 = vmatmul.mubr.f32.vlgmr.msra.gmra.mrb[28].mxu1 %v2657_v26 }
 0x190   : > { %2166 = vmatpush1.bf16.msra.mxu1 %v2165_v0  ;;  %842 = vmatprep.mubr.f32.mxu1 %v2662_v28  ;;  %v1685_v0 = vld [vmem:[%s2444_s12 + $0x490] sm:$0xff] }
 0x191   : > { %2168 = vmatprep.subr.bf16.mxu1 %v2167_v16  ;;  %v1688_v16 = vld [vmem:[%s2444_s12 + $0x4a8] sm:$0xff]  ;;  %v2181_v19 = vpack.c.bf16 %v1685_v0, %v1683_v14  ;;  %v1702_v14 = vld [vmem:[%s2444_s12 + $0x518] sm:$0xff] }
 0x192   : > { %v2183_v20 = vpack.c.bf16 %v1690_v17, %v1688_v16  ;;  %v1699_v17 = vld [vmem:[%s2444_s12 + $0x500] sm:$0xff] }
 0x193   : > { %843 = vmatmul.mubr.f32.gmra.mrb[30].mxu1 %v2670_v29 }
 0x194   : > { %2170 = vmatpush1.bf16.msra.mxu1 %v2169_v22  ;;  %848 = vmatprep.mubr.f32.mxu1 %v2676_v31  ;;  %v1689_v22 = vld [vmem:[%s2444_s12 + $0x4b0] sm:$0xff] }
 0x195   : > { %2172 = vmatprep.subr.bf16.mxu1 %v2171_v23  ;;  %v1692_v23 = vld [vmem:[%s2444_s12 + $0x4c8] sm:$0xff]  ;;  %v2185_v25 = vpack.c.bf16 %v1689_v22, %v1687_v21  ;;  %v1706_v21 = vld [vmem:[%s2444_s12 + $0x538] sm:$0xff] }
 0x196   : > { %v2187_v62 = vpack.c.bf16 %v1694_v24, %v1692_v23  ;;  %v1703_v24 = vld [vmem:[%s2444_s12 + $0x520] sm:$0xff] }
 0x197   : > { %849 = vmatmul.mubr.f32.gmra.mrb[32].mxu1 %v2684_v32 }
 0x198   : > { %2174 = vmatpush1.bf16.msra.mxu1 %v2173_v1  ;;  %854 = vmatprep.mubr.f32.mxu1 %v2690_v33  ;;  %v1693_v1 = vld [vmem:[%s2444_s12 + $0x4d0] sm:$0xff] }
 0x199   : > { %2176 = vmatprep.subr.bf16.mxu1 %v2175_v4  ;;  %v1696_v4 = vld [vmem:[%s2444_s12 + $0x4e8] sm:$0xff]  ;;  %v2189_v8 = vpack.c.bf16 %v1693_v1, %v1691_v63  ;;  %v1710_v63 = vld [vmem:[%s2444_s12 + $0x558] sm:$0xff] }
 0x19a   : > { %v2191_v9 = vpack.c.bf16 %v1698_v5, %v1696_v4  ;;  %v1707_v5 = vld [vmem:[%s2444_s12 + $0x540] sm:$0xff] }
 0x19b   : > { %855 = vmatmul.mubr.f32.gmra.mrb[34].mxu1 %v2698_v34 }
 0x19c   : > { %2178 = vmatpush1.bf16.msra.mxu1 %v2177_v11  ;;  %860 = vmatprep.mubr.f32.mxu1 %v2704_v35  ;;  %v1697_v11 = vld [vmem:[%s2444_s12 + $0x4f0] sm:$0xff] }
 0x19d   : > { %2180 = vmatprep.subr.bf16.mxu1 %v2179_v12  ;;  %v1700_v12 = vld [vmem:[%s2444_s12 + $0x508] sm:$0xff]  ;;  %v2193_v0 = vpack.c.bf16 %v1697_v11, %v1695_v10  ;;  %v1714_v10 = vld [vmem:[%s2444_s12 + $0x578] sm:$0xff] }
 0x19e   : > { %v2195_v16 = vpack.c.bf16 %v1702_v14, %v1700_v12  ;;  %v1711_v14 = vld [vmem:[%s2444_s12 + $0x560] sm:$0xff] }
 0x19f   : > { %861 = vmatmul.mubr.f32.gmra.mrb[36].mxu1 %v2712_v36 }
 0x1a0   : > { %2182 = vmatpush1.bf16.msra.mxu1 %v2181_v19  ;;  %866 = vmatprep.mubr.f32.mxu1 %v2718_v37  ;;  %v1701_v19 = vld [vmem:[%s2444_s12 + $0x510] sm:$0xff] }
 0x1a1   : > { %2184 = vmatprep.subr.bf16.mxu1 %v2183_v20  ;;  %v1704_v20 = vld [vmem:[%s2444_s12 + $0x528] sm:$0xff]  ;;  %v2197_v22 = vpack.c.bf16 %v1701_v19, %v1699_v17  ;;  %v1718_v17 = vld [vmem:[%s2444_s12 + $0x598] sm:$0xff] }
 0x1a2   : > { %v2199_v23 = vpack.c.bf16 %v1706_v21, %v1704_v20  ;;  %v1715_v21 = vld [vmem:[%s2444_s12 + $0x580] sm:$0xff] }
 0x1a3   : > { %867 = vmatmul.mubr.f32.gmra.mrb[38].mxu1 %v2726_v38 }
 0x1a4   : > { %2186 = vmatpush1.bf16.msra.mxu1 %v2185_v25  ;;  %872 = vmatprep.mubr.f32.mxu1 %v2732_v40  ;;  %v1705_v25 = vld [vmem:[%s2444_s12 + $0x530] sm:$0xff] }
 0x1a5   : > { %2188 = vmatprep.subr.bf16.mxu1 %v2187_v62  ;;  %v1708_v62 = vld [vmem:[%s2444_s12 + $0x548] sm:$0xff]  ;;  %v2201_v1 = vpack.c.bf16 %v1705_v25, %v1703_v24  ;;  %v1722_v24 = vld [vmem:[%s2444_s12 + $0x5b8] sm:$0xff] }
 0x1a6   : > { %v2203_v4 = vpack.c.bf16 %v1710_v63, %v1708_v62  ;;  %v1719_v63 = vld [vmem:[%s2444_s12 + $0x5a0] sm:$0xff] }
 0x1a7   : > { %873 = vmatmul.mubr.f32.gmra.mrb[40].mxu1 %v2740_v41 }
 0x1a8   : > { %2190 = vmatpush1.bf16.msra.mxu1 %v2189_v8  ;;  %878 = vmatprep.mubr.f32.mxu1 %v2746_v43  ;;  %v1709_v8 = vld [vmem:[%s2444_s12 + $0x550] sm:$0xff] }
 0x1a9   : > { %2192 = vmatprep.subr.bf16.mxu1 %v2191_v9  ;;  %v1712_v9 = vld [vmem:[%s2444_s12 + $0x568] sm:$0xff]  ;;  %v2205_v11 = vpack.c.bf16 %v1709_v8, %v1707_v5  ;;  %v1726_v5 = vld [vmem:[%s2444_s12 + $0x5d8] sm:$0xff] }
 0x1aa   : > { %v2207_v12 = vpack.c.bf16 %v1714_v10, %v1712_v9  ;;  %v1723_v10 = vld [vmem:[%s2444_s12 + $0x5c0] sm:$0xff] }
 0x1ab   : > { %879 = vmatmul.mubr.f32.gmra.mrb[42].mxu1 %v2754_v44 }
 0x1ac   : > { %2194 = vmatpush1.bf16.msra.mxu1 %v2193_v0  ;;  %884 = vmatprep.mubr.f32.mxu1 %v2760_v45  ;;  %v1713_v0 = vld [vmem:[%s2444_s12 + $0x570] sm:$0xff] }
 0x1ad   : > { %2196 = vmatprep.subr.bf16.mxu1 %v2195_v16  ;;  %v1716_v16 = vld [vmem:[%s2444_s12 + $0x588] sm:$0xff]  ;;  %v2209_v19 = vpack.c.bf16 %v1713_v0, %v1711_v14  ;;  %v1730_v14 = vld [vmem:[%s2444_s12 + $0x5f8] sm:$0xff] }
 0x1ae   : > { %v2211_v20 = vpack.c.bf16 %v1718_v17, %v1716_v16  ;;  %v2306_v16 = vld [vmem:[%s3242_s3 + $0x8] sm:$0xff] }
 0x1af   : > { %885 = vmatmul.mubr.f32.gmra.mrb[44].mxu1 %v2768_v46 }
 0x1b0   : > { %2198 = vmatpush1.bf16.msra.mxu1 %v2197_v22  ;;  %890 = vmatprep.mubr.f32.mxu1 %v2774_v47  ;;  %v1717_v22 = vld [vmem:[%s2444_s12 + $0x590] sm:$0xff] }
 0x1b1   : > { %2200 = vmatprep.subr.bf16.mxu1 %v2199_v23  ;;  %v1720_v23 = vld [vmem:[%s2444_s12 + $0x5a8] sm:$0xff]  ;;  %v2213_v25 = vpack.c.bf16 %v1717_v22, %v1715_v21 }
 0x1b2   : > { %v2215_v62 = vpack.c.bf16 %v1722_v24, %v1720_v23 }
 0x1b3   : > { %891 = vmatmul.mubr.f32.gmra.mrb[46].mxu1 %v2782_v48 }
 0x1b4   : > { %2202 = vmatpush1.bf16.msra.mxu1 %v2201_v1  ;;  %896 = vmatprep.mubr.f32.mxu1 %v2787_v49  ;;  %v1721_v1 = vld [vmem:[%s2444_s12 + $0x5b0] sm:$0xff] }
 0x1b5   : > { %2204 = vmatprep.subr.bf16.mxu1 %v2203_v4  ;;  %v1724_v4 = vld [vmem:[%s2444_s12 + $0x5c8] sm:$0xff]  ;;  %v2217_v8 = vpack.c.bf16 %v1721_v1, %v1719_v63 }
 0x1b6   : > { %v2219_v9 = vpack.c.bf16 %v1726_v5, %v1724_v4 }
 0x1b7   : > { %897 = vmatmul.mubr.f32.gmra.mrb[48].mxu1 %v2794_v50 }
 0x1b8   : > { %2206 = vmatpush1.bf16.msra.mxu1 %v2205_v11  ;;  %902 = vmatprep.mubr.f32.mxu1 %v2799_v52  ;;  %v1725_v11 = vld [vmem:[%s2444_s12 + $0x5d0] sm:$0xff] }
 0x1b9   : > { %2208 = vmatprep.subr.bf16.mxu1 %v2207_v12  ;;  %v1728_v12 = vld [vmem:[%s2444_s12 + $0x5e8] sm:$0xff]  ;;  %v2221_v0 = vpack.c.bf16 %v1725_v11, %v1723_v10 }
 0x1ba   : > { %v2223_v17 = vpack.c.bf16 %v1730_v14, %v1728_v12 }
 0x1bb   : > { %903 = vmatmul.mubr.f32.gmra.mrb[50].mxu1 %v2806_v53 }
 0x1bc   : > { %2210 = vmatpush1.bf16.msra.mxu1 %v2209_v19  ;;  %908 = vmatprep.mubr.f32.mxu1 %v2811_v57  ;;  %v1727_v19 = vld [vmem:[%s2444_s12 + $0x5e0] sm:$0xff] }
 0x1bd   : > { %2212 = vmatprep.subr.bf16.mxu1 %v2211_v20  ;;  %v1729_v20 = vld [vmem:[%s2444_s12 + $0x5f0] sm:$0xff]  ;;  %s660_s12 = sld [smem:[#allocation2]] }
 0x1be   : > { %v2225_v21 = vpack.c.bf16 %v1729_v20, %v1727_v19 }
 0x1bf   : > { %909 = vmatmul.mubr.f32.gmra.mrb[52].mxu1 %v2818_v58 }
 0x1c0   : > { %2214 = vmatpush1.bf16.msra.mxu1 %v2213_v25  ;;  %914 = vmatprep.mubr.f32.mxu1 %v2823_v60 }
 0x1c1   : > { %2216 = vmatprep.subr.bf16.mxu1 %v2215_v62 }
 0x1c3   : > { %915 = vmatmul.mubr.f32.gmra.mrb[54].mxu1 %v2830_v61 }
 0x1c4   : > { %2218 = vmatpush1.bf16.msra.mxu1 %v2217_v8  ;;  %1232 = vmatprep.mubr.f32.mxu1 %v2306_v16 }
 0x1c5   : > { %2220 = vmatprep.subr.bf16.mxu1 %v2219_v9 }
 0x1c8   : > { %2222 = vmatpush1.bf16.msra.mxu1 %v2221_v0 }
 0x1c9   : > { %2224 = vmatprep.subr.bf16.mxu1 %v2223_v17 }
 0x1cc   : > { %2226 = vmatpush1.bf16.msra.mxu1 %v2225_v21 }
 0x1cd   : > { %2259 = vmatprep.subr.bf16.mxu1 %v2492_v54 }
 0x1cf   : > { %1233 = vmatmul.mubr.f32.vlgmr.msra.gmra.mrb[56].mxu1 %v2657_v26 }
 0x1d0   : > { %1238 = vmatprep.mubr.f32.mxu1 %v2662_v28  ;;  %2267 = vmatpush3.bf16.msra.mxu1 %v2494_v55  ;;  %v3036_v28 = vstv %s660_s12 }
 0x1d1   : > { %2260 = vmatprep.subr.bf16.mxu1 %v2505_v59 }
 0x1d3   : > { %1239 = vmatmul.mubr.f32.gmra.mrb[58].mxu1 %v2670_v29 }
 0x1d4   : > { %1244 = vmatprep.mubr.f32.mxu1 %v2676_v31  ;;  %2268 = vmatpush3.bf16.msra.mxu1 %v2520_v3  ;;  %v3038_v31 = vstv %s676_s25 }
 0x1d5   : > { %2261 = vmatprep.subr.bf16.mxu1 %v2524_v6 }
 0x1d7   : > { %1245 = vmatmul.mubr.f32.gmra.mrb[60].mxu1 %v2684_v32 }
 0x1d8   : > { %1250 = vmatprep.mubr.f32.mxu1 %v2690_v33  ;;  %2269 = vmatpush3.bf16.msra.mxu1 %v2542_v15 }
 0x1d9   : > { %2262 = vmatprep.subr.bf16.mxu1 %v2546_v18 }
 0x1db   : > { %1251 = vmatmul.mubr.f32.gmra.mrb[62].mxu1 %v2698_v34 }
 0x1dc   : > { %1256 = vmatprep.mubr.f32.mxu1 %v2704_v35  ;;  %2270 = vmatpush3.bf16.msra.mxu1 %v2564_v27 }
 0x1dd   : > { %2263 = vmatprep.subr.bf16.mxu1 %v2568_v30 }
 0x1df   : > { %1257 = vmatmul.mubr.f32.gmra.mrb[64].mxu1 %v2712_v36 }
 0x1e0   : > { %1262 = vmatprep.mubr.f32.mxu1 %v2718_v37  ;;  %2271 = vmatpush3.bf16.msra.mxu1 %v2586_v39 }
 0x1e1   : > { %2264 = vmatprep.subr.bf16.mxu1 %v2590_v42 }
 0x1e3   : > { %1263 = vmatmul.mubr.f32.gmra.mrb[66].mxu1 %v2726_v38 }
 0x1e4   : > { %1268 = vmatprep.mubr.f32.mxu1 %v2732_v40  ;;  %2272 = vmatpush3.bf16.msra.mxu1 %v2608_v51 }
 0x1e5   : > { %2265 = vmatprep.subr.bf16.mxu1 %v2612_v56 }
 0x1e7   : > { %1269 = vmatmul.mubr.f32.gmra.mrb[68].mxu1 %v2740_v41 }
 0x1e8   : > { %1274 = vmatprep.mubr.f32.mxu1 %v2746_v43  ;;  %2273 = vmatpush3.bf16.msra.mxu1 %v2629_v2 }
 0x1e9   : > { %2266 = vmatprep.subr.bf16.mxu1 %v2633_v7 }
 0x1eb   : > { %1275 = vmatmul.mubr.f32.gmra.mrb[70].mxu1 %v2754_v44 }
 0x1ec   : > { %1280 = vmatprep.mubr.f32.mxu1 %v2760_v45  ;;  %2274 = vmatpush3.bf16.msra.mxu1 %v2644_v13 }
 0x1ef   : > { %1281 = vmatmul.mubr.f32.gmra.mrb[72].mxu1 %v2768_v46 }
 0x1f0   : > { %1286 = vmatprep.mubr.f32.mxu1 %v2774_v47 }
 0x1f3   : > { %1287 = vmatmul.mubr.f32.gmra.mrb[74].mxu1 %v2782_v48 }
 0x1f4   : > { %1292 = vmatprep.mubr.f32.mxu1 %v2787_v49 }
 0x1f7   : > { %1293 = vmatmul.mubr.f32.gmra.mrb[76].mxu1 %v2794_v50 }
 0x1f8   : > { %1298 = vmatprep.mubr.f32.mxu1 %v2799_v52 }
 0x1fb   : > { %1299 = vmatmul.mubr.f32.gmra.mrb[78].mxu1 %v2806_v53 }
 0x1fc   : > { %1304 = vmatprep.mubr.f32.mxu1 %v2811_v57 }
 0x1ff   : > { %1305 = vmatmul.mubr.f32.gmra.mrb[80].mxu1 %v2818_v58 }
 0x200   : > { %1310 = vmatprep.mubr.f32.mxu1 %v2823_v60 }
 0x203   : > { %1311 = vmatmul.mubr.f32.gmra.mrb[82].mxu1 %v2830_v61 }
 0x222   : > { %v1781_v54 = vpop.f32.mrb[0].mxu1 }
 0x223   : > { %v1782_v26 = vpop.f32.mrb[1].mxu1 }
 0x224   : > { %v1783_v29 = vadd.f32 %v1782_v26, %v1781_v54 }
 0x226   : > { %v662_v32 = vmul.f32 %v1783_v29, %v3036_v28  ;;  %v1784_v33 = vpop.f32.mrb[2].mxu1 }
 0x227   : > { %v1785_v34 = vpop.f32.mrb[3].mxu1 }
 0x228   : > { %v678_v35 = vadd.f32 %v3038_v31, %v662_v32  ;;  %v1786_v36 = vadd.f32 %v1785_v34, %v1784_v33 }
 0x22a   : > { %693 = vst.msk [vmem:[%s3044_s29] sm:$0xff] %vm692_vm0, %v678_v35  ;;  %v663_v37 = vmul.f32 %v1786_v36, %v3036_v28  ;;  %v1787_v38 = vpop.f32.mrb[4].mxu1 }
 0x22b   : > { %v1788_v40 = vpop.f32.mrb[5].mxu1 }
 0x22c   : > { %v679_v41 = vadd.f32 %v3038_v31, %v663_v37  ;;  %v1789_v43 = vadd.f32 %v1788_v40, %v1787_v38 }
 0x22e   : > { %694 = vst.msk [vmem:[%s3044_s29 + $0x8] sm:$0xff] %vm692_vm0, %v679_v41  ;;  %v664_v44 = vmul.f32 %v1789_v43, %v3036_v28  ;;  %v1790_v45 = vpop.f32.mrb[6].mxu1 }
 0x22f   : > { %v1791_v46 = vpop.f32.mrb[7].mxu1 }
 0x230   : > { %v680_v47 = vadd.f32 %v3038_v31, %v664_v44  ;;  %v1792_v48 = vadd.f32 %v1791_v46, %v1790_v45 }
 0x232   : > { %695 = vst.msk [vmem:[%s3044_s29 + $0x10] sm:$0xff] %vm692_vm0, %v680_v47  ;;  %v665_v49 = vmul.f32 %v1792_v48, %v3036_v28  ;;  %v1793_v50 = vpop.f32.mrb[8].mxu1 }
 0x233   : > { %v1794_v52 = vpop.f32.mrb[9].mxu1 }
 0x234   : > { %v681_v53 = vadd.f32 %v3038_v31, %v665_v49  ;;  %v1795_v57 = vadd.f32 %v1794_v52, %v1793_v50 }
 0x236   : > { %696 = vst.msk [vmem:[%s3044_s29 + $0x18] sm:$0xff] %vm692_vm0, %v681_v53  ;;  %v666_v58 = vmul.f32 %v1795_v57, %v3036_v28  ;;  %v1796_v60 = vpop.f32.mrb[10].mxu1 }
 0x237   : > { %v1797_v61 = vpop.f32.mrb[11].mxu1 }
 0x238   : > { %v682_v22 = vadd.f32 %v3038_v31, %v666_v58  ;;  %v1798_v23 = vadd.f32 %v1797_v61, %v1796_v60 }
 0x23a   : > { %697 = vst.msk [vmem:[%s3044_s29 + $0x20] sm:$0xff] %vm692_vm0, %v682_v22  ;;  %v667_v24 = vmul.f32 %v1798_v23, %v3036_v28  ;;  %v1799_v25 = vpop.f32.mrb[12].mxu1 }
 0x23b   : > { %v1800_v62 = vpop.f32.mrb[13].mxu1 }
 0x23c   : > { %v683_v63 = vadd.f32 %v3038_v31, %v667_v24  ;;  %v1801_v1 = vadd.f32 %v1800_v62, %v1799_v25 }
 0x23e   : > { %698 = vst.msk [vmem:[%s3044_s29 + $0x28] sm:$0xff] %vm692_vm0, %v683_v63  ;;  %v668_v4 = vmul.f32 %v1801_v1, %v3036_v28  ;;  %v1802_v5 = vpop.f32.mrb[14].mxu1 }
 0x23f   : > { %v1803_v8 = vpop.f32.mrb[15].mxu1 }
 0x240   : > { %v684_v9 = vadd.f32 %v3038_v31, %v668_v4  ;;  %v1804_v10 = vadd.f32 %v1803_v8, %v1802_v5 }
 0x242   : > { %699 = vst.msk [vmem:[%s3044_s29 + $0x30] sm:$0xff] %vm692_vm0, %v684_v9  ;;  %v669_v11 = vmul.f32 %v1804_v10, %v3036_v28  ;;  %v1805_v12 = vpop.f32.mrb[16].mxu1 }
 0x243   : > { %v1806_v14 = vpop.f32.mrb[17].mxu1 }
 0x244   : > { %v685_v0 = vadd.f32 %v3038_v31, %v669_v11  ;;  %v1807_v16 = vadd.f32 %v1806_v14, %v1805_v12 }
 0x246   : > { %700 = vst.msk [vmem:[%s3044_s29 + $0x38] sm:$0xff] %vm692_vm0, %v685_v0  ;;  %v670_v17 = vmul.f32 %v1807_v16, %v3036_v28  ;;  %v1808_v19 = vpop.f32.mrb[18].mxu1 }
 0x247   : > { %v1809_v20 = vpop.f32.mrb[19].mxu1 }
 0x248   : > { %v686_v21 = vadd.f32 %v3038_v31, %v670_v17  ;;  %v1810_v54 = vadd.f32 %v1809_v20, %v1808_v19 }
 0x24a   : > { %701 = vst.msk [vmem:[%s3044_s29 + $0x40] sm:$0xff] %vm692_vm0, %v686_v21  ;;  %v671_v26 = vmul.f32 %v1810_v54, %v3036_v28  ;;  %v1811_v29 = vpop.f32.mrb[20].mxu1 }
 0x24b   : > { %v1812_v32 = vpop.f32.mrb[21].mxu1 }
 0x24c   : > { %v687_v33 = vadd.f32 %v3038_v31, %v671_v26  ;;  %v1813_v34 = vadd.f32 %v1812_v32, %v1811_v29 }
 0x24e   : > { %702 = vst.msk [vmem:[%s3044_s29 + $0x48] sm:$0xff] %vm692_vm0, %v687_v33  ;;  %v672_v35 = vmul.f32 %v1813_v34, %v3036_v28  ;;  %v1814_v36 = vpop.f32.mrb[22].mxu1 }
 0x24f   : > { %v1815_v37 = vpop.f32.mrb[23].mxu1 }
 0x250   : > { %v688_v38 = vadd.f32 %v3038_v31, %v672_v35  ;;  %v1816_v40 = vadd.f32 %v1815_v37, %v1814_v36 }
 0x252   : > { %703 = vst.msk [vmem:[%s3044_s29 + $0x50] sm:$0xff] %vm692_vm0, %v688_v38  ;;  %v673_v41 = vmul.f32 %v1816_v40, %v3036_v28  ;;  %v1817_v43 = vpop.f32.mrb[24].mxu1 }
 0x253   : > { %v1818_v44 = vpop.f32.mrb[25].mxu1 }
 0x254   : > { %v689_v45 = vadd.f32 %v3038_v31, %v673_v41  ;;  %v1819_v46 = vadd.f32 %v1818_v44, %v1817_v43 }
 0x256   : > { %704 = vst.msk [vmem:[%s3044_s29 + $0x58] sm:$0xff] %vm692_vm0, %v689_v45  ;;  %v674_v47 = vmul.f32 %v1819_v46, %v3036_v28  ;;  %v1820_v48 = vpop.f32.mrb[26].mxu1 }
 0x257   : > { %v1821_v49 = vpop.f32.mrb[27].mxu1 }
 0x258   : > { %v690_v50 = vadd.f32 %v3038_v31, %v674_v47  ;;  %v1822_v52 = vadd.f32 %v1821_v49, %v1820_v48  ;;  %v3116_v48 = vstv %s1651_s19 }
 0x25a   : > { %705 = vst.msk [vmem:[%s3044_s29 + $0x60] sm:$0xff] %vm692_vm0, %v690_v50  ;;  %v675_v53 = vmul.f32 %v1822_v52, %v3036_v28  ;;  %v3118_v50 = vstv %s1652_s30 }
 0x25c   : > { %v691_v57 = vadd.f32 %v3038_v31, %v675_v53 }
 0x25e   : > { %706 = vst.msk [vmem:[%s3044_s29 + $0x68] sm:$0xff] %vm692_vm0, %v691_v57 }
 0x262   : > { %v838_v58 = vpop.f32.mrb[28].mxu1 }
 0x263   : > { %v840_v60 = vpop.f32.mrb[29].mxu1 }
 0x264   : > { %985 = vmatprep.mubr.f32.mxu0 %v840_v60 }
 0x265   : > { %986 = vmatmul.mubr.f32.vlgmr.msra.gmra.mrb[28].mxu0 %v838_v58 }
 0x266   : > { %v844_v61 = vpop.f32.mrb[30].mxu1  ;;  %2230 = vmatpush3.bf16.msra.mxu0 %v2494_v55 }
 0x267   : > { %v846_v22 = vpop.f32.mrb[31].mxu1  ;;  %2232 = vmatprep.subr.bf16.mxu0 %v2505_v59 }
 0x268   : > { %990 = vmatprep.mubr.f32.mxu0 %v846_v22 }
 0x269   : > { %991 = vmatmul.mubr.f32.gmra.mrb[30].mxu0 %v844_v61 }
 0x26a   : > { %v850_v23 = vpop.f32.mrb[32].mxu1  ;;  %2234 = vmatpush3.bf16.msra.mxu0 %v2520_v3 }
 0x26b   : > { %v852_v28 = vpop.f32.mrb[33].mxu1  ;;  %2236 = vmatprep.subr.bf16.mxu0 %v2524_v6 }
 0x26c   : > { %995 = vmatprep.mubr.f32.mxu0 %v852_v28 }
 0x26d   : > { %996 = vmatmul.mubr.f32.gmra.mrb[32].mxu0 %v850_v23 }
 0x26e   : > { %v856_v31 = vpop.f32.mrb[34].mxu1  ;;  %2238 = vmatpush3.bf16.msra.mxu0 %v2542_v15 }
 0x26f   : > { %v858_v24 = vpop.f32.mrb[35].mxu1  ;;  %2240 = vmatprep.subr.bf16.mxu0 %v2546_v18 }
 0x270   : > { %1000 = vmatprep.mubr.f32.mxu0 %v858_v24 }
 0x271   : > { %1001 = vmatmul.mubr.f32.gmra.mrb[34].mxu0 %v856_v31 }
 0x272   : > { %v862_v55 = vpop.f32.mrb[36].mxu1  ;;  %2242 = vmatpush3.bf16.msra.mxu0 %v2564_v27 }
 0x273   : > { %v864_v59 = vpop.f32.mrb[37].mxu1  ;;  %2244 = vmatprep.subr.bf16.mxu0 %v2568_v30 }
 0x274   : > { %1005 = vmatprep.mubr.f32.mxu0 %v864_v59 }
 0x275   : > { %1006 = vmatmul.mubr.f32.gmra.mrb[36].mxu0 %v862_v55 }
 0x276   : > { %v868_v3 = vpop.f32.mrb[38].mxu1  ;;  %2246 = vmatpush3.bf16.msra.mxu0 %v2586_v39 }
 0x277   : > { %v870_v6 = vpop.f32.mrb[39].mxu1  ;;  %2248 = vmatprep.subr.bf16.mxu0 %v2590_v42 }
 0x278   : > { %1010 = vmatprep.mubr.f32.mxu0 %v870_v6 }
 0x279   : > { %1011 = vmatmul.mubr.f32.gmra.mrb[38].mxu0 %v868_v3 }
 0x27a   : > { %v874_v15 = vpop.f32.mrb[40].mxu1  ;;  %2250 = vmatpush3.bf16.msra.mxu0 %v2608_v51 }
 0x27b   : > { %v876_v18 = vpop.f32.mrb[41].mxu1  ;;  %2252 = vmatprep.subr.bf16.mxu0 %v2612_v56 }
 0x27c   : > { %1015 = vmatprep.mubr.f32.mxu0 %v876_v18 }
 0x27d   : > { %1016 = vmatmul.mubr.f32.gmra.mrb[40].mxu0 %v874_v15 }
 0x27e   : > { %v880_v27 = vpop.f32.mrb[42].mxu1  ;;  %2254 = vmatpush3.bf16.msra.mxu0 %v2629_v2 }
 0x27f   : > { %v882_v30 = vpop.f32.mrb[43].mxu1  ;;  %2256 = vmatprep.subr.bf16.mxu0 %v2633_v7 }
 0x280   : > { %1020 = vmatprep.mubr.f32.mxu0 %v882_v30 }
 0x281   : > { %1021 = vmatmul.mubr.f32.gmra.mrb[42].mxu0 %v880_v27 }
 0x282   : > { %v886_v39 = vpop.f32.mrb[44].mxu1  ;;  %2258 = vmatpush3.bf16.msra.mxu0 %v2644_v13 }
 0x283   : > { %v888_v42 = vpop.f32.mrb[45].mxu1 }
 0x284   : > { %1025 = vmatprep.mubr.f32.mxu0 %v888_v42 }
 0x285   : > { %1026 = vmatmul.mubr.f32.gmra.mrb[44].mxu0 %v886_v39 }
 0x286   : > { %v892_v51 = vpop.f32.mrb[46].mxu1 }
 0x287   : > { %v894_v25 = vpop.f32.mrb[47].mxu1 }
 0x288   : > { %1030 = vmatprep.mubr.f32.mxu0 %v894_v25 }
 0x289   : > { %1031 = vmatmul.mubr.f32.gmra.mrb[46].mxu0 %v892_v51 }
 0x28a   : > { %v898_v56 = vpop.f32.mrb[48].mxu1 }
 0x28b   : > { %v900_v62 = vpop.f32.mrb[49].mxu1 }
 0x28c   : > { %1035 = vmatprep.mubr.f32.mxu0 %v900_v62 }
 0x28d   : > { %1036 = vmatmul.mubr.f32.gmra.mrb[48].mxu0 %v898_v56 }
 0x28e   : > { %v904_v2 = vpop.f32.mrb[50].mxu1 }
 0x28f   : > { %v906_v63 = vpop.f32.mrb[51].mxu1 }
 0x290   : > { %1040 = vmatprep.mubr.f32.mxu0 %v906_v63 }
 0x291   : > { %1041 = vmatmul.mubr.f32.gmra.mrb[50].mxu0 %v904_v2 }
 0x292   : > { %v910_v7 = vpop.f32.mrb[52].mxu1 }
 0x293   : > { %v912_v1 = vpop.f32.mrb[53].mxu1 }
 0x294   : > { %1045 = vmatprep.mubr.f32.mxu0 %v912_v1 }
 0x295   : > { %1046 = vmatmul.mubr.f32.gmra.mrb[52].mxu0 %v910_v7 }
 0x296   : > { %v916_v13 = vpop.f32.mrb[54].mxu1 }
 0x297   : > { %v918_v4 = vpop.f32.mrb[55].mxu1 }
 0x298   : > { %1050 = vmatprep.mubr.f32.mxu0 %v918_v4 }
 0x299   : > { %1051 = vmatmul.mubr.f32.gmra.mrb[54].mxu0 %v916_v13 }
 0x2a2   : > { %v1234_v5 = vpop.f32.mrb[56].mxu1 }
 0x2a3   : > { %v1236_v8 = vpop.f32.mrb[57].mxu1 }
 0x2a4   : > { %1381 = vmatprep.mubr.f32.mxu0 %v1236_v8 }
 0x2a5   : > { %1382 = vmatmul.mubr.f32.vlgmr.msra.gmra.mrb[56].mxu0 %v1234_v5 }
 0x2a6   : > { %v1240_v9 = vpop.f32.mrb[58].mxu1 }
 0x2a7   : > { %v1242_v10 = vpop.f32.mrb[59].mxu1 }
 0x2a8   : > { %1386 = vmatprep.mubr.f32.mxu0 %v1242_v10 }
 0x2a9   : > { %1387 = vmatmul.mubr.f32.gmra.mrb[58].mxu0 %v1240_v9 }
 0x2aa   : > { %v1246_v11 = vpop.f32.mrb[60].mxu1 }
 0x2ab   : > { %v1248_v12 = vpop.f32.mrb[61].mxu1 }
 0x2ac   : > { %1391 = vmatprep.mubr.f32.mxu0 %v1248_v12 }
 0x2ad   : > { %1392 = vmatmul.mubr.f32.gmra.mrb[60].mxu0 %v1246_v11 }
 0x2ae   : > { %v1252_v14 = vpop.f32.mrb[62].mxu1 }
 0x2af   : > { %v1254_v0 = vpop.f32.mrb[63].mxu1 }
 0x2b0   : > { %1396 = vmatprep.mubr.f32.mxu0 %v1254_v0 }
 0x2b1   : > { %1397 = vmatmul.mubr.f32.gmra.mrb[62].mxu0 %v1252_v14 }
 0x2b2   : > { %v1258_v16 = vpop.f32.mrb[64].mxu1 }
 0x2b3   : > { %v1260_v17 = vpop.f32.mrb[65].mxu1 }
 0x2b4   : > { %1401 = vmatprep.mubr.f32.mxu0 %v1260_v17 }
 0x2b5   : > { %1402 = vmatmul.mubr.f32.gmra.mrb[64].mxu0 %v1258_v16 }
 0x2b6   : > { %v1264_v19 = vpop.f32.mrb[66].mxu1 }
 0x2b7   : > { %v1266_v20 = vpop.f32.mrb[67].mxu1 }
 0x2b8   : > { %1406 = vmatprep.mubr.f32.mxu0 %v1266_v20 }
 0x2b9   : > { %1407 = vmatmul.mubr.f32.gmra.mrb[66].mxu0 %v1264_v19 }
 0x2ba   : > { %v1270_v21 = vpop.f32.mrb[68].mxu1 }
 0x2bb   : > { %v1272_v54 = vpop.f32.mrb[69].mxu1 }
 0x2bc   : > { %1411 = vmatprep.mubr.f32.mxu0 %v1272_v54 }
 0x2bd   : > { %1412 = vmatmul.mubr.f32.gmra.mrb[68].mxu0 %v1270_v21 }
 0x2be   : > { %v1276_v26 = vpop.f32.mrb[70].mxu1 }
 0x2bf   : > { %v1278_v29 = vpop.f32.mrb[71].mxu1 }
 0x2c0   : > { %1416 = vmatprep.mubr.f32.mxu0 %v1278_v29 }
 0x2c1   : > { %1417 = vmatmul.mubr.f32.gmra.mrb[70].mxu0 %v1276_v26 }
 0x2c2   : > { %v1282_v32 = vpop.f32.mrb[72].mxu1 }
 0x2c3   : > { %v1284_v33 = vpop.f32.mrb[73].mxu1 }
 0x2c4   : > { %1421 = vmatprep.mubr.f32.mxu0 %v1284_v33 }
 0x2c5   : > { %1422 = vmatmul.mubr.f32.gmra.mrb[72].mxu0 %v1282_v32 }
 0x2c6   : > { %v1288_v34 = vpop.f32.mrb[74].mxu1 }
 0x2c7   : > { %v1290_v35 = vpop.f32.mrb[75].mxu1 }
 0x2c8   : > { %1426 = vmatprep.mubr.f32.mxu0 %v1290_v35 }
 0x2c9   : > { %1427 = vmatmul.mubr.f32.gmra.mrb[74].mxu0 %v1288_v34 }
 0x2ca   : > { %v1294_v36 = vpop.f32.mrb[76].mxu1 }
 0x2cb   : > { %v1296_v37 = vpop.f32.mrb[77].mxu1 }
 0x2cc   : > { %1431 = vmatprep.mubr.f32.mxu0 %v1296_v37 }
 0x2cd   : > { %1432 = vmatmul.mubr.f32.gmra.mrb[76].mxu0 %v1294_v36 }
 0x2ce   : > { %v1300_v38 = vpop.f32.mrb[78].mxu1 }
 0x2cf   : > { %v1302_v40 = vpop.f32.mrb[79].mxu1 }
 0x2d0   : > { %1436 = vmatprep.mubr.f32.mxu0 %v1302_v40 }
 0x2d1   : > { %1437 = vmatmul.mubr.f32.gmra.mrb[78].mxu0 %v1300_v38 }
 0x2d2   : > { %v1306_v41 = vpop.f32.mrb[80].mxu1 }
 0x2d3   : > { %v1308_v43 = vpop.f32.mrb[81].mxu1 }
 0x2d4   : > { %1441 = vmatprep.mubr.f32.mxu1 %v1308_v43 }
 0x2d5   : > { %1442 = vmatmul.mubr.f32.vlgmr.msra.gmra.mrb[84].mxu1 %v1306_v41 }
 0x2d6   : > { %v1312_v44 = vpop.f32.mrb[82].mxu1 }
 0x2d7   : > { %v1314_v45 = vpop.f32.mrb[83].mxu1 }
 0x2d8   : > { %1446 = vmatprep.mubr.f32.mxu1 %v1314_v45 }
 0x2d9   : > { %1447 = vmatmul.mubr.f32.gmra.mrb[86].mxu1 %v1312_v44 }
 0x338   : > { %v1855_v46 = vpop.f32.mrb[28].mxu0 }
 0x339   : > { %v1856_v47 = vpop.f32.mrb[29].mxu0 }
 0x33a   : > { %v1857_v49 = vadd.f32 %v1856_v47, %v1855_v46 }
 0x33c   : > { %v1058_v52 = vmul.f32 %v1857_v49, %v3116_v48  ;;  %v1858_v53 = vpop.f32.mrb[30].mxu0 }
 0x33d   : > { %v1859_v57 = vpop.f32.mrb[31].mxu0 }
 0x33e   : > { %v1074_v58 = vadd.f32 %v3118_v50, %v1058_v52  ;;  %v1860_v60 = vadd.f32 %v1859_v57, %v1858_v53 }
 0x340   : > { %1653 = vst.msk [vmem:[%s3044_s29 + $0x70] sm:$0xff] %vm692_vm0, %v1074_v58  ;;  %v1059_v61 = vmul.f32 %v1860_v60, %v3116_v48  ;;  %v1861_v22 = vpop.f32.mrb[32].mxu0 }
 0x341   : > { %v1862_v23 = vpop.f32.mrb[33].mxu0 }
 0x342   : > { %v1075_v28 = vadd.f32 %v3118_v50, %v1059_v61  ;;  %v1863_v31 = vadd.f32 %v1862_v23, %v1861_v22  ;;  %v3176_v23 = vstv %s1731_s6 }
 0x344   : > { %1654 = vst.msk [vmem:[%s3044_s29 + $0x78] sm:$0xff] %vm692_vm0, %v1075_v28  ;;  %v1060_v24 = vmul.f32 %v1863_v31, %v3116_v48  ;;  %v1864_v55 = vpop.f32.mrb[34].mxu0  ;;  %v3178_v31 = vstv %s1732_s7 }
 0x345   : > { %v1865_v59 = vpop.f32.mrb[35].mxu0 }
 0x346   : > { %v1076_v3 = vadd.f32 %v3118_v50, %v1060_v24  ;;  %v1866_v6 = vadd.f32 %v1865_v59, %v1864_v55 }
 0x348   : > { %1655 = vst.msk [vmem:[%s3044_s29 + $0x80] sm:$0xff] %vm692_vm0, %v1076_v3  ;;  %v1061_v15 = vmul.f32 %v1866_v6, %v3116_v48  ;;  %v1867_v18 = vpop.f32.mrb[36].mxu0 }
 0x349   : > { %v1868_v27 = vpop.f32.mrb[37].mxu0 }
 0x34a   : > { %v1077_v30 = vadd.f32 %v3118_v50, %v1061_v15  ;;  %v1869_v39 = vadd.f32 %v1868_v27, %v1867_v18 }
 0x34c   : > { %1656 = vst.msk [vmem:[%s3044_s29 + $0x88] sm:$0xff] %vm692_vm0, %v1077_v30  ;;  %v1062_v42 = vmul.f32 %v1869_v39, %v3116_v48  ;;  %v1870_v51 = vpop.f32.mrb[38].mxu0 }
 0x34d   : > { %v1871_v25 = vpop.f32.mrb[39].mxu0 }
 0x34e   : > { %v1078_v56 = vadd.f32 %v3118_v50, %v1062_v42  ;;  %v1872_v62 = vadd.f32 %v1871_v25, %v1870_v51 }
 0x350   : > { %1657 = vst.msk [vmem:[%s3044_s29 + $0x90] sm:$0xff] %vm692_vm0, %v1078_v56  ;;  %v1063_v2 = vmul.f32 %v1872_v62, %v3116_v48  ;;  %v1873_v63 = vpop.f32.mrb[40].mxu0 }
 0x351   : > { %v1874_v7 = vpop.f32.mrb[41].mxu0 }
 0x352   : > { %v1079_v1 = vadd.f32 %v3118_v50, %v1063_v2  ;;  %v1875_v13 = vadd.f32 %v1874_v7, %v1873_v63 }
 0x354   : > { %1658 = vst.msk [vmem:[%s3044_s29 + $0x98] sm:$0xff] %vm692_vm0, %v1079_v1  ;;  %v1064_v4 = vmul.f32 %v1875_v13, %v3116_v48  ;;  %v1876_v5 = vpop.f32.mrb[42].mxu0 }
 0x355   : > { %v1877_v8 = vpop.f32.mrb[43].mxu0 }
 0x356   : > { %v1080_v9 = vadd.f32 %v3118_v50, %v1064_v4  ;;  %v1878_v10 = vadd.f32 %v1877_v8, %v1876_v5 }
 0x358   : > { %1659 = vst.msk [vmem:[%s3044_s29 + $0xa0] sm:$0xff] %vm692_vm0, %v1080_v9  ;;  %v1065_v11 = vmul.f32 %v1878_v10, %v3116_v48  ;;  %v1879_v12 = vpop.f32.mrb[44].mxu0 }
 0x359   : > { %v1880_v14 = vpop.f32.mrb[45].mxu0 }
 0x35a   : > { %v1081_v0 = vadd.f32 %v3118_v50, %v1065_v11  ;;  %v1881_v16 = vadd.f32 %v1880_v14, %v1879_v12 }
 0x35c   : > { %1660 = vst.msk [vmem:[%s3044_s29 + $0xa8] sm:$0xff] %vm692_vm0, %v1081_v0  ;;  %v1066_v17 = vmul.f32 %v1881_v16, %v3116_v48  ;;  %v1882_v19 = vpop.f32.mrb[46].mxu0 }
 0x35d   : > { %v1883_v20 = vpop.f32.mrb[47].mxu0 }
 0x35e   : > { %v1082_v21 = vadd.f32 %v3118_v50, %v1066_v17  ;;  %v1884_v54 = vadd.f32 %v1883_v20, %v1882_v19 }
 0x360   : > { %1661 = vst.msk [vmem:[%s3044_s29 + $0xb0] sm:$0xff] %vm692_vm0, %v1082_v21  ;;  %v1067_v26 = vmul.f32 %v1884_v54, %v3116_v48  ;;  %v1885_v29 = vpop.f32.mrb[48].mxu0 }
 0x361   : > { %v1886_v32 = vpop.f32.mrb[49].mxu0 }
 0x362   : > { %v1083_v33 = vadd.f32 %v3118_v50, %v1067_v26  ;;  %v1887_v34 = vadd.f32 %v1886_v32, %v1885_v29 }
 0x364   : > { %1662 = vst.msk [vmem:[%s3044_s29 + $0xb8] sm:$0xff] %vm692_vm0, %v1083_v33  ;;  %v1068_v35 = vmul.f32 %v1887_v34, %v3116_v48  ;;  %v1888_v36 = vpop.f32.mrb[50].mxu0 }
 0x365   : > { %v1889_v37 = vpop.f32.mrb[51].mxu0 }
 0x366   : > { %v1084_v38 = vadd.f32 %v3118_v50, %v1068_v35  ;;  %v1890_v40 = vadd.f32 %v1889_v37, %v1888_v36 }
 0x368   : > { %1663 = vst.msk [vmem:[%s3044_s29 + $0xc0] sm:$0xff] %vm692_vm0, %v1084_v38  ;;  %v1069_v41 = vmul.f32 %v1890_v40, %v3116_v48  ;;  %v1891_v43 = vpop.f32.mrb[52].mxu0 }
 0x369   : > { %v1892_v44 = vpop.f32.mrb[53].mxu0 }
 0x36a   : > { %v1085_v45 = vadd.f32 %v3118_v50, %v1069_v41  ;;  %v1893_v46 = vadd.f32 %v1892_v44, %v1891_v43 }
 0x36c   : > { %1664 = vst.msk [vmem:[%s3044_s29 + $0xc8] sm:$0xff] %vm692_vm0, %v1085_v45  ;;  %v1070_v47 = vmul.f32 %v1893_v46, %v3116_v48  ;;  %v1894_v49 = vpop.f32.mrb[54].mxu0 }
 0x36d   : > { %v1895_v52 = vpop.f32.mrb[55].mxu0 }
 0x36e   : > { %v1086_v53 = vadd.f32 %v3118_v50, %v1070_v47  ;;  %v1896_v57 = vadd.f32 %v1895_v52, %v1894_v49 }
 0x370   : > { %1665 = vst.msk [vmem:[%s3044_s29 + $0xd0] sm:$0xff] %vm692_vm0, %v1086_v53  ;;  %v1071_v58 = vmul.f32 %v1896_v57, %v3116_v48 }
 0x372   : > { %v1087_v60 = vadd.f32 %v3118_v50, %v1071_v58 }
 0x374   : > { %1666 = vst.msk [vmem:[%s3044_s29 + $0xd8] sm:$0xff] %vm692_vm0, %v1087_v60 }
 0x378   : > { %v1929_v61 = vpop.f32.mrb[56].mxu0 }
 0x379   : > { %v1930_v22 = vpop.f32.mrb[57].mxu0 }
 0x37a   : > { %v1931_v28 = vadd.f32 %v1930_v22, %v1929_v61 }
 0x37c   : > { %v1454_v24 = vmul.f32 %v1931_v28, %v3176_v23  ;;  %v1932_v55 = vpop.f32.mrb[58].mxu0 }
 0x37d   : > { %v1933_v59 = vpop.f32.mrb[59].mxu0 }
 0x37e   : > { %v1470_v48 = vadd.f32 %v3178_v31, %v1454_v24  ;;  %v1934_v3 = vadd.f32 %v1933_v59, %v1932_v55 }
 0x380   : > { %1733 = vst.msk [vmem:[%s3044_s29 + $0xe0] sm:$0xff] %vm692_vm0, %v1470_v48  ;;  %v1455_v50 = vmul.f32 %v1934_v3, %v3176_v23  ;;  %v1935_v6 = vpop.f32.mrb[60].mxu0 }
 0x381   : > { %v1936_v15 = vpop.f32.mrb[61].mxu0 }
 0x382   : > { %v1471_v18 = vadd.f32 %v3178_v31, %v1455_v50  ;;  %v1937_v27 = vadd.f32 %v1936_v15, %v1935_v6 }
 0x384   : > { %1734 = vst.msk [vmem:[%s3044_s29 + $0xe8] sm:$0xff] %vm692_vm0, %v1471_v18  ;;  %v1456_v30 = vmul.f32 %v1937_v27, %v3176_v23  ;;  %v1938_v39 = vpop.f32.mrb[62].mxu0 }
 0x385   : > { %v1939_v42 = vpop.f32.mrb[63].mxu0 }
 0x386   : > { %v1472_v51 = vadd.f32 %v3178_v31, %v1456_v30  ;;  %v1940_v25 = vadd.f32 %v1939_v42, %v1938_v39 }
 0x388   : > { %1735 = vst.msk [vmem:[%s3044_s29 + $0xf0] sm:$0xff] %vm692_vm0, %v1472_v51  ;;  %v1457_v56 = vmul.f32 %v1940_v25, %v3176_v23  ;;  %v1941_v62 = vpop.f32.mrb[64].mxu0 }
 0x389   : > { %v1942_v2 = vpop.f32.mrb[65].mxu0 }
 0x38a   : > { %v1473_v63 = vadd.f32 %v3178_v31, %v1457_v56  ;;  %v1943_v7 = vadd.f32 %v1942_v2, %v1941_v62 }
 0x38c   : > { %1736 = vst.msk [vmem:[%s3044_s29 + $0xf8] sm:$0xff] %vm692_vm0, %v1473_v63  ;;  %v1458_v1 = vmul.f32 %v1943_v7, %v3176_v23  ;;  %v1944_v13 = vpop.f32.mrb[66].mxu0 }
 0x38d   : > { %v1945_v4 = vpop.f32.mrb[67].mxu0 }
 0x38e   : > { %v1474_v5 = vadd.f32 %v3178_v31, %v1458_v1  ;;  %v1946_v8 = vadd.f32 %v1945_v4, %v1944_v13 }
 0x390   : > { %1737 = vst.msk [vmem:[%s3044_s29 + $0x100] sm:$0xff] %vm692_vm0, %v1474_v5  ;;  %v1459_v9 = vmul.f32 %v1946_v8, %v3176_v23  ;;  %v1947_v10 = vpop.f32.mrb[68].mxu0 }
 0x391   : > { %v1948_v11 = vpop.f32.mrb[69].mxu0 }
 0x392   : > { %v1475_v12 = vadd.f32 %v3178_v31, %v1459_v9  ;;  %v1949_v14 = vadd.f32 %v1948_v11, %v1947_v10 }
 0x394   : > { %1738 = vst.msk [vmem:[%s3044_s29 + $0x108] sm:$0xff] %vm692_vm0, %v1475_v12  ;;  %v1460_v0 = vmul.f32 %v1949_v14, %v3176_v23  ;;  %v1950_v16 = vpop.f32.mrb[70].mxu0 }
 0x395   : > { %v1951_v17 = vpop.f32.mrb[71].mxu0 }
 0x396   : > { %v1476_v19 = vadd.f32 %v3178_v31, %v1460_v0  ;;  %v1952_v20 = vadd.f32 %v1951_v17, %v1950_v16 }
 0x398   : > { %1739 = vst.msk [vmem:[%s3044_s29 + $0x110] sm:$0xff] %vm692_vm0, %v1476_v19  ;;  %v1461_v21 = vmul.f32 %v1952_v20, %v3176_v23  ;;  %v1953_v54 = vpop.f32.mrb[72].mxu0 }
 0x399   : > { %v1954_v26 = vpop.f32.mrb[73].mxu0 }
 0x39a   : > { %v1477_v29 = vadd.f32 %v3178_v31, %v1461_v21  ;;  %v1955_v32 = vadd.f32 %v1954_v26, %v1953_v54 }
 0x39c   : > { %1740 = vst.msk [vmem:[%s3044_s29 + $0x118] sm:$0xff] %vm692_vm0, %v1477_v29  ;;  %v1462_v33 = vmul.f32 %v1955_v32, %v3176_v23  ;;  %v1956_v34 = vpop.f32.mrb[74].mxu0 }
 0x39d   : > { %v1957_v35 = vpop.f32.mrb[75].mxu0 }
 0x39e   : > { %v1478_v36 = vadd.f32 %v3178_v31, %v1462_v33  ;;  %v1958_v37 = vadd.f32 %v1957_v35, %v1956_v34 }
 0x3a0   : > { %1741 = vst.msk [vmem:[%s3044_s29 + $0x120] sm:$0xff] %vm692_vm0, %v1478_v36  ;;  %v1463_v38 = vmul.f32 %v1958_v37, %v3176_v23  ;;  %v1959_v40 = vpop.f32.mrb[76].mxu0 }
 0x3a1   : > { %v1960_v41 = vpop.f32.mrb[77].mxu0 }
 0x3a2   : > { %v1479_v43 = vadd.f32 %v3178_v31, %v1463_v38  ;;  %v1961_v44 = vadd.f32 %v1960_v41, %v1959_v40 }
 0x3a4   : > { %1742 = vst.msk [vmem:[%s3044_s29 + $0x128] sm:$0xff] %vm692_vm0, %v1479_v43  ;;  %v1464_v45 = vmul.f32 %v1961_v44, %v3176_v23  ;;  %v1962_v46 = vpop.f32.mrb[78].mxu0 }
 0x3a5   : > { %v1963_v47 = vpop.f32.mrb[79].mxu0 }
 0x3a6   : > { %v1480_v49 = vadd.f32 %v3178_v31, %v1464_v45  ;;  %v1964_v52 = vadd.f32 %v1963_v47, %v1962_v46 }
 0x3a8   : > { %1743 = vst.msk [vmem:[%s3044_s29 + $0x130] sm:$0xff] %vm692_vm0, %v1480_v49  ;;  %v1465_v53 = vmul.f32 %v1964_v52, %v3176_v23  ;;  %v1965_v57 = vpop.f32.mrb[84].mxu1 }
 0x3a9   : > { %v1966_v58 = vpop.f32.mrb[85].mxu1 }
 0x3aa   : > { %v1481_v60 = vadd.f32 %v3178_v31, %v1465_v53  ;;  %v1967_v61 = vadd.f32 %v1966_v58, %v1965_v57 }
 0x3ac   : > { %1744 = vst.msk [vmem:[%s3044_s29 + $0x138] sm:$0xff] %vm692_vm0, %v1481_v60  ;;  %v1466_v22 = vmul.f32 %v1967_v61, %v3176_v23  ;;  %v1968_v28 = vpop.f32.mrb[86].mxu1 }
 0x3ad   : > { %v1969_v24 = vpop.f32.mrb[87].mxu1 }
 0x3ae   : > { %v1482_v55 = vadd.f32 %v3178_v31, %v1466_v22  ;;  %v1970_v59 = vadd.f32 %v1969_v24, %v1968_v28 }
 0x3b0   : > { %1745 = vst.msk [vmem:[%s3044_s29 + $0x140] sm:$0xff] %vm692_vm0, %v1482_v55  ;;  %v1467_v48 = vmul.f32 %v1970_v59, %v3176_v23 }
 0x3b2   : > { %v1483_v3 = vadd.f32 %v3178_v31, %v1467_v48 }
 0x3b4   : > { %1746 = vst.msk [vmem:[%s3044_s29 + $0x148] sm:$0xff] %vm692_vm0, %v1483_v3 }
 0x3b5 PF: > { %s17_s18 = sadd.s32 1, %s2351_s18  }
 0x3b6   : > { %p14_p5 = scmp.ge.s32.totalorder %s17_s18, 6  }
 0x3b8   :  { %16 = sbr.rel (!%p14_p5) target bundleno = 2 (0x2), region = 83 }
 0x3bf   :  { %1520 = vsyncpa [#allocation3], 1 }
 0x3c0   :  { %1522 = vsyncpa [#allocation3 + $0x1], 1 }
 0x3c1   :  { %1523 = vsyncpa [#allocation5], 1 }

// kernel: id_loss_forward.5
= control target key start
LH: loop header
LB: loop body
LE: loop exit
PB: predicated region body
PF: predicated region fallthrough
CT: control target
= control target key end

     0   :  { %8 = vsyncpa [#allocation3], 0  ;;  %vm22_vm0 = vcmask 1043456   ;;  %s259_s0 = inlined_call_operand.vmem [shape: f32[4,512], index: 0, kind: input, shape index: {}]   ;;  %s260_s1 = inlined_call_operand.hbm [shape: f32[1,1], index: 1, kind: output, shape index: {0}]   ;;  %s261_s2 = inlined_call_operand.hbm [shape: f32[1,1], index: 2, kind: output, shape index: {1}]  }
   0x1   :  { %v12_v0 = vld [vmem:[%s259_s0] sm:$0xff]  ;;  %v13_v1 = vld [vmem:[%s259_s0 + $0x8] sm:$0xff] }
   0x2   :  { %v14_v2 = vmul.f32 %v12_v0, %v12_v0  ;;  %v15_v3 = vmul.f32 %v13_v1, %v13_v1 }
   0x3   :  { %9 = vsyncpa [#allocation5], 0  ;;  %v198_v15 = vmov 839922192   ;;  %v38_v17 = vlaneseq  ;;  %vm79_vm1 = vcmask 1043458   ;;  %vm61_vm2 = vcmask 1041408  }
   0x4   :  { %v18_v4 = vcombine.high %v14_v2, %v14_v2  ;;  %v19_v5 = vcombine.high %v15_v3, %v15_v3  ;;  %v23_v6 = vsel %vm22_vm0, %v14_v2, 0.0  ;;  %v26_v8 = vsel %vm22_vm0, %v15_v3, 0.0  ;;  %s199_s0 = smov [#allocation2]   ;;  %s200_s14 = smov [#allocation4]  }
   0x5   :  { %v36_v16 = vunpack.c.l.s4 %v198_v15  ;;  %v39_v19 = vshrl.u32 %v38_v17, 7  ;;  %vm105_vm3 = vcmask 1024   ;;  %s121_s13 = sshll.u32 %s199_s0, 4  ;;  %s131_s15 = sshll.u32 %s200_s14, 4  ;;  %vm99_vm4 = vcmask 0   ;;  %s122_s13 = int_to_ptr.vmem [resolvable:$true] %s121_s13  ;;  %s227_s15 = int_to_ptr.vmem [resolvable:$true] %s131_s15 }
   0x6   :  { %v24_v7 = vsel %vm22_vm0, %v18_v4, 0.0  ;;  %v28_v10 = vsel %vm22_vm0, %v19_v5, 0.0  ;;  %s150_s16 = scalar_lea.vmem %s122_s13, 16  ;;  %s154_s17 = scalar_lea.vmem %s122_s13, 32 }
   0x7   :  { %v25_v9 = vadd.f32 %v24_v7, %v23_v6  ;;  %v37_v18 = vunpack.c.0.s8 %v36_v16  ;;  %p151_p0 = scmp.ne.s32.totalorder %s122_s13, %s150_s16  ;;  %p155_p1 = scmp.lt.s32.totalorder %s122_s13, %s122_s13 }
   0x8   :  { %p156_p2 = scmp.lt.s32.totalorder %s154_s17, %s150_s16 }
   0x9   :  { %v27_v11 = vadd.f32 %v26_v8, %v25_v9  ;;  %v40_v20 = vsub.s32 %v37_v18, %v39_v19 }
   0xa   :  { %p157_p3 = por %p156_p2, %p155_p1 }
   0xb   :  { %v29_v12 = vadd.f32 %v28_v10, %v27_v11 }
   0xc   :  { %p158_p4 = pnand %p157_p3, %p151_p0 }
   0xd   :  { %30 = vadd.xlane.f32.xlu0 %v29_v12 }
  0x9a   :  { %v31_v13 = vpop.xlane.xlu0 %30 }
  0x9b   :  { %v32_v14 = vadd.f32 1e-12, %v31_v13 }
  0x9d   :  { %148 = vrsqrt.f32 %v32_v14 }
  0xa7   :  { %v149_v21 = vpop.eup %148 }
  0xa8   :  { %v41_v22 = vrot.slane %v149_v21, %v40_v20 }
  0xaa   :  { %v43_v23 = vmul.f32 %v41_v22, %v12_v0  ;;  %v44_v24 = vmul.f32 %v41_v22, %v13_v1 }
  0xac   :  { %v71_v25 = vmul.f32 %v43_v23, %v43_v23  ;;  %v72_v26 = vmul.f32 %v44_v24, %v44_v24  ;;  %v143_v27 = vrot.slane %v43_v23, 10  ;;  %v144_v28 = vrot.slane %v44_v24, 10 }
  0xae   :  { %v75_v29 = vcombine.high %v71_v25, %v71_v25  ;;  %v53_v30 = vmul.f32 %v143_v27, %v43_v23  ;;  %v54_v31 = vmul.f32 %v144_v28, %v44_v24  ;;  %v76_v32 = vcombine.high %v72_v26, %v72_v26 }
  0xaf   :  { %v80_v33 = vsel %vm79_vm1, %v71_v25, 0.0  ;;  %v83_v37 = vsel %vm79_vm1, %v72_v26, 0.0 }
  0xb0   :  { %v81_v34 = vsel %vm79_vm1, %v75_v29, 0.0  ;;  %v57_v36 = vcombine.high %v53_v30, %v53_v30  ;;  %v58_v39 = vcombine.high %v54_v31, %v54_v31  ;;  %v62_v40 = vsel %vm61_vm2, %v53_v30, 0.0 }
  0xb1   :  { %v82_v35 = vadd.f32 %v81_v34, %v80_v33  ;;  %v85_v42 = vsel %vm79_vm1, %v76_v32, 0.0  ;;  %v65_v45 = vsel %vm61_vm2, %v54_v31, 0.0 }
  0xb2   :  { %v63_v41 = vsel %vm61_vm2, %v57_v36, 0.0  ;;  %v67_v47 = vsel %vm61_vm2, %v58_v39, 0.0 }
  0xb3   :  { %v84_v38 = vadd.f32 %v83_v37, %v82_v35  ;;  %v64_v43 = vadd.f32 %v63_v41, %v62_v40 }
  0xb5   :  { %v86_v44 = vadd.f32 %v85_v42, %v84_v38  ;;  %v66_v46 = vadd.f32 %v65_v45, %v64_v43 }
  0xb7   :  { %87 = vadd.xlane.f32.xlu0 %v86_v44  ;;  %v68_v48 = vadd.f32 %v67_v47, %v66_v46 }
  0xb9   :  { %69 = vadd.xlane.f32.xlu1 %v68_v48 }
 0x144   :  { %v88_v49 = vpop.xlane.xlu0 %87 }
 0x145   :  { %v102_v50 = vrot.slane %v88_v49, 2 }
 0x146   :  { %v70_v51 = vpop.xlane.xlu1 %69 }
 0x147   :  { %v89_v52 = vsub.f32 1.0, %v70_v51  ;;  %v104_v53 = vsub.f32 %v70_v51, %v102_v50 }
 0x149   :  { %v90_v54 = vsel %vm61_vm2, %v89_v52, 0.0  ;;  %v106_v55 = vsel %vm105_vm3, %v104_v53, 0.0 }
 0x14a   :  { %v91_v56 = vrot.slane %v90_v54, 4  ;;  %v107_v57 = vrot.slane %v106_v55, 4 }
 0x14c   :  { %v92_v58 = vadd.f32 %v91_v56, %v90_v54  ;;  %v108_v59 = vadd.f32 %v107_v57, %v106_v55 }
 0x14e   :  { %v93_v60 = vrot.slane %v92_v58, 2  ;;  %v109_v61 = vrot.slane %v108_v59, 2 }
 0x150   :  { %v110_v62 = vadd.f32 %v109_v61, %v108_v59  ;;  %v94_v63 = vadd.f32 %v93_v60, %v92_v58 }
 0x152   :  { %v95_v0 = vrot.slane %v94_v63, 1  ;;  %v111_v1 = vrot.slane %v110_v62, 1 }
 0x154   :  { %v96_v2 = vadd.f32 %v95_v0, %v94_v63  ;;  %v112_v3 = vadd.f32 %v111_v1, %v110_v62 }
 0x156   :  { %v98_v4 = vmul.f32 0.5, %v96_v2  ;;  %v113_v5 = vmul.f32 0.5, %v112_v3 }
 0x158   :  { %100 = vst.msk [vmem:[#allocation2] sm:$0x1] %vm99_vm4, %v98_v4  ;;  %114 = vst.msk [vmem:[#allocation4] sm:$0x1] %vm99_vm4, %v113_v5 }
 0x159   :  { %161 = shalt.err (!%p158_p4)
}
 0x15a   :  { %s162_s20 = scalar_lea.hbm %s260_s1, 16 }
 0x15b   :  { %p163_p5 = scmp.ne.s32.totalorder %s260_s1, %s162_s20  ;;  %p166_p6 = scmp.lt.u32.totalorder %s162_s20, %s260_s1 }
 0x15d   :  { %p168_p7 = pnand %p166_p6, %p163_p5 }
 0x15f   :  { %171 = shalt.err (!%p168_p7)
}
 0x160   :  { %124 = dma.vmem_to_hbm [thread:$0]  %s122_s13, 16, %s260_s1, [#allocation3]  }
 0x161   :  { %s172_s27 = scalar_lea.vmem %s227_s15, 16  ;;  %s176_s28 = scalar_lea.vmem %s227_s15, 32 }
 0x162   :  { %p173_p8 = scmp.ne.s32.totalorder %s227_s15, %s172_s27  ;;  %p177_p9 = scmp.lt.s32.totalorder %s227_s15, %s227_s15 }
 0x163   :  { %p178_p10 = scmp.lt.s32.totalorder %s176_s28, %s172_s27 }
 0x165   :  { %p179_p11 = por %p178_p10, %p177_p9 }
 0x167   :  { %p180_p12 = pnand %p179_p11, %p173_p8 }
 0x169   :  { %183 = shalt.err (!%p180_p12)
}
 0x16a   :  { %s184_s3 = scalar_lea.hbm %s261_s2, 16 }
 0x16b   :  { %p185_p13 = scmp.ne.s32.totalorder %s261_s2, %s184_s3  ;;  %p188_p0 = scmp.lt.u32.totalorder %s184_s3, %s261_s2 }
 0x16d   :  { %p190_p1 = pnand %p188_p0, %p185_p13 }
 0x16f   :  { %193 = shalt.err (!%p190_p1)
}
 0x170   :  { %134 = dma.vmem_to_hbm [thread:$0]  %s227_s15, 16, %s261_s2, [#allocation5]  }
 0x171   :  { %194 = dma.done.wait [#allocation3], 16  }
 0x172   :  { %195 = vsyncadd [#allocation3], 4294967280 }
 0x173   :  { %196 = dma.done.wait [#allocation5], 16  }
 0x174   :  { %197 = vsyncadd [#allocation5], 4294967280 }
 0x175   :  { %141 = vsyncpa [#allocation3], 1 }
 0x176   :  { %142 = vsyncpa [#allocation5], 1 }

// kernel: id_loss_forward.4
= control target key start
LH: loop header
LB: loop body
LE: loop exit
PB: predicated region body
PF: predicated region fallthrough
CT: control target
= control target key end

     0   :  { %7 = vsyncpa [#allocation4], 0  ;;  %s18794_s0 = inlined_call_operand.vmem [shape: bf16[4,37632], index: 0, kind: input, shape index: {}]   ;;  %s18795_s1 = inlined_call_operand.hbm [shape: bf16[37632,512], index: 1, kind: input, shape index: {}]   ;;  %s18796_s2 = inlined_call_operand.vmem [shape: f32[4,512], index: 2, kind: output, shape index: {}]  }
   0x1   :  { %9 = vsyncpa [#allocation4 + $0x1], 0  ;;  %s16647_s9 = smov 0   ;;  %s16649_s10 = smov 0  }
   0x2   :  { %s16651_s11 = smov 0   ;;  %s16653_s12 = smov 0  }
   0x3   :  { %s16655_s13 = smov 0   ;;  %s16657_s14 = smov 0  }
   0x4   :  { %s16659_s15 = smov 0   ;;  %s16661_s16 = smov 0  }
   0x5 LB: > { %s12299_s17 = sadd.s32 4294967295, %s16624_s16   ;;  %s24_s18 = sadd.s32 1, %s16616_s14  ;;  %s16624_s16 = sphi %s16661_s16, %s15_s16   ;;  %s16620_s15 = sphi %s16659_s15, %s18806_s15   ;;  %s16616_s14 = sphi %s16657_s14, %s18805_s14   ;;  %s16612_s13 = sphi %s16655_s13, %s18804_s13   ;;  %s16608_s12 = sphi %s16653_s12, %s18803_s12   ;;  %s16604_s11 = sphi %s16651_s11, %s18802_s11   ;;  %s16600_s10 = sphi %s16649_s10, %s18801_s10   ;;  %s16596_s9 = sphi %s16647_s9, %s18800_s9  }
   0x6   : > { %p25_p0 = scmp.ge.s32.totalorder %s24_s18, 3  ;;  %s27_s19 = sadd.s32 1, %s16620_s15 }
   0x7   : > { %s62_s20 = sadd.s32 1, %s16604_s11  ;;  %p69_p1 = scmp.ne.s32.totalorder %s16604_s11, %s16600_s10 }
   0x8   : > { %s18808_s18 = smov (%p25_p0, %s24_s18), 0  ;;  %s18810_s19 = smov (!%p25_p0, %s27_s19), %s16620_s15 }
   0x9   : > { %s57_s21 = ssub.s32 %s16616_s14, %s18808_s18  ;;  %p70_p2 = scmp.eq.s32.totalorder %s16624_s16, 0 }
   0xa   : > { %p29_p3 = scmp.ge.s32.totalorder %s18810_s19, 2  ;;  %p75_p4 = scmp.ne.s32.totalorder %s16600_s10, %s16596_s9 }
   0xb   : > { %p16698_p5 = por %p70_p2, %p69_p1  ;;  %p76_p6 = scmp.eq.s32.totalorder %s12299_s17, 0 }
   0xc   : > { %s18812_s19 = smov (%p29_p3, %s18810_s19), 0  ;;  %p14082_p8 = scmp.lt.s32.totalorder %s16624_s16, 6 }
   0xd   : > { %p16704_p7 = por %p76_p6, %p75_p4  ;;  %s58_s24 = ssub.s32 %s16620_s15, %s18812_s19 }
   0xe   : > { %s59_s25 = sor.u32 %s58_s24, %s57_s21  ;;  %s134_s26 = sand.u32 1, %s16604_s11  }
   0xf   : > { %p60_p9 = scmp.eq.s32.totalorder %s59_s25, 0  ;;  %s14074_s27 = smul.u32 12544, %s134_s26 }
  0x10   : > { %s12303_s28 = sshll.u32 %s16620_s15, 1  ;;  %s13883_s30 = smul.u32 6272, %s16616_s14 }
  0x11   : > { %s16714_s29 = scalar_select %p60_p9, %s16604_s11, %s62_s20  }
  0x12   : > { %s138_s3 = scalar_lea.vmem [#allocation3], %s14074_s27  ;;  %p16719_p10 = pnand %p14082_p8, %p16698_p5 }
  0x13   : > { %s148_s4 = sshll.u32 %s138_s3, 4  ;;  %s145_s6 = sadd.s32 %s13883_s30, %s12303_s28  ;;  %s16723_s4 = int_to_ptr.vmem [resolvable:$true] %s148_s4 }
  0x14   : > { %s12305_s7 = sshll.u32 %s145_s6, 6  ;;  %s16730_s20 = scalar_lea.sflag [#allocation4], %s134_s26 }
  0x15   : > { %s16728_s17 = scalar_lea.hbm %s18795_s1, %s12305_s7  ;;  %p16530_p12 = pneg %p16719_p10 }
  0x16   : > { %s16528_s21 = scalar_lea.hbm %s16728_s17, 200704  ;;  %s16533_s25 = scalar_lea.hbm %s18795_s1, 1204224 }
  0x17   : > { %p16529_p11 = scmp.ne.s32.totalorder %s16728_s17, %s16528_s21  ;;  %p16534_p1 = scmp.lt.u32.totalorder %s16728_s17, %s18795_s1 }
  0x18   : > { %p16535_p2 = scmp.lt.u32.totalorder %s16533_s25, %s16528_s21  ;;  %p16537_p4 = scmp.lt.u32.totalorder %s16528_s21, %s16728_s17 }
  0x19   : > { %p16531_p13 = pnand %p16530_p12, %p16529_p11 }
  0x1a   : > { %p16536_p3 = por %p16535_p2, %p16534_p1 }
  0x1b   : > { %p16532_p0 = pneg %p16531_p13 }
  0x1c   : > { %p16538_p5 = por %p16537_p4, %p16536_p3 }
  0x1e   : > { %p16539_p6 = pnand %p16538_p5, %p16532_p0 }
  0x20   : > { %16542 = shalt.err (!%p16539_p6)
}
  0x21   : > { %s16543_s26 = scalar_lea.vmem %s16723_s4, 200704  ;;  %s16626_s30 = smov [#allocation3]  }
  0x22   : > { %p16544_p8 = scmp.ne.s32.totalorder %s16723_s4, %s16543_s26  ;;  %s16548_s3 = sshll.u32 %s16626_s30, 4  ;;  %s16549_s3 = int_to_ptr.vmem [resolvable:$false] %s16548_s3 }
  0x23   : > { %s16550_s6 = scalar_lea.vmem %s16549_s3, 401408  ;;  %p16551_p13 = scmp.lt.s32.totalorder %s16723_s4, %s16549_s3 }
  0x24   : > { %p16546_p9 = pnand %p16544_p8, %p16530_p12  ;;  %p16552_p1 = scmp.lt.s32.totalorder %s16550_s6, %s16543_s26 }
  0x26   : > { %p16547_p11 = pneg %p16546_p9  ;;  %p16553_p2 = por %p16552_p1, %p16551_p13 }
  0x28   : > { %p16554_p3 = pnand %p16553_p2, %p16547_p11 }
  0x2a   : > { %16557 = shalt.err (!%p16554_p3)
}
  0x2b   : > { %s16627_s7 = smov 256   ;;  %s16628_s8 = smov 128  }
  0x2c   : > { %s16629_s9 = smov 8   ;;  %p12306_p12 = scmp.ge.s32.totalorder %s16624_s16, 1 }
  0x2d   : > { %14081 = dma.hbm_to_vmem [thread:$0]  (!%p16719_p10), %s16728_s17, 200704, %s16723_s4, %s16730_s20, %s16627_s7, %s16628_s8, %s16629_s9  }
  0x2e   : > { %p156_p0 = scmp.lt.s32.totalorder %s16624_s16, 7 }
  0x30   : > { %p157_p4 = pnand %p12306_p12, %p156_p0 }
  0x31   : > { %s162_s21 = sand.u32 (!%p157_p4), 1, %s16600_s10  }
  0x32   : > { %160 = sbr.rel (%p157_p4) target bundleno = 1898 (0x76a), region = 28  ;;  %s163_s24 = scalar_lea.sflag (!%p157_p4), [#allocation4], %s162_s21 }
  0x33   : > { %s14075_s22 = smul.u32 (!%p157_p4), 12544, %s162_s21 }
  0x35   : > { %s16761_s25 = scalar_lea.vmem (!%p157_p4), [#allocation3], %s14075_s22 }
  0x39   : > { %16591 = dma.done.wait (%p16704_p7), %s163_s24, 200704  }
  0x3a   : > { %16593 = vsyncadd (%p16704_p7), %s163_s24, 4294766592  ;;  %s192_s5 = smul.u32 98, %s16608_s12  ;;  %s12308_s4 = sshll.u32 %s16612_s13, 1 }
  0x3b   : > { %p201_p10 = scmp.lt.s32.totalorder %s12308_s4, 3  ;;  %p12310_p7 = scmp.ne.s32.totalorder %s16608_s12, 0 }
  0x3c   : > { %p193_p5 = scmp.lt.s32.totalorder %s192_s5, 293  ;;  %v16630_v0 = vmov (!%p12310_p7), 0.0  }
  0x3d   : > { %s18814_s4 = smov (!%p201_p10, %s12308_s4), 3  ;;  %209 = sbr.rel (%p12310_p7) target bundleno = 68 (0x44), region = 36 }
  0x3e   : > { %s18816_s5 = smov (!%p193_p5, %s192_s5), 293  ;;  %s12309_s17 = sshll.u32 %s18814_s4, 2  ;;  %210 = vst [vmem:[#allocation2] sm:$0xff] (!%p12310_p7), %v16630_v0 }
  0x3f   : > { %s12307_s20 = sshll.u32 %s18816_s5, 1  ;;  %s16772_s26 = scalar_lea.vmem %s18796_s2, %s12309_s17 }
  0x40   : > { %s16777_s23 = scalar_lea.vmem %s18794_s0, %s12307_s20 }
  0x44 PF: > { %v14152_v1 = vld [vmem:[%s16761_s25 + $0x4] ss:$8 sps:$4 sm:$0xff]   ;;  %v14156_v3 = vld [vmem:[%s16761_s25] ss:$8 sps:$4 sm:$0xff]   ;;  %v14158_v5 = vld [vmem:[%s16761_s25 + $0x14] ss:$8 sps:$4 sm:$0xff]   ;;  %v1834_v39 = vlaneseq }
  0x45   : > { %v14154_v2 = vld [vmem:[%s16761_s25 + $0x1804] ss:$8 sps:$4 sm:$0xff]   ;;  %10184 = vmatprep.subr.bf16.mxu1 %v14152_v1  ;;  %v14157_v4 = vld [vmem:[%s16761_s25 + $0x1800] ss:$8 sps:$4 sm:$0xff]   ;;  %v14160_v6 = vld [vmem:[%s16761_s25 + $0x1814] ss:$8 sps:$4 sm:$0xff]  }
  0x46   : > { %11168 = vmatprep.subr.bf16.mxu0 %v14154_v2  ;;  %10185 = vmatpush1.bf16.msra.mxu1 %v14156_v3  ;;  %v14162_v7 = vld [vmem:[%s16761_s25 + $0x10] ss:$8 sps:$4 sm:$0xff]   ;;  %v14164_v9 = vld [vmem:[%s16761_s25 + $0x24] ss:$8 sps:$4 sm:$0xff]   ;;  %v14168_v11 = vld [vmem:[%s16761_s25 + $0x20] ss:$8 sps:$4 sm:$0xff]  }
  0x47   : > { %11169 = vmatpush1.bf16.msra.mxu0 %v14157_v4  ;;  %10186 = vmatprep.subr.bf16.mxu1 %v14158_v5  ;;  %v14163_v8 = vld [vmem:[%s16761_s25 + $0x1810] ss:$8 sps:$4 sm:$0xff]   ;;  %v14166_v10 = vld [vmem:[%s16761_s25 + $0x1824] ss:$8 sps:$4 sm:$0xff]   ;;  %v14169_v12 = vld [vmem:[%s16761_s25 + $0x1820] ss:$8 sps:$4 sm:$0xff]  }
  0x48   : > { %11170 = vmatprep.subr.bf16.mxu0 %v14160_v6  ;;  %v14170_v13 = vld [vmem:[%s16761_s25 + $0x34] ss:$8 sps:$4 sm:$0xff]   ;;  %v14174_v15 = vld [vmem:[%s16761_s25 + $0x30] ss:$8 sps:$4 sm:$0xff]   ;;  %v14176_v17 = vld [vmem:[%s16761_s25 + $0x44] ss:$8 sps:$4 sm:$0xff]  }
  0x49   : > { %v14172_v14 = vld [vmem:[%s16761_s25 + $0x1834] ss:$8 sps:$4 sm:$0xff]   ;;  %v14175_v16 = vld [vmem:[%s16761_s25 + $0x1830] ss:$8 sps:$4 sm:$0xff]   ;;  %v14178_v18 = vld [vmem:[%s16761_s25 + $0x1844] ss:$8 sps:$4 sm:$0xff]  }
  0x4a   : > { %10187 = vmatpush1.bf16.msra.mxu1 %v14162_v7  ;;  %v14180_v19 = vld [vmem:[%s16761_s25 + $0x40] ss:$8 sps:$4 sm:$0xff]   ;;  %v14182_v21 = vld [vmem:[%s16761_s25 + $0x54] ss:$8 sps:$4 sm:$0xff]   ;;  %v14186_v23 = vld [vmem:[%s16761_s25 + $0x50] ss:$8 sps:$4 sm:$0xff]  }
  0x4b   : > { %11171 = vmatpush1.bf16.msra.mxu0 %v14163_v8  ;;  %10188 = vmatprep.subr.bf16.mxu1 %v14164_v9  ;;  %v14181_v20 = vld [vmem:[%s16761_s25 + $0x1840] ss:$8 sps:$4 sm:$0xff]   ;;  %v14184_v22 = vld [vmem:[%s16761_s25 + $0x1854] ss:$8 sps:$4 sm:$0xff]   ;;  %v14187_v24 = vld [vmem:[%s16761_s25 + $0x1850] ss:$8 sps:$4 sm:$0xff]  }
  0x4c   : > { %11172 = vmatprep.subr.bf16.mxu0 %v14166_v10  ;;  %v14188_v25 = vld [vmem:[%s16761_s25 + $0x64] ss:$8 sps:$4 sm:$0xff]   ;;  %v14192_v27 = vld [vmem:[%s16761_s25 + $0x60] ss:$8 sps:$4 sm:$0xff]   ;;  %v14194_v29 = vld [vmem:[%s16761_s25 + $0x74] ss:$8 sps:$4 sm:$0xff]  }
  0x4d   : > { %v14190_v26 = vld [vmem:[%s16761_s25 + $0x1864] ss:$8 sps:$4 sm:$0xff]   ;;  %v14193_v28 = vld [vmem:[%s16761_s25 + $0x1860] ss:$8 sps:$4 sm:$0xff]   ;;  %v14196_v30 = vld [vmem:[%s16761_s25 + $0x1874] ss:$8 sps:$4 sm:$0xff]  }
  0x4e   : > { %10189 = vmatpush1.bf16.msra.mxu1 %v14168_v11  ;;  %v14198_v31 = vld [vmem:[%s16761_s25 + $0x70] ss:$8 sps:$4 sm:$0xff]   ;;  %v14200_v33 = vld [vmem:[%s16761_s25 + $0x84] ss:$8 sps:$4 sm:$0xff]   ;;  %v14204_v35 = vld [vmem:[%s16761_s25 + $0x80] ss:$8 sps:$4 sm:$0xff]  }
  0x4f   : > { %11173 = vmatpush1.bf16.msra.mxu0 %v14169_v12  ;;  %10190 = vmatprep.subr.bf16.mxu1 %v14170_v13  ;;  %v14199_v32 = vld [vmem:[%s16761_s25 + $0x1870] ss:$8 sps:$4 sm:$0xff]   ;;  %v14202_v34 = vld [vmem:[%s16761_s25 + $0x1884] ss:$8 sps:$4 sm:$0xff]   ;;  %v14205_v36 = vld [vmem:[%s16761_s25 + $0x1880] ss:$8 sps:$4 sm:$0xff]  }
  0x50   : > { %11174 = vmatprep.subr.bf16.mxu0 %v14172_v14  ;;  %v16631_v37 = vmov 1983009808   ;;  %v14206_v40 = vld [vmem:[%s16761_s25 + $0x94] ss:$8 sps:$4 sm:$0xff]   ;;  %v14210_v42 = vld [vmem:[%s16761_s25 + $0x90] ss:$8 sps:$4 sm:$0xff]  }
  0x51   : > { %v1832_v38 = vunpack.c.l.s4 %v16631_v37  ;;  %v14208_v41 = vld [vmem:[%s16761_s25 + $0x1894] ss:$8 sps:$4 sm:$0xff]   ;;  %v1835_v44 = vshrl.u32 %v1834_v39, 7  ;;  %v14211_v45 = vld [vmem:[%s16761_s25 + $0x1890] ss:$8 sps:$4 sm:$0xff]   ;;  %p13880_p6 = scmp.ne.s32.totalorder %s16608_s12, 2 }
  0x52   : > { %10191 = vmatpush1.bf16.msra.mxu1 %v14174_v15  ;;  %v14212_v46 = vld [vmem:[%s16761_s25 + $0xa4] ss:$8 sps:$4 sm:$0xff]   ;;  %v14216_v48 = vld [vmem:[%s16761_s25 + $0xa0] ss:$8 sps:$4 sm:$0xff]   ;;  %v14218_v51 = vld [vmem:[%s16761_s25 + $0xb4] ss:$8 sps:$4 sm:$0xff]  }
  0x53   : > { %11175 = vmatpush1.bf16.msra.mxu0 %v14175_v16  ;;  %10192 = vmatprep.subr.bf16.mxu1 %v14176_v17  ;;  %v1833_v43 = vunpack.c.0.s8 %v1832_v38  ;;  %v14214_v47 = vld [vmem:[%s16761_s25 + $0x18a4] ss:$8 sps:$4 sm:$0xff]   ;;  %v14217_v49 = vld [vmem:[%s16761_s25 + $0x18a0] ss:$8 sps:$4 sm:$0xff]   ;;  %v14220_v52 = vld [vmem:[%s16761_s25 + $0x18b4] ss:$8 sps:$4 sm:$0xff]  }
  0x54   : > { %11176 = vmatprep.subr.bf16.mxu0 %v14178_v18  ;;  %v212_v53 = vld [vmem:[%s16777_s23] sm:$0xff]  ;;  %v14224_v58 = vld [vmem:[%s16761_s25 + $0xc4] ss:$8 sps:$4 sm:$0xff]   ;;  %v14228_v63 = vld [vmem:[%s16761_s25 + $0xc0] ss:$8 sps:$4 sm:$0xff]  }
  0x55   : > { %v16824_v50 = vsub.s32 %v1833_v43, %v1835_v44  ;;  %v14222_v54 = vld [vmem:[%s16761_s25 + $0xb0] ss:$8 sps:$4 sm:$0xff]   ;;  %v14226_v59 = vld [vmem:[%s16761_s25 + $0x18c4] ss:$8 sps:$4 sm:$0xff]   ;;  %v14229_v0 = vld [vmem:[%s16761_s25 + $0x18c0] ss:$8 sps:$4 sm:$0xff]   ;;  %v1830_v11 = vcombine.high %v212_v53, %v212_v53 }
  0x56   : > { %10193 = vmatpush1.bf16.msra.mxu1 %v14180_v19  ;;  %v14223_v56 = vld [vmem:[%s16761_s25 + $0x18b0] ss:$8 sps:$4 sm:$0xff]   ;;  %v14230_v1 = vld [vmem:[%s16761_s25 + $0xd4] ss:$8 sps:$4 sm:$0xff]   ;;  %v14236_v5 = vld [vmem:[%s16761_s25 + $0xe4] ss:$8 sps:$4 sm:$0xff]  }
  0x57   : > { %11177 = vmatpush1.bf16.msra.mxu0 %v14181_v20  ;;  %10194 = vmatprep.subr.bf16.mxu1 %v14182_v21  ;;  %v1837_v55 = vrot.slane %v212_v53, %v16824_v50  ;;  %v224_v57 = vld [vmem:[%s16777_s23 + $0x60] sm:$0xff]  ;;  %v14238_v6 = vld [vmem:[%s16761_s25 + $0x18e4] ss:$8 sps:$4 sm:$0xff]   ;;  %v14240_v7 = vld [vmem:[%s16761_s25 + $0xe0] ss:$8 sps:$4 sm:$0xff]   ;;  %v16853_v17 = vrot.slane %v1830_v11, %v16824_v50 }
  0x58   : > { %11178 = vmatprep.subr.bf16.mxu0 %v14184_v22  ;;  %v2041_v61 = vrot.slane %v224_v57, %v16824_v50  ;;  %v14232_v2 = vld [vmem:[%s16761_s25 + $0x18d4] ss:$8 sps:$4 sm:$0xff]   ;;  %v14234_v3 = vld [vmem:[%s16761_s25 + $0xd0] ss:$8 sps:$4 sm:$0xff]   ;;  %v14241_v8 = vld [vmem:[%s16761_s25 + $0x18e0] ss:$8 sps:$4 sm:$0xff]   ;;  %v2034_v12 = vcombine.high %v224_v57, %v224_v57 }
  0x59   : > { %v1845_v60 = vcombine.high %v1837_v55, %v1837_v55  ;;  %v14235_v4 = vld [vmem:[%s16761_s25 + $0x18d0] ss:$8 sps:$4 sm:$0xff]   ;;  %v14242_v9 = vld [vmem:[%s16761_s25 + $0xf4] ss:$8 sps:$4 sm:$0xff]   ;;  %v14251_v15 = vld [vmem:[%s16761_s25 + $0x104] ss:$8 sps:$4 sm:$0xff]  }
  0x5a   : > { %10195 = vmatpush1.bf16.msra.mxu1 %v14186_v23  ;;  %v2049_v62 = vcombine.high %v2041_v61, %v2041_v61  ;;  %v14244_v10 = vld [vmem:[%s16761_s25 + $0x18f4] ss:$8 sps:$4 sm:$0xff]   ;;  %v14246_v13 = vld [vmem:[%s16761_s25 + $0xf0] ss:$8 sps:$4 sm:$0xff]   ;;  %v14255_v16 = vld [vmem:[%s16761_s25 + $0x1904] ss:$8 sps:$4 sm:$0xff]   ;;  %v16856_v18 = vrot.slane %v2034_v12, %v16824_v50  ;;  %v1846_v23 = vcombine.high %v16853_v17, %v16853_v17 }
  0x5b   : > { %11179 = vmatpush1.bf16.msra.mxu0 %v14187_v24  ;;  %10196 = vmatprep.subr.bf16.mxu1 %v14188_v25  ;;  %v14247_v14 = vld [vmem:[%s16761_s25 + $0x18f0] ss:$8 sps:$4 sm:$0xff]   ;;  %v14249_v19 = vld [vmem:[%s16761_s25 + $0x100] ss:$8 sps:$4 sm:$0xff]   ;;  %v14258_v21 = vld [vmem:[%s16761_s25 + $0x114] ss:$8 sps:$4 sm:$0xff]  }
  0x5c   : > { %11180 = vmatprep.subr.bf16.mxu0 %v14190_v26  ;;  %10216 = vmatprep.mubr.bf16.mxu1 %v1845_v60  ;;  %v14253_v20 = vld [vmem:[%s16761_s25 + $0x1900] ss:$8 sps:$4 sm:$0xff]   ;;  %v14261_v22 = vld [vmem:[%s16761_s25 + $0x1914] ss:$8 sps:$4 sm:$0xff]   ;;  %v2050_v24 = vcombine.high %v16856_v18, %v16856_v18  ;;  %v14256_v25 = vld [vmem:[%s16761_s25 + $0x110] ss:$8 sps:$4 sm:$0xff]  }
  0x5d   : > { %11200 = vmatprep.mubr.bf16.mxu0 %v2049_v62  ;;  %v14259_v26 = vld [vmem:[%s16761_s25 + $0x1910] ss:$8 sps:$4 sm:$0xff]   ;;  %v14274_v37 = vld [vmem:[%s16761_s25 + $0x140] ss:$8 sps:$4 sm:$0xff]   ;;  %v14282_v39 = vld [vmem:[%s16761_s25 + $0x154] ss:$8 sps:$4 sm:$0xff]  }
  0x5e   : > { %10197 = vmatpush1.bf16.msra.mxu1 %v14192_v27  ;;  %v14264_v27 = vld [vmem:[%s16761_s25 + $0x124] ss:$8 sps:$4 sm:$0xff]   ;;  %v14277_v38 = vld [vmem:[%s16761_s25 + $0x1940] ss:$8 sps:$4 sm:$0xff]   ;;  %v14309_v57 = vld [vmem:[%s16761_s25 + $0x1994] ss:$8 sps:$4 sm:$0xff]  }
  0x5f   : > { %11181 = vmatpush1.bf16.msra.mxu0 %v14193_v28  ;;  %10198 = vmatprep.subr.bf16.mxu1 %v14194_v29  ;;  %v14267_v28 = vld [vmem:[%s16761_s25 + $0x1924] ss:$8 sps:$4 sm:$0xff]   ;;  %v14262_v29 = vld [vmem:[%s16761_s25 + $0x120] ss:$8 sps:$4 sm:$0xff]   ;;  %v14331_v11 = vld [vmem:[%s16761_s25 + $0x19d0] ss:$8 sps:$4 sm:$0xff]  }
  0x60   : > { %11182 = vmatprep.subr.bf16.mxu0 %v14196_v30  ;;  %v14265_v30 = vld [vmem:[%s16761_s25 + $0x1920] ss:$8 sps:$4 sm:$0xff]   ;;  %v14288_v43 = vld [vmem:[%s16761_s25 + $0x164] ss:$8 sps:$4 sm:$0xff]  }
  0x61   : > { %v14291_v44 = vld [vmem:[%s16761_s25 + $0x1964] ss:$8 sps:$4 sm:$0xff]   ;;  %v14310_v62 = vld [vmem:[%s16761_s25 + $0x1a0] ss:$8 sps:$4 sm:$0xff]  }
  0x62   : > { %10199 = vmatpush1.bf16.msra.mxu1 %v14198_v31  ;;  %v14270_v31 = vld [vmem:[%s16761_s25 + $0x134] ss:$8 sps:$4 sm:$0xff]   ;;  %v14303_v53 = vld [vmem:[%s16761_s25 + $0x1984] ss:$8 sps:$4 sm:$0xff]  }
  0x63   : > { %11183 = vmatpush1.bf16.msra.mxu0 %v14199_v32  ;;  %10200 = vmatprep.subr.bf16.mxu1 %v14200_v33  ;;  %v14273_v32 = vld [vmem:[%s16761_s25 + $0x1934] ss:$8 sps:$4 sm:$0xff]   ;;  %v14268_v33 = vld [vmem:[%s16761_s25 + $0x130] ss:$8 sps:$4 sm:$0xff]   ;;  %v14312_v60 = vld [vmem:[%s16761_s25 + $0x1a4] ss:$8 sps:$4 sm:$0xff]  }
  0x64   : > { %11184 = vmatprep.subr.bf16.mxu0 %v14202_v34  ;;  %v14271_v34 = vld [vmem:[%s16761_s25 + $0x1930] ss:$8 sps:$4 sm:$0xff]   ;;  %v14336_v12 = vld [vmem:[%s16761_s25 + $0x1e4] ss:$8 sps:$4 sm:$0xff]  }
  0x66   : > { %10201 = vmatpush1.bf16.msra.mxu1 %v14204_v35  ;;  %v14276_v35 = vld [vmem:[%s16761_s25 + $0x144] ss:$8 sps:$4 sm:$0xff]  }
  0x67   : > { %11185 = vmatpush1.bf16.msra.mxu0 %v14205_v36  ;;  %10202 = vmatprep.subr.bf16.mxu1 %v14206_v40  ;;  %v14279_v36 = vld [vmem:[%s16761_s25 + $0x1944] ss:$8 sps:$4 sm:$0xff]   ;;  %v14285_v40 = vld [vmem:[%s16761_s25 + $0x1954] ss:$8 sps:$4 sm:$0xff]  }
  0x68   : > { %11186 = vmatprep.subr.bf16.mxu0 %v14208_v41  ;;  %v14280_v41 = vld [vmem:[%s16761_s25 + $0x150] ss:$8 sps:$4 sm:$0xff]  }
  0x6a   : > { %10203 = vmatpush1.bf16.msra.mxu1 %v14210_v42  ;;  %v14283_v42 = vld [vmem:[%s16761_s25 + $0x1950] ss:$8 sps:$4 sm:$0xff]  }
  0x6b   : > { %11187 = vmatpush1.bf16.msra.mxu0 %v14211_v45  ;;  %10204 = vmatprep.subr.bf16.mxu1 %v14212_v46  ;;  %v14286_v45 = vld [vmem:[%s16761_s25 + $0x160] ss:$8 sps:$4 sm:$0xff]  }
  0x6c   : > { %11188 = vmatprep.subr.bf16.mxu0 %v14214_v47  ;;  %v14289_v46 = vld [vmem:[%s16761_s25 + $0x1960] ss:$8 sps:$4 sm:$0xff]   ;;  %v14294_v47 = vld [vmem:[%s16761_s25 + $0x174] ss:$8 sps:$4 sm:$0xff]  }
  0x6e   : > { %10205 = vmatpush1.bf16.msra.mxu1 %v14216_v48  ;;  %v14297_v48 = vld [vmem:[%s16761_s25 + $0x1974] ss:$8 sps:$4 sm:$0xff]  }
  0x6f   : > { %11189 = vmatpush1.bf16.msra.mxu0 %v14217_v49  ;;  %10206 = vmatprep.subr.bf16.mxu1 %v14218_v51  ;;  %v14292_v49 = vld [vmem:[%s16761_s25 + $0x170] ss:$8 sps:$4 sm:$0xff]  }
  0x70   : > { %11190 = vmatprep.subr.bf16.mxu0 %v14220_v52  ;;  %v14295_v51 = vld [vmem:[%s16761_s25 + $0x1970] ss:$8 sps:$4 sm:$0xff]   ;;  %v14300_v52 = vld [vmem:[%s16761_s25 + $0x184] ss:$8 sps:$4 sm:$0xff]  }
  0x72   : > { %10207 = vmatpush1.bf16.msra.mxu1 %v14222_v54  ;;  %v14298_v54 = vld [vmem:[%s16761_s25 + $0x180] ss:$8 sps:$4 sm:$0xff]  }
  0x73   : > { %11191 = vmatpush1.bf16.msra.mxu0 %v14223_v56  ;;  %10208 = vmatprep.subr.bf16.mxu1 %v14224_v58  ;;  %v14306_v56 = vld [vmem:[%s16761_s25 + $0x194] ss:$8 sps:$4 sm:$0xff]   ;;  %v14304_v58 = vld [vmem:[%s16761_s25 + $0x190] ss:$8 sps:$4 sm:$0xff]  }
  0x74   : > { %11192 = vmatprep.subr.bf16.mxu0 %v14226_v59  ;;  %v14307_v59 = vld [vmem:[%s16761_s25 + $0x1990] ss:$8 sps:$4 sm:$0xff]  }
  0x76   : > { %10209 = vmatpush1.bf16.msra.mxu1 %v14228_v63  ;;  %v14313_v63 = vld [vmem:[%s16761_s25 + $0x19a0] ss:$8 sps:$4 sm:$0xff]  }
  0x77   : > { %11193 = vmatpush1.bf16.msra.mxu0 %v14229_v0  ;;  %10210 = vmatprep.subr.bf16.mxu1 %v14230_v1  ;;  %v14318_v0 = vld [vmem:[%s16761_s25 + $0x1b4] ss:$8 sps:$4 sm:$0xff]  }
  0x78   : > { %11194 = vmatprep.subr.bf16.mxu0 %v14232_v2  ;;  %v14321_v1 = vld [vmem:[%s16761_s25 + $0x19b4] ss:$8 sps:$4 sm:$0xff]   ;;  %v14316_v2 = vld [vmem:[%s16761_s25 + $0x1b0] ss:$8 sps:$4 sm:$0xff]  }
  0x7a   : > { %10211 = vmatpush1.bf16.msra.mxu1 %v14234_v3  ;;  %v14319_v3 = vld [vmem:[%s16761_s25 + $0x19b0] ss:$8 sps:$4 sm:$0xff]  }
  0x7b   : > { %11195 = vmatpush1.bf16.msra.mxu0 %v14235_v4  ;;  %10212 = vmatprep.subr.bf16.mxu1 %v14236_v5  ;;  %v14324_v4 = vld [vmem:[%s16761_s25 + $0x1c4] ss:$8 sps:$4 sm:$0xff]  }
  0x7c   : > { %11196 = vmatprep.subr.bf16.mxu0 %v14238_v6  ;;  %v14327_v5 = vld [vmem:[%s16761_s25 + $0x19c4] ss:$8 sps:$4 sm:$0xff]   ;;  %v14322_v6 = vld [vmem:[%s16761_s25 + $0x1c0] ss:$8 sps:$4 sm:$0xff]  }
  0x7e   : > { %10213 = vmatpush1.bf16.msra.mxu1 %v14240_v7  ;;  %v14325_v7 = vld [vmem:[%s16761_s25 + $0x19c0] ss:$8 sps:$4 sm:$0xff]  }
  0x7f   : > { %11197 = vmatpush1.bf16.msra.mxu0 %v14241_v8  ;;  %10214 = vmatprep.subr.bf16.mxu1 %v14242_v9  ;;  %v14330_v8 = vld [vmem:[%s16761_s25 + $0x1d4] ss:$8 sps:$4 sm:$0xff]  }
  0x80   : > { %11198 = vmatprep.subr.bf16.mxu0 %v14244_v10  ;;  %v14333_v9 = vld [vmem:[%s16761_s25 + $0x19d4] ss:$8 sps:$4 sm:$0xff]   ;;  %v14328_v10 = vld [vmem:[%s16761_s25 + $0x1d0] ss:$8 sps:$4 sm:$0xff]  }
  0x82   : > { %10215 = vmatpush1.bf16.msra.mxu1 %v14246_v13  ;;  %v14339_v13 = vld [vmem:[%s16761_s25 + $0x19e4] ss:$8 sps:$4 sm:$0xff]  }
  0x83   : > { %11199 = vmatpush1.bf16.msra.mxu0 %v14247_v14  ;;  %10225 = vmatprep.subr.bf16.mxu1 %v14251_v15  ;;  %v14334_v14 = vld [vmem:[%s16761_s25 + $0x1e0] ss:$8 sps:$4 sm:$0xff]  }
  0x84   : > { %11209 = vmatprep.subr.bf16.mxu0 %v14255_v16  ;;  %v14337_v15 = vld [vmem:[%s16761_s25 + $0x19e0] ss:$8 sps:$4 sm:$0xff]   ;;  %v14342_v16 = vld [vmem:[%s16761_s25 + $0x1f4] ss:$8 sps:$4 sm:$0xff]  }
  0x85   : > { %10217 = vmatmul.mubr.bf16.vlgmr.msra.gmra.mrb[0].mxu1 %v1837_v55  ;;  %v14301_v55 = vld [vmem:[%s16761_s25 + $0x1980] ss:$8 sps:$4 sm:$0xff]  }
  0x86   : > { %11201 = vmatmul.mubr.bf16.vlgmr.msra.gmra.mrb[0].mxu0 %v2041_v61  ;;  %10226 = vmatpush1.bf16.msra.mxu1 %v14249_v19  ;;  %v14315_v61 = vld [vmem:[%s16761_s25 + $0x19a4] ss:$8 sps:$4 sm:$0xff]   ;;  %v14345_v19 = vld [vmem:[%s16761_s25 + $0x19f4] ss:$8 sps:$4 sm:$0xff]  }
  0x87   : > { %11210 = vmatpush1.bf16.msra.mxu0 %v14253_v20  ;;  %10227 = vmatprep.subr.bf16.mxu1 %v14258_v21  ;;  %v14340_v20 = vld [vmem:[%s16761_s25 + $0x1f0] ss:$8 sps:$4 sm:$0xff]  }
  0x88   : > { %11211 = vmatprep.subr.bf16.mxu0 %v14261_v22  ;;  %10257 = vmatprep.mubr.bf16.mxu1 %v1846_v23  ;;  %v14343_v21 = vld [vmem:[%s16761_s25 + $0x19f0] ss:$8 sps:$4 sm:$0xff]   ;;  %v14348_v22 = vld [vmem:[%s16761_s25 + $0x204] ss:$8 sps:$4 sm:$0xff]  }
  0x89   : > { %11241 = vmatprep.mubr.bf16.mxu0 %v2050_v24  ;;  %v14351_v23 = vld [vmem:[%s16761_s25 + $0x1a04] ss:$8 sps:$4 sm:$0xff]   ;;  %v14346_v24 = vld [vmem:[%s16761_s25 + $0x200] ss:$8 sps:$4 sm:$0xff]  }
  0x8a   : > { %10228 = vmatpush1.bf16.msra.mxu1 %v14256_v25  ;;  %v14349_v25 = vld [vmem:[%s16761_s25 + $0x1a00] ss:$8 sps:$4 sm:$0xff]  }
  0x8b   : > { %11212 = vmatpush1.bf16.msra.mxu0 %v14259_v26  ;;  %10229 = vmatprep.subr.bf16.mxu1 %v14264_v27  ;;  %v14354_v26 = vld [vmem:[%s16761_s25 + $0x214] ss:$8 sps:$4 sm:$0xff]   ;;  %v16930_v27 = vld [vmem:[%s16777_s23 + $0x8] sm:$0xff] }
  0x8c   : > { %11213 = vmatprep.subr.bf16.mxu0 %v14267_v28  ;;  %v14357_v28 = vld [vmem:[%s16761_s25 + $0x1a14] ss:$8 sps:$4 sm:$0xff]  }
  0x8e   : > { %10230 = vmatpush1.bf16.msra.mxu1 %v14262_v29  ;;  %v16935_v29 = vrot.slane %v16930_v27, %v16824_v50 }
  0x8f   : > { %11214 = vmatpush1.bf16.msra.mxu0 %v14265_v30  ;;  %10231 = vmatprep.subr.bf16.mxu1 %v14270_v31  ;;  %v16938_v30 = vld [vmem:[%s16777_s23 + $0x68] sm:$0xff]  ;;  %v14352_v31 = vld [vmem:[%s16761_s25 + $0x210] ss:$8 sps:$4 sm:$0xff]  }
  0x90   : > { %11215 = vmatprep.subr.bf16.mxu0 %v14273_v32  ;;  %v14355_v32 = vld [vmem:[%s16761_s25 + $0x1a10] ss:$8 sps:$4 sm:$0xff]  }
  0x92   : > { %10232 = vmatpush1.bf16.msra.mxu1 %v14268_v33  ;;  %v1862_v33 = vcombine.high %v16935_v29, %v16935_v29 }
  0x93   : > { %11216 = vmatpush1.bf16.msra.mxu0 %v14271_v34  ;;  %10233 = vmatprep.subr.bf16.mxu1 %v14276_v35  ;;  %v16948_v34 = vrot.slane %v16938_v30, %v16824_v50  ;;  %v14360_v35 = vld [vmem:[%s16761_s25 + $0x224] ss:$8 sps:$4 sm:$0xff]  }
  0x94   : > { %11217 = vmatprep.subr.bf16.mxu0 %v14279_v36  ;;  %v14358_v36 = vld [vmem:[%s16761_s25 + $0x220] ss:$8 sps:$4 sm:$0xff]  }
  0x96   : > { %10234 = vmatpush1.bf16.msra.mxu1 %v14274_v37  ;;  %v14361_v37 = vld [vmem:[%s16761_s25 + $0x1a20] ss:$8 sps:$4 sm:$0xff]  }
  0x97   : > { %11218 = vmatpush1.bf16.msra.mxu0 %v14277_v38  ;;  %10235 = vmatprep.subr.bf16.mxu1 %v14282_v39  ;;  %v14366_v38 = vld [vmem:[%s16761_s25 + $0x234] ss:$8 sps:$4 sm:$0xff]  }
  0x98   : > { %11219 = vmatprep.subr.bf16.mxu0 %v14285_v40  ;;  %v14369_v39 = vld [vmem:[%s16761_s25 + $0x1a34] ss:$8 sps:$4 sm:$0xff]   ;;  %v14364_v40 = vld [vmem:[%s16761_s25 + $0x230] ss:$8 sps:$4 sm:$0xff]  }
  0x9a   : > { %10236 = vmatpush1.bf16.msra.mxu1 %v14280_v41  ;;  %v14367_v41 = vld [vmem:[%s16761_s25 + $0x1a30] ss:$8 sps:$4 sm:$0xff]  }
  0x9b   : > { %11220 = vmatpush1.bf16.msra.mxu0 %v14283_v42  ;;  %10237 = vmatprep.subr.bf16.mxu1 %v14288_v43  ;;  %v14372_v42 = vld [vmem:[%s16761_s25 + $0x244] ss:$8 sps:$4 sm:$0xff]  }
  0x9c   : > { %11221 = vmatprep.subr.bf16.mxu0 %v14291_v44  ;;  %v14375_v43 = vld [vmem:[%s16761_s25 + $0x1a44] ss:$8 sps:$4 sm:$0xff]   ;;  %v14370_v44 = vld [vmem:[%s16761_s25 + $0x240] ss:$8 sps:$4 sm:$0xff]  }
  0x9e   : > { %10238 = vmatpush1.bf16.msra.mxu1 %v14286_v45  ;;  %v14373_v45 = vld [vmem:[%s16761_s25 + $0x1a40] ss:$8 sps:$4 sm:$0xff]  }
  0x9f   : > { %11222 = vmatpush1.bf16.msra.mxu0 %v14289_v46  ;;  %10239 = vmatprep.subr.bf16.mxu1 %v14294_v47  ;;  %v14378_v46 = vld [vmem:[%s16761_s25 + $0x254] ss:$8 sps:$4 sm:$0xff]  }
  0xa0   : > { %11223 = vmatprep.subr.bf16.mxu0 %v14297_v48  ;;  %v14381_v47 = vld [vmem:[%s16761_s25 + $0x1a54] ss:$8 sps:$4 sm:$0xff]   ;;  %v14376_v48 = vld [vmem:[%s16761_s25 + $0x250] ss:$8 sps:$4 sm:$0xff]  }
  0xa2   : > { %10240 = vmatpush1.bf16.msra.mxu1 %v14292_v49  ;;  %v14379_v49 = vld [vmem:[%s16761_s25 + $0x1a50] ss:$8 sps:$4 sm:$0xff]  }
  0xa3   : > { %11224 = vmatpush1.bf16.msra.mxu0 %v14295_v51  ;;  %10241 = vmatprep.subr.bf16.mxu1 %v14300_v52  ;;  %v14384_v51 = vld [vmem:[%s16761_s25 + $0x264] ss:$8 sps:$4 sm:$0xff]  }
  0xa4   : > { %11225 = vmatprep.subr.bf16.mxu0 %v14303_v53  ;;  %v14387_v52 = vld [vmem:[%s16761_s25 + $0x1a64] ss:$8 sps:$4 sm:$0xff]   ;;  %v14382_v53 = vld [vmem:[%s16761_s25 + $0x260] ss:$8 sps:$4 sm:$0xff]  }
  0xa6   : > { %10242 = vmatpush1.bf16.msra.mxu1 %v14298_v54  ;;  %v14385_v54 = vld [vmem:[%s16761_s25 + $0x1a60] ss:$8 sps:$4 sm:$0xff]  }
  0xa7   : > { %11226 = vmatpush1.bf16.msra.mxu0 %v14301_v55  ;;  %10243 = vmatprep.subr.bf16.mxu1 %v14306_v56  ;;  %v14390_v55 = vld [vmem:[%s16761_s25 + $0x274] ss:$8 sps:$4 sm:$0xff]  }
  0xa8   : > { %11227 = vmatprep.subr.bf16.mxu0 %v14309_v57  ;;  %v14393_v56 = vld [vmem:[%s16761_s25 + $0x1a74] ss:$8 sps:$4 sm:$0xff]   ;;  %v14388_v57 = vld [vmem:[%s16761_s25 + $0x270] ss:$8 sps:$4 sm:$0xff]  }
  0xaa   : > { %10244 = vmatpush1.bf16.msra.mxu1 %v14304_v58  ;;  %v14391_v58 = vld [vmem:[%s16761_s25 + $0x1a70] ss:$8 sps:$4 sm:$0xff]  }
  0xab   : > { %11228 = vmatpush1.bf16.msra.mxu0 %v14307_v59  ;;  %10245 = vmatprep.subr.bf16.mxu1 %v14312_v60  ;;  %v14396_v59 = vld [vmem:[%s16761_s25 + $0x284] ss:$8 sps:$4 sm:$0xff]  }
  0xac   : > { %11229 = vmatprep.subr.bf16.mxu0 %v14315_v61  ;;  %v14399_v60 = vld [vmem:[%s16761_s25 + $0x1a84] ss:$8 sps:$4 sm:$0xff]   ;;  %v14394_v61 = vld [vmem:[%s16761_s25 + $0x280] ss:$8 sps:$4 sm:$0xff]  }
  0xae   : > { %10246 = vmatpush1.bf16.msra.mxu1 %v14310_v62  ;;  %v14397_v62 = vld [vmem:[%s16761_s25 + $0x1a80] ss:$8 sps:$4 sm:$0xff]  }
  0xaf   : > { %11230 = vmatpush1.bf16.msra.mxu0 %v14313_v63  ;;  %10247 = vmatprep.subr.bf16.mxu1 %v14318_v0  ;;  %v14402_v63 = vld [vmem:[%s16761_s25 + $0x294] ss:$8 sps:$4 sm:$0xff]  }
  0xb0   : > { %11231 = vmatprep.subr.bf16.mxu0 %v14321_v1  ;;  %v14405_v0 = vld [vmem:[%s16761_s25 + $0x1a94] ss:$8 sps:$4 sm:$0xff]   ;;  %v14400_v1 = vld [vmem:[%s16761_s25 + $0x290] ss:$8 sps:$4 sm:$0xff]  }
  0xb2   : > { %10248 = vmatpush1.bf16.msra.mxu1 %v14316_v2  ;;  %v14403_v2 = vld [vmem:[%s16761_s25 + $0x1a90] ss:$8 sps:$4 sm:$0xff]  }
  0xb3   : > { %11232 = vmatpush1.bf16.msra.mxu0 %v14319_v3  ;;  %10249 = vmatprep.subr.bf16.mxu1 %v14324_v4  ;;  %v14408_v3 = vld [vmem:[%s16761_s25 + $0x2a4] ss:$8 sps:$4 sm:$0xff]  }
  0xb4   : > { %11233 = vmatprep.subr.bf16.mxu0 %v14327_v5  ;;  %v14411_v4 = vld [vmem:[%s16761_s25 + $0x1aa4] ss:$8 sps:$4 sm:$0xff]   ;;  %v14406_v5 = vld [vmem:[%s16761_s25 + $0x2a0] ss:$8 sps:$4 sm:$0xff]  }
  0xb6   : > { %10250 = vmatpush1.bf16.msra.mxu1 %v14322_v6  ;;  %v14409_v6 = vld [vmem:[%s16761_s25 + $0x1aa0] ss:$8 sps:$4 sm:$0xff]  }
  0xb7   : > { %11234 = vmatpush1.bf16.msra.mxu0 %v14325_v7  ;;  %10251 = vmatprep.subr.bf16.mxu1 %v14330_v8  ;;  %v14414_v7 = vld [vmem:[%s16761_s25 + $0x2b4] ss:$8 sps:$4 sm:$0xff]  }
  0xb8   : > { %11235 = vmatprep.subr.bf16.mxu0 %v14333_v9  ;;  %v14417_v8 = vld [vmem:[%s16761_s25 + $0x1ab4] ss:$8 sps:$4 sm:$0xff]   ;;  %v14412_v9 = vld [vmem:[%s16761_s25 + $0x2b0] ss:$8 sps:$4 sm:$0xff]  }
  0xba   : > { %10252 = vmatpush1.bf16.msra.mxu1 %v14328_v10  ;;  %v14415_v10 = vld [vmem:[%s16761_s25 + $0x1ab0] ss:$8 sps:$4 sm:$0xff]  }
  0xbb   : > { %11236 = vmatpush1.bf16.msra.mxu0 %v14331_v11  ;;  %10253 = vmatprep.subr.bf16.mxu1 %v14336_v12  ;;  %v14420_v11 = vld [vmem:[%s16761_s25 + $0x2c4] ss:$8 sps:$4 sm:$0xff]  }
  0xbc   : > { %11237 = vmatprep.subr.bf16.mxu0 %v14339_v13  ;;  %v14423_v12 = vld [vmem:[%s16761_s25 + $0x1ac4] ss:$8 sps:$4 sm:$0xff]   ;;  %v14418_v13 = vld [vmem:[%s16761_s25 + $0x2c0] ss:$8 sps:$4 sm:$0xff]  }
  0xbe   : > { %10254 = vmatpush1.bf16.msra.mxu1 %v14334_v14  ;;  %v14421_v14 = vld [vmem:[%s16761_s25 + $0x1ac0] ss:$8 sps:$4 sm:$0xff]  }
  0xbf   : > { %11238 = vmatpush1.bf16.msra.mxu0 %v14337_v15  ;;  %10255 = vmatprep.subr.bf16.mxu1 %v14342_v16  ;;  %v14426_v15 = vld [vmem:[%s16761_s25 + $0x2d4] ss:$8 sps:$4 sm:$0xff]  }
  0xc0   : > { %11239 = vmatprep.subr.bf16.mxu0 %v14345_v19  ;;  %v14429_v16 = vld [vmem:[%s16761_s25 + $0x1ad4] ss:$8 sps:$4 sm:$0xff]   ;;  %v14424_v19 = vld [vmem:[%s16761_s25 + $0x2d0] ss:$8 sps:$4 sm:$0xff]  }
  0xc2   : > { %10256 = vmatpush1.bf16.msra.mxu1 %v14340_v20  ;;  %v14427_v20 = vld [vmem:[%s16761_s25 + $0x1ad0] ss:$8 sps:$4 sm:$0xff]  }
  0xc3   : > { %11240 = vmatpush1.bf16.msra.mxu0 %v14343_v21  ;;  %10266 = vmatprep.subr.bf16.mxu1 %v14348_v22  ;;  %v14432_v21 = vld [vmem:[%s16761_s25 + $0x2e4] ss:$8 sps:$4 sm:$0xff]  }
  0xc4   : > { %11250 = vmatprep.subr.bf16.mxu0 %v14351_v23  ;;  %v14435_v22 = vld [vmem:[%s16761_s25 + $0x1ae4] ss:$8 sps:$4 sm:$0xff]   ;;  %v14430_v23 = vld [vmem:[%s16761_s25 + $0x2e0] ss:$8 sps:$4 sm:$0xff]  }
  0xc5   : > { %10258 = vmatmul.mubr.bf16.vlgmr.msra.gmra.mrb[0].mxu1 %v16853_v17  ;;  %v14363_v17 = vld [vmem:[%s16761_s25 + $0x1a24] ss:$8 sps:$4 sm:$0xff]  }
  0xc6   : > { %11242 = vmatmul.mubr.bf16.vlgmr.msra.gmra.mrb[0].mxu0 %v16856_v18  ;;  %10267 = vmatpush1.bf16.msra.mxu1 %v14346_v24  ;;  %v2066_v18 = vcombine.high %v16948_v34, %v16948_v34  ;;  %v14433_v24 = vld [vmem:[%s16761_s25 + $0x1ae0] ss:$8 sps:$4 sm:$0xff]  }
  0xc7   : > { %11251 = vmatpush1.bf16.msra.mxu0 %v14349_v25  ;;  %10268 = vmatprep.subr.bf16.mxu1 %v14354_v26  ;;  %v14438_v25 = vld [vmem:[%s16761_s25 + $0x2f4] ss:$8 sps:$4 sm:$0xff]  }
  0xc8   : > { %11252 = vmatprep.subr.bf16.mxu0 %v14357_v28  ;;  %10298 = vmatprep.mubr.bf16.mxu1 %v1862_v33  ;;  %v14441_v26 = vld [vmem:[%s16761_s25 + $0x1af4] ss:$8 sps:$4 sm:$0xff]   ;;  %v1847_v28 = vcombine.high %v16930_v27, %v16930_v27  ;;  %v14439_v33 = vld [vmem:[%s16761_s25 + $0x1af0] ss:$8 sps:$4 sm:$0xff]  }
  0xc9   : > { %11282 = vmatprep.mubr.bf16.mxu0 %v2066_v18 }
  0xca   : > { %10269 = vmatpush1.bf16.msra.mxu1 %v14352_v31  ;;  %v2051_v31 = vcombine.high %v16938_v30, %v16938_v30  ;;  %v17015_v18 = vrot.slane %v1847_v28, %v16824_v50  ;;  %v14445_v30 = vld [vmem:[%s16761_s25 + $0x1b00] ss:$8 sps:$4 sm:$0xff]   ;;  %v14523_v28 = vld [vmem:[%s16761_s25 + $0x1bd0] ss:$8 sps:$4 sm:$0xff]  }
  0xcb   : > { %11253 = vmatpush1.bf16.msra.mxu0 %v14355_v32  ;;  %10270 = vmatprep.subr.bf16.mxu1 %v14360_v35  ;;  %v14436_v32 = vld [vmem:[%s16761_s25 + $0x2f0] ss:$8 sps:$4 sm:$0xff]   ;;  %v14444_v35 = vld [vmem:[%s16761_s25 + $0x304] ss:$8 sps:$4 sm:$0xff]  }
  0xcc   : > { %11254 = vmatprep.subr.bf16.mxu0 %v14363_v17  ;;  %v14447_v17 = vld [vmem:[%s16761_s25 + $0x1b04] ss:$8 sps:$4 sm:$0xff]   ;;  %v17018_v27 = vrot.slane %v2051_v31, %v16824_v50 }
  0xcd   : > { %v14528_v31 = vld [vmem:[%s16761_s25 + $0x3e4] ss:$8 sps:$4 sm:$0xff]  }
  0xce   : > { %10271 = vmatpush1.bf16.msra.mxu1 %v14358_v36  ;;  %v14442_v36 = vld [vmem:[%s16761_s25 + $0x300] ss:$8 sps:$4 sm:$0xff]  }
  0xcf   : > { %11255 = vmatpush1.bf16.msra.mxu0 %v14361_v37  ;;  %10272 = vmatprep.subr.bf16.mxu1 %v14366_v38  ;;  %v14450_v37 = vld [vmem:[%s16761_s25 + $0x314] ss:$8 sps:$4 sm:$0xff]  }
  0xd0   : > { %11256 = vmatprep.subr.bf16.mxu0 %v14369_v39  ;;  %v14453_v38 = vld [vmem:[%s16761_s25 + $0x1b14] ss:$8 sps:$4 sm:$0xff]   ;;  %v1863_v39 = vcombine.high %v17015_v18, %v17015_v18 }
  0xd2   : > { %10273 = vmatpush1.bf16.msra.mxu1 %v14364_v40  ;;  %v2067_v40 = vcombine.high %v17018_v27, %v17018_v27 }
  0xd3   : > { %11257 = vmatpush1.bf16.msra.mxu0 %v14367_v41  ;;  %10274 = vmatprep.subr.bf16.mxu1 %v14372_v42  ;;  %v14448_v41 = vld [vmem:[%s16761_s25 + $0x310] ss:$8 sps:$4 sm:$0xff]  }
  0xd4   : > { %11258 = vmatprep.subr.bf16.mxu0 %v14375_v43  ;;  %v14451_v42 = vld [vmem:[%s16761_s25 + $0x1b10] ss:$8 sps:$4 sm:$0xff]   ;;  %v14456_v43 = vld [vmem:[%s16761_s25 + $0x324] ss:$8 sps:$4 sm:$0xff]  }
  0xd6   : > { %10275 = vmatpush1.bf16.msra.mxu1 %v14370_v44  ;;  %v14459_v44 = vld [vmem:[%s16761_s25 + $0x1b24] ss:$8 sps:$4 sm:$0xff]  }
  0xd7   : > { %11259 = vmatpush1.bf16.msra.mxu0 %v14373_v45  ;;  %10276 = vmatprep.subr.bf16.mxu1 %v14378_v46  ;;  %v14454_v45 = vld [vmem:[%s16761_s25 + $0x320] ss:$8 sps:$4 sm:$0xff]   ;;  %v14465_v46 = vld [vmem:[%s16761_s25 + $0x1b34] ss:$8 sps:$4 sm:$0xff]  }
  0xd8   : > { %11260 = vmatprep.subr.bf16.mxu0 %v14381_v47  ;;  %v14460_v47 = vld [vmem:[%s16761_s25 + $0x330] ss:$8 sps:$4 sm:$0xff]  }
  0xda   : > { %10277 = vmatpush1.bf16.msra.mxu1 %v14376_v48  ;;  %v14463_v48 = vld [vmem:[%s16761_s25 + $0x1b30] ss:$8 sps:$4 sm:$0xff]  }
  0xdb   : > { %11261 = vmatpush1.bf16.msra.mxu0 %v14379_v49  ;;  %10278 = vmatprep.subr.bf16.mxu1 %v14384_v51  ;;  %v14468_v49 = vld [vmem:[%s16761_s25 + $0x344] ss:$8 sps:$4 sm:$0xff]  }
  0xdc   : > { %11262 = vmatprep.subr.bf16.mxu0 %v14387_v52  ;;  %v14471_v51 = vld [vmem:[%s16761_s25 + $0x1b44] ss:$8 sps:$4 sm:$0xff]   ;;  %v14466_v52 = vld [vmem:[%s16761_s25 + $0x340] ss:$8 sps:$4 sm:$0xff]  }
  0xde   : > { %10279 = vmatpush1.bf16.msra.mxu1 %v14382_v53  ;;  %v14469_v53 = vld [vmem:[%s16761_s25 + $0x1b40] ss:$8 sps:$4 sm:$0xff]  }
  0xdf   : > { %11263 = vmatpush1.bf16.msra.mxu0 %v14385_v54  ;;  %10280 = vmatprep.subr.bf16.mxu1 %v14390_v55  ;;  %v14474_v54 = vld [vmem:[%s16761_s25 + $0x354] ss:$8 sps:$4 sm:$0xff]  }
  0xe0   : > { %11264 = vmatprep.subr.bf16.mxu0 %v14393_v56  ;;  %v14477_v55 = vld [vmem:[%s16761_s25 + $0x1b54] ss:$8 sps:$4 sm:$0xff]   ;;  %v14472_v56 = vld [vmem:[%s16761_s25 + $0x350] ss:$8 sps:$4 sm:$0xff]  }
  0xe2   : > { %10281 = vmatpush1.bf16.msra.mxu1 %v14388_v57  ;;  %v14475_v57 = vld [vmem:[%s16761_s25 + $0x1b50] ss:$8 sps:$4 sm:$0xff]  }
  0xe3   : > { %11265 = vmatpush1.bf16.msra.mxu0 %v14391_v58  ;;  %10282 = vmatprep.subr.bf16.mxu1 %v14396_v59  ;;  %v14480_v58 = vld [vmem:[%s16761_s25 + $0x364] ss:$8 sps:$4 sm:$0xff]  }
  0xe4   : > { %11266 = vmatprep.subr.bf16.mxu0 %v14399_v60  ;;  %v14483_v59 = vld [vmem:[%s16761_s25 + $0x1b64] ss:$8 sps:$4 sm:$0xff]   ;;  %v14478_v60 = vld [vmem:[%s16761_s25 + $0x360] ss:$8 sps:$4 sm:$0xff]  }
  0xe6   : > { %10283 = vmatpush1.bf16.msra.mxu1 %v14394_v61  ;;  %v14481_v61 = vld [vmem:[%s16761_s25 + $0x1b60] ss:$8 sps:$4 sm:$0xff]  }
  0xe7   : > { %11267 = vmatpush1.bf16.msra.mxu0 %v14397_v62  ;;  %10284 = vmatprep.subr.bf16.mxu1 %v14402_v63  ;;  %v14486_v62 = vld [vmem:[%s16761_s25 + $0x374] ss:$8 sps:$4 sm:$0xff]  }
  0xe8   : > { %11268 = vmatprep.subr.bf16.mxu0 %v14405_v0  ;;  %v14489_v63 = vld [vmem:[%s16761_s25 + $0x1b74] ss:$8 sps:$4 sm:$0xff]   ;;  %v14484_v0 = vld [vmem:[%s16761_s25 + $0x370] ss:$8 sps:$4 sm:$0xff]  }
  0xea   : > { %10285 = vmatpush1.bf16.msra.mxu1 %v14400_v1  ;;  %v14487_v1 = vld [vmem:[%s16761_s25 + $0x1b70] ss:$8 sps:$4 sm:$0xff]  }
  0xeb   : > { %11269 = vmatpush1.bf16.msra.mxu0 %v14403_v2  ;;  %10286 = vmatprep.subr.bf16.mxu1 %v14408_v3  ;;  %v14492_v2 = vld [vmem:[%s16761_s25 + $0x384] ss:$8 sps:$4 sm:$0xff]  }
  0xec   : > { %11270 = vmatprep.subr.bf16.mxu0 %v14411_v4  ;;  %v14495_v3 = vld [vmem:[%s16761_s25 + $0x1b84] ss:$8 sps:$4 sm:$0xff]   ;;  %v14490_v4 = vld [vmem:[%s16761_s25 + $0x380] ss:$8 sps:$4 sm:$0xff]  }
  0xee   : > { %10287 = vmatpush1.bf16.msra.mxu1 %v14406_v5  ;;  %v14493_v5 = vld [vmem:[%s16761_s25 + $0x1b80] ss:$8 sps:$4 sm:$0xff]  }
  0xef   : > { %11271 = vmatpush1.bf16.msra.mxu0 %v14409_v6  ;;  %10288 = vmatprep.subr.bf16.mxu1 %v14414_v7  ;;  %v14498_v6 = vld [vmem:[%s16761_s25 + $0x394] ss:$8 sps:$4 sm:$0xff]  }
  0xf0   : > { %11272 = vmatprep.subr.bf16.mxu0 %v14417_v8  ;;  %v14501_v7 = vld [vmem:[%s16761_s25 + $0x1b94] ss:$8 sps:$4 sm:$0xff]   ;;  %v14496_v8 = vld [vmem:[%s16761_s25 + $0x390] ss:$8 sps:$4 sm:$0xff]  }
  0xf2   : > { %10289 = vmatpush1.bf16.msra.mxu1 %v14412_v9  ;;  %v14499_v9 = vld [vmem:[%s16761_s25 + $0x1b90] ss:$8 sps:$4 sm:$0xff]  }
  0xf3   : > { %11273 = vmatpush1.bf16.msra.mxu0 %v14415_v10  ;;  %10290 = vmatprep.subr.bf16.mxu1 %v14420_v11  ;;  %v14504_v10 = vld [vmem:[%s16761_s25 + $0x3a4] ss:$8 sps:$4 sm:$0xff]  }
  0xf4   : > { %11274 = vmatprep.subr.bf16.mxu0 %v14423_v12  ;;  %v14507_v11 = vld [vmem:[%s16761_s25 + $0x1ba4] ss:$8 sps:$4 sm:$0xff]   ;;  %v14502_v12 = vld [vmem:[%s16761_s25 + $0x3a0] ss:$8 sps:$4 sm:$0xff]  }
  0xf6   : > { %10291 = vmatpush1.bf16.msra.mxu1 %v14418_v13  ;;  %v14505_v13 = vld [vmem:[%s16761_s25 + $0x1ba0] ss:$8 sps:$4 sm:$0xff]  }
  0xf7   : > { %11275 = vmatpush1.bf16.msra.mxu0 %v14421_v14  ;;  %10292 = vmatprep.subr.bf16.mxu1 %v14426_v15  ;;  %v14510_v14 = vld [vmem:[%s16761_s25 + $0x3b4] ss:$8 sps:$4 sm:$0xff]  }
  0xf8   : > { %11276 = vmatprep.subr.bf16.mxu0 %v14429_v16  ;;  %v14513_v15 = vld [vmem:[%s16761_s25 + $0x1bb4] ss:$8 sps:$4 sm:$0xff]   ;;  %v14508_v16 = vld [vmem:[%s16761_s25 + $0x3b0] ss:$8 sps:$4 sm:$0xff]  }
  0xfa   : > { %10293 = vmatpush1.bf16.msra.mxu1 %v14424_v19  ;;  %v14511_v19 = vld [vmem:[%s16761_s25 + $0x1bb0] ss:$8 sps:$4 sm:$0xff]  }
  0xfb   : > { %11277 = vmatpush1.bf16.msra.mxu0 %v14427_v20  ;;  %10294 = vmatprep.subr.bf16.mxu1 %v14432_v21  ;;  %v14516_v20 = vld [vmem:[%s16761_s25 + $0x3c4] ss:$8 sps:$4 sm:$0xff]  }
  0xfc   : > { %11278 = vmatprep.subr.bf16.mxu0 %v14435_v22  ;;  %v14519_v21 = vld [vmem:[%s16761_s25 + $0x1bc4] ss:$8 sps:$4 sm:$0xff]   ;;  %v14514_v22 = vld [vmem:[%s16761_s25 + $0x3c0] ss:$8 sps:$4 sm:$0xff]  }
  0xfe   : > { %10295 = vmatpush1.bf16.msra.mxu1 %v14430_v23  ;;  %v14517_v23 = vld [vmem:[%s16761_s25 + $0x1bc0] ss:$8 sps:$4 sm:$0xff]  }
  0xff   : > { %11279 = vmatpush1.bf16.msra.mxu0 %v14433_v24  ;;  %10296 = vmatprep.subr.bf16.mxu1 %v14438_v25  ;;  %v14522_v24 = vld [vmem:[%s16761_s25 + $0x3d4] ss:$8 sps:$4 sm:$0xff]  }
 0x100   : > { %11280 = vmatprep.subr.bf16.mxu0 %v14441_v26  ;;  %v14525_v25 = vld [vmem:[%s16761_s25 + $0x1bd4] ss:$8 sps:$4 sm:$0xff]   ;;  %v14520_v26 = vld [vmem:[%s16761_s25 + $0x3d0] ss:$8 sps:$4 sm:$0xff]  }
 0x102   : > { %10297 = vmatpush1.bf16.msra.mxu1 %v14436_v32  ;;  %v14531_v32 = vld [vmem:[%s16761_s25 + $0x1be4] ss:$8 sps:$4 sm:$0xff]  }
 0x103   : > { %11281 = vmatpush1.bf16.msra.mxu0 %v14439_v33  ;;  %10307 = vmatprep.subr.bf16.mxu1 %v14444_v35  ;;  %v14526_v33 = vld [vmem:[%s16761_s25 + $0x3e0] ss:$8 sps:$4 sm:$0xff]  }
 0x104   : > { %11291 = vmatprep.subr.bf16.mxu0 %v14447_v17  ;;  %v14529_v35 = vld [vmem:[%s16761_s25 + $0x1be0] ss:$8 sps:$4 sm:$0xff]   ;;  %v14534_v17 = vld [vmem:[%s16761_s25 + $0x3f4] ss:$8 sps:$4 sm:$0xff]  }
 0x105   : > { %10299 = vmatmul.mubr.bf16.vlgmr.msra.gmra.mrb[0].mxu1 %v16935_v29  ;;  %v14457_v29 = vld [vmem:[%s16761_s25 + $0x1b20] ss:$8 sps:$4 sm:$0xff]  }
 0x106   : > { %11283 = vmatmul.mubr.bf16.vlgmr.msra.gmra.mrb[0].mxu0 %v16948_v34  ;;  %10308 = vmatpush1.bf16.msra.mxu1 %v14442_v36  ;;  %v14462_v34 = vld [vmem:[%s16761_s25 + $0x334] ss:$8 sps:$4 sm:$0xff]  }
 0x107   : > { %11292 = vmatpush1.bf16.msra.mxu0 %v14445_v30  ;;  %10309 = vmatprep.subr.bf16.mxu1 %v14450_v37  ;;  %v14537_v36 = vld [vmem:[%s16761_s25 + $0x1bf4] ss:$8 sps:$4 sm:$0xff]   ;;  %v17087_v30 = vld [vmem:[%s16777_s23 + $0x10] sm:$0xff] }
 0x108   : > { %11293 = vmatprep.subr.bf16.mxu0 %v14453_v38  ;;  %10339 = vmatprep.mubr.bf16.mxu1 %v1863_v39  ;;  %v17090_v37 = vld [vmem:[%s16777_s23 + $0x70] sm:$0xff]  ;;  %v14532_v38 = vld [vmem:[%s16761_s25 + $0x3f0] ss:$8 sps:$4 sm:$0xff]  }
 0x109   : > { %11323 = vmatprep.mubr.bf16.mxu0 %v2067_v40  ;;  %v14535_v39 = vld [vmem:[%s16761_s25 + $0x1bf0] ss:$8 sps:$4 sm:$0xff]   ;;  %v14541_v40 = vld [vmem:[%s16761_s25 + $0x404] ss:$8 sps:$4 sm:$0xff]  }
 0x10a   : > { %10310 = vmatpush1.bf16.msra.mxu1 %v14448_v41  ;;  %v14545_v41 = vld [vmem:[%s16761_s25 + $0x1c04] ss:$8 sps:$4 sm:$0xff]  }
 0x10b   : > { %11294 = vmatpush1.bf16.msra.mxu0 %v14451_v42  ;;  %10311 = vmatprep.subr.bf16.mxu1 %v14456_v43  ;;  %v17098_v42 = vrot.slane %v17087_v30, %v16824_v50  ;;  %v17102_v43 = vrot.slane %v17090_v37, %v16824_v50 }
 0x10c   : > { %11295 = vmatprep.subr.bf16.mxu0 %v14459_v44  ;;  %v14539_v44 = vld [vmem:[%s16761_s25 + $0x400] ss:$8 sps:$4 sm:$0xff]  }
 0x10e   : > { %10312 = vmatpush1.bf16.msra.mxu1 %v14454_v45  ;;  %v14543_v45 = vld [vmem:[%s16761_s25 + $0x1c00] ss:$8 sps:$4 sm:$0xff]  }
 0x10f   : > { %11296 = vmatpush1.bf16.msra.mxu0 %v14457_v29  ;;  %10313 = vmatprep.subr.bf16.mxu1 %v14462_v34  ;;  %v14548_v29 = vld [vmem:[%s16761_s25 + $0x414] ss:$8 sps:$4 sm:$0xff]  }
 0x110   : > { %11297 = vmatprep.subr.bf16.mxu0 %v14465_v46  ;;  %v14551_v34 = vld [vmem:[%s16761_s25 + $0x1c14] ss:$8 sps:$4 sm:$0xff]   ;;  %v1879_v46 = vcombine.high %v17098_v42, %v17098_v42 }
 0x112   : > { %10314 = vmatpush1.bf16.msra.mxu1 %v14460_v47  ;;  %v2083_v47 = vcombine.high %v17102_v43, %v17102_v43 }
 0x113   : > { %11298 = vmatpush1.bf16.msra.mxu0 %v14463_v48  ;;  %10315 = vmatprep.subr.bf16.mxu1 %v14468_v49  ;;  %v14546_v48 = vld [vmem:[%s16761_s25 + $0x410] ss:$8 sps:$4 sm:$0xff]  }
 0x114   : > { %11299 = vmatprep.subr.bf16.mxu0 %v14471_v51  ;;  %v14549_v49 = vld [vmem:[%s16761_s25 + $0x1c10] ss:$8 sps:$4 sm:$0xff]   ;;  %v14554_v51 = vld [vmem:[%s16761_s25 + $0x424] ss:$8 sps:$4 sm:$0xff]  }
 0x116   : > { %10316 = vmatpush1.bf16.msra.mxu1 %v14466_v52  ;;  %v14557_v52 = vld [vmem:[%s16761_s25 + $0x1c24] ss:$8 sps:$4 sm:$0xff]  }
 0x117   : > { %11300 = vmatpush1.bf16.msra.mxu0 %v14469_v53  ;;  %10317 = vmatprep.subr.bf16.mxu1 %v14474_v54  ;;  %v14560_v53 = vld [vmem:[%s16761_s25 + $0x434] ss:$8 sps:$4 sm:$0xff]  }
 0x118   : > { %11301 = vmatprep.subr.bf16.mxu0 %v14477_v55  ;;  %v14563_v54 = vld [vmem:[%s16761_s25 + $0x1c34] ss:$8 sps:$4 sm:$0xff]   ;;  %v14558_v55 = vld [vmem:[%s16761_s25 + $0x430] ss:$8 sps:$4 sm:$0xff]  }
 0x11a   : > { %10318 = vmatpush1.bf16.msra.mxu1 %v14472_v56  ;;  %v14561_v56 = vld [vmem:[%s16761_s25 + $0x1c30] ss:$8 sps:$4 sm:$0xff]  }
 0x11b   : > { %11302 = vmatpush1.bf16.msra.mxu0 %v14475_v57  ;;  %10319 = vmatprep.subr.bf16.mxu1 %v14480_v58  ;;  %v14566_v57 = vld [vmem:[%s16761_s25 + $0x444] ss:$8 sps:$4 sm:$0xff]  }
 0x11c   : > { %11303 = vmatprep.subr.bf16.mxu0 %v14483_v59  ;;  %v14569_v58 = vld [vmem:[%s16761_s25 + $0x1c44] ss:$8 sps:$4 sm:$0xff]   ;;  %v14564_v59 = vld [vmem:[%s16761_s25 + $0x440] ss:$8 sps:$4 sm:$0xff]  }
 0x11e   : > { %10320 = vmatpush1.bf16.msra.mxu1 %v14478_v60  ;;  %v14567_v60 = vld [vmem:[%s16761_s25 + $0x1c40] ss:$8 sps:$4 sm:$0xff]  }
 0x11f   : > { %11304 = vmatpush1.bf16.msra.mxu0 %v14481_v61  ;;  %10321 = vmatprep.subr.bf16.mxu1 %v14486_v62  ;;  %v14572_v61 = vld [vmem:[%s16761_s25 + $0x454] ss:$8 sps:$4 sm:$0xff]  }
 0x120   : > { %11305 = vmatprep.subr.bf16.mxu0 %v14489_v63  ;;  %v14575_v62 = vld [vmem:[%s16761_s25 + $0x1c54] ss:$8 sps:$4 sm:$0xff]   ;;  %v14570_v63 = vld [vmem:[%s16761_s25 + $0x450] ss:$8 sps:$4 sm:$0xff]  }
 0x122   : > { %10322 = vmatpush1.bf16.msra.mxu1 %v14484_v0  ;;  %v14573_v0 = vld [vmem:[%s16761_s25 + $0x1c50] ss:$8 sps:$4 sm:$0xff]  }
 0x123   : > { %11306 = vmatpush1.bf16.msra.mxu0 %v14487_v1  ;;  %10323 = vmatprep.subr.bf16.mxu1 %v14492_v2  ;;  %v14578_v1 = vld [vmem:[%s16761_s25 + $0x464] ss:$8 sps:$4 sm:$0xff]  }
 0x124   : > { %11307 = vmatprep.subr.bf16.mxu0 %v14495_v3  ;;  %v14581_v2 = vld [vmem:[%s16761_s25 + $0x1c64] ss:$8 sps:$4 sm:$0xff]   ;;  %v14576_v3 = vld [vmem:[%s16761_s25 + $0x460] ss:$8 sps:$4 sm:$0xff]  }
 0x126   : > { %10324 = vmatpush1.bf16.msra.mxu1 %v14490_v4  ;;  %v14579_v4 = vld [vmem:[%s16761_s25 + $0x1c60] ss:$8 sps:$4 sm:$0xff]  }
 0x127   : > { %11308 = vmatpush1.bf16.msra.mxu0 %v14493_v5  ;;  %10325 = vmatprep.subr.bf16.mxu1 %v14498_v6  ;;  %v14584_v5 = vld [vmem:[%s16761_s25 + $0x474] ss:$8 sps:$4 sm:$0xff]  }
 0x128   : > { %11309 = vmatprep.subr.bf16.mxu0 %v14501_v7  ;;  %v14587_v6 = vld [vmem:[%s16761_s25 + $0x1c74] ss:$8 sps:$4 sm:$0xff]   ;;  %v14582_v7 = vld [vmem:[%s16761_s25 + $0x470] ss:$8 sps:$4 sm:$0xff]  }
 0x12a   : > { %10326 = vmatpush1.bf16.msra.mxu1 %v14496_v8  ;;  %v14585_v8 = vld [vmem:[%s16761_s25 + $0x1c70] ss:$8 sps:$4 sm:$0xff]  }
 0x12b   : > { %11310 = vmatpush1.bf16.msra.mxu0 %v14499_v9  ;;  %10327 = vmatprep.subr.bf16.mxu1 %v14504_v10  ;;  %v14590_v9 = vld [vmem:[%s16761_s25 + $0x484] ss:$8 sps:$4 sm:$0xff]  }
 0x12c   : > { %11311 = vmatprep.subr.bf16.mxu0 %v14507_v11  ;;  %v14593_v10 = vld [vmem:[%s16761_s25 + $0x1c84] ss:$8 sps:$4 sm:$0xff]   ;;  %v14588_v11 = vld [vmem:[%s16761_s25 + $0x480] ss:$8 sps:$4 sm:$0xff]  }
 0x12e   : > { %10328 = vmatpush1.bf16.msra.mxu1 %v14502_v12  ;;  %v14591_v12 = vld [vmem:[%s16761_s25 + $0x1c80] ss:$8 sps:$4 sm:$0xff]  }
 0x12f   : > { %11312 = vmatpush1.bf16.msra.mxu0 %v14505_v13  ;;  %10329 = vmatprep.subr.bf16.mxu1 %v14510_v14  ;;  %v14596_v13 = vld [vmem:[%s16761_s25 + $0x494] ss:$8 sps:$4 sm:$0xff]  }
 0x130   : > { %11313 = vmatprep.subr.bf16.mxu0 %v14513_v15  ;;  %v14599_v14 = vld [vmem:[%s16761_s25 + $0x1c94] ss:$8 sps:$4 sm:$0xff]   ;;  %v14594_v15 = vld [vmem:[%s16761_s25 + $0x490] ss:$8 sps:$4 sm:$0xff]  }
 0x132   : > { %10330 = vmatpush1.bf16.msra.mxu1 %v14508_v16  ;;  %v14597_v16 = vld [vmem:[%s16761_s25 + $0x1c90] ss:$8 sps:$4 sm:$0xff]  }
 0x133   : > { %11314 = vmatpush1.bf16.msra.mxu0 %v14511_v19  ;;  %10331 = vmatprep.subr.bf16.mxu1 %v14516_v20  ;;  %v14602_v19 = vld [vmem:[%s16761_s25 + $0x4a4] ss:$8 sps:$4 sm:$0xff]  }
 0x134   : > { %11315 = vmatprep.subr.bf16.mxu0 %v14519_v21  ;;  %v14605_v20 = vld [vmem:[%s16761_s25 + $0x1ca4] ss:$8 sps:$4 sm:$0xff]   ;;  %v14600_v21 = vld [vmem:[%s16761_s25 + $0x4a0] ss:$8 sps:$4 sm:$0xff]  }
 0x136   : > { %10332 = vmatpush1.bf16.msra.mxu1 %v14514_v22  ;;  %v14603_v22 = vld [vmem:[%s16761_s25 + $0x1ca0] ss:$8 sps:$4 sm:$0xff]  }
 0x137   : > { %11316 = vmatpush1.bf16.msra.mxu0 %v14517_v23  ;;  %10333 = vmatprep.subr.bf16.mxu1 %v14522_v24  ;;  %v14608_v23 = vld [vmem:[%s16761_s25 + $0x4b4] ss:$8 sps:$4 sm:$0xff]  }
 0x138   : > { %11317 = vmatprep.subr.bf16.mxu0 %v14525_v25  ;;  %v14611_v24 = vld [vmem:[%s16761_s25 + $0x1cb4] ss:$8 sps:$4 sm:$0xff]   ;;  %v14606_v25 = vld [vmem:[%s16761_s25 + $0x4b0] ss:$8 sps:$4 sm:$0xff]  }
 0x13a   : > { %10334 = vmatpush1.bf16.msra.mxu1 %v14520_v26  ;;  %v14609_v26 = vld [vmem:[%s16761_s25 + $0x1cb0] ss:$8 sps:$4 sm:$0xff]  }
 0x13b   : > { %11318 = vmatpush1.bf16.msra.mxu0 %v14523_v28  ;;  %10335 = vmatprep.subr.bf16.mxu1 %v14528_v31  ;;  %v14614_v28 = vld [vmem:[%s16761_s25 + $0x4c4] ss:$8 sps:$4 sm:$0xff]  }
 0x13c   : > { %11319 = vmatprep.subr.bf16.mxu0 %v14531_v32  ;;  %v14617_v31 = vld [vmem:[%s16761_s25 + $0x1cc4] ss:$8 sps:$4 sm:$0xff]   ;;  %v14612_v32 = vld [vmem:[%s16761_s25 + $0x4c0] ss:$8 sps:$4 sm:$0xff]  }
 0x13e   : > { %10336 = vmatpush1.bf16.msra.mxu1 %v14526_v33  ;;  %v14615_v33 = vld [vmem:[%s16761_s25 + $0x1cc0] ss:$8 sps:$4 sm:$0xff]  }
 0x13f   : > { %11320 = vmatpush1.bf16.msra.mxu0 %v14529_v35  ;;  %10337 = vmatprep.subr.bf16.mxu1 %v14534_v17  ;;  %v14620_v35 = vld [vmem:[%s16761_s25 + $0x4d4] ss:$8 sps:$4 sm:$0xff]  }
 0x140   : > { %11321 = vmatprep.subr.bf16.mxu0 %v14537_v36  ;;  %v14623_v17 = vld [vmem:[%s16761_s25 + $0x1cd4] ss:$8 sps:$4 sm:$0xff]   ;;  %v14618_v36 = vld [vmem:[%s16761_s25 + $0x4d0] ss:$8 sps:$4 sm:$0xff]  }
 0x142   : > { %10338 = vmatpush1.bf16.msra.mxu1 %v14532_v38  ;;  %v14621_v38 = vld [vmem:[%s16761_s25 + $0x1cd0] ss:$8 sps:$4 sm:$0xff]  }
 0x143   : > { %11322 = vmatpush1.bf16.msra.mxu0 %v14535_v39  ;;  %10348 = vmatprep.subr.bf16.mxu1 %v14541_v40  ;;  %v14626_v39 = vld [vmem:[%s16761_s25 + $0x4e4] ss:$8 sps:$4 sm:$0xff]  }
 0x144   : > { %11332 = vmatprep.subr.bf16.mxu0 %v14545_v41  ;;  %v14629_v40 = vld [vmem:[%s16761_s25 + $0x1ce4] ss:$8 sps:$4 sm:$0xff]   ;;  %v14624_v41 = vld [vmem:[%s16761_s25 + $0x4e0] ss:$8 sps:$4 sm:$0xff]  }
 0x145   : > { %10340 = vmatmul.mubr.bf16.vlgmr.msra.gmra.mrb[0].mxu1 %v17015_v18  ;;  %v14552_v18 = vld [vmem:[%s16761_s25 + $0x420] ss:$8 sps:$4 sm:$0xff]  }
 0x146   : > { %11324 = vmatmul.mubr.bf16.vlgmr.msra.gmra.mrb[0].mxu0 %v17018_v27  ;;  %10349 = vmatpush1.bf16.msra.mxu1 %v14539_v44  ;;  %v14555_v27 = vld [vmem:[%s16761_s25 + $0x1c20] ss:$8 sps:$4 sm:$0xff]  }
 0x147   : > { %11333 = vmatpush1.bf16.msra.mxu0 %v14543_v45  ;;  %10350 = vmatprep.subr.bf16.mxu1 %v14548_v29  ;;  %v14627_v44 = vld [vmem:[%s16761_s25 + $0x1ce0] ss:$8 sps:$4 sm:$0xff]   ;;  %v14632_v45 = vld [vmem:[%s16761_s25 + $0x4f4] ss:$8 sps:$4 sm:$0xff]  }
 0x148   : > { %11334 = vmatprep.subr.bf16.mxu0 %v14551_v34  ;;  %10380 = vmatprep.mubr.bf16.mxu1 %v1879_v46  ;;  %v14635_v29 = vld [vmem:[%s16761_s25 + $0x1cf4] ss:$8 sps:$4 sm:$0xff]   ;;  %v1864_v34 = vcombine.high %v17087_v30, %v17087_v30  ;;  %v2068_v46 = vcombine.high %v17090_v37, %v17090_v37  ;;  %v14636_v30 = vld [vmem:[%s16761_s25 + $0x500] ss:$8 sps:$4 sm:$0xff]  }
 0x149   : > { %11364 = vmatprep.mubr.bf16.mxu0 %v2083_v47  ;;  %v14630_v47 = vld [vmem:[%s16761_s25 + $0x4f0] ss:$8 sps:$4 sm:$0xff]   ;;  %v14639_v37 = vld [vmem:[%s16761_s25 + $0x1d00] ss:$8 sps:$4 sm:$0xff]  }
 0x14a   : > { %10351 = vmatpush1.bf16.msra.mxu1 %v14546_v48  ;;  %v14633_v48 = vld [vmem:[%s16761_s25 + $0x1cf0] ss:$8 sps:$4 sm:$0xff]  }
 0x14b   : > { %11335 = vmatpush1.bf16.msra.mxu0 %v14549_v49  ;;  %10352 = vmatprep.subr.bf16.mxu1 %v14554_v51  ;;  %v14638_v49 = vld [vmem:[%s16761_s25 + $0x504] ss:$8 sps:$4 sm:$0xff]  }
 0x14c   : > { %11336 = vmatprep.subr.bf16.mxu0 %v14557_v52  ;;  %v14641_v51 = vld [vmem:[%s16761_s25 + $0x1d04] ss:$8 sps:$4 sm:$0xff]   ;;  %v17179_v52 = vrot.slane %v1864_v34, %v16824_v50  ;;  %v14717_v34 = vld [vmem:[%s16761_s25 + $0x1dd0] ss:$8 sps:$4 sm:$0xff]  }
 0x14e   : > { %10353 = vmatpush1.bf16.msra.mxu1 %v14552_v18  ;;  %v17182_v18 = vrot.slane %v2068_v46, %v16824_v50  ;;  %v14722_v46 = vld [vmem:[%s16761_s25 + $0x5e4] ss:$8 sps:$4 sm:$0xff]  }
 0x14f   : > { %11337 = vmatpush1.bf16.msra.mxu0 %v14555_v27  ;;  %10354 = vmatprep.subr.bf16.mxu1 %v14560_v53  ;;  %v14644_v27 = vld [vmem:[%s16761_s25 + $0x514] ss:$8 sps:$4 sm:$0xff]  }
 0x150   : > { %11338 = vmatprep.subr.bf16.mxu0 %v14563_v54  ;;  %v14647_v53 = vld [vmem:[%s16761_s25 + $0x1d14] ss:$8 sps:$4 sm:$0xff]   ;;  %v1880_v54 = vcombine.high %v17179_v52, %v17179_v52 }
 0x152   : > { %10355 = vmatpush1.bf16.msra.mxu1 %v14558_v55  ;;  %v2084_v55 = vcombine.high %v17182_v18, %v17182_v18 }
 0x153   : > { %11339 = vmatpush1.bf16.msra.mxu0 %v14561_v56  ;;  %10356 = vmatprep.subr.bf16.mxu1 %v14566_v57  ;;  %v14642_v56 = vld [vmem:[%s16761_s25 + $0x510] ss:$8 sps:$4 sm:$0xff]  }
 0x154   : > { %11340 = vmatprep.subr.bf16.mxu0 %v14569_v58  ;;  %v14645_v57 = vld [vmem:[%s16761_s25 + $0x1d10] ss:$8 sps:$4 sm:$0xff]   ;;  %v14650_v58 = vld [vmem:[%s16761_s25 + $0x524] ss:$8 sps:$4 sm:$0xff]  }
 0x156   : > { %10357 = vmatpush1.bf16.msra.mxu1 %v14564_v59  ;;  %v14653_v59 = vld [vmem:[%s16761_s25 + $0x1d24] ss:$8 sps:$4 sm:$0xff]  }
 0x157   : > { %11341 = vmatpush1.bf16.msra.mxu0 %v14567_v60  ;;  %10358 = vmatprep.subr.bf16.mxu1 %v14572_v61  ;;  %v14656_v60 = vld [vmem:[%s16761_s25 + $0x534] ss:$8 sps:$4 sm:$0xff]  }
 0x158   : > { %11342 = vmatprep.subr.bf16.mxu0 %v14575_v62  ;;  %v14659_v61 = vld [vmem:[%s16761_s25 + $0x1d34] ss:$8 sps:$4 sm:$0xff]   ;;  %v14654_v62 = vld [vmem:[%s16761_s25 + $0x530] ss:$8 sps:$4 sm:$0xff]  }
 0x15a   : > { %10359 = vmatpush1.bf16.msra.mxu1 %v14570_v63  ;;  %v14657_v63 = vld [vmem:[%s16761_s25 + $0x1d30] ss:$8 sps:$4 sm:$0xff]  }
 0x15b   : > { %11343 = vmatpush1.bf16.msra.mxu0 %v14573_v0  ;;  %10360 = vmatprep.subr.bf16.mxu1 %v14578_v1  ;;  %v14662_v0 = vld [vmem:[%s16761_s25 + $0x544] ss:$8 sps:$4 sm:$0xff]  }
 0x15c   : > { %11344 = vmatprep.subr.bf16.mxu0 %v14581_v2  ;;  %v14665_v1 = vld [vmem:[%s16761_s25 + $0x1d44] ss:$8 sps:$4 sm:$0xff]   ;;  %v14660_v2 = vld [vmem:[%s16761_s25 + $0x540] ss:$8 sps:$4 sm:$0xff]  }
 0x15e   : > { %10361 = vmatpush1.bf16.msra.mxu1 %v14576_v3  ;;  %v14663_v3 = vld [vmem:[%s16761_s25 + $0x1d40] ss:$8 sps:$4 sm:$0xff]  }
 0x15f   : > { %11345 = vmatpush1.bf16.msra.mxu0 %v14579_v4  ;;  %10362 = vmatprep.subr.bf16.mxu1 %v14584_v5  ;;  %v14668_v4 = vld [vmem:[%s16761_s25 + $0x554] ss:$8 sps:$4 sm:$0xff]  }
 0x160   : > { %11346 = vmatprep.subr.bf16.mxu0 %v14587_v6  ;;  %v14671_v5 = vld [vmem:[%s16761_s25 + $0x1d54] ss:$8 sps:$4 sm:$0xff]   ;;  %v14666_v6 = vld [vmem:[%s16761_s25 + $0x550] ss:$8 sps:$4 sm:$0xff]  }
 0x162   : > { %10363 = vmatpush1.bf16.msra.mxu1 %v14582_v7  ;;  %v14669_v7 = vld [vmem:[%s16761_s25 + $0x1d50] ss:$8 sps:$4 sm:$0xff]  }
 0x163   : > { %11347 = vmatpush1.bf16.msra.mxu0 %v14585_v8  ;;  %10364 = vmatprep.subr.bf16.mxu1 %v14590_v9  ;;  %v14674_v8 = vld [vmem:[%s16761_s25 + $0x564] ss:$8 sps:$4 sm:$0xff]  }
 0x164   : > { %11348 = vmatprep.subr.bf16.mxu0 %v14593_v10  ;;  %v14677_v9 = vld [vmem:[%s16761_s25 + $0x1d64] ss:$8 sps:$4 sm:$0xff]   ;;  %v14672_v10 = vld [vmem:[%s16761_s25 + $0x560] ss:$8 sps:$4 sm:$0xff]  }
 0x166   : > { %10365 = vmatpush1.bf16.msra.mxu1 %v14588_v11  ;;  %v14675_v11 = vld [vmem:[%s16761_s25 + $0x1d60] ss:$8 sps:$4 sm:$0xff]  }
 0x167   : > { %11349 = vmatpush1.bf16.msra.mxu0 %v14591_v12  ;;  %10366 = vmatprep.subr.bf16.mxu1 %v14596_v13  ;;  %v14680_v12 = vld [vmem:[%s16761_s25 + $0x574] ss:$8 sps:$4 sm:$0xff]  }
 0x168   : > { %11350 = vmatprep.subr.bf16.mxu0 %v14599_v14  ;;  %v14683_v13 = vld [vmem:[%s16761_s25 + $0x1d74] ss:$8 sps:$4 sm:$0xff]   ;;  %v14678_v14 = vld [vmem:[%s16761_s25 + $0x570] ss:$8 sps:$4 sm:$0xff]  }
 0x16a   : > { %10367 = vmatpush1.bf16.msra.mxu1 %v14594_v15  ;;  %v14681_v15 = vld [vmem:[%s16761_s25 + $0x1d70] ss:$8 sps:$4 sm:$0xff]  }
 0x16b   : > { %11351 = vmatpush1.bf16.msra.mxu0 %v14597_v16  ;;  %10368 = vmatprep.subr.bf16.mxu1 %v14602_v19  ;;  %v14686_v16 = vld [vmem:[%s16761_s25 + $0x584] ss:$8 sps:$4 sm:$0xff]  }
 0x16c   : > { %11352 = vmatprep.subr.bf16.mxu0 %v14605_v20  ;;  %v14689_v19 = vld [vmem:[%s16761_s25 + $0x1d84] ss:$8 sps:$4 sm:$0xff]   ;;  %v14684_v20 = vld [vmem:[%s16761_s25 + $0x580] ss:$8 sps:$4 sm:$0xff]  }
 0x16e   : > { %10369 = vmatpush1.bf16.msra.mxu1 %v14600_v21  ;;  %v14687_v21 = vld [vmem:[%s16761_s25 + $0x1d80] ss:$8 sps:$4 sm:$0xff]  }
 0x16f   : > { %11353 = vmatpush1.bf16.msra.mxu0 %v14603_v22  ;;  %10370 = vmatprep.subr.bf16.mxu1 %v14608_v23  ;;  %v14692_v22 = vld [vmem:[%s16761_s25 + $0x594] ss:$8 sps:$4 sm:$0xff]  }
 0x170   : > { %11354 = vmatprep.subr.bf16.mxu0 %v14611_v24  ;;  %v14695_v23 = vld [vmem:[%s16761_s25 + $0x1d94] ss:$8 sps:$4 sm:$0xff]   ;;  %v14690_v24 = vld [vmem:[%s16761_s25 + $0x590] ss:$8 sps:$4 sm:$0xff]  }
 0x172   : > { %10371 = vmatpush1.bf16.msra.mxu1 %v14606_v25  ;;  %v14693_v25 = vld [vmem:[%s16761_s25 + $0x1d90] ss:$8 sps:$4 sm:$0xff]  }
 0x173   : > { %11355 = vmatpush1.bf16.msra.mxu0 %v14609_v26  ;;  %10372 = vmatprep.subr.bf16.mxu1 %v14614_v28  ;;  %v14698_v26 = vld [vmem:[%s16761_s25 + $0x5a4] ss:$8 sps:$4 sm:$0xff]  }
 0x174   : > { %11356 = vmatprep.subr.bf16.mxu0 %v14617_v31  ;;  %v14701_v28 = vld [vmem:[%s16761_s25 + $0x1da4] ss:$8 sps:$4 sm:$0xff]   ;;  %v14696_v31 = vld [vmem:[%s16761_s25 + $0x5a0] ss:$8 sps:$4 sm:$0xff]  }
 0x176   : > { %10373 = vmatpush1.bf16.msra.mxu1 %v14612_v32  ;;  %v14699_v32 = vld [vmem:[%s16761_s25 + $0x1da0] ss:$8 sps:$4 sm:$0xff]  }
 0x177   : > { %11357 = vmatpush1.bf16.msra.mxu0 %v14615_v33  ;;  %10374 = vmatprep.subr.bf16.mxu1 %v14620_v35  ;;  %v14704_v33 = vld [vmem:[%s16761_s25 + $0x5b4] ss:$8 sps:$4 sm:$0xff]  }
 0x178   : > { %11358 = vmatprep.subr.bf16.mxu0 %v14623_v17  ;;  %v14707_v35 = vld [vmem:[%s16761_s25 + $0x1db4] ss:$8 sps:$4 sm:$0xff]   ;;  %v14702_v17 = vld [vmem:[%s16761_s25 + $0x5b0] ss:$8 sps:$4 sm:$0xff]  }
 0x17a   : > { %10375 = vmatpush1.bf16.msra.mxu1 %v14618_v36  ;;  %v14705_v36 = vld [vmem:[%s16761_s25 + $0x1db0] ss:$8 sps:$4 sm:$0xff]  }
 0x17b   : > { %11359 = vmatpush1.bf16.msra.mxu0 %v14621_v38  ;;  %10376 = vmatprep.subr.bf16.mxu1 %v14626_v39  ;;  %v14710_v38 = vld [vmem:[%s16761_s25 + $0x5c4] ss:$8 sps:$4 sm:$0xff]  }
 0x17c   : > { %11360 = vmatprep.subr.bf16.mxu0 %v14629_v40  ;;  %v14713_v39 = vld [vmem:[%s16761_s25 + $0x1dc4] ss:$8 sps:$4 sm:$0xff]   ;;  %v14708_v40 = vld [vmem:[%s16761_s25 + $0x5c0] ss:$8 sps:$4 sm:$0xff]  }
 0x17e   : > { %10377 = vmatpush1.bf16.msra.mxu1 %v14624_v41  ;;  %v14711_v41 = vld [vmem:[%s16761_s25 + $0x1dc0] ss:$8 sps:$4 sm:$0xff]  }
 0x17f   : > { %11361 = vmatpush1.bf16.msra.mxu0 %v14627_v44  ;;  %10378 = vmatprep.subr.bf16.mxu1 %v14632_v45  ;;  %v14716_v44 = vld [vmem:[%s16761_s25 + $0x5d4] ss:$8 sps:$4 sm:$0xff]  }
 0x180   : > { %11362 = vmatprep.subr.bf16.mxu0 %v14635_v29  ;;  %v14719_v45 = vld [vmem:[%s16761_s25 + $0x1dd4] ss:$8 sps:$4 sm:$0xff]   ;;  %v14714_v29 = vld [vmem:[%s16761_s25 + $0x5d0] ss:$8 sps:$4 sm:$0xff]  }
 0x182   : > { %10379 = vmatpush1.bf16.msra.mxu1 %v14630_v47  ;;  %v14725_v47 = vld [vmem:[%s16761_s25 + $0x1de4] ss:$8 sps:$4 sm:$0xff]  }
 0x183   : > { %11363 = vmatpush1.bf16.msra.mxu0 %v14633_v48  ;;  %10389 = vmatprep.subr.bf16.mxu1 %v14638_v49  ;;  %v14720_v48 = vld [vmem:[%s16761_s25 + $0x5e0] ss:$8 sps:$4 sm:$0xff]  }
 0x184   : > { %11373 = vmatprep.subr.bf16.mxu0 %v14641_v51  ;;  %v14723_v49 = vld [vmem:[%s16761_s25 + $0x1de0] ss:$8 sps:$4 sm:$0xff]   ;;  %v14728_v51 = vld [vmem:[%s16761_s25 + $0x5f4] ss:$8 sps:$4 sm:$0xff]  }
 0x185   : > { %10381 = vmatmul.mubr.bf16.vlgmr.msra.gmra.mrb[0].mxu1 %v17098_v42  ;;  %v14648_v42 = vld [vmem:[%s16761_s25 + $0x520] ss:$8 sps:$4 sm:$0xff]  }
 0x186   : > { %11365 = vmatmul.mubr.bf16.vlgmr.msra.gmra.mrb[0].mxu0 %v17102_v43  ;;  %10390 = vmatpush1.bf16.msra.mxu1 %v14636_v30  ;;  %v14651_v43 = vld [vmem:[%s16761_s25 + $0x1d20] ss:$8 sps:$4 sm:$0xff]   ;;  %v14731_v30 = vld [vmem:[%s16761_s25 + $0x1df4] ss:$8 sps:$4 sm:$0xff]  }
 0x187   : > { %11374 = vmatpush1.bf16.msra.mxu0 %v14639_v37  ;;  %10391 = vmatprep.subr.bf16.mxu1 %v14644_v27  ;;  %v17251_v37 = vld [vmem:[%s16777_s23 + $0x18] sm:$0xff] }
 0x188   : > { %11375 = vmatprep.subr.bf16.mxu0 %v14647_v53  ;;  %10421 = vmatprep.mubr.bf16.mxu1 %v1880_v54  ;;  %v17254_v27 = vld [vmem:[%s16777_s23 + $0x78] sm:$0xff] }
 0x189   : > { %11405 = vmatprep.mubr.bf16.mxu0 %v2084_v55  ;;  %v14726_v53 = vld [vmem:[%s16761_s25 + $0x5f0] ss:$8 sps:$4 sm:$0xff]   ;;  %v14735_v55 = vld [vmem:[%s16761_s25 + $0x604] ss:$8 sps:$4 sm:$0xff]  }
 0x18a   : > { %10392 = vmatpush1.bf16.msra.mxu1 %v14642_v56  ;;  %v14729_v54 = vld [vmem:[%s16761_s25 + $0x1df0] ss:$8 sps:$4 sm:$0xff]   ;;  %v14739_v56 = vld [vmem:[%s16761_s25 + $0x1e04] ss:$8 sps:$4 sm:$0xff]  }
 0x18b   : > { %11376 = vmatpush1.bf16.msra.mxu0 %v14645_v57  ;;  %10393 = vmatprep.subr.bf16.mxu1 %v14650_v58  ;;  %v17262_v57 = vrot.slane %v17251_v37, %v16824_v50  ;;  %v17266_v58 = vrot.slane %v17254_v27, %v16824_v50 }
 0x18c   : > { %11377 = vmatprep.subr.bf16.mxu0 %v14653_v59  ;;  %v14733_v59 = vld [vmem:[%s16761_s25 + $0x600] ss:$8 sps:$4 sm:$0xff]  }
 0x18e   : > { %10394 = vmatpush1.bf16.msra.mxu1 %v14648_v42  ;;  %v14737_v42 = vld [vmem:[%s16761_s25 + $0x1e00] ss:$8 sps:$4 sm:$0xff]  }
 0x18f   : > { %11378 = vmatpush1.bf16.msra.mxu0 %v14651_v43  ;;  %10395 = vmatprep.subr.bf16.mxu1 %v14656_v60  ;;  %v14742_v43 = vld [vmem:[%s16761_s25 + $0x614] ss:$8 sps:$4 sm:$0xff]  }
 0x190   : > { %11379 = vmatprep.subr.bf16.mxu0 %v14659_v61  ;;  %v14745_v60 = vld [vmem:[%s16761_s25 + $0x1e14] ss:$8 sps:$4 sm:$0xff]   ;;  %v1896_v61 = vcombine.high %v17262_v57, %v17262_v57 }
 0x192   : > { %10396 = vmatpush1.bf16.msra.mxu1 %v14654_v62  ;;  %v2100_v62 = vcombine.high %v17266_v58, %v17266_v58 }
 0x193   : > { %11380 = vmatpush1.bf16.msra.mxu0 %v14657_v63  ;;  %10397 = vmatprep.subr.bf16.mxu1 %v14662_v0  ;;  %v14740_v63 = vld [vmem:[%s16761_s25 + $0x610] ss:$8 sps:$4 sm:$0xff]  }
 0x194   : > { %11381 = vmatprep.subr.bf16.mxu0 %v14665_v1  ;;  %v14743_v0 = vld [vmem:[%s16761_s25 + $0x1e10] ss:$8 sps:$4 sm:$0xff]   ;;  %v14748_v1 = vld [vmem:[%s16761_s25 + $0x624] ss:$8 sps:$4 sm:$0xff]  }
 0x196   : > { %10398 = vmatpush1.bf16.msra.mxu1 %v14660_v2  ;;  %v14751_v2 = vld [vmem:[%s16761_s25 + $0x1e24] ss:$8 sps:$4 sm:$0xff]  }
 0x197   : > { %11382 = vmatpush1.bf16.msra.mxu0 %v14663_v3  ;;  %10399 = vmatprep.subr.bf16.mxu1 %v14668_v4  ;;  %v14754_v3 = vld [vmem:[%s16761_s25 + $0x634] ss:$8 sps:$4 sm:$0xff]  }
 0x198   : > { %11383 = vmatprep.subr.bf16.mxu0 %v14671_v5  ;;  %v14757_v4 = vld [vmem:[%s16761_s25 + $0x1e34] ss:$8 sps:$4 sm:$0xff]   ;;  %v14752_v5 = vld [vmem:[%s16761_s25 + $0x630] ss:$8 sps:$4 sm:$0xff]  }
 0x19a   : > { %10400 = vmatpush1.bf16.msra.mxu1 %v14666_v6  ;;  %v14755_v6 = vld [vmem:[%s16761_s25 + $0x1e30] ss:$8 sps:$4 sm:$0xff]  }
 0x19b   : > { %11384 = vmatpush1.bf16.msra.mxu0 %v14669_v7  ;;  %10401 = vmatprep.subr.bf16.mxu1 %v14674_v8  ;;  %v14760_v7 = vld [vmem:[%s16761_s25 + $0x644] ss:$8 sps:$4 sm:$0xff]  }
 0x19c   : > { %11385 = vmatprep.subr.bf16.mxu0 %v14677_v9  ;;  %v14763_v8 = vld [vmem:[%s16761_s25 + $0x1e44] ss:$8 sps:$4 sm:$0xff]   ;;  %v14758_v9 = vld [vmem:[%s16761_s25 + $0x640] ss:$8 sps:$4 sm:$0xff]  }
 0x19e   : > { %10402 = vmatpush1.bf16.msra.mxu1 %v14672_v10  ;;  %v14761_v10 = vld [vmem:[%s16761_s25 + $0x1e40] ss:$8 sps:$4 sm:$0xff]  }
 0x19f   : > { %11386 = vmatpush1.bf16.msra.mxu0 %v14675_v11  ;;  %10403 = vmatprep.subr.bf16.mxu1 %v14680_v12  ;;  %v14766_v11 = vld [vmem:[%s16761_s25 + $0x654] ss:$8 sps:$4 sm:$0xff]  }
 0x1a0   : > { %11387 = vmatprep.subr.bf16.mxu0 %v14683_v13  ;;  %v14769_v12 = vld [vmem:[%s16761_s25 + $0x1e54] ss:$8 sps:$4 sm:$0xff]   ;;  %v14764_v13 = vld [vmem:[%s16761_s25 + $0x650] ss:$8 sps:$4 sm:$0xff]  }
 0x1a2   : > { %10404 = vmatpush1.bf16.msra.mxu1 %v14678_v14  ;;  %v14767_v14 = vld [vmem:[%s16761_s25 + $0x1e50] ss:$8 sps:$4 sm:$0xff]  }
 0x1a3   : > { %11388 = vmatpush1.bf16.msra.mxu0 %v14681_v15  ;;  %10405 = vmatprep.subr.bf16.mxu1 %v14686_v16  ;;  %v14772_v15 = vld [vmem:[%s16761_s25 + $0x664] ss:$8 sps:$4 sm:$0xff]  }
 0x1a4   : > { %11389 = vmatprep.subr.bf16.mxu0 %v14689_v19  ;;  %v14775_v16 = vld [vmem:[%s16761_s25 + $0x1e64] ss:$8 sps:$4 sm:$0xff]   ;;  %v14770_v19 = vld [vmem:[%s16761_s25 + $0x660] ss:$8 sps:$4 sm:$0xff]  }
 0x1a6   : > { %10406 = vmatpush1.bf16.msra.mxu1 %v14684_v20  ;;  %v14773_v20 = vld [vmem:[%s16761_s25 + $0x1e60] ss:$8 sps:$4 sm:$0xff]  }
 0x1a7   : > { %11390 = vmatpush1.bf16.msra.mxu0 %v14687_v21  ;;  %10407 = vmatprep.subr.bf16.mxu1 %v14692_v22  ;;  %v14778_v21 = vld [vmem:[%s16761_s25 + $0x674] ss:$8 sps:$4 sm:$0xff]  }
 0x1a8   : > { %11391 = vmatprep.subr.bf16.mxu0 %v14695_v23  ;;  %v14781_v22 = vld [vmem:[%s16761_s25 + $0x1e74] ss:$8 sps:$4 sm:$0xff]   ;;  %v14776_v23 = vld [vmem:[%s16761_s25 + $0x670] ss:$8 sps:$4 sm:$0xff]  }
 0x1aa   : > { %10408 = vmatpush1.bf16.msra.mxu1 %v14690_v24  ;;  %v14779_v24 = vld [vmem:[%s16761_s25 + $0x1e70] ss:$8 sps:$4 sm:$0xff]  }
 0x1ab   : > { %11392 = vmatpush1.bf16.msra.mxu0 %v14693_v25  ;;  %10409 = vmatprep.subr.bf16.mxu1 %v14698_v26  ;;  %v14784_v25 = vld [vmem:[%s16761_s25 + $0x684] ss:$8 sps:$4 sm:$0xff]  }
 0x1ac   : > { %11393 = vmatprep.subr.bf16.mxu0 %v14701_v28  ;;  %v14787_v26 = vld [vmem:[%s16761_s25 + $0x1e84] ss:$8 sps:$4 sm:$0xff]   ;;  %v14782_v28 = vld [vmem:[%s16761_s25 + $0x680] ss:$8 sps:$4 sm:$0xff]  }
 0x1ae   : > { %10410 = vmatpush1.bf16.msra.mxu1 %v14696_v31  ;;  %v14785_v31 = vld [vmem:[%s16761_s25 + $0x1e80] ss:$8 sps:$4 sm:$0xff]  }
 0x1af   : > { %11394 = vmatpush1.bf16.msra.mxu0 %v14699_v32  ;;  %10411 = vmatprep.subr.bf16.mxu1 %v14704_v33  ;;  %v14790_v32 = vld [vmem:[%s16761_s25 + $0x694] ss:$8 sps:$4 sm:$0xff]  }
 0x1b0   : > { %11395 = vmatprep.subr.bf16.mxu0 %v14707_v35  ;;  %v14793_v33 = vld [vmem:[%s16761_s25 + $0x1e94] ss:$8 sps:$4 sm:$0xff]   ;;  %v14788_v35 = vld [vmem:[%s16761_s25 + $0x690] ss:$8 sps:$4 sm:$0xff]  }
 0x1b2   : > { %10412 = vmatpush1.bf16.msra.mxu1 %v14702_v17  ;;  %v14791_v17 = vld [vmem:[%s16761_s25 + $0x1e90] ss:$8 sps:$4 sm:$0xff]  }
 0x1b3   : > { %11396 = vmatpush1.bf16.msra.mxu0 %v14705_v36  ;;  %10413 = vmatprep.subr.bf16.mxu1 %v14710_v38  ;;  %v14796_v36 = vld [vmem:[%s16761_s25 + $0x6a4] ss:$8 sps:$4 sm:$0xff]  }
 0x1b4   : > { %11397 = vmatprep.subr.bf16.mxu0 %v14713_v39  ;;  %v14799_v38 = vld [vmem:[%s16761_s25 + $0x1ea4] ss:$8 sps:$4 sm:$0xff]   ;;  %v14794_v39 = vld [vmem:[%s16761_s25 + $0x6a0] ss:$8 sps:$4 sm:$0xff]  }
 0x1b6   : > { %10414 = vmatpush1.bf16.msra.mxu1 %v14708_v40  ;;  %v14797_v40 = vld [vmem:[%s16761_s25 + $0x1ea0] ss:$8 sps:$4 sm:$0xff]  }
 0x1b7   : > { %11398 = vmatpush1.bf16.msra.mxu0 %v14711_v41  ;;  %10415 = vmatprep.subr.bf16.mxu1 %v14716_v44  ;;  %v14802_v41 = vld [vmem:[%s16761_s25 + $0x6b4] ss:$8 sps:$4 sm:$0xff]  }
 0x1b8   : > { %11399 = vmatprep.subr.bf16.mxu0 %v14719_v45  ;;  %v14805_v44 = vld [vmem:[%s16761_s25 + $0x1eb4] ss:$8 sps:$4 sm:$0xff]   ;;  %v14800_v45 = vld [vmem:[%s16761_s25 + $0x6b0] ss:$8 sps:$4 sm:$0xff]  }
 0x1ba   : > { %10416 = vmatpush1.bf16.msra.mxu1 %v14714_v29  ;;  %v14803_v29 = vld [vmem:[%s16761_s25 + $0x1eb0] ss:$8 sps:$4 sm:$0xff]  }
 0x1bb   : > { %11400 = vmatpush1.bf16.msra.mxu0 %v14717_v34  ;;  %10417 = vmatprep.subr.bf16.mxu1 %v14722_v46  ;;  %v14808_v34 = vld [vmem:[%s16761_s25 + $0x6c4] ss:$8 sps:$4 sm:$0xff]  }
 0x1bc   : > { %11401 = vmatprep.subr.bf16.mxu0 %v14725_v47  ;;  %v14811_v46 = vld [vmem:[%s16761_s25 + $0x1ec4] ss:$8 sps:$4 sm:$0xff]   ;;  %v14806_v47 = vld [vmem:[%s16761_s25 + $0x6c0] ss:$8 sps:$4 sm:$0xff]  }
 0x1be   : > { %10418 = vmatpush1.bf16.msra.mxu1 %v14720_v48  ;;  %v14809_v48 = vld [vmem:[%s16761_s25 + $0x1ec0] ss:$8 sps:$4 sm:$0xff]  }
 0x1bf   : > { %11402 = vmatpush1.bf16.msra.mxu0 %v14723_v49  ;;  %10419 = vmatprep.subr.bf16.mxu1 %v14728_v51  ;;  %v14814_v49 = vld [vmem:[%s16761_s25 + $0x6d4] ss:$8 sps:$4 sm:$0xff]  }
 0x1c0   : > { %11403 = vmatprep.subr.bf16.mxu0 %v14731_v30  ;;  %v14817_v51 = vld [vmem:[%s16761_s25 + $0x1ed4] ss:$8 sps:$4 sm:$0xff]   ;;  %v14812_v30 = vld [vmem:[%s16761_s25 + $0x6d0] ss:$8 sps:$4 sm:$0xff]  }
 0x1c2   : > { %10420 = vmatpush1.bf16.msra.mxu1 %v14726_v53  ;;  %v14815_v53 = vld [vmem:[%s16761_s25 + $0x1ed0] ss:$8 sps:$4 sm:$0xff]  }
 0x1c3   : > { %11404 = vmatpush1.bf16.msra.mxu0 %v14729_v54  ;;  %10430 = vmatprep.subr.bf16.mxu1 %v14735_v55  ;;  %v14820_v54 = vld [vmem:[%s16761_s25 + $0x6e4] ss:$8 sps:$4 sm:$0xff]  }
 0x1c4   : > { %11414 = vmatprep.subr.bf16.mxu0 %v14739_v56  ;;  %v14823_v55 = vld [vmem:[%s16761_s25 + $0x1ee4] ss:$8 sps:$4 sm:$0xff]   ;;  %v14818_v56 = vld [vmem:[%s16761_s25 + $0x6e0] ss:$8 sps:$4 sm:$0xff]  }
 0x1c5   : > { %10422 = vmatmul.mubr.bf16.vlgmr.msra.gmra.mrb[0].mxu1 %v17179_v52  ;;  %v14746_v52 = vld [vmem:[%s16761_s25 + $0x620] ss:$8 sps:$4 sm:$0xff]  }
 0x1c6   : > { %11406 = vmatmul.mubr.bf16.vlgmr.msra.gmra.mrb[0].mxu0 %v17182_v18  ;;  %10431 = vmatpush1.bf16.msra.mxu1 %v14733_v59  ;;  %v14749_v18 = vld [vmem:[%s16761_s25 + $0x1e20] ss:$8 sps:$4 sm:$0xff]  }
 0x1c7   : > { %11415 = vmatpush1.bf16.msra.mxu0 %v14737_v42  ;;  %10432 = vmatprep.subr.bf16.mxu1 %v14742_v43  ;;  %v14821_v59 = vld [vmem:[%s16761_s25 + $0x1ee0] ss:$8 sps:$4 sm:$0xff]   ;;  %v14826_v42 = vld [vmem:[%s16761_s25 + $0x6f4] ss:$8 sps:$4 sm:$0xff]  }
 0x1c8   : > { %11416 = vmatprep.subr.bf16.mxu0 %v14745_v60  ;;  %10462 = vmatprep.mubr.bf16.mxu1 %v1896_v61  ;;  %v14829_v43 = vld [vmem:[%s16761_s25 + $0x1ef4] ss:$8 sps:$4 sm:$0xff]   ;;  %v1881_v60 = vcombine.high %v17251_v37, %v17251_v37  ;;  %v2085_v61 = vcombine.high %v17254_v27, %v17254_v27  ;;  %v14830_v37 = vld [vmem:[%s16761_s25 + $0x700] ss:$8 sps:$4 sm:$0xff]  }
 0x1c9   : > { %11446 = vmatprep.mubr.bf16.mxu0 %v2100_v62  ;;  %v14824_v62 = vld [vmem:[%s16761_s25 + $0x6f0] ss:$8 sps:$4 sm:$0xff]   ;;  %v14833_v27 = vld [vmem:[%s16761_s25 + $0x1f00] ss:$8 sps:$4 sm:$0xff]  }
 0x1ca   : > { %10433 = vmatpush1.bf16.msra.mxu1 %v14740_v63  ;;  %v14827_v63 = vld [vmem:[%s16761_s25 + $0x1ef0] ss:$8 sps:$4 sm:$0xff]  }
 0x1cb   : > { %11417 = vmatpush1.bf16.msra.mxu0 %v14743_v0  ;;  %10434 = vmatprep.subr.bf16.mxu1 %v14748_v1  ;;  %v14832_v0 = vld [vmem:[%s16761_s25 + $0x704] ss:$8 sps:$4 sm:$0xff]  }
 0x1cc   : > { %11418 = vmatprep.subr.bf16.mxu0 %v14751_v2  ;;  %v14835_v1 = vld [vmem:[%s16761_s25 + $0x1f04] ss:$8 sps:$4 sm:$0xff]   ;;  %v17343_v2 = vrot.slane %v1881_v60, %v16824_v50  ;;  %v14911_v60 = vld [vmem:[%s16761_s25 + $0x1fd0] ss:$8 sps:$4 sm:$0xff]  }
 0x1ce   : > { %10435 = vmatpush1.bf16.msra.mxu1 %v14746_v52  ;;  %v17346_v52 = vrot.slane %v2085_v61, %v16824_v50  ;;  %v14916_v61 = vld [vmem:[%s16761_s25 + $0x7e4] ss:$8 sps:$4 sm:$0xff]  }
 0x1cf   : > { %11419 = vmatpush1.bf16.msra.mxu0 %v14749_v18  ;;  %10436 = vmatprep.subr.bf16.mxu1 %v14754_v3  ;;  %v14838_v18 = vld [vmem:[%s16761_s25 + $0x714] ss:$8 sps:$4 sm:$0xff]  }
 0x1d0   : > { %11420 = vmatprep.subr.bf16.mxu0 %v14757_v4  ;;  %v14841_v3 = vld [vmem:[%s16761_s25 + $0x1f14] ss:$8 sps:$4 sm:$0xff]   ;;  %v1897_v4 = vcombine.high %v17343_v2, %v17343_v2 }
 0x1d2   : > { %10437 = vmatpush1.bf16.msra.mxu1 %v14752_v5  ;;  %v2101_v5 = vcombine.high %v17346_v52, %v17346_v52 }
 0x1d3   : > { %11421 = vmatpush1.bf16.msra.mxu0 %v14755_v6  ;;  %10438 = vmatprep.subr.bf16.mxu1 %v14760_v7  ;;  %v14836_v6 = vld [vmem:[%s16761_s25 + $0x710] ss:$8 sps:$4 sm:$0xff]  }
 0x1d4   : > { %11422 = vmatprep.subr.bf16.mxu0 %v14763_v8  ;;  %v14839_v7 = vld [vmem:[%s16761_s25 + $0x1f10] ss:$8 sps:$4 sm:$0xff]   ;;  %v14844_v8 = vld [vmem:[%s16761_s25 + $0x724] ss:$8 sps:$4 sm:$0xff]  }
 0x1d6   : > { %10439 = vmatpush1.bf16.msra.mxu1 %v14758_v9  ;;  %v14847_v9 = vld [vmem:[%s16761_s25 + $0x1f24] ss:$8 sps:$4 sm:$0xff]  }
 0x1d7   : > { %11423 = vmatpush1.bf16.msra.mxu0 %v14761_v10  ;;  %10440 = vmatprep.subr.bf16.mxu1 %v14766_v11  ;;  %v14850_v10 = vld [vmem:[%s16761_s25 + $0x734] ss:$8 sps:$4 sm:$0xff]  }
 0x1d8   : > { %11424 = vmatprep.subr.bf16.mxu0 %v14769_v12  ;;  %v14853_v11 = vld [vmem:[%s16761_s25 + $0x1f34] ss:$8 sps:$4 sm:$0xff]   ;;  %v14848_v12 = vld [vmem:[%s16761_s25 + $0x730] ss:$8 sps:$4 sm:$0xff]  }
 0x1da   : > { %10441 = vmatpush1.bf16.msra.mxu1 %v14764_v13  ;;  %v14851_v13 = vld [vmem:[%s16761_s25 + $0x1f30] ss:$8 sps:$4 sm:$0xff]  }
 0x1db   : > { %11425 = vmatpush1.bf16.msra.mxu0 %v14767_v14  ;;  %10442 = vmatprep.subr.bf16.mxu1 %v14772_v15  ;;  %v14856_v14 = vld [vmem:[%s16761_s25 + $0x744] ss:$8 sps:$4 sm:$0xff]  }
 0x1dc   : > { %11426 = vmatprep.subr.bf16.mxu0 %v14775_v16  ;;  %v14859_v15 = vld [vmem:[%s16761_s25 + $0x1f44] ss:$8 sps:$4 sm:$0xff]   ;;  %v14854_v16 = vld [vmem:[%s16761_s25 + $0x740] ss:$8 sps:$4 sm:$0xff]  }
 0x1de   : > { %10443 = vmatpush1.bf16.msra.mxu1 %v14770_v19  ;;  %v14857_v19 = vld [vmem:[%s16761_s25 + $0x1f40] ss:$8 sps:$4 sm:$0xff]  }
 0x1df   : > { %11427 = vmatpush1.bf16.msra.mxu0 %v14773_v20  ;;  %10444 = vmatprep.subr.bf16.mxu1 %v14778_v21  ;;  %v14862_v20 = vld [vmem:[%s16761_s25 + $0x754] ss:$8 sps:$4 sm:$0xff]  }
 0x1e0   : > { %11428 = vmatprep.subr.bf16.mxu0 %v14781_v22  ;;  %v14865_v21 = vld [vmem:[%s16761_s25 + $0x1f54] ss:$8 sps:$4 sm:$0xff]   ;;  %v14860_v22 = vld [vmem:[%s16761_s25 + $0x750] ss:$8 sps:$4 sm:$0xff]  }
 0x1e2   : > { %10445 = vmatpush1.bf16.msra.mxu1 %v14776_v23  ;;  %v14863_v23 = vld [vmem:[%s16761_s25 + $0x1f50] ss:$8 sps:$4 sm:$0xff]  }
 0x1e3   : > { %11429 = vmatpush1.bf16.msra.mxu0 %v14779_v24  ;;  %10446 = vmatprep.subr.bf16.mxu1 %v14784_v25  ;;  %v14868_v24 = vld [vmem:[%s16761_s25 + $0x764] ss:$8 sps:$4 sm:$0xff]  }
 0x1e4   : > { %11430 = vmatprep.subr.bf16.mxu0 %v14787_v26  ;;  %v14871_v25 = vld [vmem:[%s16761_s25 + $0x1f64] ss:$8 sps:$4 sm:$0xff]   ;;  %v14866_v26 = vld [vmem:[%s16761_s25 + $0x760] ss:$8 sps:$4 sm:$0xff]  }
 0x1e6   : > { %10447 = vmatpush1.bf16.msra.mxu1 %v14782_v28  ;;  %v14869_v28 = vld [vmem:[%s16761_s25 + $0x1f60] ss:$8 sps:$4 sm:$0xff]  }
 0x1e7   : > { %11431 = vmatpush1.bf16.msra.mxu0 %v14785_v31  ;;  %10448 = vmatprep.subr.bf16.mxu1 %v14790_v32  ;;  %v14874_v31 = vld [vmem:[%s16761_s25 + $0x774] ss:$8 sps:$4 sm:$0xff]  }
 0x1e8   : > { %11432 = vmatprep.subr.bf16.mxu0 %v14793_v33  ;;  %v14877_v32 = vld [vmem:[%s16761_s25 + $0x1f74] ss:$8 sps:$4 sm:$0xff]   ;;  %v14872_v33 = vld [vmem:[%s16761_s25 + $0x770] ss:$8 sps:$4 sm:$0xff]  }
 0x1ea   : > { %10449 = vmatpush1.bf16.msra.mxu1 %v14788_v35  ;;  %v14875_v35 = vld [vmem:[%s16761_s25 + $0x1f70] ss:$8 sps:$4 sm:$0xff]  }
 0x1eb   : > { %11433 = vmatpush1.bf16.msra.mxu0 %v14791_v17  ;;  %10450 = vmatprep.subr.bf16.mxu1 %v14796_v36  ;;  %v14880_v17 = vld [vmem:[%s16761_s25 + $0x784] ss:$8 sps:$4 sm:$0xff]  }
 0x1ec   : > { %11434 = vmatprep.subr.bf16.mxu0 %v14799_v38  ;;  %v14883_v36 = vld [vmem:[%s16761_s25 + $0x1f84] ss:$8 sps:$4 sm:$0xff]   ;;  %v14878_v38 = vld [vmem:[%s16761_s25 + $0x780] ss:$8 sps:$4 sm:$0xff]  }
 0x1ee   : > { %10451 = vmatpush1.bf16.msra.mxu1 %v14794_v39  ;;  %v14881_v39 = vld [vmem:[%s16761_s25 + $0x1f80] ss:$8 sps:$4 sm:$0xff]  }
 0x1ef   : > { %11435 = vmatpush1.bf16.msra.mxu0 %v14797_v40  ;;  %10452 = vmatprep.subr.bf16.mxu1 %v14802_v41  ;;  %v14886_v40 = vld [vmem:[%s16761_s25 + $0x794] ss:$8 sps:$4 sm:$0xff]  }
 0x1f0   : > { %11436 = vmatprep.subr.bf16.mxu0 %v14805_v44  ;;  %v14889_v41 = vld [vmem:[%s16761_s25 + $0x1f94] ss:$8 sps:$4 sm:$0xff]   ;;  %v14884_v44 = vld [vmem:[%s16761_s25 + $0x790] ss:$8 sps:$4 sm:$0xff]  }
 0x1f2   : > { %10453 = vmatpush1.bf16.msra.mxu1 %v14800_v45  ;;  %v14887_v45 = vld [vmem:[%s16761_s25 + $0x1f90] ss:$8 sps:$4 sm:$0xff]  }
 0x1f3   : > { %11437 = vmatpush1.bf16.msra.mxu0 %v14803_v29  ;;  %10454 = vmatprep.subr.bf16.mxu1 %v14808_v34  ;;  %v14892_v29 = vld [vmem:[%s16761_s25 + $0x7a4] ss:$8 sps:$4 sm:$0xff]  }
 0x1f4   : > { %11438 = vmatprep.subr.bf16.mxu0 %v14811_v46  ;;  %v14895_v34 = vld [vmem:[%s16761_s25 + $0x1fa4] ss:$8 sps:$4 sm:$0xff]   ;;  %v14890_v46 = vld [vmem:[%s16761_s25 + $0x7a0] ss:$8 sps:$4 sm:$0xff]  }
 0x1f6   : > { %10455 = vmatpush1.bf16.msra.mxu1 %v14806_v47  ;;  %v14893_v47 = vld [vmem:[%s16761_s25 + $0x1fa0] ss:$8 sps:$4 sm:$0xff]  }
 0x1f7   : > { %11439 = vmatpush1.bf16.msra.mxu0 %v14809_v48  ;;  %10456 = vmatprep.subr.bf16.mxu1 %v14814_v49  ;;  %v14898_v48 = vld [vmem:[%s16761_s25 + $0x7b4] ss:$8 sps:$4 sm:$0xff]  }
 0x1f8   : > { %11440 = vmatprep.subr.bf16.mxu0 %v14817_v51  ;;  %v14901_v49 = vld [vmem:[%s16761_s25 + $0x1fb4] ss:$8 sps:$4 sm:$0xff]   ;;  %v14896_v51 = vld [vmem:[%s16761_s25 + $0x7b0] ss:$8 sps:$4 sm:$0xff]  }
 0x1fa   : > { %10457 = vmatpush1.bf16.msra.mxu1 %v14812_v30  ;;  %v14899_v30 = vld [vmem:[%s16761_s25 + $0x1fb0] ss:$8 sps:$4 sm:$0xff]  }
 0x1fb   : > { %11441 = vmatpush1.bf16.msra.mxu0 %v14815_v53  ;;  %10458 = vmatprep.subr.bf16.mxu1 %v14820_v54  ;;  %v14904_v53 = vld [vmem:[%s16761_s25 + $0x7c4] ss:$8 sps:$4 sm:$0xff]  }
 0x1fc   : > { %11442 = vmatprep.subr.bf16.mxu0 %v14823_v55  ;;  %v14907_v54 = vld [vmem:[%s16761_s25 + $0x1fc4] ss:$8 sps:$4 sm:$0xff]   ;;  %v14902_v55 = vld [vmem:[%s16761_s25 + $0x7c0] ss:$8 sps:$4 sm:$0xff]  }
 0x1fe   : > { %10459 = vmatpush1.bf16.msra.mxu1 %v14818_v56  ;;  %v14905_v56 = vld [vmem:[%s16761_s25 + $0x1fc0] ss:$8 sps:$4 sm:$0xff]  }
 0x1ff   : > { %11443 = vmatpush1.bf16.msra.mxu0 %v14821_v59  ;;  %10460 = vmatprep.subr.bf16.mxu1 %v14826_v42  ;;  %v14910_v59 = vld [vmem:[%s16761_s25 + $0x7d4] ss:$8 sps:$4 sm:$0xff]  }
 0x200   : > { %11444 = vmatprep.subr.bf16.mxu0 %v14829_v43  ;;  %v14913_v42 = vld [vmem:[%s16761_s25 + $0x1fd4] ss:$8 sps:$4 sm:$0xff]   ;;  %v14908_v43 = vld [vmem:[%s16761_s25 + $0x7d0] ss:$8 sps:$4 sm:$0xff]  }
 0x202   : > { %10461 = vmatpush1.bf16.msra.mxu1 %v14824_v62  ;;  %v14919_v62 = vld [vmem:[%s16761_s25 + $0x1fe4] ss:$8 sps:$4 sm:$0xff]  }
 0x203   : > { %11445 = vmatpush1.bf16.msra.mxu0 %v14827_v63  ;;  %10471 = vmatprep.subr.bf16.mxu1 %v14832_v0  ;;  %v14914_v63 = vld [vmem:[%s16761_s25 + $0x7e0] ss:$8 sps:$4 sm:$0xff]  }
 0x204   : > { %11455 = vmatprep.subr.bf16.mxu0 %v14835_v1  ;;  %v14917_v0 = vld [vmem:[%s16761_s25 + $0x1fe0] ss:$8 sps:$4 sm:$0xff]   ;;  %v14922_v1 = vld [vmem:[%s16761_s25 + $0x7f4] ss:$8 sps:$4 sm:$0xff]  }
 0x205   : > { %10463 = vmatmul.mubr.bf16.vlgmr.msra.gmra.mrb[0].mxu1 %v17262_v57  ;;  %v14842_v57 = vld [vmem:[%s16761_s25 + $0x720] ss:$8 sps:$4 sm:$0xff]  }
 0x206   : > { %11447 = vmatmul.mubr.bf16.vlgmr.msra.gmra.mrb[0].mxu0 %v17266_v58  ;;  %10472 = vmatpush1.bf16.msra.mxu1 %v14830_v37  ;;  %v14845_v58 = vld [vmem:[%s16761_s25 + $0x1f20] ss:$8 sps:$4 sm:$0xff]   ;;  %v14925_v37 = vld [vmem:[%s16761_s25 + $0x1ff4] ss:$8 sps:$4 sm:$0xff]  }
 0x207   : > { %11456 = vmatpush1.bf16.msra.mxu0 %v14833_v27  ;;  %10473 = vmatprep.subr.bf16.mxu1 %v14838_v18  ;;  %v17415_v27 = vld [vmem:[%s16777_s23 + $0x20] sm:$0xff] }
 0x208   : > { %11457 = vmatprep.subr.bf16.mxu0 %v14841_v3  ;;  %10503 = vmatprep.mubr.bf16.mxu1 %v1897_v4  ;;  %v17418_v18 = vld [vmem:[%s16777_s23 + $0x80] sm:$0xff] }
 0x209   : > { %11487 = vmatprep.mubr.bf16.mxu0 %v2101_v5  ;;  %v14920_v3 = vld [vmem:[%s16761_s25 + $0x7f0] ss:$8 sps:$4 sm:$0xff]   ;;  %v14929_v5 = vld [vmem:[%s16761_s25 + $0x804] ss:$8 sps:$4 sm:$0xff]  }
 0x20a   : > { %10474 = vmatpush1.bf16.msra.mxu1 %v14836_v6  ;;  %v14923_v4 = vld [vmem:[%s16761_s25 + $0x1ff0] ss:$8 sps:$4 sm:$0xff]   ;;  %v14933_v6 = vld [vmem:[%s16761_s25 + $0x2004] ss:$8 sps:$4 sm:$0xff]  }
 0x20b   : > { %11458 = vmatpush1.bf16.msra.mxu0 %v14839_v7  ;;  %10475 = vmatprep.subr.bf16.mxu1 %v14844_v8  ;;  %v17426_v7 = vrot.slane %v17415_v27, %v16824_v50  ;;  %v17430_v8 = vrot.slane %v17418_v18, %v16824_v50 }
 0x20c   : > { %11459 = vmatprep.subr.bf16.mxu0 %v14847_v9  ;;  %v14927_v9 = vld [vmem:[%s16761_s25 + $0x800] ss:$8 sps:$4 sm:$0xff]  }
 0x20e   : > { %10476 = vmatpush1.bf16.msra.mxu1 %v14842_v57  ;;  %v14931_v57 = vld [vmem:[%s16761_s25 + $0x2000] ss:$8 sps:$4 sm:$0xff]  }
 0x20f   : > { %11460 = vmatpush1.bf16.msra.mxu0 %v14845_v58  ;;  %10477 = vmatprep.subr.bf16.mxu1 %v14850_v10  ;;  %v14936_v58 = vld [vmem:[%s16761_s25 + $0x814] ss:$8 sps:$4 sm:$0xff]  }
 0x210   : > { %11461 = vmatprep.subr.bf16.mxu0 %v14853_v11  ;;  %v14939_v10 = vld [vmem:[%s16761_s25 + $0x2014] ss:$8 sps:$4 sm:$0xff]   ;;  %v1913_v11 = vcombine.high %v17426_v7, %v17426_v7 }
 0x212   : > { %10478 = vmatpush1.bf16.msra.mxu1 %v14848_v12  ;;  %v2117_v12 = vcombine.high %v17430_v8, %v17430_v8 }
 0x213   : > { %11462 = vmatpush1.bf16.msra.mxu0 %v14851_v13  ;;  %10479 = vmatprep.subr.bf16.mxu1 %v14856_v14  ;;  %v14934_v13 = vld [vmem:[%s16761_s25 + $0x810] ss:$8 sps:$4 sm:$0xff]  }
 0x214   : > { %11463 = vmatprep.subr.bf16.mxu0 %v14859_v15  ;;  %v14937_v14 = vld [vmem:[%s16761_s25 + $0x2010] ss:$8 sps:$4 sm:$0xff]   ;;  %v14942_v15 = vld [vmem:[%s16761_s25 + $0x824] ss:$8 sps:$4 sm:$0xff]  }
 0x216   : > { %10480 = vmatpush1.bf16.msra.mxu1 %v14854_v16  ;;  %v14945_v16 = vld [vmem:[%s16761_s25 + $0x2024] ss:$8 sps:$4 sm:$0xff]  }
 0x217   : > { %11464 = vmatpush1.bf16.msra.mxu0 %v14857_v19  ;;  %10481 = vmatprep.subr.bf16.mxu1 %v14862_v20  ;;  %v14948_v19 = vld [vmem:[%s16761_s25 + $0x834] ss:$8 sps:$4 sm:$0xff]  }
 0x218   : > { %11465 = vmatprep.subr.bf16.mxu0 %v14865_v21  ;;  %v14951_v20 = vld [vmem:[%s16761_s25 + $0x2034] ss:$8 sps:$4 sm:$0xff]   ;;  %v14946_v21 = vld [vmem:[%s16761_s25 + $0x830] ss:$8 sps:$4 sm:$0xff]  }
 0x21a   : > { %10482 = vmatpush1.bf16.msra.mxu1 %v14860_v22  ;;  %v14949_v22 = vld [vmem:[%s16761_s25 + $0x2030] ss:$8 sps:$4 sm:$0xff]  }
 0x21b   : > { %11466 = vmatpush1.bf16.msra.mxu0 %v14863_v23  ;;  %10483 = vmatprep.subr.bf16.mxu1 %v14868_v24  ;;  %v14954_v23 = vld [vmem:[%s16761_s25 + $0x844] ss:$8 sps:$4 sm:$0xff]  }
 0x21c   : > { %11467 = vmatprep.subr.bf16.mxu0 %v14871_v25  ;;  %v14957_v24 = vld [vmem:[%s16761_s25 + $0x2044] ss:$8 sps:$4 sm:$0xff]   ;;  %v14952_v25 = vld [vmem:[%s16761_s25 + $0x840] ss:$8 sps:$4 sm:$0xff]  }
 0x21e   : > { %10484 = vmatpush1.bf16.msra.mxu1 %v14866_v26  ;;  %v14955_v26 = vld [vmem:[%s16761_s25 + $0x2040] ss:$8 sps:$4 sm:$0xff]  }
 0x21f   : > { %11468 = vmatpush1.bf16.msra.mxu0 %v14869_v28  ;;  %10485 = vmatprep.subr.bf16.mxu1 %v14874_v31  ;;  %v14960_v28 = vld [vmem:[%s16761_s25 + $0x854] ss:$8 sps:$4 sm:$0xff]  }
 0x220   : > { %11469 = vmatprep.subr.bf16.mxu0 %v14877_v32  ;;  %v14963_v31 = vld [vmem:[%s16761_s25 + $0x2054] ss:$8 sps:$4 sm:$0xff]   ;;  %v14958_v32 = vld [vmem:[%s16761_s25 + $0x850] ss:$8 sps:$4 sm:$0xff]  }
 0x222   : > { %10486 = vmatpush1.bf16.msra.mxu1 %v14872_v33  ;;  %v14961_v33 = vld [vmem:[%s16761_s25 + $0x2050] ss:$8 sps:$4 sm:$0xff]  }
 0x223   : > { %11470 = vmatpush1.bf16.msra.mxu0 %v14875_v35  ;;  %10487 = vmatprep.subr.bf16.mxu1 %v14880_v17  ;;  %v14966_v35 = vld [vmem:[%s16761_s25 + $0x864] ss:$8 sps:$4 sm:$0xff]  }
 0x224   : > { %11471 = vmatprep.subr.bf16.mxu0 %v14883_v36  ;;  %v14969_v17 = vld [vmem:[%s16761_s25 + $0x2064] ss:$8 sps:$4 sm:$0xff]   ;;  %v14964_v36 = vld [vmem:[%s16761_s25 + $0x860] ss:$8 sps:$4 sm:$0xff]  }
 0x226   : > { %10488 = vmatpush1.bf16.msra.mxu1 %v14878_v38  ;;  %v14967_v38 = vld [vmem:[%s16761_s25 + $0x2060] ss:$8 sps:$4 sm:$0xff]  }
 0x227   : > { %11472 = vmatpush1.bf16.msra.mxu0 %v14881_v39  ;;  %10489 = vmatprep.subr.bf16.mxu1 %v14886_v40  ;;  %v14972_v39 = vld [vmem:[%s16761_s25 + $0x874] ss:$8 sps:$4 sm:$0xff]  }
 0x228   : > { %11473 = vmatprep.subr.bf16.mxu0 %v14889_v41  ;;  %v14975_v40 = vld [vmem:[%s16761_s25 + $0x2074] ss:$8 sps:$4 sm:$0xff]   ;;  %v14970_v41 = vld [vmem:[%s16761_s25 + $0x870] ss:$8 sps:$4 sm:$0xff]  }
 0x22a   : > { %10490 = vmatpush1.bf16.msra.mxu1 %v14884_v44  ;;  %v14973_v44 = vld [vmem:[%s16761_s25 + $0x2070] ss:$8 sps:$4 sm:$0xff]  }
 0x22b   : > { %11474 = vmatpush1.bf16.msra.mxu0 %v14887_v45  ;;  %10491 = vmatprep.subr.bf16.mxu1 %v14892_v29  ;;  %v14978_v45 = vld [vmem:[%s16761_s25 + $0x884] ss:$8 sps:$4 sm:$0xff]  }
 0x22c   : > { %11475 = vmatprep.subr.bf16.mxu0 %v14895_v34  ;;  %v14981_v29 = vld [vmem:[%s16761_s25 + $0x2084] ss:$8 sps:$4 sm:$0xff]   ;;  %v14976_v34 = vld [vmem:[%s16761_s25 + $0x880] ss:$8 sps:$4 sm:$0xff]  }
 0x22e   : > { %10492 = vmatpush1.bf16.msra.mxu1 %v14890_v46  ;;  %v14979_v46 = vld [vmem:[%s16761_s25 + $0x2080] ss:$8 sps:$4 sm:$0xff]  }
 0x22f   : > { %11476 = vmatpush1.bf16.msra.mxu0 %v14893_v47  ;;  %10493 = vmatprep.subr.bf16.mxu1 %v14898_v48  ;;  %v14984_v47 = vld [vmem:[%s16761_s25 + $0x894] ss:$8 sps:$4 sm:$0xff]  }
 0x230   : > { %11477 = vmatprep.subr.bf16.mxu0 %v14901_v49  ;;  %v14987_v48 = vld [vmem:[%s16761_s25 + $0x2094] ss:$8 sps:$4 sm:$0xff]   ;;  %v14982_v49 = vld [vmem:[%s16761_s25 + $0x890] ss:$8 sps:$4 sm:$0xff]  }
 0x232   : > { %10494 = vmatpush1.bf16.msra.mxu1 %v14896_v51  ;;  %v14985_v51 = vld [vmem:[%s16761_s25 + $0x2090] ss:$8 sps:$4 sm:$0xff]  }
 0x233   : > { %11478 = vmatpush1.bf16.msra.mxu0 %v14899_v30  ;;  %10495 = vmatprep.subr.bf16.mxu1 %v14904_v53  ;;  %v14990_v30 = vld [vmem:[%s16761_s25 + $0x8a4] ss:$8 sps:$4 sm:$0xff]  }
 0x234   : > { %11479 = vmatprep.subr.bf16.mxu0 %v14907_v54  ;;  %v14993_v53 = vld [vmem:[%s16761_s25 + $0x20a4] ss:$8 sps:$4 sm:$0xff]   ;;  %v14988_v54 = vld [vmem:[%s16761_s25 + $0x8a0] ss:$8 sps:$4 sm:$0xff]  }
 0x236   : > { %10496 = vmatpush1.bf16.msra.mxu1 %v14902_v55  ;;  %v14991_v55 = vld [vmem:[%s16761_s25 + $0x20a0] ss:$8 sps:$4 sm:$0xff]  }
 0x237   : > { %11480 = vmatpush1.bf16.msra.mxu0 %v14905_v56  ;;  %10497 = vmatprep.subr.bf16.mxu1 %v14910_v59  ;;  %v14996_v56 = vld [vmem:[%s16761_s25 + $0x8b4] ss:$8 sps:$4 sm:$0xff]  }
 0x238   : > { %11481 = vmatprep.subr.bf16.mxu0 %v14913_v42  ;;  %v14999_v59 = vld [vmem:[%s16761_s25 + $0x20b4] ss:$8 sps:$4 sm:$0xff]   ;;  %v14994_v42 = vld [vmem:[%s16761_s25 + $0x8b0] ss:$8 sps:$4 sm:$0xff]  }
 0x23a   : > { %10498 = vmatpush1.bf16.msra.mxu1 %v14908_v43  ;;  %v14997_v43 = vld [vmem:[%s16761_s25 + $0x20b0] ss:$8 sps:$4 sm:$0xff]  }
 0x23b   : > { %11482 = vmatpush1.bf16.msra.mxu0 %v14911_v60  ;;  %10499 = vmatprep.subr.bf16.mxu1 %v14916_v61  ;;  %v15002_v60 = vld [vmem:[%s16761_s25 + $0x8c4] ss:$8 sps:$4 sm:$0xff]  }
 0x23c   : > { %11483 = vmatprep.subr.bf16.mxu0 %v14919_v62  ;;  %v15005_v61 = vld [vmem:[%s16761_s25 + $0x20c4] ss:$8 sps:$4 sm:$0xff]   ;;  %v15000_v62 = vld [vmem:[%s16761_s25 + $0x8c0] ss:$8 sps:$4 sm:$0xff]  }
 0x23e   : > { %10500 = vmatpush1.bf16.msra.mxu1 %v14914_v63  ;;  %v15003_v63 = vld [vmem:[%s16761_s25 + $0x20c0] ss:$8 sps:$4 sm:$0xff]  }
 0x23f   : > { %11484 = vmatpush1.bf16.msra.mxu0 %v14917_v0  ;;  %10501 = vmatprep.subr.bf16.mxu1 %v14922_v1  ;;  %v15008_v0 = vld [vmem:[%s16761_s25 + $0x8d4] ss:$8 sps:$4 sm:$0xff]  }
 0x240   : > { %11485 = vmatprep.subr.bf16.mxu0 %v14925_v37  ;;  %v15011_v1 = vld [vmem:[%s16761_s25 + $0x20d4] ss:$8 sps:$4 sm:$0xff]   ;;  %v15006_v37 = vld [vmem:[%s16761_s25 + $0x8d0] ss:$8 sps:$4 sm:$0xff]  }
 0x242   : > { %10502 = vmatpush1.bf16.msra.mxu1 %v14920_v3  ;;  %v15009_v3 = vld [vmem:[%s16761_s25 + $0x20d0] ss:$8 sps:$4 sm:$0xff]  }
 0x243   : > { %11486 = vmatpush1.bf16.msra.mxu0 %v14923_v4  ;;  %10512 = vmatprep.subr.bf16.mxu1 %v14929_v5  ;;  %v15014_v4 = vld [vmem:[%s16761_s25 + $0x8e4] ss:$8 sps:$4 sm:$0xff]  }
 0x244   : > { %11496 = vmatprep.subr.bf16.mxu0 %v14933_v6  ;;  %v15017_v5 = vld [vmem:[%s16761_s25 + $0x20e4] ss:$8 sps:$4 sm:$0xff]   ;;  %v15012_v6 = vld [vmem:[%s16761_s25 + $0x8e0] ss:$8 sps:$4 sm:$0xff]  }
 0x245   : > { %10504 = vmatmul.mubr.bf16.vlgmr.msra.gmra.mrb[0].mxu1 %v17343_v2  ;;  %v14940_v2 = vld [vmem:[%s16761_s25 + $0x820] ss:$8 sps:$4 sm:$0xff]  }
 0x246   : > { %11488 = vmatmul.mubr.bf16.vlgmr.msra.gmra.mrb[0].mxu0 %v17346_v52  ;;  %10513 = vmatpush1.bf16.msra.mxu1 %v14927_v9  ;;  %v14943_v52 = vld [vmem:[%s16761_s25 + $0x2020] ss:$8 sps:$4 sm:$0xff]  }
 0x247   : > { %11497 = vmatpush1.bf16.msra.mxu0 %v14931_v57  ;;  %10514 = vmatprep.subr.bf16.mxu1 %v14936_v58  ;;  %v15015_v9 = vld [vmem:[%s16761_s25 + $0x20e0] ss:$8 sps:$4 sm:$0xff]   ;;  %v15020_v57 = vld [vmem:[%s16761_s25 + $0x8f4] ss:$8 sps:$4 sm:$0xff]  }
 0x248   : > { %11498 = vmatprep.subr.bf16.mxu0 %v14939_v10  ;;  %10544 = vmatprep.mubr.bf16.mxu1 %v1913_v11  ;;  %v15023_v58 = vld [vmem:[%s16761_s25 + $0x20f4] ss:$8 sps:$4 sm:$0xff]   ;;  %v1898_v10 = vcombine.high %v17415_v27, %v17415_v27  ;;  %v2102_v11 = vcombine.high %v17418_v18, %v17418_v18  ;;  %v15024_v27 = vld [vmem:[%s16761_s25 + $0x900] ss:$8 sps:$4 sm:$0xff]  }
 0x249   : > { %11528 = vmatprep.mubr.bf16.mxu0 %v2117_v12  ;;  %v15018_v12 = vld [vmem:[%s16761_s25 + $0x8f0] ss:$8 sps:$4 sm:$0xff]   ;;  %v15027_v18 = vld [vmem:[%s16761_s25 + $0x2100] ss:$8 sps:$4 sm:$0xff]  }
 0x24a   : > { %10515 = vmatpush1.bf16.msra.mxu1 %v14934_v13  ;;  %v15021_v13 = vld [vmem:[%s16761_s25 + $0x20f0] ss:$8 sps:$4 sm:$0xff]  }
 0x24b   : > { %11499 = vmatpush1.bf16.msra.mxu0 %v14937_v14  ;;  %10516 = vmatprep.subr.bf16.mxu1 %v14942_v15  ;;  %v15026_v14 = vld [vmem:[%s16761_s25 + $0x904] ss:$8 sps:$4 sm:$0xff]  }
 0x24c   : > { %11500 = vmatprep.subr.bf16.mxu0 %v14945_v16  ;;  %v15029_v15 = vld [vmem:[%s16761_s25 + $0x2104] ss:$8 sps:$4 sm:$0xff]   ;;  %v17507_v16 = vrot.slane %v1898_v10, %v16824_v50  ;;  %v15105_v10 = vld [vmem:[%s16761_s25 + $0x21d0] ss:$8 sps:$4 sm:$0xff]  }
 0x24e   : > { %10517 = vmatpush1.bf16.msra.mxu1 %v14940_v2  ;;  %v17510_v2 = vrot.slane %v2102_v11, %v16824_v50  ;;  %v15110_v11 = vld [vmem:[%s16761_s25 + $0x9e4] ss:$8 sps:$4 sm:$0xff]  }
 0x24f   : > { %11501 = vmatpush1.bf16.msra.mxu0 %v14943_v52  ;;  %10518 = vmatprep.subr.bf16.mxu1 %v14948_v19  ;;  %v15032_v52 = vld [vmem:[%s16761_s25 + $0x914] ss:$8 sps:$4 sm:$0xff]  }
 0x250   : > { %11502 = vmatprep.subr.bf16.mxu0 %v14951_v20  ;;  %v15035_v19 = vld [vmem:[%s16761_s25 + $0x2114] ss:$8 sps:$4 sm:$0xff]   ;;  %v1914_v20 = vcombine.high %v17507_v16, %v17507_v16 }
 0x252   : > { %10519 = vmatpush1.bf16.msra.mxu1 %v14946_v21  ;;  %v2118_v21 = vcombine.high %v17510_v2, %v17510_v2 }
 0x253   : > { %11503 = vmatpush1.bf16.msra.mxu0 %v14949_v22  ;;  %10520 = vmatprep.subr.bf16.mxu1 %v14954_v23  ;;  %v15030_v22 = vld [vmem:[%s16761_s25 + $0x910] ss:$8 sps:$4 sm:$0xff]  }
 0x254   : > { %11504 = vmatprep.subr.bf16.mxu0 %v14957_v24  ;;  %v15033_v23 = vld [vmem:[%s16761_s25 + $0x2110] ss:$8 sps:$4 sm:$0xff]   ;;  %v15038_v24 = vld [vmem:[%s16761_s25 + $0x924] ss:$8 sps:$4 sm:$0xff]  }
 0x256   : > { %10521 = vmatpush1.bf16.msra.mxu1 %v14952_v25  ;;  %v15041_v25 = vld [vmem:[%s16761_s25 + $0x2124] ss:$8 sps:$4 sm:$0xff]  }
 0x257   : > { %11505 = vmatpush1.bf16.msra.mxu0 %v14955_v26  ;;  %10522 = vmatprep.subr.bf16.mxu1 %v14960_v28  ;;  %v15044_v26 = vld [vmem:[%s16761_s25 + $0x934] ss:$8 sps:$4 sm:$0xff]  }
 0x258   : > { %11506 = vmatprep.subr.bf16.mxu0 %v14963_v31  ;;  %v15047_v28 = vld [vmem:[%s16761_s25 + $0x2134] ss:$8 sps:$4 sm:$0xff]   ;;  %v15042_v31 = vld [vmem:[%s16761_s25 + $0x930] ss:$8 sps:$4 sm:$0xff]  }
 0x25a   : > { %10523 = vmatpush1.bf16.msra.mxu1 %v14958_v32  ;;  %v15045_v32 = vld [vmem:[%s16761_s25 + $0x2130] ss:$8 sps:$4 sm:$0xff]  }
 0x25b   : > { %11507 = vmatpush1.bf16.msra.mxu0 %v14961_v33  ;;  %10524 = vmatprep.subr.bf16.mxu1 %v14966_v35  ;;  %v15050_v33 = vld [vmem:[%s16761_s25 + $0x944] ss:$8 sps:$4 sm:$0xff]  }
 0x25c   : > { %11508 = vmatprep.subr.bf16.mxu0 %v14969_v17  ;;  %v15053_v35 = vld [vmem:[%s16761_s25 + $0x2144] ss:$8 sps:$4 sm:$0xff]   ;;  %v15048_v17 = vld [vmem:[%s16761_s25 + $0x940] ss:$8 sps:$4 sm:$0xff]  }
 0x25e   : > { %10525 = vmatpush1.bf16.msra.mxu1 %v14964_v36  ;;  %v15051_v36 = vld [vmem:[%s16761_s25 + $0x2140] ss:$8 sps:$4 sm:$0xff]  }
 0x25f   : > { %11509 = vmatpush1.bf16.msra.mxu0 %v14967_v38  ;;  %10526 = vmatprep.subr.bf16.mxu1 %v14972_v39  ;;  %v15056_v38 = vld [vmem:[%s16761_s25 + $0x954] ss:$8 sps:$4 sm:$0xff]  }
 0x260   : > { %11510 = vmatprep.subr.bf16.mxu0 %v14975_v40  ;;  %v15059_v39 = vld [vmem:[%s16761_s25 + $0x2154] ss:$8 sps:$4 sm:$0xff]   ;;  %v15054_v40 = vld [vmem:[%s16761_s25 + $0x950] ss:$8 sps:$4 sm:$0xff]  }
 0x262   : > { %10527 = vmatpush1.bf16.msra.mxu1 %v14970_v41  ;;  %v15057_v41 = vld [vmem:[%s16761_s25 + $0x2150] ss:$8 sps:$4 sm:$0xff]  }
 0x263   : > { %11511 = vmatpush1.bf16.msra.mxu0 %v14973_v44  ;;  %10528 = vmatprep.subr.bf16.mxu1 %v14978_v45  ;;  %v15062_v44 = vld [vmem:[%s16761_s25 + $0x964] ss:$8 sps:$4 sm:$0xff]  }
 0x264   : > { %11512 = vmatprep.subr.bf16.mxu0 %v14981_v29  ;;  %v15065_v45 = vld [vmem:[%s16761_s25 + $0x2164] ss:$8 sps:$4 sm:$0xff]   ;;  %v15060_v29 = vld [vmem:[%s16761_s25 + $0x960] ss:$8 sps:$4 sm:$0xff]  }
 0x266   : > { %10529 = vmatpush1.bf16.msra.mxu1 %v14976_v34  ;;  %v15063_v34 = vld [vmem:[%s16761_s25 + $0x2160] ss:$8 sps:$4 sm:$0xff]  }
 0x267   : > { %11513 = vmatpush1.bf16.msra.mxu0 %v14979_v46  ;;  %10530 = vmatprep.subr.bf16.mxu1 %v14984_v47  ;;  %v15068_v46 = vld [vmem:[%s16761_s25 + $0x974] ss:$8 sps:$4 sm:$0xff]  }
 0x268   : > { %11514 = vmatprep.subr.bf16.mxu0 %v14987_v48  ;;  %v15071_v47 = vld [vmem:[%s16761_s25 + $0x2174] ss:$8 sps:$4 sm:$0xff]   ;;  %v15066_v48 = vld [vmem:[%s16761_s25 + $0x970] ss:$8 sps:$4 sm:$0xff]  }
 0x26a   : > { %10531 = vmatpush1.bf16.msra.mxu1 %v14982_v49  ;;  %v15069_v49 = vld [vmem:[%s16761_s25 + $0x2170] ss:$8 sps:$4 sm:$0xff]  }
 0x26b   : > { %11515 = vmatpush1.bf16.msra.mxu0 %v14985_v51  ;;  %10532 = vmatprep.subr.bf16.mxu1 %v14990_v30  ;;  %v15074_v51 = vld [vmem:[%s16761_s25 + $0x984] ss:$8 sps:$4 sm:$0xff]  }
 0x26c   : > { %11516 = vmatprep.subr.bf16.mxu0 %v14993_v53  ;;  %v15077_v30 = vld [vmem:[%s16761_s25 + $0x2184] ss:$8 sps:$4 sm:$0xff]   ;;  %v15072_v53 = vld [vmem:[%s16761_s25 + $0x980] ss:$8 sps:$4 sm:$0xff]  }
 0x26e   : > { %10533 = vmatpush1.bf16.msra.mxu1 %v14988_v54  ;;  %v15075_v54 = vld [vmem:[%s16761_s25 + $0x2180] ss:$8 sps:$4 sm:$0xff]  }
 0x26f   : > { %11517 = vmatpush1.bf16.msra.mxu0 %v14991_v55  ;;  %10534 = vmatprep.subr.bf16.mxu1 %v14996_v56  ;;  %v15080_v55 = vld [vmem:[%s16761_s25 + $0x994] ss:$8 sps:$4 sm:$0xff]  }
 0x270   : > { %11518 = vmatprep.subr.bf16.mxu0 %v14999_v59  ;;  %v15083_v56 = vld [vmem:[%s16761_s25 + $0x2194] ss:$8 sps:$4 sm:$0xff]   ;;  %v15078_v59 = vld [vmem:[%s16761_s25 + $0x990] ss:$8 sps:$4 sm:$0xff]  }
 0x272   : > { %10535 = vmatpush1.bf16.msra.mxu1 %v14994_v42  ;;  %v15081_v42 = vld [vmem:[%s16761_s25 + $0x2190] ss:$8 sps:$4 sm:$0xff]  }
 0x273   : > { %11519 = vmatpush1.bf16.msra.mxu0 %v14997_v43  ;;  %10536 = vmatprep.subr.bf16.mxu1 %v15002_v60  ;;  %v15086_v43 = vld [vmem:[%s16761_s25 + $0x9a4] ss:$8 sps:$4 sm:$0xff]  }
 0x274   : > { %11520 = vmatprep.subr.bf16.mxu0 %v15005_v61  ;;  %v15089_v60 = vld [vmem:[%s16761_s25 + $0x21a4] ss:$8 sps:$4 sm:$0xff]   ;;  %v15084_v61 = vld [vmem:[%s16761_s25 + $0x9a0] ss:$8 sps:$4 sm:$0xff]  }
 0x276   : > { %10537 = vmatpush1.bf16.msra.mxu1 %v15000_v62  ;;  %v15087_v62 = vld [vmem:[%s16761_s25 + $0x21a0] ss:$8 sps:$4 sm:$0xff]  }
 0x277   : > { %11521 = vmatpush1.bf16.msra.mxu0 %v15003_v63  ;;  %10538 = vmatprep.subr.bf16.mxu1 %v15008_v0  ;;  %v15092_v63 = vld [vmem:[%s16761_s25 + $0x9b4] ss:$8 sps:$4 sm:$0xff]  }
 0x278   : > { %11522 = vmatprep.subr.bf16.mxu0 %v15011_v1  ;;  %v15095_v0 = vld [vmem:[%s16761_s25 + $0x21b4] ss:$8 sps:$4 sm:$0xff]   ;;  %v15090_v1 = vld [vmem:[%s16761_s25 + $0x9b0] ss:$8 sps:$4 sm:$0xff]  }
 0x27a   : > { %10539 = vmatpush1.bf16.msra.mxu1 %v15006_v37  ;;  %v15093_v37 = vld [vmem:[%s16761_s25 + $0x21b0] ss:$8 sps:$4 sm:$0xff]  }
 0x27b   : > { %11523 = vmatpush1.bf16.msra.mxu0 %v15009_v3  ;;  %10540 = vmatprep.subr.bf16.mxu1 %v15014_v4  ;;  %v15098_v3 = vld [vmem:[%s16761_s25 + $0x9c4] ss:$8 sps:$4 sm:$0xff]  }
 0x27c   : > { %11524 = vmatprep.subr.bf16.mxu0 %v15017_v5  ;;  %v15101_v4 = vld [vmem:[%s16761_s25 + $0x21c4] ss:$8 sps:$4 sm:$0xff]   ;;  %v15096_v5 = vld [vmem:[%s16761_s25 + $0x9c0] ss:$8 sps:$4 sm:$0xff]  }
 0x27e   : > { %10541 = vmatpush1.bf16.msra.mxu1 %v15012_v6  ;;  %v15099_v6 = vld [vmem:[%s16761_s25 + $0x21c0] ss:$8 sps:$4 sm:$0xff]  }
 0x27f   : > { %11525 = vmatpush1.bf16.msra.mxu0 %v15015_v9  ;;  %10542 = vmatprep.subr.bf16.mxu1 %v15020_v57  ;;  %v15104_v9 = vld [vmem:[%s16761_s25 + $0x9d4] ss:$8 sps:$4 sm:$0xff]  }
 0x280   : > { %11526 = vmatprep.subr.bf16.mxu0 %v15023_v58  ;;  %v15107_v57 = vld [vmem:[%s16761_s25 + $0x21d4] ss:$8 sps:$4 sm:$0xff]   ;;  %v15102_v58 = vld [vmem:[%s16761_s25 + $0x9d0] ss:$8 sps:$4 sm:$0xff]  }
 0x282   : > { %10543 = vmatpush1.bf16.msra.mxu1 %v15018_v12  ;;  %v15113_v12 = vld [vmem:[%s16761_s25 + $0x21e4] ss:$8 sps:$4 sm:$0xff]  }
 0x283   : > { %11527 = vmatpush1.bf16.msra.mxu0 %v15021_v13  ;;  %10553 = vmatprep.subr.bf16.mxu1 %v15026_v14  ;;  %v15108_v13 = vld [vmem:[%s16761_s25 + $0x9e0] ss:$8 sps:$4 sm:$0xff]  }
 0x284   : > { %11537 = vmatprep.subr.bf16.mxu0 %v15029_v15  ;;  %v15111_v14 = vld [vmem:[%s16761_s25 + $0x21e0] ss:$8 sps:$4 sm:$0xff]   ;;  %v15116_v15 = vld [vmem:[%s16761_s25 + $0x9f4] ss:$8 sps:$4 sm:$0xff]  }
 0x285   : > { %10545 = vmatmul.mubr.bf16.vlgmr.msra.gmra.mrb[0].mxu1 %v17426_v7  ;;  %v15036_v7 = vld [vmem:[%s16761_s25 + $0x920] ss:$8 sps:$4 sm:$0xff]  }
 0x286   : > { %11529 = vmatmul.mubr.bf16.vlgmr.msra.gmra.mrb[0].mxu0 %v17430_v8  ;;  %10554 = vmatpush1.bf16.msra.mxu1 %v15024_v27  ;;  %v15039_v8 = vld [vmem:[%s16761_s25 + $0x2120] ss:$8 sps:$4 sm:$0xff]   ;;  %v15119_v27 = vld [vmem:[%s16761_s25 + $0x21f4] ss:$8 sps:$4 sm:$0xff]  }
 0x287   : > { %11538 = vmatpush1.bf16.msra.mxu0 %v15027_v18  ;;  %10555 = vmatprep.subr.bf16.mxu1 %v15032_v52  ;;  %v17579_v18 = vld [vmem:[%s16777_s23 + $0x28] sm:$0xff] }
 0x288   : > { %11539 = vmatprep.subr.bf16.mxu0 %v15035_v19  ;;  %10585 = vmatprep.mubr.bf16.mxu1 %v1914_v20  ;;  %v17582_v52 = vld [vmem:[%s16777_s23 + $0x88] sm:$0xff]  ;;  %v15114_v19 = vld [vmem:[%s16761_s25 + $0x9f0] ss:$8 sps:$4 sm:$0xff]  }
 0x289   : > { %11569 = vmatprep.mubr.bf16.mxu0 %v2118_v21  ;;  %v15117_v20 = vld [vmem:[%s16761_s25 + $0x21f0] ss:$8 sps:$4 sm:$0xff]   ;;  %v15123_v21 = vld [vmem:[%s16761_s25 + $0xa04] ss:$8 sps:$4 sm:$0xff]  }
 0x28a   : > { %10556 = vmatpush1.bf16.msra.mxu1 %v15030_v22  ;;  %v15127_v22 = vld [vmem:[%s16761_s25 + $0x2204] ss:$8 sps:$4 sm:$0xff]  }
 0x28b   : > { %11540 = vmatpush1.bf16.msra.mxu0 %v15033_v23  ;;  %10557 = vmatprep.subr.bf16.mxu1 %v15038_v24  ;;  %v17590_v23 = vrot.slane %v17579_v18, %v16824_v50  ;;  %v17594_v24 = vrot.slane %v17582_v52, %v16824_v50 }
 0x28c   : > { %11541 = vmatprep.subr.bf16.mxu0 %v15041_v25  ;;  %v15121_v25 = vld [vmem:[%s16761_s25 + $0xa00] ss:$8 sps:$4 sm:$0xff]  }
 0x28e   : > { %10558 = vmatpush1.bf16.msra.mxu1 %v15036_v7  ;;  %v15125_v7 = vld [vmem:[%s16761_s25 + $0x2200] ss:$8 sps:$4 sm:$0xff]  }
 0x28f   : > { %11542 = vmatpush1.bf16.msra.mxu0 %v15039_v8  ;;  %10559 = vmatprep.subr.bf16.mxu1 %v15044_v26  ;;  %v15130_v8 = vld [vmem:[%s16761_s25 + $0xa14] ss:$8 sps:$4 sm:$0xff]  }
 0x290   : > { %11543 = vmatprep.subr.bf16.mxu0 %v15047_v28  ;;  %v15133_v26 = vld [vmem:[%s16761_s25 + $0x2214] ss:$8 sps:$4 sm:$0xff]   ;;  %v1930_v28 = vcombine.high %v17590_v23, %v17590_v23 }
 0x292   : > { %10560 = vmatpush1.bf16.msra.mxu1 %v15042_v31  ;;  %v2134_v31 = vcombine.high %v17594_v24, %v17594_v24 }
 0x293   : > { %11544 = vmatpush1.bf16.msra.mxu0 %v15045_v32  ;;  %10561 = vmatprep.subr.bf16.mxu1 %v15050_v33  ;;  %v15128_v32 = vld [vmem:[%s16761_s25 + $0xa10] ss:$8 sps:$4 sm:$0xff]  }
 0x294   : > { %11545 = vmatprep.subr.bf16.mxu0 %v15053_v35  ;;  %v15131_v33 = vld [vmem:[%s16761_s25 + $0x2210] ss:$8 sps:$4 sm:$0xff]   ;;  %v15136_v35 = vld [vmem:[%s16761_s25 + $0xa24] ss:$8 sps:$4 sm:$0xff]  }
 0x296   : > { %10562 = vmatpush1.bf16.msra.mxu1 %v15048_v17  ;;  %v15139_v17 = vld [vmem:[%s16761_s25 + $0x2224] ss:$8 sps:$4 sm:$0xff]  }
 0x297   : > { %11546 = vmatpush1.bf16.msra.mxu0 %v15051_v36  ;;  %10563 = vmatprep.subr.bf16.mxu1 %v15056_v38  ;;  %v15142_v36 = vld [vmem:[%s16761_s25 + $0xa34] ss:$8 sps:$4 sm:$0xff]  }
 0x298   : > { %11547 = vmatprep.subr.bf16.mxu0 %v15059_v39  ;;  %v15145_v38 = vld [vmem:[%s16761_s25 + $0x2234] ss:$8 sps:$4 sm:$0xff]   ;;  %v15140_v39 = vld [vmem:[%s16761_s25 + $0xa30] ss:$8 sps:$4 sm:$0xff]  }
 0x29a   : > { %10564 = vmatpush1.bf16.msra.mxu1 %v15054_v40  ;;  %v15143_v40 = vld [vmem:[%s16761_s25 + $0x2230] ss:$8 sps:$4 sm:$0xff]  }
 0x29b   : > { %11548 = vmatpush1.bf16.msra.mxu0 %v15057_v41  ;;  %10565 = vmatprep.subr.bf16.mxu1 %v15062_v44  ;;  %v15148_v41 = vld [vmem:[%s16761_s25 + $0xa44] ss:$8 sps:$4 sm:$0xff]  }
 0x29c   : > { %11549 = vmatprep.subr.bf16.mxu0 %v15065_v45  ;;  %v15151_v44 = vld [vmem:[%s16761_s25 + $0x2244] ss:$8 sps:$4 sm:$0xff]   ;;  %v15146_v45 = vld [vmem:[%s16761_s25 + $0xa40] ss:$8 sps:$4 sm:$0xff]  }
 0x29e   : > { %10566 = vmatpush1.bf16.msra.mxu1 %v15060_v29  ;;  %v15149_v29 = vld [vmem:[%s16761_s25 + $0x2240] ss:$8 sps:$4 sm:$0xff]  }
 0x29f   : > { %11550 = vmatpush1.bf16.msra.mxu0 %v15063_v34  ;;  %10567 = vmatprep.subr.bf16.mxu1 %v15068_v46  ;;  %v15154_v34 = vld [vmem:[%s16761_s25 + $0xa54] ss:$8 sps:$4 sm:$0xff]  }
 0x2a0   : > { %11551 = vmatprep.subr.bf16.mxu0 %v15071_v47  ;;  %v15157_v46 = vld [vmem:[%s16761_s25 + $0x2254] ss:$8 sps:$4 sm:$0xff]   ;;  %v15152_v47 = vld [vmem:[%s16761_s25 + $0xa50] ss:$8 sps:$4 sm:$0xff]  }
 0x2a2   : > { %10568 = vmatpush1.bf16.msra.mxu1 %v15066_v48  ;;  %v15155_v48 = vld [vmem:[%s16761_s25 + $0x2250] ss:$8 sps:$4 sm:$0xff]  }
 0x2a3   : > { %11552 = vmatpush1.bf16.msra.mxu0 %v15069_v49  ;;  %10569 = vmatprep.subr.bf16.mxu1 %v15074_v51  ;;  %v15160_v49 = vld [vmem:[%s16761_s25 + $0xa64] ss:$8 sps:$4 sm:$0xff]  }
 0x2a4   : > { %11553 = vmatprep.subr.bf16.mxu0 %v15077_v30  ;;  %v15163_v51 = vld [vmem:[%s16761_s25 + $0x2264] ss:$8 sps:$4 sm:$0xff]   ;;  %v15158_v30 = vld [vmem:[%s16761_s25 + $0xa60] ss:$8 sps:$4 sm:$0xff]  }
 0x2a6   : > { %10570 = vmatpush1.bf16.msra.mxu1 %v15072_v53  ;;  %v15161_v53 = vld [vmem:[%s16761_s25 + $0x2260] ss:$8 sps:$4 sm:$0xff]  }
 0x2a7   : > { %11554 = vmatpush1.bf16.msra.mxu0 %v15075_v54  ;;  %10571 = vmatprep.subr.bf16.mxu1 %v15080_v55  ;;  %v15166_v54 = vld [vmem:[%s16761_s25 + $0xa74] ss:$8 sps:$4 sm:$0xff]  }
 0x2a8   : > { %11555 = vmatprep.subr.bf16.mxu0 %v15083_v56  ;;  %v15169_v55 = vld [vmem:[%s16761_s25 + $0x2274] ss:$8 sps:$4 sm:$0xff]   ;;  %v15164_v56 = vld [vmem:[%s16761_s25 + $0xa70] ss:$8 sps:$4 sm:$0xff]  }
 0x2aa   : > { %10572 = vmatpush1.bf16.msra.mxu1 %v15078_v59  ;;  %v15167_v59 = vld [vmem:[%s16761_s25 + $0x2270] ss:$8 sps:$4 sm:$0xff]  }
 0x2ab   : > { %11556 = vmatpush1.bf16.msra.mxu0 %v15081_v42  ;;  %10573 = vmatprep.subr.bf16.mxu1 %v15086_v43  ;;  %v15172_v42 = vld [vmem:[%s16761_s25 + $0xa84] ss:$8 sps:$4 sm:$0xff]  }
 0x2ac   : > { %11557 = vmatprep.subr.bf16.mxu0 %v15089_v60  ;;  %v15175_v43 = vld [vmem:[%s16761_s25 + $0x2284] ss:$8 sps:$4 sm:$0xff]   ;;  %v15170_v60 = vld [vmem:[%s16761_s25 + $0xa80] ss:$8 sps:$4 sm:$0xff]  }
 0x2ae   : > { %10574 = vmatpush1.bf16.msra.mxu1 %v15084_v61  ;;  %v15173_v61 = vld [vmem:[%s16761_s25 + $0x2280] ss:$8 sps:$4 sm:$0xff]  }
 0x2af   : > { %11558 = vmatpush1.bf16.msra.mxu0 %v15087_v62  ;;  %10575 = vmatprep.subr.bf16.mxu1 %v15092_v63  ;;  %v15178_v62 = vld [vmem:[%s16761_s25 + $0xa94] ss:$8 sps:$4 sm:$0xff]  }
 0x2b0   : > { %11559 = vmatprep.subr.bf16.mxu0 %v15095_v0  ;;  %v15181_v63 = vld [vmem:[%s16761_s25 + $0x2294] ss:$8 sps:$4 sm:$0xff]   ;;  %v15176_v0 = vld [vmem:[%s16761_s25 + $0xa90] ss:$8 sps:$4 sm:$0xff]  }
 0x2b2   : > { %10576 = vmatpush1.bf16.msra.mxu1 %v15090_v1  ;;  %v15179_v1 = vld [vmem:[%s16761_s25 + $0x2290] ss:$8 sps:$4 sm:$0xff]  }
 0x2b3   : > { %11560 = vmatpush1.bf16.msra.mxu0 %v15093_v37  ;;  %10577 = vmatprep.subr.bf16.mxu1 %v15098_v3  ;;  %v15184_v37 = vld [vmem:[%s16761_s25 + $0xaa4] ss:$8 sps:$4 sm:$0xff]  }
 0x2b4   : > { %11561 = vmatprep.subr.bf16.mxu0 %v15101_v4  ;;  %v15187_v3 = vld [vmem:[%s16761_s25 + $0x22a4] ss:$8 sps:$4 sm:$0xff]   ;;  %v15182_v4 = vld [vmem:[%s16761_s25 + $0xaa0] ss:$8 sps:$4 sm:$0xff]  }
 0x2b6   : > { %10578 = vmatpush1.bf16.msra.mxu1 %v15096_v5  ;;  %v15185_v5 = vld [vmem:[%s16761_s25 + $0x22a0] ss:$8 sps:$4 sm:$0xff]  }
 0x2b7   : > { %11562 = vmatpush1.bf16.msra.mxu0 %v15099_v6  ;;  %10579 = vmatprep.subr.bf16.mxu1 %v15104_v9  ;;  %v15190_v6 = vld [vmem:[%s16761_s25 + $0xab4] ss:$8 sps:$4 sm:$0xff]  }
 0x2b8   : > { %11563 = vmatprep.subr.bf16.mxu0 %v15107_v57  ;;  %v15193_v9 = vld [vmem:[%s16761_s25 + $0x22b4] ss:$8 sps:$4 sm:$0xff]   ;;  %v15188_v57 = vld [vmem:[%s16761_s25 + $0xab0] ss:$8 sps:$4 sm:$0xff]  }
 0x2ba   : > { %10580 = vmatpush1.bf16.msra.mxu1 %v15102_v58  ;;  %v15191_v58 = vld [vmem:[%s16761_s25 + $0x22b0] ss:$8 sps:$4 sm:$0xff]  }
 0x2bb   : > { %11564 = vmatpush1.bf16.msra.mxu0 %v15105_v10  ;;  %10581 = vmatprep.subr.bf16.mxu1 %v15110_v11  ;;  %v15196_v10 = vld [vmem:[%s16761_s25 + $0xac4] ss:$8 sps:$4 sm:$0xff]  }
 0x2bc   : > { %11565 = vmatprep.subr.bf16.mxu0 %v15113_v12  ;;  %v15199_v11 = vld [vmem:[%s16761_s25 + $0x22c4] ss:$8 sps:$4 sm:$0xff]   ;;  %v15194_v12 = vld [vmem:[%s16761_s25 + $0xac0] ss:$8 sps:$4 sm:$0xff]  }
 0x2be   : > { %10582 = vmatpush1.bf16.msra.mxu1 %v15108_v13  ;;  %v15197_v13 = vld [vmem:[%s16761_s25 + $0x22c0] ss:$8 sps:$4 sm:$0xff]  }
 0x2bf   : > { %11566 = vmatpush1.bf16.msra.mxu0 %v15111_v14  ;;  %10583 = vmatprep.subr.bf16.mxu1 %v15116_v15  ;;  %v15202_v14 = vld [vmem:[%s16761_s25 + $0xad4] ss:$8 sps:$4 sm:$0xff]  }
 0x2c0   : > { %11567 = vmatprep.subr.bf16.mxu0 %v15119_v27  ;;  %v15205_v15 = vld [vmem:[%s16761_s25 + $0x22d4] ss:$8 sps:$4 sm:$0xff]   ;;  %v15200_v27 = vld [vmem:[%s16761_s25 + $0xad0] ss:$8 sps:$4 sm:$0xff]  }
 0x2c2   : > { %10584 = vmatpush1.bf16.msra.mxu1 %v15114_v19  ;;  %v15203_v19 = vld [vmem:[%s16761_s25 + $0x22d0] ss:$8 sps:$4 sm:$0xff]  }
 0x2c3   : > { %11568 = vmatpush1.bf16.msra.mxu0 %v15117_v20  ;;  %10594 = vmatprep.subr.bf16.mxu1 %v15123_v21  ;;  %v15208_v20 = vld [vmem:[%s16761_s25 + $0xae4] ss:$8 sps:$4 sm:$0xff]  }
 0x2c4   : > { %11578 = vmatprep.subr.bf16.mxu0 %v15127_v22  ;;  %v15211_v21 = vld [vmem:[%s16761_s25 + $0x22e4] ss:$8 sps:$4 sm:$0xff]   ;;  %v15206_v22 = vld [vmem:[%s16761_s25 + $0xae0] ss:$8 sps:$4 sm:$0xff]  }
 0x2c5   : > { %10586 = vmatmul.mubr.bf16.vlgmr.msra.gmra.mrb[0].mxu1 %v17507_v16  ;;  %v15134_v16 = vld [vmem:[%s16761_s25 + $0xa20] ss:$8 sps:$4 sm:$0xff]  }
 0x2c6   : > { %11570 = vmatmul.mubr.bf16.vlgmr.msra.gmra.mrb[0].mxu0 %v17510_v2  ;;  %10595 = vmatpush1.bf16.msra.mxu1 %v15121_v25  ;;  %v15137_v2 = vld [vmem:[%s16761_s25 + $0x2220] ss:$8 sps:$4 sm:$0xff]  }
 0x2c7   : > { %11579 = vmatpush1.bf16.msra.mxu0 %v15125_v7  ;;  %10596 = vmatprep.subr.bf16.mxu1 %v15130_v8  ;;  %v15209_v25 = vld [vmem:[%s16761_s25 + $0x22e0] ss:$8 sps:$4 sm:$0xff]   ;;  %v15214_v7 = vld [vmem:[%s16761_s25 + $0xaf4] ss:$8 sps:$4 sm:$0xff]  }
 0x2c8   : > { %11580 = vmatprep.subr.bf16.mxu0 %v15133_v26  ;;  %10626 = vmatprep.mubr.bf16.mxu1 %v1930_v28  ;;  %v15217_v8 = vld [vmem:[%s16761_s25 + $0x22f4] ss:$8 sps:$4 sm:$0xff]   ;;  %v1915_v26 = vcombine.high %v17579_v18, %v17579_v18  ;;  %v2119_v28 = vcombine.high %v17582_v52, %v17582_v52  ;;  %v15218_v18 = vld [vmem:[%s16761_s25 + $0xb00] ss:$8 sps:$4 sm:$0xff]  }
 0x2c9   : > { %11610 = vmatprep.mubr.bf16.mxu0 %v2134_v31  ;;  %v15212_v31 = vld [vmem:[%s16761_s25 + $0xaf0] ss:$8 sps:$4 sm:$0xff]   ;;  %v15221_v52 = vld [vmem:[%s16761_s25 + $0x2300] ss:$8 sps:$4 sm:$0xff]  }
 0x2ca   : > { %10597 = vmatpush1.bf16.msra.mxu1 %v15128_v32  ;;  %v15215_v32 = vld [vmem:[%s16761_s25 + $0x22f0] ss:$8 sps:$4 sm:$0xff]  }
 0x2cb   : > { %11581 = vmatpush1.bf16.msra.mxu0 %v15131_v33  ;;  %10598 = vmatprep.subr.bf16.mxu1 %v15136_v35  ;;  %v15220_v33 = vld [vmem:[%s16761_s25 + $0xb04] ss:$8 sps:$4 sm:$0xff]  }
 0x2cc   : > { %11582 = vmatprep.subr.bf16.mxu0 %v15139_v17  ;;  %v15223_v35 = vld [vmem:[%s16761_s25 + $0x2304] ss:$8 sps:$4 sm:$0xff]   ;;  %v17671_v17 = vrot.slane %v1915_v26, %v16824_v50  ;;  %v15299_v26 = vld [vmem:[%s16761_s25 + $0x23d0] ss:$8 sps:$4 sm:$0xff]  }
 0x2ce   : > { %10599 = vmatpush1.bf16.msra.mxu1 %v15134_v16  ;;  %v17674_v16 = vrot.slane %v2119_v28, %v16824_v50  ;;  %v15304_v28 = vld [vmem:[%s16761_s25 + $0xbe4] ss:$8 sps:$4 sm:$0xff]  }
 0x2cf   : > { %11583 = vmatpush1.bf16.msra.mxu0 %v15137_v2  ;;  %10600 = vmatprep.subr.bf16.mxu1 %v15142_v36  ;;  %v15226_v2 = vld [vmem:[%s16761_s25 + $0xb14] ss:$8 sps:$4 sm:$0xff]  }
 0x2d0   : > { %11584 = vmatprep.subr.bf16.mxu0 %v15145_v38  ;;  %v15229_v36 = vld [vmem:[%s16761_s25 + $0x2314] ss:$8 sps:$4 sm:$0xff]   ;;  %v1931_v38 = vcombine.high %v17671_v17, %v17671_v17 }
 0x2d2   : > { %10601 = vmatpush1.bf16.msra.mxu1 %v15140_v39  ;;  %v2135_v39 = vcombine.high %v17674_v16, %v17674_v16 }
 0x2d3   : > { %11585 = vmatpush1.bf16.msra.mxu0 %v15143_v40  ;;  %10602 = vmatprep.subr.bf16.mxu1 %v15148_v41  ;;  %v15224_v40 = vld [vmem:[%s16761_s25 + $0xb10] ss:$8 sps:$4 sm:$0xff]  }
 0x2d4   : > { %11586 = vmatprep.subr.bf16.mxu0 %v15151_v44  ;;  %v15227_v41 = vld [vmem:[%s16761_s25 + $0x2310] ss:$8 sps:$4 sm:$0xff]   ;;  %v15232_v44 = vld [vmem:[%s16761_s25 + $0xb24] ss:$8 sps:$4 sm:$0xff]  }
 0x2d6   : > { %10603 = vmatpush1.bf16.msra.mxu1 %v15146_v45  ;;  %v15235_v45 = vld [vmem:[%s16761_s25 + $0x2324] ss:$8 sps:$4 sm:$0xff]  }
 0x2d7   : > { %11587 = vmatpush1.bf16.msra.mxu0 %v15149_v29  ;;  %10604 = vmatprep.subr.bf16.mxu1 %v15154_v34  ;;  %v15238_v29 = vld [vmem:[%s16761_s25 + $0xb34] ss:$8 sps:$4 sm:$0xff]  }
 0x2d8   : > { %11588 = vmatprep.subr.bf16.mxu0 %v15157_v46  ;;  %v15241_v34 = vld [vmem:[%s16761_s25 + $0x2334] ss:$8 sps:$4 sm:$0xff]   ;;  %v15236_v46 = vld [vmem:[%s16761_s25 + $0xb30] ss:$8 sps:$4 sm:$0xff]  }
 0x2da   : > { %10605 = vmatpush1.bf16.msra.mxu1 %v15152_v47  ;;  %v15239_v47 = vld [vmem:[%s16761_s25 + $0x2330] ss:$8 sps:$4 sm:$0xff]  }
 0x2db   : > { %11589 = vmatpush1.bf16.msra.mxu0 %v15155_v48  ;;  %10606 = vmatprep.subr.bf16.mxu1 %v15160_v49  ;;  %v15244_v48 = vld [vmem:[%s16761_s25 + $0xb44] ss:$8 sps:$4 sm:$0xff]  }
 0x2dc   : > { %11590 = vmatprep.subr.bf16.mxu0 %v15163_v51  ;;  %v15247_v49 = vld [vmem:[%s16761_s25 + $0x2344] ss:$8 sps:$4 sm:$0xff]   ;;  %v15242_v51 = vld [vmem:[%s16761_s25 + $0xb40] ss:$8 sps:$4 sm:$0xff]  }
 0x2de   : > { %10607 = vmatpush1.bf16.msra.mxu1 %v15158_v30  ;;  %v15245_v30 = vld [vmem:[%s16761_s25 + $0x2340] ss:$8 sps:$4 sm:$0xff]  }
 0x2df   : > { %11591 = vmatpush1.bf16.msra.mxu0 %v15161_v53  ;;  %10608 = vmatprep.subr.bf16.mxu1 %v15166_v54  ;;  %v15250_v53 = vld [vmem:[%s16761_s25 + $0xb54] ss:$8 sps:$4 sm:$0xff]  }
 0x2e0   : > { %11592 = vmatprep.subr.bf16.mxu0 %v15169_v55  ;;  %v15253_v54 = vld [vmem:[%s16761_s25 + $0x2354] ss:$8 sps:$4 sm:$0xff]   ;;  %v15248_v55 = vld [vmem:[%s16761_s25 + $0xb50] ss:$8 sps:$4 sm:$0xff]  }
 0x2e2   : > { %10609 = vmatpush1.bf16.msra.mxu1 %v15164_v56  ;;  %v15251_v56 = vld [vmem:[%s16761_s25 + $0x2350] ss:$8 sps:$4 sm:$0xff]  }
 0x2e3   : > { %11593 = vmatpush1.bf16.msra.mxu0 %v15167_v59  ;;  %10610 = vmatprep.subr.bf16.mxu1 %v15172_v42  ;;  %v15256_v59 = vld [vmem:[%s16761_s25 + $0xb64] ss:$8 sps:$4 sm:$0xff]  }
 0x2e4   : > { %11594 = vmatprep.subr.bf16.mxu0 %v15175_v43  ;;  %v15259_v42 = vld [vmem:[%s16761_s25 + $0x2364] ss:$8 sps:$4 sm:$0xff]   ;;  %v15254_v43 = vld [vmem:[%s16761_s25 + $0xb60] ss:$8 sps:$4 sm:$0xff]  }
 0x2e6   : > { %10611 = vmatpush1.bf16.msra.mxu1 %v15170_v60  ;;  %v15257_v60 = vld [vmem:[%s16761_s25 + $0x2360] ss:$8 sps:$4 sm:$0xff]  }
 0x2e7   : > { %11595 = vmatpush1.bf16.msra.mxu0 %v15173_v61  ;;  %10612 = vmatprep.subr.bf16.mxu1 %v15178_v62  ;;  %v15262_v61 = vld [vmem:[%s16761_s25 + $0xb74] ss:$8 sps:$4 sm:$0xff]  }
 0x2e8   : > { %11596 = vmatprep.subr.bf16.mxu0 %v15181_v63  ;;  %v15265_v62 = vld [vmem:[%s16761_s25 + $0x2374] ss:$8 sps:$4 sm:$0xff]   ;;  %v15260_v63 = vld [vmem:[%s16761_s25 + $0xb70] ss:$8 sps:$4 sm:$0xff]  }
 0x2ea   : > { %10613 = vmatpush1.bf16.msra.mxu1 %v15176_v0  ;;  %v15263_v0 = vld [vmem:[%s16761_s25 + $0x2370] ss:$8 sps:$4 sm:$0xff]  }
 0x2eb   : > { %11597 = vmatpush1.bf16.msra.mxu0 %v15179_v1  ;;  %10614 = vmatprep.subr.bf16.mxu1 %v15184_v37  ;;  %v15268_v1 = vld [vmem:[%s16761_s25 + $0xb84] ss:$8 sps:$4 sm:$0xff]  }
 0x2ec   : > { %11598 = vmatprep.subr.bf16.mxu0 %v15187_v3  ;;  %v15271_v37 = vld [vmem:[%s16761_s25 + $0x2384] ss:$8 sps:$4 sm:$0xff]   ;;  %v15266_v3 = vld [vmem:[%s16761_s25 + $0xb80] ss:$8 sps:$4 sm:$0xff]  }
 0x2ee   : > { %10615 = vmatpush1.bf16.msra.mxu1 %v15182_v4  ;;  %v15269_v4 = vld [vmem:[%s16761_s25 + $0x2380] ss:$8 sps:$4 sm:$0xff]  }
 0x2ef   : > { %11599 = vmatpush1.bf16.msra.mxu0 %v15185_v5  ;;  %10616 = vmatprep.subr.bf16.mxu1 %v15190_v6  ;;  %v15274_v5 = vld [vmem:[%s16761_s25 + $0xb94] ss:$8 sps:$4 sm:$0xff]  }
 0x2f0   : > { %11600 = vmatprep.subr.bf16.mxu0 %v15193_v9  ;;  %v15277_v6 = vld [vmem:[%s16761_s25 + $0x2394] ss:$8 sps:$4 sm:$0xff]   ;;  %v15272_v9 = vld [vmem:[%s16761_s25 + $0xb90] ss:$8 sps:$4 sm:$0xff]  }
 0x2f2   : > { %10617 = vmatpush1.bf16.msra.mxu1 %v15188_v57  ;;  %v15275_v57 = vld [vmem:[%s16761_s25 + $0x2390] ss:$8 sps:$4 sm:$0xff]  }
 0x2f3   : > { %11601 = vmatpush1.bf16.msra.mxu0 %v15191_v58  ;;  %10618 = vmatprep.subr.bf16.mxu1 %v15196_v10  ;;  %v15280_v58 = vld [vmem:[%s16761_s25 + $0xba4] ss:$8 sps:$4 sm:$0xff]  }
 0x2f4   : > { %11602 = vmatprep.subr.bf16.mxu0 %v15199_v11  ;;  %v15283_v10 = vld [vmem:[%s16761_s25 + $0x23a4] ss:$8 sps:$4 sm:$0xff]   ;;  %v15278_v11 = vld [vmem:[%s16761_s25 + $0xba0] ss:$8 sps:$4 sm:$0xff]  }
 0x2f6   : > { %10619 = vmatpush1.bf16.msra.mxu1 %v15194_v12  ;;  %v15281_v12 = vld [vmem:[%s16761_s25 + $0x23a0] ss:$8 sps:$4 sm:$0xff]  }
 0x2f7   : > { %11603 = vmatpush1.bf16.msra.mxu0 %v15197_v13  ;;  %10620 = vmatprep.subr.bf16.mxu1 %v15202_v14  ;;  %v15286_v13 = vld [vmem:[%s16761_s25 + $0xbb4] ss:$8 sps:$4 sm:$0xff]  }
 0x2f8   : > { %11604 = vmatprep.subr.bf16.mxu0 %v15205_v15  ;;  %v15289_v14 = vld [vmem:[%s16761_s25 + $0x23b4] ss:$8 sps:$4 sm:$0xff]   ;;  %v15284_v15 = vld [vmem:[%s16761_s25 + $0xbb0] ss:$8 sps:$4 sm:$0xff]  }
 0x2fa   : > { %10621 = vmatpush1.bf16.msra.mxu1 %v15200_v27  ;;  %v15287_v27 = vld [vmem:[%s16761_s25 + $0x23b0] ss:$8 sps:$4 sm:$0xff]  }
 0x2fb   : > { %11605 = vmatpush1.bf16.msra.mxu0 %v15203_v19  ;;  %10622 = vmatprep.subr.bf16.mxu1 %v15208_v20  ;;  %v15292_v19 = vld [vmem:[%s16761_s25 + $0xbc4] ss:$8 sps:$4 sm:$0xff]  }
 0x2fc   : > { %11606 = vmatprep.subr.bf16.mxu0 %v15211_v21  ;;  %v15295_v20 = vld [vmem:[%s16761_s25 + $0x23c4] ss:$8 sps:$4 sm:$0xff]   ;;  %v15290_v21 = vld [vmem:[%s16761_s25 + $0xbc0] ss:$8 sps:$4 sm:$0xff]  }
 0x2fe   : > { %10623 = vmatpush1.bf16.msra.mxu1 %v15206_v22  ;;  %v15293_v22 = vld [vmem:[%s16761_s25 + $0x23c0] ss:$8 sps:$4 sm:$0xff]  }
 0x2ff   : > { %11607 = vmatpush1.bf16.msra.mxu0 %v15209_v25  ;;  %10624 = vmatprep.subr.bf16.mxu1 %v15214_v7  ;;  %v15298_v25 = vld [vmem:[%s16761_s25 + $0xbd4] ss:$8 sps:$4 sm:$0xff]  }
 0x300   : > { %11608 = vmatprep.subr.bf16.mxu0 %v15217_v8  ;;  %v15301_v7 = vld [vmem:[%s16761_s25 + $0x23d4] ss:$8 sps:$4 sm:$0xff]   ;;  %v15296_v8 = vld [vmem:[%s16761_s25 + $0xbd0] ss:$8 sps:$4 sm:$0xff]  }
 0x302   : > { %10625 = vmatpush1.bf16.msra.mxu1 %v15212_v31  ;;  %v15307_v31 = vld [vmem:[%s16761_s25 + $0x23e4] ss:$8 sps:$4 sm:$0xff]  }
 0x303   : > { %11609 = vmatpush1.bf16.msra.mxu0 %v15215_v32  ;;  %10635 = vmatprep.subr.bf16.mxu1 %v15220_v33  ;;  %v15302_v32 = vld [vmem:[%s16761_s25 + $0xbe0] ss:$8 sps:$4 sm:$0xff]  }
 0x304   : > { %11619 = vmatprep.subr.bf16.mxu0 %v15223_v35  ;;  %v15305_v33 = vld [vmem:[%s16761_s25 + $0x23e0] ss:$8 sps:$4 sm:$0xff]   ;;  %v15310_v35 = vld [vmem:[%s16761_s25 + $0xbf4] ss:$8 sps:$4 sm:$0xff]  }
 0x305   : > { %10627 = vmatmul.mubr.bf16.vlgmr.msra.gmra.mrb[0].mxu1 %v17590_v23  ;;  %v15230_v23 = vld [vmem:[%s16761_s25 + $0xb20] ss:$8 sps:$4 sm:$0xff]  }
 0x306   : > { %11611 = vmatmul.mubr.bf16.vlgmr.msra.gmra.mrb[0].mxu0 %v17594_v24  ;;  %10636 = vmatpush1.bf16.msra.mxu1 %v15218_v18  ;;  %v15233_v24 = vld [vmem:[%s16761_s25 + $0x2320] ss:$8 sps:$4 sm:$0xff]   ;;  %v15313_v18 = vld [vmem:[%s16761_s25 + $0x23f4] ss:$8 sps:$4 sm:$0xff]  }
 0x307   : > { %11620 = vmatpush1.bf16.msra.mxu0 %v15221_v52  ;;  %10637 = vmatprep.subr.bf16.mxu1 %v15226_v2  ;;  %v17743_v52 = vld [vmem:[%s16777_s23 + $0x30] sm:$0xff] }
 0x308   : > { %11621 = vmatprep.subr.bf16.mxu0 %v15229_v36  ;;  %10667 = vmatprep.mubr.bf16.mxu1 %v1931_v38  ;;  %v17746_v2 = vld [vmem:[%s16777_s23 + $0x90] sm:$0xff]  ;;  %v15308_v36 = vld [vmem:[%s16761_s25 + $0xbf0] ss:$8 sps:$4 sm:$0xff]  }
 0x309   : > { %11651 = vmatprep.mubr.bf16.mxu0 %v2135_v39  ;;  %v15311_v38 = vld [vmem:[%s16761_s25 + $0x23f0] ss:$8 sps:$4 sm:$0xff]   ;;  %v15317_v39 = vld [vmem:[%s16761_s25 + $0xc04] ss:$8 sps:$4 sm:$0xff]  }
 0x30a   : > { %10638 = vmatpush1.bf16.msra.mxu1 %v15224_v40  ;;  %v15321_v40 = vld [vmem:[%s16761_s25 + $0x2404] ss:$8 sps:$4 sm:$0xff]  }
 0x30b   : > { %11622 = vmatpush1.bf16.msra.mxu0 %v15227_v41  ;;  %10639 = vmatprep.subr.bf16.mxu1 %v15232_v44  ;;  %v17754_v41 = vrot.slane %v17743_v52, %v16824_v50  ;;  %v17758_v44 = vrot.slane %v17746_v2, %v16824_v50 }
 0x30c   : > { %11623 = vmatprep.subr.bf16.mxu0 %v15235_v45  ;;  %v15315_v45 = vld [vmem:[%s16761_s25 + $0xc00] ss:$8 sps:$4 sm:$0xff]  }
 0x30e   : > { %10640 = vmatpush1.bf16.msra.mxu1 %v15230_v23  ;;  %v15319_v23 = vld [vmem:[%s16761_s25 + $0x2400] ss:$8 sps:$4 sm:$0xff]  }
 0x30f   : > { %11624 = vmatpush1.bf16.msra.mxu0 %v15233_v24  ;;  %10641 = vmatprep.subr.bf16.mxu1 %v15238_v29  ;;  %v15324_v24 = vld [vmem:[%s16761_s25 + $0xc14] ss:$8 sps:$4 sm:$0xff]  }
 0x310   : > { %11625 = vmatprep.subr.bf16.mxu0 %v15241_v34  ;;  %v15327_v29 = vld [vmem:[%s16761_s25 + $0x2414] ss:$8 sps:$4 sm:$0xff]   ;;  %v1947_v34 = vcombine.high %v17754_v41, %v17754_v41 }
 0x312   : > { %10642 = vmatpush1.bf16.msra.mxu1 %v15236_v46  ;;  %v2151_v46 = vcombine.high %v17758_v44, %v17758_v44 }
 0x313   : > { %11626 = vmatpush1.bf16.msra.mxu0 %v15239_v47  ;;  %10643 = vmatprep.subr.bf16.mxu1 %v15244_v48  ;;  %v15322_v47 = vld [vmem:[%s16761_s25 + $0xc10] ss:$8 sps:$4 sm:$0xff]  }
 0x314   : > { %11627 = vmatprep.subr.bf16.mxu0 %v15247_v49  ;;  %v15325_v48 = vld [vmem:[%s16761_s25 + $0x2410] ss:$8 sps:$4 sm:$0xff]   ;;  %v15330_v49 = vld [vmem:[%s16761_s25 + $0xc24] ss:$8 sps:$4 sm:$0xff]  }
 0x316   : > { %10644 = vmatpush1.bf16.msra.mxu1 %v15242_v51  ;;  %v15333_v51 = vld [vmem:[%s16761_s25 + $0x2424] ss:$8 sps:$4 sm:$0xff]  }
 0x317   : > { %11628 = vmatpush1.bf16.msra.mxu0 %v15245_v30  ;;  %10645 = vmatprep.subr.bf16.mxu1 %v15250_v53  ;;  %v15336_v30 = vld [vmem:[%s16761_s25 + $0xc34] ss:$8 sps:$4 sm:$0xff]  }
 0x318   : > { %11629 = vmatprep.subr.bf16.mxu0 %v15253_v54  ;;  %v15339_v53 = vld [vmem:[%s16761_s25 + $0x2434] ss:$8 sps:$4 sm:$0xff]   ;;  %v15334_v54 = vld [vmem:[%s16761_s25 + $0xc30] ss:$8 sps:$4 sm:$0xff]  }
 0x31a   : > { %10646 = vmatpush1.bf16.msra.mxu1 %v15248_v55  ;;  %v15337_v55 = vld [vmem:[%s16761_s25 + $0x2430] ss:$8 sps:$4 sm:$0xff]  }
 0x31b   : > { %11630 = vmatpush1.bf16.msra.mxu0 %v15251_v56  ;;  %10647 = vmatprep.subr.bf16.mxu1 %v15256_v59  ;;  %v15342_v56 = vld [vmem:[%s16761_s25 + $0xc44] ss:$8 sps:$4 sm:$0xff]  }
 0x31c   : > { %11631 = vmatprep.subr.bf16.mxu0 %v15259_v42  ;;  %v15345_v59 = vld [vmem:[%s16761_s25 + $0x2444] ss:$8 sps:$4 sm:$0xff]   ;;  %v15340_v42 = vld [vmem:[%s16761_s25 + $0xc40] ss:$8 sps:$4 sm:$0xff]  }
 0x31e   : > { %10648 = vmatpush1.bf16.msra.mxu1 %v15254_v43  ;;  %v15343_v43 = vld [vmem:[%s16761_s25 + $0x2440] ss:$8 sps:$4 sm:$0xff]  }
 0x31f   : > { %11632 = vmatpush1.bf16.msra.mxu0 %v15257_v60  ;;  %10649 = vmatprep.subr.bf16.mxu1 %v15262_v61  ;;  %v15348_v60 = vld [vmem:[%s16761_s25 + $0xc54] ss:$8 sps:$4 sm:$0xff]  }
 0x320   : > { %11633 = vmatprep.subr.bf16.mxu0 %v15265_v62  ;;  %v15351_v61 = vld [vmem:[%s16761_s25 + $0x2454] ss:$8 sps:$4 sm:$0xff]   ;;  %v15346_v62 = vld [vmem:[%s16761_s25 + $0xc50] ss:$8 sps:$4 sm:$0xff]  }
 0x322   : > { %10650 = vmatpush1.bf16.msra.mxu1 %v15260_v63  ;;  %v15349_v63 = vld [vmem:[%s16761_s25 + $0x2450] ss:$8 sps:$4 sm:$0xff]  }
 0x323   : > { %11634 = vmatpush1.bf16.msra.mxu0 %v15263_v0  ;;  %10651 = vmatprep.subr.bf16.mxu1 %v15268_v1  ;;  %v15354_v0 = vld [vmem:[%s16761_s25 + $0xc64] ss:$8 sps:$4 sm:$0xff]  }
 0x324   : > { %11635 = vmatprep.subr.bf16.mxu0 %v15271_v37  ;;  %v15357_v1 = vld [vmem:[%s16761_s25 + $0x2464] ss:$8 sps:$4 sm:$0xff]   ;;  %v15352_v37 = vld [vmem:[%s16761_s25 + $0xc60] ss:$8 sps:$4 sm:$0xff]  }
 0x326   : > { %10652 = vmatpush1.bf16.msra.mxu1 %v15266_v3  ;;  %v15355_v3 = vld [vmem:[%s16761_s25 + $0x2460] ss:$8 sps:$4 sm:$0xff]  }
 0x327   : > { %11636 = vmatpush1.bf16.msra.mxu0 %v15269_v4  ;;  %10653 = vmatprep.subr.bf16.mxu1 %v15274_v5  ;;  %v15360_v4 = vld [vmem:[%s16761_s25 + $0xc74] ss:$8 sps:$4 sm:$0xff]  }
 0x328   : > { %11637 = vmatprep.subr.bf16.mxu0 %v15277_v6  ;;  %v15363_v5 = vld [vmem:[%s16761_s25 + $0x2474] ss:$8 sps:$4 sm:$0xff]   ;;  %v15358_v6 = vld [vmem:[%s16761_s25 + $0xc70] ss:$8 sps:$4 sm:$0xff]  }
 0x32a   : > { %10654 = vmatpush1.bf16.msra.mxu1 %v15272_v9  ;;  %v15361_v9 = vld [vmem:[%s16761_s25 + $0x2470] ss:$8 sps:$4 sm:$0xff]  }
 0x32b   : > { %11638 = vmatpush1.bf16.msra.mxu0 %v15275_v57  ;;  %10655 = vmatprep.subr.bf16.mxu1 %v15280_v58  ;;  %v15366_v57 = vld [vmem:[%s16761_s25 + $0xc84] ss:$8 sps:$4 sm:$0xff]  }
 0x32c   : > { %11639 = vmatprep.subr.bf16.mxu0 %v15283_v10  ;;  %v15369_v58 = vld [vmem:[%s16761_s25 + $0x2484] ss:$8 sps:$4 sm:$0xff]   ;;  %v15364_v10 = vld [vmem:[%s16761_s25 + $0xc80] ss:$8 sps:$4 sm:$0xff]  }
 0x32e   : > { %10656 = vmatpush1.bf16.msra.mxu1 %v15278_v11  ;;  %v15367_v11 = vld [vmem:[%s16761_s25 + $0x2480] ss:$8 sps:$4 sm:$0xff]  }
 0x32f   : > { %11640 = vmatpush1.bf16.msra.mxu0 %v15281_v12  ;;  %10657 = vmatprep.subr.bf16.mxu1 %v15286_v13  ;;  %v15372_v12 = vld [vmem:[%s16761_s25 + $0xc94] ss:$8 sps:$4 sm:$0xff]  }
 0x330   : > { %11641 = vmatprep.subr.bf16.mxu0 %v15289_v14  ;;  %v15375_v13 = vld [vmem:[%s16761_s25 + $0x2494] ss:$8 sps:$4 sm:$0xff]   ;;  %v15370_v14 = vld [vmem:[%s16761_s25 + $0xc90] ss:$8 sps:$4 sm:$0xff]  }
 0x332   : > { %10658 = vmatpush1.bf16.msra.mxu1 %v15284_v15  ;;  %v15373_v15 = vld [vmem:[%s16761_s25 + $0x2490] ss:$8 sps:$4 sm:$0xff]  }
 0x333   : > { %11642 = vmatpush1.bf16.msra.mxu0 %v15287_v27  ;;  %10659 = vmatprep.subr.bf16.mxu1 %v15292_v19  ;;  %v15378_v27 = vld [vmem:[%s16761_s25 + $0xca4] ss:$8 sps:$4 sm:$0xff]  }
 0x334   : > { %11643 = vmatprep.subr.bf16.mxu0 %v15295_v20  ;;  %v15381_v19 = vld [vmem:[%s16761_s25 + $0x24a4] ss:$8 sps:$4 sm:$0xff]   ;;  %v15376_v20 = vld [vmem:[%s16761_s25 + $0xca0] ss:$8 sps:$4 sm:$0xff]  }
 0x336   : > { %10660 = vmatpush1.bf16.msra.mxu1 %v15290_v21  ;;  %v15379_v21 = vld [vmem:[%s16761_s25 + $0x24a0] ss:$8 sps:$4 sm:$0xff]  }
 0x337   : > { %11644 = vmatpush1.bf16.msra.mxu0 %v15293_v22  ;;  %10661 = vmatprep.subr.bf16.mxu1 %v15298_v25  ;;  %v15384_v22 = vld [vmem:[%s16761_s25 + $0xcb4] ss:$8 sps:$4 sm:$0xff]  }
 0x338   : > { %11645 = vmatprep.subr.bf16.mxu0 %v15301_v7  ;;  %v15387_v25 = vld [vmem:[%s16761_s25 + $0x24b4] ss:$8 sps:$4 sm:$0xff]   ;;  %v15382_v7 = vld [vmem:[%s16761_s25 + $0xcb0] ss:$8 sps:$4 sm:$0xff]  }
 0x33a   : > { %10662 = vmatpush1.bf16.msra.mxu1 %v15296_v8  ;;  %v15385_v8 = vld [vmem:[%s16761_s25 + $0x24b0] ss:$8 sps:$4 sm:$0xff]  }
 0x33b   : > { %11646 = vmatpush1.bf16.msra.mxu0 %v15299_v26  ;;  %10663 = vmatprep.subr.bf16.mxu1 %v15304_v28  ;;  %v15390_v26 = vld [vmem:[%s16761_s25 + $0xcc4] ss:$8 sps:$4 sm:$0xff]  }
 0x33c   : > { %11647 = vmatprep.subr.bf16.mxu0 %v15307_v31  ;;  %v15393_v28 = vld [vmem:[%s16761_s25 + $0x24c4] ss:$8 sps:$4 sm:$0xff]   ;;  %v15388_v31 = vld [vmem:[%s16761_s25 + $0xcc0] ss:$8 sps:$4 sm:$0xff]  }
 0x33e   : > { %10664 = vmatpush1.bf16.msra.mxu1 %v15302_v32  ;;  %v15391_v32 = vld [vmem:[%s16761_s25 + $0x24c0] ss:$8 sps:$4 sm:$0xff]  }
 0x33f   : > { %11648 = vmatpush1.bf16.msra.mxu0 %v15305_v33  ;;  %10665 = vmatprep.subr.bf16.mxu1 %v15310_v35  ;;  %v15396_v33 = vld [vmem:[%s16761_s25 + $0xcd4] ss:$8 sps:$4 sm:$0xff]  }
 0x340   : > { %11649 = vmatprep.subr.bf16.mxu0 %v15313_v18  ;;  %v15399_v35 = vld [vmem:[%s16761_s25 + $0x24d4] ss:$8 sps:$4 sm:$0xff]   ;;  %v15394_v18 = vld [vmem:[%s16761_s25 + $0xcd0] ss:$8 sps:$4 sm:$0xff]  }
 0x342   : > { %10666 = vmatpush1.bf16.msra.mxu1 %v15308_v36  ;;  %v15397_v36 = vld [vmem:[%s16761_s25 + $0x24d0] ss:$8 sps:$4 sm:$0xff]  }
 0x343   : > { %11650 = vmatpush1.bf16.msra.mxu0 %v15311_v38  ;;  %10676 = vmatprep.subr.bf16.mxu1 %v15317_v39  ;;  %v15402_v38 = vld [vmem:[%s16761_s25 + $0xce4] ss:$8 sps:$4 sm:$0xff]  }
 0x344   : > { %11660 = vmatprep.subr.bf16.mxu0 %v15321_v40  ;;  %v15405_v39 = vld [vmem:[%s16761_s25 + $0x24e4] ss:$8 sps:$4 sm:$0xff]   ;;  %v15400_v40 = vld [vmem:[%s16761_s25 + $0xce0] ss:$8 sps:$4 sm:$0xff]  }
 0x345   : > { %10668 = vmatmul.mubr.bf16.vlgmr.msra.gmra.mrb[0].mxu1 %v17671_v17  ;;  %v15328_v17 = vld [vmem:[%s16761_s25 + $0xc20] ss:$8 sps:$4 sm:$0xff]  }
 0x346   : > { %11652 = vmatmul.mubr.bf16.vlgmr.msra.gmra.mrb[0].mxu0 %v17674_v16  ;;  %10677 = vmatpush1.bf16.msra.mxu1 %v15315_v45  ;;  %v15331_v16 = vld [vmem:[%s16761_s25 + $0x2420] ss:$8 sps:$4 sm:$0xff]  }
 0x347   : > { %11661 = vmatpush1.bf16.msra.mxu0 %v15319_v23  ;;  %10678 = vmatprep.subr.bf16.mxu1 %v15324_v24  ;;  %v15403_v45 = vld [vmem:[%s16761_s25 + $0x24e0] ss:$8 sps:$4 sm:$0xff]   ;;  %v15408_v23 = vld [vmem:[%s16761_s25 + $0xcf4] ss:$8 sps:$4 sm:$0xff]  }
 0x348   : > { %11662 = vmatprep.subr.bf16.mxu0 %v15327_v29  ;;  %10708 = vmatprep.mubr.bf16.mxu1 %v1947_v34  ;;  %v15411_v24 = vld [vmem:[%s16761_s25 + $0x24f4] ss:$8 sps:$4 sm:$0xff]   ;;  %v1932_v29 = vcombine.high %v17743_v52, %v17743_v52  ;;  %v2136_v34 = vcombine.high %v17746_v2, %v17746_v2  ;;  %v15412_v52 = vld [vmem:[%s16761_s25 + $0xd00] ss:$8 sps:$4 sm:$0xff]  }
 0x349   : > { %11692 = vmatprep.mubr.bf16.mxu0 %v2151_v46  ;;  %v15406_v46 = vld [vmem:[%s16761_s25 + $0xcf0] ss:$8 sps:$4 sm:$0xff]   ;;  %v15415_v2 = vld [vmem:[%s16761_s25 + $0x2500] ss:$8 sps:$4 sm:$0xff]  }
 0x34a   : > { %10679 = vmatpush1.bf16.msra.mxu1 %v15322_v47  ;;  %v15409_v47 = vld [vmem:[%s16761_s25 + $0x24f0] ss:$8 sps:$4 sm:$0xff]  }
 0x34b   : > { %11663 = vmatpush1.bf16.msra.mxu0 %v15325_v48  ;;  %10680 = vmatprep.subr.bf16.mxu1 %v15330_v49  ;;  %v15414_v48 = vld [vmem:[%s16761_s25 + $0xd04] ss:$8 sps:$4 sm:$0xff]  }
 0x34c   : > { %11664 = vmatprep.subr.bf16.mxu0 %v15333_v51  ;;  %v15417_v49 = vld [vmem:[%s16761_s25 + $0x2504] ss:$8 sps:$4 sm:$0xff]   ;;  %v17835_v51 = vrot.slane %v1932_v29, %v16824_v50  ;;  %v15493_v29 = vld [vmem:[%s16761_s25 + $0x25d0] ss:$8 sps:$4 sm:$0xff]  }
 0x34e   : > { %10681 = vmatpush1.bf16.msra.mxu1 %v15328_v17  ;;  %v17838_v17 = vrot.slane %v2136_v34, %v16824_v50  ;;  %v15498_v34 = vld [vmem:[%s16761_s25 + $0xde4] ss:$8 sps:$4 sm:$0xff]  }
 0x34f   : > { %11665 = vmatpush1.bf16.msra.mxu0 %v15331_v16  ;;  %10682 = vmatprep.subr.bf16.mxu1 %v15336_v30  ;;  %v15420_v16 = vld [vmem:[%s16761_s25 + $0xd14] ss:$8 sps:$4 sm:$0xff]  }
 0x350   : > { %11666 = vmatprep.subr.bf16.mxu0 %v15339_v53  ;;  %v15423_v30 = vld [vmem:[%s16761_s25 + $0x2514] ss:$8 sps:$4 sm:$0xff]   ;;  %v1948_v53 = vcombine.high %v17835_v51, %v17835_v51 }
 0x352   : > { %10683 = vmatpush1.bf16.msra.mxu1 %v15334_v54  ;;  %v2152_v54 = vcombine.high %v17838_v17, %v17838_v17 }
 0x353   : > { %11667 = vmatpush1.bf16.msra.mxu0 %v15337_v55  ;;  %10684 = vmatprep.subr.bf16.mxu1 %v15342_v56  ;;  %v15418_v55 = vld [vmem:[%s16761_s25 + $0xd10] ss:$8 sps:$4 sm:$0xff]  }
 0x354   : > { %11668 = vmatprep.subr.bf16.mxu0 %v15345_v59  ;;  %v15421_v56 = vld [vmem:[%s16761_s25 + $0x2510] ss:$8 sps:$4 sm:$0xff]   ;;  %v15426_v59 = vld [vmem:[%s16761_s25 + $0xd24] ss:$8 sps:$4 sm:$0xff]  }
 0x356   : > { %10685 = vmatpush1.bf16.msra.mxu1 %v15340_v42  ;;  %v15429_v42 = vld [vmem:[%s16761_s25 + $0x2524] ss:$8 sps:$4 sm:$0xff]  }
 0x357   : > { %11669 = vmatpush1.bf16.msra.mxu0 %v15343_v43  ;;  %10686 = vmatprep.subr.bf16.mxu1 %v15348_v60  ;;  %v15432_v43 = vld [vmem:[%s16761_s25 + $0xd34] ss:$8 sps:$4 sm:$0xff]  }
 0x358   : > { %11670 = vmatprep.subr.bf16.mxu0 %v15351_v61  ;;  %v15435_v60 = vld [vmem:[%s16761_s25 + $0x2534] ss:$8 sps:$4 sm:$0xff]   ;;  %v15430_v61 = vld [vmem:[%s16761_s25 + $0xd30] ss:$8 sps:$4 sm:$0xff]  }
 0x35a   : > { %10687 = vmatpush1.bf16.msra.mxu1 %v15346_v62  ;;  %v15433_v62 = vld [vmem:[%s16761_s25 + $0x2530] ss:$8 sps:$4 sm:$0xff]  }
 0x35b   : > { %11671 = vmatpush1.bf16.msra.mxu0 %v15349_v63  ;;  %10688 = vmatprep.subr.bf16.mxu1 %v15354_v0  ;;  %v15438_v63 = vld [vmem:[%s16761_s25 + $0xd44] ss:$8 sps:$4 sm:$0xff]  }
 0x35c   : > { %11672 = vmatprep.subr.bf16.mxu0 %v15357_v1  ;;  %v15441_v0 = vld [vmem:[%s16761_s25 + $0x2544] ss:$8 sps:$4 sm:$0xff]   ;;  %v15436_v1 = vld [vmem:[%s16761_s25 + $0xd40] ss:$8 sps:$4 sm:$0xff]  }
 0x35e   : > { %10689 = vmatpush1.bf16.msra.mxu1 %v15352_v37  ;;  %v15439_v37 = vld [vmem:[%s16761_s25 + $0x2540] ss:$8 sps:$4 sm:$0xff]  }
 0x35f   : > { %11673 = vmatpush1.bf16.msra.mxu0 %v15355_v3  ;;  %10690 = vmatprep.subr.bf16.mxu1 %v15360_v4  ;;  %v15444_v3 = vld [vmem:[%s16761_s25 + $0xd54] ss:$8 sps:$4 sm:$0xff]  }
 0x360   : > { %11674 = vmatprep.subr.bf16.mxu0 %v15363_v5  ;;  %v15447_v4 = vld [vmem:[%s16761_s25 + $0x2554] ss:$8 sps:$4 sm:$0xff]   ;;  %v15442_v5 = vld [vmem:[%s16761_s25 + $0xd50] ss:$8 sps:$4 sm:$0xff]  }
 0x362   : > { %10691 = vmatpush1.bf16.msra.mxu1 %v15358_v6  ;;  %v15445_v6 = vld [vmem:[%s16761_s25 + $0x2550] ss:$8 sps:$4 sm:$0xff]  }
 0x363   : > { %11675 = vmatpush1.bf16.msra.mxu0 %v15361_v9  ;;  %10692 = vmatprep.subr.bf16.mxu1 %v15366_v57  ;;  %v15450_v9 = vld [vmem:[%s16761_s25 + $0xd64] ss:$8 sps:$4 sm:$0xff]  }
 0x364   : > { %11676 = vmatprep.subr.bf16.mxu0 %v15369_v58  ;;  %v15453_v57 = vld [vmem:[%s16761_s25 + $0x2564] ss:$8 sps:$4 sm:$0xff]   ;;  %v15448_v58 = vld [vmem:[%s16761_s25 + $0xd60] ss:$8 sps:$4 sm:$0xff]  }
 0x366   : > { %10693 = vmatpush1.bf16.msra.mxu1 %v15364_v10  ;;  %v15451_v10 = vld [vmem:[%s16761_s25 + $0x2560] ss:$8 sps:$4 sm:$0xff]  }
 0x367   : > { %11677 = vmatpush1.bf16.msra.mxu0 %v15367_v11  ;;  %10694 = vmatprep.subr.bf16.mxu1 %v15372_v12  ;;  %v15456_v11 = vld [vmem:[%s16761_s25 + $0xd74] ss:$8 sps:$4 sm:$0xff]  }
 0x368   : > { %11678 = vmatprep.subr.bf16.mxu0 %v15375_v13  ;;  %v15459_v12 = vld [vmem:[%s16761_s25 + $0x2574] ss:$8 sps:$4 sm:$0xff]   ;;  %v15454_v13 = vld [vmem:[%s16761_s25 + $0xd70] ss:$8 sps:$4 sm:$0xff]  }
 0x36a   : > { %10695 = vmatpush1.bf16.msra.mxu1 %v15370_v14  ;;  %v15457_v14 = vld [vmem:[%s16761_s25 + $0x2570] ss:$8 sps:$4 sm:$0xff]  }
 0x36b   : > { %11679 = vmatpush1.bf16.msra.mxu0 %v15373_v15  ;;  %10696 = vmatprep.subr.bf16.mxu1 %v15378_v27  ;;  %v15462_v15 = vld [vmem:[%s16761_s25 + $0xd84] ss:$8 sps:$4 sm:$0xff]  }
 0x36c   : > { %11680 = vmatprep.subr.bf16.mxu0 %v15381_v19  ;;  %v15465_v27 = vld [vmem:[%s16761_s25 + $0x2584] ss:$8 sps:$4 sm:$0xff]   ;;  %v15460_v19 = vld [vmem:[%s16761_s25 + $0xd80] ss:$8 sps:$4 sm:$0xff]  }
 0x36e   : > { %10697 = vmatpush1.bf16.msra.mxu1 %v15376_v20  ;;  %v15463_v20 = vld [vmem:[%s16761_s25 + $0x2580] ss:$8 sps:$4 sm:$0xff]  }
 0x36f   : > { %11681 = vmatpush1.bf16.msra.mxu0 %v15379_v21  ;;  %10698 = vmatprep.subr.bf16.mxu1 %v15384_v22  ;;  %v15468_v21 = vld [vmem:[%s16761_s25 + $0xd94] ss:$8 sps:$4 sm:$0xff]  }
 0x370   : > { %11682 = vmatprep.subr.bf16.mxu0 %v15387_v25  ;;  %v15471_v22 = vld [vmem:[%s16761_s25 + $0x2594] ss:$8 sps:$4 sm:$0xff]   ;;  %v15466_v25 = vld [vmem:[%s16761_s25 + $0xd90] ss:$8 sps:$4 sm:$0xff]  }
 0x372   : > { %10699 = vmatpush1.bf16.msra.mxu1 %v15382_v7  ;;  %v15469_v7 = vld [vmem:[%s16761_s25 + $0x2590] ss:$8 sps:$4 sm:$0xff]  }
 0x373   : > { %11683 = vmatpush1.bf16.msra.mxu0 %v15385_v8  ;;  %10700 = vmatprep.subr.bf16.mxu1 %v15390_v26  ;;  %v15474_v8 = vld [vmem:[%s16761_s25 + $0xda4] ss:$8 sps:$4 sm:$0xff]  }
 0x374   : > { %11684 = vmatprep.subr.bf16.mxu0 %v15393_v28  ;;  %v15477_v26 = vld [vmem:[%s16761_s25 + $0x25a4] ss:$8 sps:$4 sm:$0xff]   ;;  %v15472_v28 = vld [vmem:[%s16761_s25 + $0xda0] ss:$8 sps:$4 sm:$0xff]  }
 0x376   : > { %10701 = vmatpush1.bf16.msra.mxu1 %v15388_v31  ;;  %v15475_v31 = vld [vmem:[%s16761_s25 + $0x25a0] ss:$8 sps:$4 sm:$0xff]  }
 0x377   : > { %11685 = vmatpush1.bf16.msra.mxu0 %v15391_v32  ;;  %10702 = vmatprep.subr.bf16.mxu1 %v15396_v33  ;;  %v15480_v32 = vld [vmem:[%s16761_s25 + $0xdb4] ss:$8 sps:$4 sm:$0xff]  }
 0x378   : > { %11686 = vmatprep.subr.bf16.mxu0 %v15399_v35  ;;  %v15483_v33 = vld [vmem:[%s16761_s25 + $0x25b4] ss:$8 sps:$4 sm:$0xff]   ;;  %v15478_v35 = vld [vmem:[%s16761_s25 + $0xdb0] ss:$8 sps:$4 sm:$0xff]  }
 0x37a   : > { %10703 = vmatpush1.bf16.msra.mxu1 %v15394_v18  ;;  %v15481_v18 = vld [vmem:[%s16761_s25 + $0x25b0] ss:$8 sps:$4 sm:$0xff]  }
 0x37b   : > { %11687 = vmatpush1.bf16.msra.mxu0 %v15397_v36  ;;  %10704 = vmatprep.subr.bf16.mxu1 %v15402_v38  ;;  %v15486_v36 = vld [vmem:[%s16761_s25 + $0xdc4] ss:$8 sps:$4 sm:$0xff]  }
 0x37c   : > { %11688 = vmatprep.subr.bf16.mxu0 %v15405_v39  ;;  %v15489_v38 = vld [vmem:[%s16761_s25 + $0x25c4] ss:$8 sps:$4 sm:$0xff]   ;;  %v15484_v39 = vld [vmem:[%s16761_s25 + $0xdc0] ss:$8 sps:$4 sm:$0xff]  }
 0x37e   : > { %10705 = vmatpush1.bf16.msra.mxu1 %v15400_v40  ;;  %v15487_v40 = vld [vmem:[%s16761_s25 + $0x25c0] ss:$8 sps:$4 sm:$0xff]  }
 0x37f   : > { %11689 = vmatpush1.bf16.msra.mxu0 %v15403_v45  ;;  %10706 = vmatprep.subr.bf16.mxu1 %v15408_v23  ;;  %v15492_v45 = vld [vmem:[%s16761_s25 + $0xdd4] ss:$8 sps:$4 sm:$0xff]  }
 0x380   : > { %11690 = vmatprep.subr.bf16.mxu0 %v15411_v24  ;;  %v15495_v23 = vld [vmem:[%s16761_s25 + $0x25d4] ss:$8 sps:$4 sm:$0xff]   ;;  %v15490_v24 = vld [vmem:[%s16761_s25 + $0xdd0] ss:$8 sps:$4 sm:$0xff]  }
 0x382   : > { %10707 = vmatpush1.bf16.msra.mxu1 %v15406_v46  ;;  %v15501_v46 = vld [vmem:[%s16761_s25 + $0x25e4] ss:$8 sps:$4 sm:$0xff]  }
 0x383   : > { %11691 = vmatpush1.bf16.msra.mxu0 %v15409_v47  ;;  %10717 = vmatprep.subr.bf16.mxu1 %v15414_v48  ;;  %v15496_v47 = vld [vmem:[%s16761_s25 + $0xde0] ss:$8 sps:$4 sm:$0xff]  }
 0x384   : > { %11701 = vmatprep.subr.bf16.mxu0 %v15417_v49  ;;  %v15499_v48 = vld [vmem:[%s16761_s25 + $0x25e0] ss:$8 sps:$4 sm:$0xff]   ;;  %v15504_v49 = vld [vmem:[%s16761_s25 + $0xdf4] ss:$8 sps:$4 sm:$0xff]  }
 0x385   : > { %10709 = vmatmul.mubr.bf16.vlgmr.msra.gmra.mrb[0].mxu1 %v17754_v41  ;;  %v15424_v41 = vld [vmem:[%s16761_s25 + $0xd20] ss:$8 sps:$4 sm:$0xff]  }
 0x386   : > { %11693 = vmatmul.mubr.bf16.vlgmr.msra.gmra.mrb[0].mxu0 %v17758_v44  ;;  %10718 = vmatpush1.bf16.msra.mxu1 %v15412_v52  ;;  %v15427_v44 = vld [vmem:[%s16761_s25 + $0x2520] ss:$8 sps:$4 sm:$0xff]   ;;  %v15507_v52 = vld [vmem:[%s16761_s25 + $0x25f4] ss:$8 sps:$4 sm:$0xff]  }
 0x387   : > { %11702 = vmatpush1.bf16.msra.mxu0 %v15415_v2  ;;  %10719 = vmatprep.subr.bf16.mxu1 %v15420_v16  ;;  %v17907_v2 = vld [vmem:[%s16777_s23 + $0x38] sm:$0xff] }
 0x388   : > { %11703 = vmatprep.subr.bf16.mxu0 %v15423_v30  ;;  %10749 = vmatprep.mubr.bf16.mxu1 %v1948_v53  ;;  %v17910_v16 = vld [vmem:[%s16777_s23 + $0x98] sm:$0xff] }
 0x389   : > { %11733 = vmatprep.mubr.bf16.mxu0 %v2152_v54  ;;  %v15502_v30 = vld [vmem:[%s16761_s25 + $0xdf0] ss:$8 sps:$4 sm:$0xff]   ;;  %v15511_v54 = vld [vmem:[%s16761_s25 + $0xe04] ss:$8 sps:$4 sm:$0xff]  }
 0x38a   : > { %10720 = vmatpush1.bf16.msra.mxu1 %v15418_v55  ;;  %v15505_v53 = vld [vmem:[%s16761_s25 + $0x25f0] ss:$8 sps:$4 sm:$0xff]   ;;  %v15515_v55 = vld [vmem:[%s16761_s25 + $0x2604] ss:$8 sps:$4 sm:$0xff]  }
 0x38b   : > { %11704 = vmatpush1.bf16.msra.mxu0 %v15421_v56  ;;  %10721 = vmatprep.subr.bf16.mxu1 %v15426_v59  ;;  %v17918_v56 = vrot.slane %v17907_v2, %v16824_v50  ;;  %v17922_v59 = vrot.slane %v17910_v16, %v16824_v50 }
 0x38c   : > { %11705 = vmatprep.subr.bf16.mxu0 %v15429_v42  ;;  %v15509_v42 = vld [vmem:[%s16761_s25 + $0xe00] ss:$8 sps:$4 sm:$0xff]  }
 0x38e   : > { %10722 = vmatpush1.bf16.msra.mxu1 %v15424_v41  ;;  %v15513_v41 = vld [vmem:[%s16761_s25 + $0x2600] ss:$8 sps:$4 sm:$0xff]  }
 0x38f   : > { %11706 = vmatpush1.bf16.msra.mxu0 %v15427_v44  ;;  %10723 = vmatprep.subr.bf16.mxu1 %v15432_v43  ;;  %v15518_v44 = vld [vmem:[%s16761_s25 + $0xe14] ss:$8 sps:$4 sm:$0xff]  }
 0x390   : > { %11707 = vmatprep.subr.bf16.mxu0 %v15435_v60  ;;  %v15521_v43 = vld [vmem:[%s16761_s25 + $0x2614] ss:$8 sps:$4 sm:$0xff]   ;;  %v1964_v60 = vcombine.high %v17918_v56, %v17918_v56 }
 0x392   : > { %10724 = vmatpush1.bf16.msra.mxu1 %v15430_v61  ;;  %v2168_v61 = vcombine.high %v17922_v59, %v17922_v59 }
 0x393   : > { %11708 = vmatpush1.bf16.msra.mxu0 %v15433_v62  ;;  %10725 = vmatprep.subr.bf16.mxu1 %v15438_v63  ;;  %v15516_v62 = vld [vmem:[%s16761_s25 + $0xe10] ss:$8 sps:$4 sm:$0xff]  }
 0x394   : > { %11709 = vmatprep.subr.bf16.mxu0 %v15441_v0  ;;  %v15519_v63 = vld [vmem:[%s16761_s25 + $0x2610] ss:$8 sps:$4 sm:$0xff]   ;;  %v15524_v0 = vld [vmem:[%s16761_s25 + $0xe24] ss:$8 sps:$4 sm:$0xff]  }
 0x396   : > { %10726 = vmatpush1.bf16.msra.mxu1 %v15436_v1  ;;  %v15527_v1 = vld [vmem:[%s16761_s25 + $0x2624] ss:$8 sps:$4 sm:$0xff]  }
 0x397   : > { %11710 = vmatpush1.bf16.msra.mxu0 %v15439_v37  ;;  %10727 = vmatprep.subr.bf16.mxu1 %v15444_v3  ;;  %v15530_v37 = vld [vmem:[%s16761_s25 + $0xe34] ss:$8 sps:$4 sm:$0xff]  }
 0x398   : > { %11711 = vmatprep.subr.bf16.mxu0 %v15447_v4  ;;  %v15533_v3 = vld [vmem:[%s16761_s25 + $0x2634] ss:$8 sps:$4 sm:$0xff]   ;;  %v15528_v4 = vld [vmem:[%s16761_s25 + $0xe30] ss:$8 sps:$4 sm:$0xff]  }
 0x39a   : > { %10728 = vmatpush1.bf16.msra.mxu1 %v15442_v5  ;;  %v15531_v5 = vld [vmem:[%s16761_s25 + $0x2630] ss:$8 sps:$4 sm:$0xff]  }
 0x39b   : > { %11712 = vmatpush1.bf16.msra.mxu0 %v15445_v6  ;;  %10729 = vmatprep.subr.bf16.mxu1 %v15450_v9  ;;  %v15536_v6 = vld [vmem:[%s16761_s25 + $0xe44] ss:$8 sps:$4 sm:$0xff]  }
 0x39c   : > { %11713 = vmatprep.subr.bf16.mxu0 %v15453_v57  ;;  %v15539_v9 = vld [vmem:[%s16761_s25 + $0x2644] ss:$8 sps:$4 sm:$0xff]   ;;  %v15534_v57 = vld [vmem:[%s16761_s25 + $0xe40] ss:$8 sps:$4 sm:$0xff]  }
 0x39e   : > { %10730 = vmatpush1.bf16.msra.mxu1 %v15448_v58  ;;  %v15537_v58 = vld [vmem:[%s16761_s25 + $0x2640] ss:$8 sps:$4 sm:$0xff]  }
 0x39f   : > { %11714 = vmatpush1.bf16.msra.mxu0 %v15451_v10  ;;  %10731 = vmatprep.subr.bf16.mxu1 %v15456_v11  ;;  %v15542_v10 = vld [vmem:[%s16761_s25 + $0xe54] ss:$8 sps:$4 sm:$0xff]  }
 0x3a0   : > { %11715 = vmatprep.subr.bf16.mxu0 %v15459_v12  ;;  %v15545_v11 = vld [vmem:[%s16761_s25 + $0x2654] ss:$8 sps:$4 sm:$0xff]   ;;  %v15540_v12 = vld [vmem:[%s16761_s25 + $0xe50] ss:$8 sps:$4 sm:$0xff]  }
 0x3a2   : > { %10732 = vmatpush1.bf16.msra.mxu1 %v15454_v13  ;;  %v15543_v13 = vld [vmem:[%s16761_s25 + $0x2650] ss:$8 sps:$4 sm:$0xff]  }
 0x3a3   : > { %11716 = vmatpush1.bf16.msra.mxu0 %v15457_v14  ;;  %10733 = vmatprep.subr.bf16.mxu1 %v15462_v15  ;;  %v15548_v14 = vld [vmem:[%s16761_s25 + $0xe64] ss:$8 sps:$4 sm:$0xff]  }
 0x3a4   : > { %11717 = vmatprep.subr.bf16.mxu0 %v15465_v27  ;;  %v15551_v15 = vld [vmem:[%s16761_s25 + $0x2664] ss:$8 sps:$4 sm:$0xff]   ;;  %v15546_v27 = vld [vmem:[%s16761_s25 + $0xe60] ss:$8 sps:$4 sm:$0xff]  }
 0x3a6   : > { %10734 = vmatpush1.bf16.msra.mxu1 %v15460_v19  ;;  %v15549_v19 = vld [vmem:[%s16761_s25 + $0x2660] ss:$8 sps:$4 sm:$0xff]  }
 0x3a7   : > { %11718 = vmatpush1.bf16.msra.mxu0 %v15463_v20  ;;  %10735 = vmatprep.subr.bf16.mxu1 %v15468_v21  ;;  %v15554_v20 = vld [vmem:[%s16761_s25 + $0xe74] ss:$8 sps:$4 sm:$0xff]  }
 0x3a8   : > { %11719 = vmatprep.subr.bf16.mxu0 %v15471_v22  ;;  %v15557_v21 = vld [vmem:[%s16761_s25 + $0x2674] ss:$8 sps:$4 sm:$0xff]   ;;  %v15552_v22 = vld [vmem:[%s16761_s25 + $0xe70] ss:$8 sps:$4 sm:$0xff]  }
 0x3aa   : > { %10736 = vmatpush1.bf16.msra.mxu1 %v15466_v25  ;;  %v15555_v25 = vld [vmem:[%s16761_s25 + $0x2670] ss:$8 sps:$4 sm:$0xff]  }
 0x3ab   : > { %11720 = vmatpush1.bf16.msra.mxu0 %v15469_v7  ;;  %10737 = vmatprep.subr.bf16.mxu1 %v15474_v8  ;;  %v15560_v7 = vld [vmem:[%s16761_s25 + $0xe84] ss:$8 sps:$4 sm:$0xff]  }
 0x3ac   : > { %11721 = vmatprep.subr.bf16.mxu0 %v15477_v26  ;;  %v15563_v8 = vld [vmem:[%s16761_s25 + $0x2684] ss:$8 sps:$4 sm:$0xff]   ;;  %v15558_v26 = vld [vmem:[%s16761_s25 + $0xe80] ss:$8 sps:$4 sm:$0xff]  }
 0x3ae   : > { %10738 = vmatpush1.bf16.msra.mxu1 %v15472_v28  ;;  %v15561_v28 = vld [vmem:[%s16761_s25 + $0x2680] ss:$8 sps:$4 sm:$0xff]  }
 0x3af   : > { %11722 = vmatpush1.bf16.msra.mxu0 %v15475_v31  ;;  %10739 = vmatprep.subr.bf16.mxu1 %v15480_v32  ;;  %v15566_v31 = vld [vmem:[%s16761_s25 + $0xe94] ss:$8 sps:$4 sm:$0xff]  }
 0x3b0   : > { %11723 = vmatprep.subr.bf16.mxu0 %v15483_v33  ;;  %v15569_v32 = vld [vmem:[%s16761_s25 + $0x2694] ss:$8 sps:$4 sm:$0xff]   ;;  %v15564_v33 = vld [vmem:[%s16761_s25 + $0xe90] ss:$8 sps:$4 sm:$0xff]  }
 0x3b2   : > { %10740 = vmatpush1.bf16.msra.mxu1 %v15478_v35  ;;  %v15567_v35 = vld [vmem:[%s16761_s25 + $0x2690] ss:$8 sps:$4 sm:$0xff]  }
 0x3b3   : > { %11724 = vmatpush1.bf16.msra.mxu0 %v15481_v18  ;;  %10741 = vmatprep.subr.bf16.mxu1 %v15486_v36  ;;  %v15572_v18 = vld [vmem:[%s16761_s25 + $0xea4] ss:$8 sps:$4 sm:$0xff]  }
 0x3b4   : > { %11725 = vmatprep.subr.bf16.mxu0 %v15489_v38  ;;  %v15575_v36 = vld [vmem:[%s16761_s25 + $0x26a4] ss:$8 sps:$4 sm:$0xff]   ;;  %v15570_v38 = vld [vmem:[%s16761_s25 + $0xea0] ss:$8 sps:$4 sm:$0xff]  }
 0x3b6   : > { %10742 = vmatpush1.bf16.msra.mxu1 %v15484_v39  ;;  %v15573_v39 = vld [vmem:[%s16761_s25 + $0x26a0] ss:$8 sps:$4 sm:$0xff]  }
 0x3b7   : > { %11726 = vmatpush1.bf16.msra.mxu0 %v15487_v40  ;;  %10743 = vmatprep.subr.bf16.mxu1 %v15492_v45  ;;  %v15578_v40 = vld [vmem:[%s16761_s25 + $0xeb4] ss:$8 sps:$4 sm:$0xff]  }
 0x3b8   : > { %11727 = vmatprep.subr.bf16.mxu0 %v15495_v23  ;;  %v15581_v45 = vld [vmem:[%s16761_s25 + $0x26b4] ss:$8 sps:$4 sm:$0xff]   ;;  %v15576_v23 = vld [vmem:[%s16761_s25 + $0xeb0] ss:$8 sps:$4 sm:$0xff]  }
 0x3ba   : > { %10744 = vmatpush1.bf16.msra.mxu1 %v15490_v24  ;;  %v15579_v24 = vld [vmem:[%s16761_s25 + $0x26b0] ss:$8 sps:$4 sm:$0xff]  }
 0x3bb   : > { %11728 = vmatpush1.bf16.msra.mxu0 %v15493_v29  ;;  %10745 = vmatprep.subr.bf16.mxu1 %v15498_v34  ;;  %v15584_v29 = vld [vmem:[%s16761_s25 + $0xec4] ss:$8 sps:$4 sm:$0xff]  }
 0x3bc   : > { %11729 = vmatprep.subr.bf16.mxu0 %v15501_v46  ;;  %v15587_v34 = vld [vmem:[%s16761_s25 + $0x26c4] ss:$8 sps:$4 sm:$0xff]   ;;  %v15582_v46 = vld [vmem:[%s16761_s25 + $0xec0] ss:$8 sps:$4 sm:$0xff]  }
 0x3be   : > { %10746 = vmatpush1.bf16.msra.mxu1 %v15496_v47  ;;  %v15585_v47 = vld [vmem:[%s16761_s25 + $0x26c0] ss:$8 sps:$4 sm:$0xff]  }
 0x3bf   : > { %11730 = vmatpush1.bf16.msra.mxu0 %v15499_v48  ;;  %10747 = vmatprep.subr.bf16.mxu1 %v15504_v49  ;;  %v15590_v48 = vld [vmem:[%s16761_s25 + $0xed4] ss:$8 sps:$4 sm:$0xff]  }
 0x3c0   : > { %11731 = vmatprep.subr.bf16.mxu0 %v15507_v52  ;;  %v15593_v49 = vld [vmem:[%s16761_s25 + $0x26d4] ss:$8 sps:$4 sm:$0xff]   ;;  %v15588_v52 = vld [vmem:[%s16761_s25 + $0xed0] ss:$8 sps:$4 sm:$0xff]  }
 0x3c2   : > { %10748 = vmatpush1.bf16.msra.mxu1 %v15502_v30  ;;  %v15591_v30 = vld [vmem:[%s16761_s25 + $0x26d0] ss:$8 sps:$4 sm:$0xff]  }
 0x3c3   : > { %11732 = vmatpush1.bf16.msra.mxu0 %v15505_v53  ;;  %10758 = vmatprep.subr.bf16.mxu1 %v15511_v54  ;;  %v15596_v53 = vld [vmem:[%s16761_s25 + $0xee4] ss:$8 sps:$4 sm:$0xff]  }
 0x3c4   : > { %11742 = vmatprep.subr.bf16.mxu0 %v15515_v55  ;;  %v15599_v54 = vld [vmem:[%s16761_s25 + $0x26e4] ss:$8 sps:$4 sm:$0xff]   ;;  %v15594_v55 = vld [vmem:[%s16761_s25 + $0xee0] ss:$8 sps:$4 sm:$0xff]  }
 0x3c5   : > { %10750 = vmatmul.mubr.bf16.vlgmr.msra.gmra.mrb[0].mxu1 %v17835_v51  ;;  %v15522_v51 = vld [vmem:[%s16761_s25 + $0xe20] ss:$8 sps:$4 sm:$0xff]  }
 0x3c6   : > { %11734 = vmatmul.mubr.bf16.vlgmr.msra.gmra.mrb[0].mxu0 %v17838_v17  ;;  %10759 = vmatpush1.bf16.msra.mxu1 %v15509_v42  ;;  %v15525_v17 = vld [vmem:[%s16761_s25 + $0x2620] ss:$8 sps:$4 sm:$0xff]  }
 0x3c7   : > { %11743 = vmatpush1.bf16.msra.mxu0 %v15513_v41  ;;  %10760 = vmatprep.subr.bf16.mxu1 %v15518_v44  ;;  %v15597_v42 = vld [vmem:[%s16761_s25 + $0x26e0] ss:$8 sps:$4 sm:$0xff]   ;;  %v15602_v41 = vld [vmem:[%s16761_s25 + $0xef4] ss:$8 sps:$4 sm:$0xff]  }
 0x3c8   : > { %11744 = vmatprep.subr.bf16.mxu0 %v15521_v43  ;;  %10790 = vmatprep.mubr.bf16.mxu1 %v1964_v60  ;;  %v15605_v44 = vld [vmem:[%s16761_s25 + $0x26f4] ss:$8 sps:$4 sm:$0xff]   ;;  %v1949_v43 = vcombine.high %v17907_v2, %v17907_v2  ;;  %v2153_v60 = vcombine.high %v17910_v16, %v17910_v16  ;;  %v15606_v2 = vld [vmem:[%s16761_s25 + $0xf00] ss:$8 sps:$4 sm:$0xff]  }
 0x3c9   : > { %11774 = vmatprep.mubr.bf16.mxu0 %v2168_v61  ;;  %v15600_v61 = vld [vmem:[%s16761_s25 + $0xef0] ss:$8 sps:$4 sm:$0xff]   ;;  %v15609_v16 = vld [vmem:[%s16761_s25 + $0x2700] ss:$8 sps:$4 sm:$0xff]  }
 0x3ca   : > { %10761 = vmatpush1.bf16.msra.mxu1 %v15516_v62  ;;  %v15603_v62 = vld [vmem:[%s16761_s25 + $0x26f0] ss:$8 sps:$4 sm:$0xff]  }
 0x3cb   : > { %11745 = vmatpush1.bf16.msra.mxu0 %v15519_v63  ;;  %10762 = vmatprep.subr.bf16.mxu1 %v15524_v0  ;;  %v15608_v63 = vld [vmem:[%s16761_s25 + $0xf04] ss:$8 sps:$4 sm:$0xff]  }
 0x3cc   : > { %11746 = vmatprep.subr.bf16.mxu0 %v15527_v1  ;;  %v15611_v0 = vld [vmem:[%s16761_s25 + $0x2704] ss:$8 sps:$4 sm:$0xff]   ;;  %v17999_v1 = vrot.slane %v1949_v43, %v16824_v50  ;;  %v15687_v43 = vld [vmem:[%s16761_s25 + $0x27d0] ss:$8 sps:$4 sm:$0xff]  }
 0x3ce   : > { %10763 = vmatpush1.bf16.msra.mxu1 %v15522_v51  ;;  %v18002_v51 = vrot.slane %v2153_v60, %v16824_v50  ;;  %v15692_v60 = vld [vmem:[%s16761_s25 + $0xfe4] ss:$8 sps:$4 sm:$0xff]  }
 0x3cf   : > { %11747 = vmatpush1.bf16.msra.mxu0 %v15525_v17  ;;  %10764 = vmatprep.subr.bf16.mxu1 %v15530_v37  ;;  %v15614_v17 = vld [vmem:[%s16761_s25 + $0xf14] ss:$8 sps:$4 sm:$0xff]  }
 0x3d0   : > { %11748 = vmatprep.subr.bf16.mxu0 %v15533_v3  ;;  %v15617_v37 = vld [vmem:[%s16761_s25 + $0x2714] ss:$8 sps:$4 sm:$0xff]   ;;  %v1965_v3 = vcombine.high %v17999_v1, %v17999_v1 }
 0x3d2   : > { %10765 = vmatpush1.bf16.msra.mxu1 %v15528_v4  ;;  %v2169_v4 = vcombine.high %v18002_v51, %v18002_v51 }
 0x3d3   : > { %11749 = vmatpush1.bf16.msra.mxu0 %v15531_v5  ;;  %10766 = vmatprep.subr.bf16.mxu1 %v15536_v6  ;;  %v15612_v5 = vld [vmem:[%s16761_s25 + $0xf10] ss:$8 sps:$4 sm:$0xff]  }
 0x3d4   : > { %11750 = vmatprep.subr.bf16.mxu0 %v15539_v9  ;;  %v15615_v6 = vld [vmem:[%s16761_s25 + $0x2710] ss:$8 sps:$4 sm:$0xff]   ;;  %v15620_v9 = vld [vmem:[%s16761_s25 + $0xf24] ss:$8 sps:$4 sm:$0xff]  }
 0x3d6   : > { %10767 = vmatpush1.bf16.msra.mxu1 %v15534_v57  ;;  %v15623_v57 = vld [vmem:[%s16761_s25 + $0x2724] ss:$8 sps:$4 sm:$0xff]  }
 0x3d7   : > { %11751 = vmatpush1.bf16.msra.mxu0 %v15537_v58  ;;  %10768 = vmatprep.subr.bf16.mxu1 %v15542_v10  ;;  %v15626_v58 = vld [vmem:[%s16761_s25 + $0xf34] ss:$8 sps:$4 sm:$0xff]  }
 0x3d8   : > { %11752 = vmatprep.subr.bf16.mxu0 %v15545_v11  ;;  %v15629_v10 = vld [vmem:[%s16761_s25 + $0x2734] ss:$8 sps:$4 sm:$0xff]   ;;  %v15624_v11 = vld [vmem:[%s16761_s25 + $0xf30] ss:$8 sps:$4 sm:$0xff]  }
 0x3da   : > { %10769 = vmatpush1.bf16.msra.mxu1 %v15540_v12  ;;  %v15627_v12 = vld [vmem:[%s16761_s25 + $0x2730] ss:$8 sps:$4 sm:$0xff]  }
 0x3db   : > { %11753 = vmatpush1.bf16.msra.mxu0 %v15543_v13  ;;  %10770 = vmatprep.subr.bf16.mxu1 %v15548_v14  ;;  %v15632_v13 = vld [vmem:[%s16761_s25 + $0xf44] ss:$8 sps:$4 sm:$0xff]  }
 0x3dc   : > { %11754 = vmatprep.subr.bf16.mxu0 %v15551_v15  ;;  %v15635_v14 = vld [vmem:[%s16761_s25 + $0x2744] ss:$8 sps:$4 sm:$0xff]   ;;  %v15630_v15 = vld [vmem:[%s16761_s25 + $0xf40] ss:$8 sps:$4 sm:$0xff]  }
 0x3de   : > { %10771 = vmatpush1.bf16.msra.mxu1 %v15546_v27  ;;  %v15633_v27 = vld [vmem:[%s16761_s25 + $0x2740] ss:$8 sps:$4 sm:$0xff]  }
 0x3df   : > { %11755 = vmatpush1.bf16.msra.mxu0 %v15549_v19  ;;  %10772 = vmatprep.subr.bf16.mxu1 %v15554_v20  ;;  %v15638_v19 = vld [vmem:[%s16761_s25 + $0xf54] ss:$8 sps:$4 sm:$0xff]  }
 0x3e0   : > { %11756 = vmatprep.subr.bf16.mxu0 %v15557_v21  ;;  %v15641_v20 = vld [vmem:[%s16761_s25 + $0x2754] ss:$8 sps:$4 sm:$0xff]   ;;  %v15636_v21 = vld [vmem:[%s16761_s25 + $0xf50] ss:$8 sps:$4 sm:$0xff]  }
 0x3e2   : > { %10773 = vmatpush1.bf16.msra.mxu1 %v15552_v22  ;;  %v15639_v22 = vld [vmem:[%s16761_s25 + $0x2750] ss:$8 sps:$4 sm:$0xff]  }
 0x3e3   : > { %11757 = vmatpush1.bf16.msra.mxu0 %v15555_v25  ;;  %10774 = vmatprep.subr.bf16.mxu1 %v15560_v7  ;;  %v15644_v25 = vld [vmem:[%s16761_s25 + $0xf64] ss:$8 sps:$4 sm:$0xff]  }
 0x3e4   : > { %11758 = vmatprep.subr.bf16.mxu0 %v15563_v8  ;;  %v15647_v7 = vld [vmem:[%s16761_s25 + $0x2764] ss:$8 sps:$4 sm:$0xff]   ;;  %v15642_v8 = vld [vmem:[%s16761_s25 + $0xf60] ss:$8 sps:$4 sm:$0xff]  }
 0x3e6   : > { %10775 = vmatpush1.bf16.msra.mxu1 %v15558_v26  ;;  %v15645_v26 = vld [vmem:[%s16761_s25 + $0x2760] ss:$8 sps:$4 sm:$0xff]  }
 0x3e7   : > { %11759 = vmatpush1.bf16.msra.mxu0 %v15561_v28  ;;  %10776 = vmatprep.subr.bf16.mxu1 %v15566_v31  ;;  %v15650_v28 = vld [vmem:[%s16761_s25 + $0xf74] ss:$8 sps:$4 sm:$0xff]  }
 0x3e8   : > { %11760 = vmatprep.subr.bf16.mxu0 %v15569_v32  ;;  %v15653_v31 = vld [vmem:[%s16761_s25 + $0x2774] ss:$8 sps:$4 sm:$0xff]   ;;  %v15648_v32 = vld [vmem:[%s16761_s25 + $0xf70] ss:$8 sps:$4 sm:$0xff]  }
 0x3ea   : > { %10777 = vmatpush1.bf16.msra.mxu1 %v15564_v33  ;;  %v15651_v33 = vld [vmem:[%s16761_s25 + $0x2770] ss:$8 sps:$4 sm:$0xff]  }
 0x3eb   : > { %11761 = vmatpush1.bf16.msra.mxu0 %v15567_v35  ;;  %10778 = vmatprep.subr.bf16.mxu1 %v15572_v18  ;;  %v15656_v35 = vld [vmem:[%s16761_s25 + $0xf84] ss:$8 sps:$4 sm:$0xff]  }
 0x3ec   : > { %11762 = vmatprep.subr.bf16.mxu0 %v15575_v36  ;;  %v15659_v18 = vld [vmem:[%s16761_s25 + $0x2784] ss:$8 sps:$4 sm:$0xff]   ;;  %v15654_v36 = vld [vmem:[%s16761_s25 + $0xf80] ss:$8 sps:$4 sm:$0xff]  }
 0x3ee   : > { %10779 = vmatpush1.bf16.msra.mxu1 %v15570_v38  ;;  %v15657_v38 = vld [vmem:[%s16761_s25 + $0x2780] ss:$8 sps:$4 sm:$0xff]  }
 0x3ef   : > { %11763 = vmatpush1.bf16.msra.mxu0 %v15573_v39  ;;  %10780 = vmatprep.subr.bf16.mxu1 %v15578_v40  ;;  %v15662_v39 = vld [vmem:[%s16761_s25 + $0xf94] ss:$8 sps:$4 sm:$0xff]  }
 0x3f0   : > { %11764 = vmatprep.subr.bf16.mxu0 %v15581_v45  ;;  %v15665_v40 = vld [vmem:[%s16761_s25 + $0x2794] ss:$8 sps:$4 sm:$0xff]   ;;  %v15660_v45 = vld [vmem:[%s16761_s25 + $0xf90] ss:$8 sps:$4 sm:$0xff]  }
 0x3f2   : > { %10781 = vmatpush1.bf16.msra.mxu1 %v15576_v23  ;;  %v15663_v23 = vld [vmem:[%s16761_s25 + $0x2790] ss:$8 sps:$4 sm:$0xff]  }
 0x3f3   : > { %11765 = vmatpush1.bf16.msra.mxu0 %v15579_v24  ;;  %10782 = vmatprep.subr.bf16.mxu1 %v15584_v29  ;;  %v15668_v24 = vld [vmem:[%s16761_s25 + $0xfa4] ss:$8 sps:$4 sm:$0xff]  }
 0x3f4   : > { %11766 = vmatprep.subr.bf16.mxu0 %v15587_v34  ;;  %v15671_v29 = vld [vmem:[%s16761_s25 + $0x27a4] ss:$8 sps:$4 sm:$0xff]   ;;  %v15666_v34 = vld [vmem:[%s16761_s25 + $0xfa0] ss:$8 sps:$4 sm:$0xff]  }
 0x3f6   : > { %10783 = vmatpush1.bf16.msra.mxu1 %v15582_v46  ;;  %v15669_v46 = vld [vmem:[%s16761_s25 + $0x27a0] ss:$8 sps:$4 sm:$0xff]  }
 0x3f7   : > { %11767 = vmatpush1.bf16.msra.mxu0 %v15585_v47  ;;  %10784 = vmatprep.subr.bf16.mxu1 %v15590_v48  ;;  %v15674_v47 = vld [vmem:[%s16761_s25 + $0xfb4] ss:$8 sps:$4 sm:$0xff]  }
 0x3f8   : > { %11768 = vmatprep.subr.bf16.mxu0 %v15593_v49  ;;  %v15677_v48 = vld [vmem:[%s16761_s25 + $0x27b4] ss:$8 sps:$4 sm:$0xff]   ;;  %v15672_v49 = vld [vmem:[%s16761_s25 + $0xfb0] ss:$8 sps:$4 sm:$0xff]  }
 0x3fa   : > { %10785 = vmatpush1.bf16.msra.mxu1 %v15588_v52  ;;  %v15675_v52 = vld [vmem:[%s16761_s25 + $0x27b0] ss:$8 sps:$4 sm:$0xff]  }
 0x3fb   : > { %11769 = vmatpush1.bf16.msra.mxu0 %v15591_v30  ;;  %10786 = vmatprep.subr.bf16.mxu1 %v15596_v53  ;;  %v15680_v30 = vld [vmem:[%s16761_s25 + $0xfc4] ss:$8 sps:$4 sm:$0xff]  }
 0x3fc   : > { %11770 = vmatprep.subr.bf16.mxu0 %v15599_v54  ;;  %v15683_v53 = vld [vmem:[%s16761_s25 + $0x27c4] ss:$8 sps:$4 sm:$0xff]   ;;  %v15678_v54 = vld [vmem:[%s16761_s25 + $0xfc0] ss:$8 sps:$4 sm:$0xff]  }
 0x3fe   : > { %10787 = vmatpush1.bf16.msra.mxu1 %v15594_v55  ;;  %v15681_v55 = vld [vmem:[%s16761_s25 + $0x27c0] ss:$8 sps:$4 sm:$0xff]  }
 0x3ff   : > { %11771 = vmatpush1.bf16.msra.mxu0 %v15597_v42  ;;  %10788 = vmatprep.subr.bf16.mxu1 %v15602_v41  ;;  %v15686_v42 = vld [vmem:[%s16761_s25 + $0xfd4] ss:$8 sps:$4 sm:$0xff]  }
 0x400   : > { %11772 = vmatprep.subr.bf16.mxu0 %v15605_v44  ;;  %v15689_v41 = vld [vmem:[%s16761_s25 + $0x27d4] ss:$8 sps:$4 sm:$0xff]   ;;  %v15684_v44 = vld [vmem:[%s16761_s25 + $0xfd0] ss:$8 sps:$4 sm:$0xff]  }
 0x402   : > { %10789 = vmatpush1.bf16.msra.mxu1 %v15600_v61  ;;  %v15695_v61 = vld [vmem:[%s16761_s25 + $0x27e4] ss:$8 sps:$4 sm:$0xff]  }
 0x403   : > { %11773 = vmatpush1.bf16.msra.mxu0 %v15603_v62  ;;  %10799 = vmatprep.subr.bf16.mxu1 %v15608_v63  ;;  %v15690_v62 = vld [vmem:[%s16761_s25 + $0xfe0] ss:$8 sps:$4 sm:$0xff]  }
 0x404   : > { %11783 = vmatprep.subr.bf16.mxu0 %v15611_v0  ;;  %v15693_v63 = vld [vmem:[%s16761_s25 + $0x27e0] ss:$8 sps:$4 sm:$0xff]   ;;  %v15698_v0 = vld [vmem:[%s16761_s25 + $0xff4] ss:$8 sps:$4 sm:$0xff]  }
 0x405   : > { %10791 = vmatmul.mubr.bf16.vlgmr.msra.gmra.mrb[0].mxu1 %v17918_v56  ;;  %v15618_v56 = vld [vmem:[%s16761_s25 + $0xf20] ss:$8 sps:$4 sm:$0xff]  }
 0x406   : > { %11775 = vmatmul.mubr.bf16.vlgmr.msra.gmra.mrb[0].mxu0 %v17922_v59  ;;  %10800 = vmatpush1.bf16.msra.mxu1 %v15606_v2  ;;  %v15621_v59 = vld [vmem:[%s16761_s25 + $0x2720] ss:$8 sps:$4 sm:$0xff]   ;;  %v15701_v2 = vld [vmem:[%s16761_s25 + $0x27f4] ss:$8 sps:$4 sm:$0xff]  }
 0x407   : > { %11784 = vmatpush1.bf16.msra.mxu0 %v15609_v16  ;;  %10801 = vmatprep.subr.bf16.mxu1 %v15614_v17  ;;  %v18071_v16 = vld [vmem:[%s16777_s23 + $0x40] sm:$0xff] }
 0x408   : > { %11785 = vmatprep.subr.bf16.mxu0 %v15617_v37  ;;  %10831 = vmatprep.mubr.bf16.mxu1 %v1965_v3  ;;  %v18074_v17 = vld [vmem:[%s16777_s23 + $0xa0] sm:$0xff] }
 0x409   : > { %11815 = vmatprep.mubr.bf16.mxu0 %v2169_v4  ;;  %v15696_v37 = vld [vmem:[%s16761_s25 + $0xff0] ss:$8 sps:$4 sm:$0xff]   ;;  %v15705_v4 = vld [vmem:[%s16761_s25 + $0x1004] ss:$8 sps:$4 sm:$0xff]  }
 0x40a   : > { %10802 = vmatpush1.bf16.msra.mxu1 %v15612_v5  ;;  %v15699_v3 = vld [vmem:[%s16761_s25 + $0x27f0] ss:$8 sps:$4 sm:$0xff]   ;;  %v15709_v5 = vld [vmem:[%s16761_s25 + $0x2804] ss:$8 sps:$4 sm:$0xff]  }
 0x40b   : > { %11786 = vmatpush1.bf16.msra.mxu0 %v15615_v6  ;;  %10803 = vmatprep.subr.bf16.mxu1 %v15620_v9  ;;  %v18082_v6 = vrot.slane %v18071_v16, %v16824_v50  ;;  %v18086_v9 = vrot.slane %v18074_v17, %v16824_v50 }
 0x40c   : > { %11787 = vmatprep.subr.bf16.mxu0 %v15623_v57  ;;  %v15703_v57 = vld [vmem:[%s16761_s25 + $0x1000] ss:$8 sps:$4 sm:$0xff]  }
 0x40e   : > { %10804 = vmatpush1.bf16.msra.mxu1 %v15618_v56  ;;  %v15707_v56 = vld [vmem:[%s16761_s25 + $0x2800] ss:$8 sps:$4 sm:$0xff]  }
 0x40f   : > { %11788 = vmatpush1.bf16.msra.mxu0 %v15621_v59  ;;  %10805 = vmatprep.subr.bf16.mxu1 %v15626_v58  ;;  %v15712_v59 = vld [vmem:[%s16761_s25 + $0x1014] ss:$8 sps:$4 sm:$0xff]  }
 0x410   : > { %11789 = vmatprep.subr.bf16.mxu0 %v15629_v10  ;;  %v15715_v58 = vld [vmem:[%s16761_s25 + $0x2814] ss:$8 sps:$4 sm:$0xff]   ;;  %v1981_v10 = vcombine.high %v18082_v6, %v18082_v6 }
 0x412   : > { %10806 = vmatpush1.bf16.msra.mxu1 %v15624_v11  ;;  %v2185_v11 = vcombine.high %v18086_v9, %v18086_v9 }
 0x413   : > { %11790 = vmatpush1.bf16.msra.mxu0 %v15627_v12  ;;  %10807 = vmatprep.subr.bf16.mxu1 %v15632_v13  ;;  %v15710_v12 = vld [vmem:[%s16761_s25 + $0x1010] ss:$8 sps:$4 sm:$0xff]  }
 0x414   : > { %11791 = vmatprep.subr.bf16.mxu0 %v15635_v14  ;;  %v15713_v13 = vld [vmem:[%s16761_s25 + $0x2810] ss:$8 sps:$4 sm:$0xff]   ;;  %v15718_v14 = vld [vmem:[%s16761_s25 + $0x1024] ss:$8 sps:$4 sm:$0xff]  }
 0x416   : > { %10808 = vmatpush1.bf16.msra.mxu1 %v15630_v15  ;;  %v15721_v15 = vld [vmem:[%s16761_s25 + $0x2824] ss:$8 sps:$4 sm:$0xff]  }
 0x417   : > { %11792 = vmatpush1.bf16.msra.mxu0 %v15633_v27  ;;  %10809 = vmatprep.subr.bf16.mxu1 %v15638_v19  ;;  %v15724_v27 = vld [vmem:[%s16761_s25 + $0x1034] ss:$8 sps:$4 sm:$0xff]  }
 0x418   : > { %11793 = vmatprep.subr.bf16.mxu0 %v15641_v20  ;;  %v15727_v19 = vld [vmem:[%s16761_s25 + $0x2834] ss:$8 sps:$4 sm:$0xff]   ;;  %v15722_v20 = vld [vmem:[%s16761_s25 + $0x1030] ss:$8 sps:$4 sm:$0xff]  }
 0x41a   : > { %10810 = vmatpush1.bf16.msra.mxu1 %v15636_v21  ;;  %v15725_v21 = vld [vmem:[%s16761_s25 + $0x2830] ss:$8 sps:$4 sm:$0xff]  }
 0x41b   : > { %11794 = vmatpush1.bf16.msra.mxu0 %v15639_v22  ;;  %10811 = vmatprep.subr.bf16.mxu1 %v15644_v25  ;;  %v15730_v22 = vld [vmem:[%s16761_s25 + $0x1044] ss:$8 sps:$4 sm:$0xff]  }
 0x41c   : > { %11795 = vmatprep.subr.bf16.mxu0 %v15647_v7  ;;  %v15733_v25 = vld [vmem:[%s16761_s25 + $0x2844] ss:$8 sps:$4 sm:$0xff]   ;;  %v15728_v7 = vld [vmem:[%s16761_s25 + $0x1040] ss:$8 sps:$4 sm:$0xff]  }
 0x41e   : > { %10812 = vmatpush1.bf16.msra.mxu1 %v15642_v8  ;;  %v15731_v8 = vld [vmem:[%s16761_s25 + $0x2840] ss:$8 sps:$4 sm:$0xff]  }
 0x41f   : > { %11796 = vmatpush1.bf16.msra.mxu0 %v15645_v26  ;;  %10813 = vmatprep.subr.bf16.mxu1 %v15650_v28  ;;  %v15736_v26 = vld [vmem:[%s16761_s25 + $0x1054] ss:$8 sps:$4 sm:$0xff]  }
 0x420   : > { %11797 = vmatprep.subr.bf16.mxu0 %v15653_v31  ;;  %v15739_v28 = vld [vmem:[%s16761_s25 + $0x2854] ss:$8 sps:$4 sm:$0xff]   ;;  %v15734_v31 = vld [vmem:[%s16761_s25 + $0x1050] ss:$8 sps:$4 sm:$0xff]  }
 0x422   : > { %10814 = vmatpush1.bf16.msra.mxu1 %v15648_v32  ;;  %v15737_v32 = vld [vmem:[%s16761_s25 + $0x2850] ss:$8 sps:$4 sm:$0xff]  }
 0x423   : > { %11798 = vmatpush1.bf16.msra.mxu0 %v15651_v33  ;;  %10815 = vmatprep.subr.bf16.mxu1 %v15656_v35  ;;  %v15742_v33 = vld [vmem:[%s16761_s25 + $0x1064] ss:$8 sps:$4 sm:$0xff]  }
 0x424   : > { %11799 = vmatprep.subr.bf16.mxu0 %v15659_v18  ;;  %v15745_v35 = vld [vmem:[%s16761_s25 + $0x2864] ss:$8 sps:$4 sm:$0xff]   ;;  %v15740_v18 = vld [vmem:[%s16761_s25 + $0x1060] ss:$8 sps:$4 sm:$0xff]  }
 0x426   : > { %10816 = vmatpush1.bf16.msra.mxu1 %v15654_v36  ;;  %v15743_v36 = vld [vmem:[%s16761_s25 + $0x2860] ss:$8 sps:$4 sm:$0xff]  }
 0x427   : > { %11800 = vmatpush1.bf16.msra.mxu0 %v15657_v38  ;;  %10817 = vmatprep.subr.bf16.mxu1 %v15662_v39  ;;  %v15748_v38 = vld [vmem:[%s16761_s25 + $0x1074] ss:$8 sps:$4 sm:$0xff]  }
 0x428   : > { %11801 = vmatprep.subr.bf16.mxu0 %v15665_v40  ;;  %v15751_v39 = vld [vmem:[%s16761_s25 + $0x2874] ss:$8 sps:$4 sm:$0xff]   ;;  %v15746_v40 = vld [vmem:[%s16761_s25 + $0x1070] ss:$8 sps:$4 sm:$0xff]  }
 0x42a   : > { %10818 = vmatpush1.bf16.msra.mxu1 %v15660_v45  ;;  %v15749_v45 = vld [vmem:[%s16761_s25 + $0x2870] ss:$8 sps:$4 sm:$0xff]  }
 0x42b   : > { %11802 = vmatpush1.bf16.msra.mxu0 %v15663_v23  ;;  %10819 = vmatprep.subr.bf16.mxu1 %v15668_v24  ;;  %v15754_v23 = vld [vmem:[%s16761_s25 + $0x1084] ss:$8 sps:$4 sm:$0xff]  }
 0x42c   : > { %11803 = vmatprep.subr.bf16.mxu0 %v15671_v29  ;;  %v15757_v24 = vld [vmem:[%s16761_s25 + $0x2884] ss:$8 sps:$4 sm:$0xff]   ;;  %v15752_v29 = vld [vmem:[%s16761_s25 + $0x1080] ss:$8 sps:$4 sm:$0xff]  }
 0x42e   : > { %10820 = vmatpush1.bf16.msra.mxu1 %v15666_v34  ;;  %v15755_v34 = vld [vmem:[%s16761_s25 + $0x2880] ss:$8 sps:$4 sm:$0xff]  }
 0x42f   : > { %11804 = vmatpush1.bf16.msra.mxu0 %v15669_v46  ;;  %10821 = vmatprep.subr.bf16.mxu1 %v15674_v47  ;;  %v15760_v46 = vld [vmem:[%s16761_s25 + $0x1094] ss:$8 sps:$4 sm:$0xff]  }
 0x430   : > { %11805 = vmatprep.subr.bf16.mxu0 %v15677_v48  ;;  %v15763_v47 = vld [vmem:[%s16761_s25 + $0x2894] ss:$8 sps:$4 sm:$0xff]   ;;  %v15758_v48 = vld [vmem:[%s16761_s25 + $0x1090] ss:$8 sps:$4 sm:$0xff]  }
 0x432   : > { %10822 = vmatpush1.bf16.msra.mxu1 %v15672_v49  ;;  %v15761_v49 = vld [vmem:[%s16761_s25 + $0x2890] ss:$8 sps:$4 sm:$0xff]  }
 0x433   : > { %11806 = vmatpush1.bf16.msra.mxu0 %v15675_v52  ;;  %10823 = vmatprep.subr.bf16.mxu1 %v15680_v30  ;;  %v15766_v52 = vld [vmem:[%s16761_s25 + $0x10a4] ss:$8 sps:$4 sm:$0xff]  }
 0x434   : > { %11807 = vmatprep.subr.bf16.mxu0 %v15683_v53  ;;  %v15769_v30 = vld [vmem:[%s16761_s25 + $0x28a4] ss:$8 sps:$4 sm:$0xff]   ;;  %v15764_v53 = vld [vmem:[%s16761_s25 + $0x10a0] ss:$8 sps:$4 sm:$0xff]  }
 0x436   : > { %10824 = vmatpush1.bf16.msra.mxu1 %v15678_v54  ;;  %v15767_v54 = vld [vmem:[%s16761_s25 + $0x28a0] ss:$8 sps:$4 sm:$0xff]  }
 0x437   : > { %11808 = vmatpush1.bf16.msra.mxu0 %v15681_v55  ;;  %10825 = vmatprep.subr.bf16.mxu1 %v15686_v42  ;;  %v15772_v55 = vld [vmem:[%s16761_s25 + $0x10b4] ss:$8 sps:$4 sm:$0xff]  }
 0x438   : > { %11809 = vmatprep.subr.bf16.mxu0 %v15689_v41  ;;  %v15775_v42 = vld [vmem:[%s16761_s25 + $0x28b4] ss:$8 sps:$4 sm:$0xff]   ;;  %v15770_v41 = vld [vmem:[%s16761_s25 + $0x10b0] ss:$8 sps:$4 sm:$0xff]  }
 0x43a   : > { %10826 = vmatpush1.bf16.msra.mxu1 %v15684_v44  ;;  %v15773_v44 = vld [vmem:[%s16761_s25 + $0x28b0] ss:$8 sps:$4 sm:$0xff]  }
 0x43b   : > { %11810 = vmatpush1.bf16.msra.mxu0 %v15687_v43  ;;  %10827 = vmatprep.subr.bf16.mxu1 %v15692_v60  ;;  %v15778_v43 = vld [vmem:[%s16761_s25 + $0x10c4] ss:$8 sps:$4 sm:$0xff]  }
 0x43c   : > { %11811 = vmatprep.subr.bf16.mxu0 %v15695_v61  ;;  %v15781_v60 = vld [vmem:[%s16761_s25 + $0x28c4] ss:$8 sps:$4 sm:$0xff]   ;;  %v15776_v61 = vld [vmem:[%s16761_s25 + $0x10c0] ss:$8 sps:$4 sm:$0xff]  }
 0x43e   : > { %10828 = vmatpush1.bf16.msra.mxu1 %v15690_v62  ;;  %v15779_v62 = vld [vmem:[%s16761_s25 + $0x28c0] ss:$8 sps:$4 sm:$0xff]  }
 0x43f   : > { %11812 = vmatpush1.bf16.msra.mxu0 %v15693_v63  ;;  %10829 = vmatprep.subr.bf16.mxu1 %v15698_v0  ;;  %v15784_v63 = vld [vmem:[%s16761_s25 + $0x10d4] ss:$8 sps:$4 sm:$0xff]  }
 0x440   : > { %11813 = vmatprep.subr.bf16.mxu0 %v15701_v2  ;;  %v15787_v0 = vld [vmem:[%s16761_s25 + $0x28d4] ss:$8 sps:$4 sm:$0xff]   ;;  %v15782_v2 = vld [vmem:[%s16761_s25 + $0x10d0] ss:$8 sps:$4 sm:$0xff]  }
 0x442   : > { %10830 = vmatpush1.bf16.msra.mxu1 %v15696_v37  ;;  %v15785_v37 = vld [vmem:[%s16761_s25 + $0x28d0] ss:$8 sps:$4 sm:$0xff]  }
 0x443   : > { %11814 = vmatpush1.bf16.msra.mxu0 %v15699_v3  ;;  %10840 = vmatprep.subr.bf16.mxu1 %v15705_v4  ;;  %v15790_v3 = vld [vmem:[%s16761_s25 + $0x10e4] ss:$8 sps:$4 sm:$0xff]  }
 0x444   : > { %11824 = vmatprep.subr.bf16.mxu0 %v15709_v5  ;;  %v15793_v4 = vld [vmem:[%s16761_s25 + $0x28e4] ss:$8 sps:$4 sm:$0xff]   ;;  %v15788_v5 = vld [vmem:[%s16761_s25 + $0x10e0] ss:$8 sps:$4 sm:$0xff]  }
 0x445   : > { %10832 = vmatmul.mubr.bf16.vlgmr.msra.gmra.mrb[0].mxu1 %v17999_v1  ;;  %v15716_v1 = vld [vmem:[%s16761_s25 + $0x1020] ss:$8 sps:$4 sm:$0xff]  }
 0x446   : > { %11816 = vmatmul.mubr.bf16.vlgmr.msra.gmra.mrb[0].mxu0 %v18002_v51  ;;  %10841 = vmatpush1.bf16.msra.mxu1 %v15703_v57  ;;  %v15719_v51 = vld [vmem:[%s16761_s25 + $0x2820] ss:$8 sps:$4 sm:$0xff]  }
 0x447   : > { %11825 = vmatpush1.bf16.msra.mxu0 %v15707_v56  ;;  %10842 = vmatprep.subr.bf16.mxu1 %v15712_v59  ;;  %v15791_v57 = vld [vmem:[%s16761_s25 + $0x28e0] ss:$8 sps:$4 sm:$0xff]   ;;  %v15796_v56 = vld [vmem:[%s16761_s25 + $0x10f4] ss:$8 sps:$4 sm:$0xff]  }
 0x448   : > { %11826 = vmatprep.subr.bf16.mxu0 %v15715_v58  ;;  %10872 = vmatprep.mubr.bf16.mxu1 %v1981_v10  ;;  %v15799_v59 = vld [vmem:[%s16761_s25 + $0x28f4] ss:$8 sps:$4 sm:$0xff]   ;;  %v1966_v58 = vcombine.high %v18071_v16, %v18071_v16  ;;  %v2170_v10 = vcombine.high %v18074_v17, %v18074_v17  ;;  %v15800_v16 = vld [vmem:[%s16761_s25 + $0x1100] ss:$8 sps:$4 sm:$0xff]  }
 0x449   : > { %11856 = vmatprep.mubr.bf16.mxu0 %v2185_v11  ;;  %v15794_v11 = vld [vmem:[%s16761_s25 + $0x10f0] ss:$8 sps:$4 sm:$0xff]   ;;  %v15803_v17 = vld [vmem:[%s16761_s25 + $0x2900] ss:$8 sps:$4 sm:$0xff]  }
 0x44a   : > { %10843 = vmatpush1.bf16.msra.mxu1 %v15710_v12  ;;  %v15797_v12 = vld [vmem:[%s16761_s25 + $0x28f0] ss:$8 sps:$4 sm:$0xff]  }
 0x44b   : > { %11827 = vmatpush1.bf16.msra.mxu0 %v15713_v13  ;;  %10844 = vmatprep.subr.bf16.mxu1 %v15718_v14  ;;  %v15802_v13 = vld [vmem:[%s16761_s25 + $0x1104] ss:$8 sps:$4 sm:$0xff]  }
 0x44c   : > { %11828 = vmatprep.subr.bf16.mxu0 %v15721_v15  ;;  %v15805_v14 = vld [vmem:[%s16761_s25 + $0x2904] ss:$8 sps:$4 sm:$0xff]   ;;  %v18163_v15 = vrot.slane %v1966_v58, %v16824_v50  ;;  %v15881_v58 = vld [vmem:[%s16761_s25 + $0x29d0] ss:$8 sps:$4 sm:$0xff]  }
 0x44e   : > { %10845 = vmatpush1.bf16.msra.mxu1 %v15716_v1  ;;  %v18166_v1 = vrot.slane %v2170_v10, %v16824_v50  ;;  %v15886_v10 = vld [vmem:[%s16761_s25 + $0x11e4] ss:$8 sps:$4 sm:$0xff]  }
 0x44f   : > { %11829 = vmatpush1.bf16.msra.mxu0 %v15719_v51  ;;  %10846 = vmatprep.subr.bf16.mxu1 %v15724_v27  ;;  %v15808_v51 = vld [vmem:[%s16761_s25 + $0x1114] ss:$8 sps:$4 sm:$0xff]  }
 0x450   : > { %11830 = vmatprep.subr.bf16.mxu0 %v15727_v19  ;;  %v15811_v27 = vld [vmem:[%s16761_s25 + $0x2914] ss:$8 sps:$4 sm:$0xff]   ;;  %v1982_v19 = vcombine.high %v18163_v15, %v18163_v15 }
 0x452   : > { %10847 = vmatpush1.bf16.msra.mxu1 %v15722_v20  ;;  %v2186_v20 = vcombine.high %v18166_v1, %v18166_v1 }
 0x453   : > { %11831 = vmatpush1.bf16.msra.mxu0 %v15725_v21  ;;  %10848 = vmatprep.subr.bf16.mxu1 %v15730_v22  ;;  %v15806_v21 = vld [vmem:[%s16761_s25 + $0x1110] ss:$8 sps:$4 sm:$0xff]  }
 0x454   : > { %11832 = vmatprep.subr.bf16.mxu0 %v15733_v25  ;;  %v15809_v22 = vld [vmem:[%s16761_s25 + $0x2910] ss:$8 sps:$4 sm:$0xff]   ;;  %v15814_v25 = vld [vmem:[%s16761_s25 + $0x1124] ss:$8 sps:$4 sm:$0xff]  }
 0x456   : > { %10849 = vmatpush1.bf16.msra.mxu1 %v15728_v7  ;;  %v15817_v7 = vld [vmem:[%s16761_s25 + $0x2924] ss:$8 sps:$4 sm:$0xff]  }
 0x457   : > { %11833 = vmatpush1.bf16.msra.mxu0 %v15731_v8  ;;  %10850 = vmatprep.subr.bf16.mxu1 %v15736_v26  ;;  %v15820_v8 = vld [vmem:[%s16761_s25 + $0x1134] ss:$8 sps:$4 sm:$0xff]  }
 0x458   : > { %11834 = vmatprep.subr.bf16.mxu0 %v15739_v28  ;;  %v15823_v26 = vld [vmem:[%s16761_s25 + $0x2934] ss:$8 sps:$4 sm:$0xff]   ;;  %v15818_v28 = vld [vmem:[%s16761_s25 + $0x1130] ss:$8 sps:$4 sm:$0xff]  }
 0x45a   : > { %10851 = vmatpush1.bf16.msra.mxu1 %v15734_v31  ;;  %v15821_v31 = vld [vmem:[%s16761_s25 + $0x2930] ss:$8 sps:$4 sm:$0xff]  }
 0x45b   : > { %11835 = vmatpush1.bf16.msra.mxu0 %v15737_v32  ;;  %10852 = vmatprep.subr.bf16.mxu1 %v15742_v33  ;;  %v15826_v32 = vld [vmem:[%s16761_s25 + $0x1144] ss:$8 sps:$4 sm:$0xff]  }
 0x45c   : > { %11836 = vmatprep.subr.bf16.mxu0 %v15745_v35  ;;  %v15829_v33 = vld [vmem:[%s16761_s25 + $0x2944] ss:$8 sps:$4 sm:$0xff]   ;;  %v15824_v35 = vld [vmem:[%s16761_s25 + $0x1140] ss:$8 sps:$4 sm:$0xff]  }
 0x45e   : > { %10853 = vmatpush1.bf16.msra.mxu1 %v15740_v18  ;;  %v15827_v18 = vld [vmem:[%s16761_s25 + $0x2940] ss:$8 sps:$4 sm:$0xff]  }
 0x45f   : > { %11837 = vmatpush1.bf16.msra.mxu0 %v15743_v36  ;;  %10854 = vmatprep.subr.bf16.mxu1 %v15748_v38  ;;  %v15832_v36 = vld [vmem:[%s16761_s25 + $0x1154] ss:$8 sps:$4 sm:$0xff]  }
 0x460   : > { %11838 = vmatprep.subr.bf16.mxu0 %v15751_v39  ;;  %v15835_v38 = vld [vmem:[%s16761_s25 + $0x2954] ss:$8 sps:$4 sm:$0xff]   ;;  %v15830_v39 = vld [vmem:[%s16761_s25 + $0x1150] ss:$8 sps:$4 sm:$0xff]  }
 0x462   : > { %10855 = vmatpush1.bf16.msra.mxu1 %v15746_v40  ;;  %v15833_v40 = vld [vmem:[%s16761_s25 + $0x2950] ss:$8 sps:$4 sm:$0xff]  }
 0x463   : > { %11839 = vmatpush1.bf16.msra.mxu0 %v15749_v45  ;;  %10856 = vmatprep.subr.bf16.mxu1 %v15754_v23  ;;  %v15838_v45 = vld [vmem:[%s16761_s25 + $0x1164] ss:$8 sps:$4 sm:$0xff]  }
 0x464   : > { %11840 = vmatprep.subr.bf16.mxu0 %v15757_v24  ;;  %v15841_v23 = vld [vmem:[%s16761_s25 + $0x2964] ss:$8 sps:$4 sm:$0xff]   ;;  %v15836_v24 = vld [vmem:[%s16761_s25 + $0x1160] ss:$8 sps:$4 sm:$0xff]  }
 0x466   : > { %10857 = vmatpush1.bf16.msra.mxu1 %v15752_v29  ;;  %v15839_v29 = vld [vmem:[%s16761_s25 + $0x2960] ss:$8 sps:$4 sm:$0xff]  }
 0x467   : > { %11841 = vmatpush1.bf16.msra.mxu0 %v15755_v34  ;;  %10858 = vmatprep.subr.bf16.mxu1 %v15760_v46  ;;  %v15844_v34 = vld [vmem:[%s16761_s25 + $0x1174] ss:$8 sps:$4 sm:$0xff]  }
 0x468   : > { %11842 = vmatprep.subr.bf16.mxu0 %v15763_v47  ;;  %v15847_v46 = vld [vmem:[%s16761_s25 + $0x2974] ss:$8 sps:$4 sm:$0xff]   ;;  %v15842_v47 = vld [vmem:[%s16761_s25 + $0x1170] ss:$8 sps:$4 sm:$0xff]  }
 0x46a   : > { %10859 = vmatpush1.bf16.msra.mxu1 %v15758_v48  ;;  %v15845_v48 = vld [vmem:[%s16761_s25 + $0x2970] ss:$8 sps:$4 sm:$0xff]  }
 0x46b   : > { %11843 = vmatpush1.bf16.msra.mxu0 %v15761_v49  ;;  %10860 = vmatprep.subr.bf16.mxu1 %v15766_v52  ;;  %v15850_v49 = vld [vmem:[%s16761_s25 + $0x1184] ss:$8 sps:$4 sm:$0xff]  }
 0x46c   : > { %11844 = vmatprep.subr.bf16.mxu0 %v15769_v30  ;;  %v15853_v52 = vld [vmem:[%s16761_s25 + $0x2984] ss:$8 sps:$4 sm:$0xff]   ;;  %v15848_v30 = vld [vmem:[%s16761_s25 + $0x1180] ss:$8 sps:$4 sm:$0xff]  }
 0x46e   : > { %10861 = vmatpush1.bf16.msra.mxu1 %v15764_v53  ;;  %v15851_v53 = vld [vmem:[%s16761_s25 + $0x2980] ss:$8 sps:$4 sm:$0xff]  }
 0x46f   : > { %11845 = vmatpush1.bf16.msra.mxu0 %v15767_v54  ;;  %10862 = vmatprep.subr.bf16.mxu1 %v15772_v55  ;;  %v15856_v54 = vld [vmem:[%s16761_s25 + $0x1194] ss:$8 sps:$4 sm:$0xff]  }
 0x470   : > { %11846 = vmatprep.subr.bf16.mxu0 %v15775_v42  ;;  %v15859_v55 = vld [vmem:[%s16761_s25 + $0x2994] ss:$8 sps:$4 sm:$0xff]   ;;  %v15854_v42 = vld [vmem:[%s16761_s25 + $0x1190] ss:$8 sps:$4 sm:$0xff]  }
 0x472   : > { %10863 = vmatpush1.bf16.msra.mxu1 %v15770_v41  ;;  %v15857_v41 = vld [vmem:[%s16761_s25 + $0x2990] ss:$8 sps:$4 sm:$0xff]  }
 0x473   : > { %11847 = vmatpush1.bf16.msra.mxu0 %v15773_v44  ;;  %10864 = vmatprep.subr.bf16.mxu1 %v15778_v43  ;;  %v15862_v44 = vld [vmem:[%s16761_s25 + $0x11a4] ss:$8 sps:$4 sm:$0xff]  }
 0x474   : > { %11848 = vmatprep.subr.bf16.mxu0 %v15781_v60  ;;  %v15865_v43 = vld [vmem:[%s16761_s25 + $0x29a4] ss:$8 sps:$4 sm:$0xff]   ;;  %v15860_v60 = vld [vmem:[%s16761_s25 + $0x11a0] ss:$8 sps:$4 sm:$0xff]  }
 0x476   : > { %10865 = vmatpush1.bf16.msra.mxu1 %v15776_v61  ;;  %v15863_v61 = vld [vmem:[%s16761_s25 + $0x29a0] ss:$8 sps:$4 sm:$0xff]  }
 0x477   : > { %11849 = vmatpush1.bf16.msra.mxu0 %v15779_v62  ;;  %10866 = vmatprep.subr.bf16.mxu1 %v15784_v63  ;;  %v15868_v62 = vld [vmem:[%s16761_s25 + $0x11b4] ss:$8 sps:$4 sm:$0xff]  }
 0x478   : > { %11850 = vmatprep.subr.bf16.mxu0 %v15787_v0  ;;  %v15871_v63 = vld [vmem:[%s16761_s25 + $0x29b4] ss:$8 sps:$4 sm:$0xff]   ;;  %v15866_v0 = vld [vmem:[%s16761_s25 + $0x11b0] ss:$8 sps:$4 sm:$0xff]  }
 0x47a   : > { %10867 = vmatpush1.bf16.msra.mxu1 %v15782_v2  ;;  %v15869_v2 = vld [vmem:[%s16761_s25 + $0x29b0] ss:$8 sps:$4 sm:$0xff]  }
 0x47b   : > { %11851 = vmatpush1.bf16.msra.mxu0 %v15785_v37  ;;  %10868 = vmatprep.subr.bf16.mxu1 %v15790_v3  ;;  %v15874_v37 = vld [vmem:[%s16761_s25 + $0x11c4] ss:$8 sps:$4 sm:$0xff]  }
 0x47c   : > { %11852 = vmatprep.subr.bf16.mxu0 %v15793_v4  ;;  %v15877_v3 = vld [vmem:[%s16761_s25 + $0x29c4] ss:$8 sps:$4 sm:$0xff]   ;;  %v15872_v4 = vld [vmem:[%s16761_s25 + $0x11c0] ss:$8 sps:$4 sm:$0xff]  }
 0x47e   : > { %10869 = vmatpush1.bf16.msra.mxu1 %v15788_v5  ;;  %v15875_v5 = vld [vmem:[%s16761_s25 + $0x29c0] ss:$8 sps:$4 sm:$0xff]  }
 0x47f   : > { %11853 = vmatpush1.bf16.msra.mxu0 %v15791_v57  ;;  %10870 = vmatprep.subr.bf16.mxu1 %v15796_v56  ;;  %v15880_v57 = vld [vmem:[%s16761_s25 + $0x11d4] ss:$8 sps:$4 sm:$0xff]  }
 0x480   : > { %11854 = vmatprep.subr.bf16.mxu0 %v15799_v59  ;;  %v15883_v56 = vld [vmem:[%s16761_s25 + $0x29d4] ss:$8 sps:$4 sm:$0xff]   ;;  %v15878_v59 = vld [vmem:[%s16761_s25 + $0x11d0] ss:$8 sps:$4 sm:$0xff]  }
 0x482   : > { %10871 = vmatpush1.bf16.msra.mxu1 %v15794_v11  ;;  %v15889_v11 = vld [vmem:[%s16761_s25 + $0x29e4] ss:$8 sps:$4 sm:$0xff]  }
 0x483   : > { %11855 = vmatpush1.bf16.msra.mxu0 %v15797_v12  ;;  %10881 = vmatprep.subr.bf16.mxu1 %v15802_v13  ;;  %v15884_v12 = vld [vmem:[%s16761_s25 + $0x11e0] ss:$8 sps:$4 sm:$0xff]  }
 0x484   : > { %11865 = vmatprep.subr.bf16.mxu0 %v15805_v14  ;;  %v15887_v13 = vld [vmem:[%s16761_s25 + $0x29e0] ss:$8 sps:$4 sm:$0xff]   ;;  %v15892_v14 = vld [vmem:[%s16761_s25 + $0x11f4] ss:$8 sps:$4 sm:$0xff]  }
 0x485   : > { %10873 = vmatmul.mubr.bf16.vlgmr.msra.gmra.mrb[0].mxu1 %v18082_v6  ;;  %v15812_v6 = vld [vmem:[%s16761_s25 + $0x1120] ss:$8 sps:$4 sm:$0xff]  }
 0x486   : > { %11857 = vmatmul.mubr.bf16.vlgmr.msra.gmra.mrb[0].mxu0 %v18086_v9  ;;  %10882 = vmatpush1.bf16.msra.mxu1 %v15800_v16  ;;  %v15815_v9 = vld [vmem:[%s16761_s25 + $0x2920] ss:$8 sps:$4 sm:$0xff]   ;;  %v15895_v16 = vld [vmem:[%s16761_s25 + $0x29f4] ss:$8 sps:$4 sm:$0xff]  }
 0x487   : > { %11866 = vmatpush1.bf16.msra.mxu0 %v15803_v17  ;;  %10883 = vmatprep.subr.bf16.mxu1 %v15808_v51  ;;  %v18235_v17 = vld [vmem:[%s16777_s23 + $0x48] sm:$0xff] }
 0x488   : > { %11867 = vmatprep.subr.bf16.mxu0 %v15811_v27  ;;  %10913 = vmatprep.mubr.bf16.mxu1 %v1982_v19  ;;  %v18238_v51 = vld [vmem:[%s16777_s23 + $0xa8] sm:$0xff]  ;;  %v15890_v27 = vld [vmem:[%s16761_s25 + $0x11f0] ss:$8 sps:$4 sm:$0xff]  }
 0x489   : > { %11897 = vmatprep.mubr.bf16.mxu0 %v2186_v20  ;;  %v15893_v19 = vld [vmem:[%s16761_s25 + $0x29f0] ss:$8 sps:$4 sm:$0xff]   ;;  %v15899_v20 = vld [vmem:[%s16761_s25 + $0x1204] ss:$8 sps:$4 sm:$0xff]  }
 0x48a   : > { %10884 = vmatpush1.bf16.msra.mxu1 %v15806_v21  ;;  %v15903_v21 = vld [vmem:[%s16761_s25 + $0x2a04] ss:$8 sps:$4 sm:$0xff]  }
 0x48b   : > { %11868 = vmatpush1.bf16.msra.mxu0 %v15809_v22  ;;  %10885 = vmatprep.subr.bf16.mxu1 %v15814_v25  ;;  %v18246_v22 = vrot.slane %v18235_v17, %v16824_v50  ;;  %v18250_v25 = vrot.slane %v18238_v51, %v16824_v50 }
 0x48c   : > { %11869 = vmatprep.subr.bf16.mxu0 %v15817_v7  ;;  %v15897_v7 = vld [vmem:[%s16761_s25 + $0x1200] ss:$8 sps:$4 sm:$0xff]  }
 0x48e   : > { %10886 = vmatpush1.bf16.msra.mxu1 %v15812_v6  ;;  %v15901_v6 = vld [vmem:[%s16761_s25 + $0x2a00] ss:$8 sps:$4 sm:$0xff]  }
 0x48f   : > { %11870 = vmatpush1.bf16.msra.mxu0 %v15815_v9  ;;  %10887 = vmatprep.subr.bf16.mxu1 %v15820_v8  ;;  %v15906_v9 = vld [vmem:[%s16761_s25 + $0x1214] ss:$8 sps:$4 sm:$0xff]  }
 0x490   : > { %11871 = vmatprep.subr.bf16.mxu0 %v15823_v26  ;;  %v15909_v8 = vld [vmem:[%s16761_s25 + $0x2a14] ss:$8 sps:$4 sm:$0xff]   ;;  %v1998_v26 = vcombine.high %v18246_v22, %v18246_v22 }
 0x492   : > { %10888 = vmatpush1.bf16.msra.mxu1 %v15818_v28  ;;  %v2202_v28 = vcombine.high %v18250_v25, %v18250_v25 }
 0x493   : > { %11872 = vmatpush1.bf16.msra.mxu0 %v15821_v31  ;;  %10889 = vmatprep.subr.bf16.mxu1 %v15826_v32  ;;  %v15904_v31 = vld [vmem:[%s16761_s25 + $0x1210] ss:$8 sps:$4 sm:$0xff]  }
 0x494   : > { %11873 = vmatprep.subr.bf16.mxu0 %v15829_v33  ;;  %v15907_v32 = vld [vmem:[%s16761_s25 + $0x2a10] ss:$8 sps:$4 sm:$0xff]   ;;  %v15912_v33 = vld [vmem:[%s16761_s25 + $0x1224] ss:$8 sps:$4 sm:$0xff]  }
 0x496   : > { %10890 = vmatpush1.bf16.msra.mxu1 %v15824_v35  ;;  %v15915_v35 = vld [vmem:[%s16761_s25 + $0x2a24] ss:$8 sps:$4 sm:$0xff]  }
 0x497   : > { %11874 = vmatpush1.bf16.msra.mxu0 %v15827_v18  ;;  %10891 = vmatprep.subr.bf16.mxu1 %v15832_v36  ;;  %v15918_v18 = vld [vmem:[%s16761_s25 + $0x1234] ss:$8 sps:$4 sm:$0xff]  }
 0x498   : > { %11875 = vmatprep.subr.bf16.mxu0 %v15835_v38  ;;  %v15921_v36 = vld [vmem:[%s16761_s25 + $0x2a34] ss:$8 sps:$4 sm:$0xff]   ;;  %v15916_v38 = vld [vmem:[%s16761_s25 + $0x1230] ss:$8 sps:$4 sm:$0xff]  }
 0x49a   : > { %10892 = vmatpush1.bf16.msra.mxu1 %v15830_v39  ;;  %v15919_v39 = vld [vmem:[%s16761_s25 + $0x2a30] ss:$8 sps:$4 sm:$0xff]  }
 0x49b   : > { %11876 = vmatpush1.bf16.msra.mxu0 %v15833_v40  ;;  %10893 = vmatprep.subr.bf16.mxu1 %v15838_v45  ;;  %v15924_v40 = vld [vmem:[%s16761_s25 + $0x1244] ss:$8 sps:$4 sm:$0xff]  }
 0x49c   : > { %11877 = vmatprep.subr.bf16.mxu0 %v15841_v23  ;;  %v15927_v45 = vld [vmem:[%s16761_s25 + $0x2a44] ss:$8 sps:$4 sm:$0xff]   ;;  %v15922_v23 = vld [vmem:[%s16761_s25 + $0x1240] ss:$8 sps:$4 sm:$0xff]  }
 0x49e   : > { %10894 = vmatpush1.bf16.msra.mxu1 %v15836_v24  ;;  %v15925_v24 = vld [vmem:[%s16761_s25 + $0x2a40] ss:$8 sps:$4 sm:$0xff]  }
 0x49f   : > { %11878 = vmatpush1.bf16.msra.mxu0 %v15839_v29  ;;  %10895 = vmatprep.subr.bf16.mxu1 %v15844_v34  ;;  %v15930_v29 = vld [vmem:[%s16761_s25 + $0x1254] ss:$8 sps:$4 sm:$0xff]  }
 0x4a0   : > { %11879 = vmatprep.subr.bf16.mxu0 %v15847_v46  ;;  %v15933_v34 = vld [vmem:[%s16761_s25 + $0x2a54] ss:$8 sps:$4 sm:$0xff]   ;;  %v15928_v46 = vld [vmem:[%s16761_s25 + $0x1250] ss:$8 sps:$4 sm:$0xff]  }
 0x4a2   : > { %10896 = vmatpush1.bf16.msra.mxu1 %v15842_v47  ;;  %v15931_v47 = vld [vmem:[%s16761_s25 + $0x2a50] ss:$8 sps:$4 sm:$0xff]  }
 0x4a3   : > { %11880 = vmatpush1.bf16.msra.mxu0 %v15845_v48  ;;  %10897 = vmatprep.subr.bf16.mxu1 %v15850_v49  ;;  %v15936_v48 = vld [vmem:[%s16761_s25 + $0x1264] ss:$8 sps:$4 sm:$0xff]  }
 0x4a4   : > { %11881 = vmatprep.subr.bf16.mxu0 %v15853_v52  ;;  %v15939_v49 = vld [vmem:[%s16761_s25 + $0x2a64] ss:$8 sps:$4 sm:$0xff]   ;;  %v15934_v52 = vld [vmem:[%s16761_s25 + $0x1260] ss:$8 sps:$4 sm:$0xff]  }
 0x4a6   : > { %10898 = vmatpush1.bf16.msra.mxu1 %v15848_v30  ;;  %v15937_v30 = vld [vmem:[%s16761_s25 + $0x2a60] ss:$8 sps:$4 sm:$0xff]  }
 0x4a7   : > { %11882 = vmatpush1.bf16.msra.mxu0 %v15851_v53  ;;  %10899 = vmatprep.subr.bf16.mxu1 %v15856_v54  ;;  %v15942_v53 = vld [vmem:[%s16761_s25 + $0x1274] ss:$8 sps:$4 sm:$0xff]  }
 0x4a8   : > { %11883 = vmatprep.subr.bf16.mxu0 %v15859_v55  ;;  %v15945_v54 = vld [vmem:[%s16761_s25 + $0x2a74] ss:$8 sps:$4 sm:$0xff]   ;;  %v15940_v55 = vld [vmem:[%s16761_s25 + $0x1270] ss:$8 sps:$4 sm:$0xff]  }
 0x4aa   : > { %10900 = vmatpush1.bf16.msra.mxu1 %v15854_v42  ;;  %v15943_v42 = vld [vmem:[%s16761_s25 + $0x2a70] ss:$8 sps:$4 sm:$0xff]  }
 0x4ab   : > { %11884 = vmatpush1.bf16.msra.mxu0 %v15857_v41  ;;  %10901 = vmatprep.subr.bf16.mxu1 %v15862_v44  ;;  %v15948_v41 = vld [vmem:[%s16761_s25 + $0x1284] ss:$8 sps:$4 sm:$0xff]  }
 0x4ac   : > { %11885 = vmatprep.subr.bf16.mxu0 %v15865_v43  ;;  %v15951_v44 = vld [vmem:[%s16761_s25 + $0x2a84] ss:$8 sps:$4 sm:$0xff]   ;;  %v15946_v43 = vld [vmem:[%s16761_s25 + $0x1280] ss:$8 sps:$4 sm:$0xff]  }
 0x4ae   : > { %10902 = vmatpush1.bf16.msra.mxu1 %v15860_v60  ;;  %v15949_v60 = vld [vmem:[%s16761_s25 + $0x2a80] ss:$8 sps:$4 sm:$0xff]  }
 0x4af   : > { %11886 = vmatpush1.bf16.msra.mxu0 %v15863_v61  ;;  %10903 = vmatprep.subr.bf16.mxu1 %v15868_v62  ;;  %v15954_v61 = vld [vmem:[%s16761_s25 + $0x1294] ss:$8 sps:$4 sm:$0xff]  }
 0x4b0   : > { %11887 = vmatprep.subr.bf16.mxu0 %v15871_v63  ;;  %v15957_v62 = vld [vmem:[%s16761_s25 + $0x2a94] ss:$8 sps:$4 sm:$0xff]   ;;  %v15952_v63 = vld [vmem:[%s16761_s25 + $0x1290] ss:$8 sps:$4 sm:$0xff]  }
 0x4b2   : > { %10904 = vmatpush1.bf16.msra.mxu1 %v15866_v0  ;;  %v15955_v0 = vld [vmem:[%s16761_s25 + $0x2a90] ss:$8 sps:$4 sm:$0xff]  }
 0x4b3   : > { %11888 = vmatpush1.bf16.msra.mxu0 %v15869_v2  ;;  %10905 = vmatprep.subr.bf16.mxu1 %v15874_v37  ;;  %v15960_v2 = vld [vmem:[%s16761_s25 + $0x12a4] ss:$8 sps:$4 sm:$0xff]  }
 0x4b4   : > { %11889 = vmatprep.subr.bf16.mxu0 %v15877_v3  ;;  %v15963_v37 = vld [vmem:[%s16761_s25 + $0x2aa4] ss:$8 sps:$4 sm:$0xff]   ;;  %v15958_v3 = vld [vmem:[%s16761_s25 + $0x12a0] ss:$8 sps:$4 sm:$0xff]  }
 0x4b6   : > { %10906 = vmatpush1.bf16.msra.mxu1 %v15872_v4  ;;  %v15961_v4 = vld [vmem:[%s16761_s25 + $0x2aa0] ss:$8 sps:$4 sm:$0xff]  }
 0x4b7   : > { %11890 = vmatpush1.bf16.msra.mxu0 %v15875_v5  ;;  %10907 = vmatprep.subr.bf16.mxu1 %v15880_v57  ;;  %v15966_v5 = vld [vmem:[%s16761_s25 + $0x12b4] ss:$8 sps:$4 sm:$0xff]  }
 0x4b8   : > { %11891 = vmatprep.subr.bf16.mxu0 %v15883_v56  ;;  %v15969_v57 = vld [vmem:[%s16761_s25 + $0x2ab4] ss:$8 sps:$4 sm:$0xff]   ;;  %v15964_v56 = vld [vmem:[%s16761_s25 + $0x12b0] ss:$8 sps:$4 sm:$0xff]  }
 0x4ba   : > { %10908 = vmatpush1.bf16.msra.mxu1 %v15878_v59  ;;  %v15967_v59 = vld [vmem:[%s16761_s25 + $0x2ab0] ss:$8 sps:$4 sm:$0xff]  }
 0x4bb   : > { %11892 = vmatpush1.bf16.msra.mxu0 %v15881_v58  ;;  %10909 = vmatprep.subr.bf16.mxu1 %v15886_v10  ;;  %v15972_v58 = vld [vmem:[%s16761_s25 + $0x12c4] ss:$8 sps:$4 sm:$0xff]  }
 0x4bc   : > { %11893 = vmatprep.subr.bf16.mxu0 %v15889_v11  ;;  %v15975_v10 = vld [vmem:[%s16761_s25 + $0x2ac4] ss:$8 sps:$4 sm:$0xff]   ;;  %v15970_v11 = vld [vmem:[%s16761_s25 + $0x12c0] ss:$8 sps:$4 sm:$0xff]  }
 0x4be   : > { %10910 = vmatpush1.bf16.msra.mxu1 %v15884_v12  ;;  %v15973_v12 = vld [vmem:[%s16761_s25 + $0x2ac0] ss:$8 sps:$4 sm:$0xff]  }
 0x4bf   : > { %11894 = vmatpush1.bf16.msra.mxu0 %v15887_v13  ;;  %10911 = vmatprep.subr.bf16.mxu1 %v15892_v14  ;;  %v15978_v13 = vld [vmem:[%s16761_s25 + $0x12d4] ss:$8 sps:$4 sm:$0xff]  }
 0x4c0   : > { %11895 = vmatprep.subr.bf16.mxu0 %v15895_v16  ;;  %v15981_v14 = vld [vmem:[%s16761_s25 + $0x2ad4] ss:$8 sps:$4 sm:$0xff]   ;;  %v15976_v16 = vld [vmem:[%s16761_s25 + $0x12d0] ss:$8 sps:$4 sm:$0xff]  }
 0x4c2   : > { %10912 = vmatpush1.bf16.msra.mxu1 %v15890_v27  ;;  %v15979_v27 = vld [vmem:[%s16761_s25 + $0x2ad0] ss:$8 sps:$4 sm:$0xff]  }
 0x4c3   : > { %11896 = vmatpush1.bf16.msra.mxu0 %v15893_v19  ;;  %10922 = vmatprep.subr.bf16.mxu1 %v15899_v20  ;;  %v15984_v19 = vld [vmem:[%s16761_s25 + $0x12e4] ss:$8 sps:$4 sm:$0xff]  }
 0x4c4   : > { %11906 = vmatprep.subr.bf16.mxu0 %v15903_v21  ;;  %v15987_v20 = vld [vmem:[%s16761_s25 + $0x2ae4] ss:$8 sps:$4 sm:$0xff]   ;;  %v15982_v21 = vld [vmem:[%s16761_s25 + $0x12e0] ss:$8 sps:$4 sm:$0xff]  }
 0x4c5   : > { %10914 = vmatmul.mubr.bf16.vlgmr.msra.gmra.mrb[0].mxu1 %v18163_v15  ;;  %v15910_v15 = vld [vmem:[%s16761_s25 + $0x1220] ss:$8 sps:$4 sm:$0xff]  }
 0x4c6   : > { %11898 = vmatmul.mubr.bf16.vlgmr.msra.gmra.mrb[0].mxu0 %v18166_v1  ;;  %10923 = vmatpush1.bf16.msra.mxu1 %v15897_v7  ;;  %v15913_v1 = vld [vmem:[%s16761_s25 + $0x2a20] ss:$8 sps:$4 sm:$0xff]  }
 0x4c7   : > { %11907 = vmatpush1.bf16.msra.mxu0 %v15901_v6  ;;  %10924 = vmatprep.subr.bf16.mxu1 %v15906_v9  ;;  %v15985_v7 = vld [vmem:[%s16761_s25 + $0x2ae0] ss:$8 sps:$4 sm:$0xff]   ;;  %v15990_v6 = vld [vmem:[%s16761_s25 + $0x12f4] ss:$8 sps:$4 sm:$0xff]  }
 0x4c8   : > { %11908 = vmatprep.subr.bf16.mxu0 %v15909_v8  ;;  %10954 = vmatprep.mubr.bf16.mxu1 %v1998_v26  ;;  %v15993_v9 = vld [vmem:[%s16761_s25 + $0x2af4] ss:$8 sps:$4 sm:$0xff]   ;;  %v1983_v8 = vcombine.high %v18235_v17, %v18235_v17  ;;  %v2187_v26 = vcombine.high %v18238_v51, %v18238_v51  ;;  %v15994_v17 = vld [vmem:[%s16761_s25 + $0x1300] ss:$8 sps:$4 sm:$0xff]  }
 0x4c9   : > { %11938 = vmatprep.mubr.bf16.mxu0 %v2202_v28  ;;  %v15988_v28 = vld [vmem:[%s16761_s25 + $0x12f0] ss:$8 sps:$4 sm:$0xff]   ;;  %v15997_v51 = vld [vmem:[%s16761_s25 + $0x2b00] ss:$8 sps:$4 sm:$0xff]  }
 0x4ca   : > { %10925 = vmatpush1.bf16.msra.mxu1 %v15904_v31  ;;  %v15991_v31 = vld [vmem:[%s16761_s25 + $0x2af0] ss:$8 sps:$4 sm:$0xff]  }
 0x4cb   : > { %11909 = vmatpush1.bf16.msra.mxu0 %v15907_v32  ;;  %10926 = vmatprep.subr.bf16.mxu1 %v15912_v33  ;;  %v15996_v32 = vld [vmem:[%s16761_s25 + $0x1304] ss:$8 sps:$4 sm:$0xff]  }
 0x4cc   : > { %11910 = vmatprep.subr.bf16.mxu0 %v15915_v35  ;;  %v15999_v33 = vld [vmem:[%s16761_s25 + $0x2b04] ss:$8 sps:$4 sm:$0xff]   ;;  %v18327_v35 = vrot.slane %v1983_v8, %v16824_v50  ;;  %v16075_v8 = vld [vmem:[%s16761_s25 + $0x2bd0] ss:$8 sps:$4 sm:$0xff]  }
 0x4ce   : > { %10927 = vmatpush1.bf16.msra.mxu1 %v15910_v15  ;;  %v18330_v15 = vrot.slane %v2187_v26, %v16824_v50  ;;  %v16080_v26 = vld [vmem:[%s16761_s25 + $0x13e4] ss:$8 sps:$4 sm:$0xff]  }
 0x4cf   : > { %11911 = vmatpush1.bf16.msra.mxu0 %v15913_v1  ;;  %10928 = vmatprep.subr.bf16.mxu1 %v15918_v18  ;;  %v16002_v1 = vld [vmem:[%s16761_s25 + $0x1314] ss:$8 sps:$4 sm:$0xff]  }
 0x4d0   : > { %11912 = vmatprep.subr.bf16.mxu0 %v15921_v36  ;;  %v16005_v18 = vld [vmem:[%s16761_s25 + $0x2b14] ss:$8 sps:$4 sm:$0xff]   ;;  %v1999_v36 = vcombine.high %v18327_v35, %v18327_v35 }
 0x4d2   : > { %10929 = vmatpush1.bf16.msra.mxu1 %v15916_v38  ;;  %v2203_v38 = vcombine.high %v18330_v15, %v18330_v15 }
 0x4d3   : > { %11913 = vmatpush1.bf16.msra.mxu0 %v15919_v39  ;;  %10930 = vmatprep.subr.bf16.mxu1 %v15924_v40  ;;  %v16000_v39 = vld [vmem:[%s16761_s25 + $0x1310] ss:$8 sps:$4 sm:$0xff]  }
 0x4d4   : > { %11914 = vmatprep.subr.bf16.mxu0 %v15927_v45  ;;  %v16003_v40 = vld [vmem:[%s16761_s25 + $0x2b10] ss:$8 sps:$4 sm:$0xff]   ;;  %v16008_v45 = vld [vmem:[%s16761_s25 + $0x1324] ss:$8 sps:$4 sm:$0xff]  }
 0x4d6   : > { %10931 = vmatpush1.bf16.msra.mxu1 %v15922_v23  ;;  %v16011_v23 = vld [vmem:[%s16761_s25 + $0x2b24] ss:$8 sps:$4 sm:$0xff]  }
 0x4d7   : > { %11915 = vmatpush1.bf16.msra.mxu0 %v15925_v24  ;;  %10932 = vmatprep.subr.bf16.mxu1 %v15930_v29  ;;  %v16014_v24 = vld [vmem:[%s16761_s25 + $0x1334] ss:$8 sps:$4 sm:$0xff]  }
 0x4d8   : > { %11916 = vmatprep.subr.bf16.mxu0 %v15933_v34  ;;  %v16017_v29 = vld [vmem:[%s16761_s25 + $0x2b34] ss:$8 sps:$4 sm:$0xff]   ;;  %v16012_v34 = vld [vmem:[%s16761_s25 + $0x1330] ss:$8 sps:$4 sm:$0xff]  }
 0x4da   : > { %10933 = vmatpush1.bf16.msra.mxu1 %v15928_v46  ;;  %v16015_v46 = vld [vmem:[%s16761_s25 + $0x2b30] ss:$8 sps:$4 sm:$0xff]  }
 0x4db   : > { %11917 = vmatpush1.bf16.msra.mxu0 %v15931_v47  ;;  %10934 = vmatprep.subr.bf16.mxu1 %v15936_v48  ;;  %v16020_v47 = vld [vmem:[%s16761_s25 + $0x1344] ss:$8 sps:$4 sm:$0xff]  }
 0x4dc   : > { %11918 = vmatprep.subr.bf16.mxu0 %v15939_v49  ;;  %v16023_v48 = vld [vmem:[%s16761_s25 + $0x2b44] ss:$8 sps:$4 sm:$0xff]   ;;  %v16018_v49 = vld [vmem:[%s16761_s25 + $0x1340] ss:$8 sps:$4 sm:$0xff]  }
 0x4de   : > { %10935 = vmatpush1.bf16.msra.mxu1 %v15934_v52  ;;  %v16021_v52 = vld [vmem:[%s16761_s25 + $0x2b40] ss:$8 sps:$4 sm:$0xff]  }
 0x4df   : > { %11919 = vmatpush1.bf16.msra.mxu0 %v15937_v30  ;;  %10936 = vmatprep.subr.bf16.mxu1 %v15942_v53  ;;  %v16026_v30 = vld [vmem:[%s16761_s25 + $0x1354] ss:$8 sps:$4 sm:$0xff]  }
 0x4e0   : > { %11920 = vmatprep.subr.bf16.mxu0 %v15945_v54  ;;  %v16029_v53 = vld [vmem:[%s16761_s25 + $0x2b54] ss:$8 sps:$4 sm:$0xff]   ;;  %v16024_v54 = vld [vmem:[%s16761_s25 + $0x1350] ss:$8 sps:$4 sm:$0xff]  }
 0x4e2   : > { %10937 = vmatpush1.bf16.msra.mxu1 %v15940_v55  ;;  %v16027_v55 = vld [vmem:[%s16761_s25 + $0x2b50] ss:$8 sps:$4 sm:$0xff]  }
 0x4e3   : > { %11921 = vmatpush1.bf16.msra.mxu0 %v15943_v42  ;;  %10938 = vmatprep.subr.bf16.mxu1 %v15948_v41  ;;  %v16032_v42 = vld [vmem:[%s16761_s25 + $0x1364] ss:$8 sps:$4 sm:$0xff]  }
 0x4e4   : > { %11922 = vmatprep.subr.bf16.mxu0 %v15951_v44  ;;  %v16035_v41 = vld [vmem:[%s16761_s25 + $0x2b64] ss:$8 sps:$4 sm:$0xff]   ;;  %v16030_v44 = vld [vmem:[%s16761_s25 + $0x1360] ss:$8 sps:$4 sm:$0xff]  }
 0x4e6   : > { %10939 = vmatpush1.bf16.msra.mxu1 %v15946_v43  ;;  %v16033_v43 = vld [vmem:[%s16761_s25 + $0x2b60] ss:$8 sps:$4 sm:$0xff]  }
 0x4e7   : > { %11923 = vmatpush1.bf16.msra.mxu0 %v15949_v60  ;;  %10940 = vmatprep.subr.bf16.mxu1 %v15954_v61  ;;  %v16038_v60 = vld [vmem:[%s16761_s25 + $0x1374] ss:$8 sps:$4 sm:$0xff]  }
 0x4e8   : > { %11924 = vmatprep.subr.bf16.mxu0 %v15957_v62  ;;  %v16041_v61 = vld [vmem:[%s16761_s25 + $0x2b74] ss:$8 sps:$4 sm:$0xff]   ;;  %v16036_v62 = vld [vmem:[%s16761_s25 + $0x1370] ss:$8 sps:$4 sm:$0xff]  }
 0x4ea   : > { %10941 = vmatpush1.bf16.msra.mxu1 %v15952_v63  ;;  %v16039_v63 = vld [vmem:[%s16761_s25 + $0x2b70] ss:$8 sps:$4 sm:$0xff]  }
 0x4eb   : > { %11925 = vmatpush1.bf16.msra.mxu0 %v15955_v0  ;;  %10942 = vmatprep.subr.bf16.mxu1 %v15960_v2  ;;  %v16044_v0 = vld [vmem:[%s16761_s25 + $0x1384] ss:$8 sps:$4 sm:$0xff]  }
 0x4ec   : > { %11926 = vmatprep.subr.bf16.mxu0 %v15963_v37  ;;  %v16047_v2 = vld [vmem:[%s16761_s25 + $0x2b84] ss:$8 sps:$4 sm:$0xff]   ;;  %v16042_v37 = vld [vmem:[%s16761_s25 + $0x1380] ss:$8 sps:$4 sm:$0xff]  }
 0x4ee   : > { %10943 = vmatpush1.bf16.msra.mxu1 %v15958_v3  ;;  %v16045_v3 = vld [vmem:[%s16761_s25 + $0x2b80] ss:$8 sps:$4 sm:$0xff]  }
 0x4ef   : > { %11927 = vmatpush1.bf16.msra.mxu0 %v15961_v4  ;;  %10944 = vmatprep.subr.bf16.mxu1 %v15966_v5  ;;  %v16050_v4 = vld [vmem:[%s16761_s25 + $0x1394] ss:$8 sps:$4 sm:$0xff]  }
 0x4f0   : > { %11928 = vmatprep.subr.bf16.mxu0 %v15969_v57  ;;  %v16053_v5 = vld [vmem:[%s16761_s25 + $0x2b94] ss:$8 sps:$4 sm:$0xff]   ;;  %v16048_v57 = vld [vmem:[%s16761_s25 + $0x1390] ss:$8 sps:$4 sm:$0xff]  }
 0x4f2   : > { %10945 = vmatpush1.bf16.msra.mxu1 %v15964_v56  ;;  %v16051_v56 = vld [vmem:[%s16761_s25 + $0x2b90] ss:$8 sps:$4 sm:$0xff]  }
 0x4f3   : > { %11929 = vmatpush1.bf16.msra.mxu0 %v15967_v59  ;;  %10946 = vmatprep.subr.bf16.mxu1 %v15972_v58  ;;  %v16056_v59 = vld [vmem:[%s16761_s25 + $0x13a4] ss:$8 sps:$4 sm:$0xff]  }
 0x4f4   : > { %11930 = vmatprep.subr.bf16.mxu0 %v15975_v10  ;;  %v16059_v58 = vld [vmem:[%s16761_s25 + $0x2ba4] ss:$8 sps:$4 sm:$0xff]   ;;  %v16054_v10 = vld [vmem:[%s16761_s25 + $0x13a0] ss:$8 sps:$4 sm:$0xff]  }
 0x4f6   : > { %10947 = vmatpush1.bf16.msra.mxu1 %v15970_v11  ;;  %v16057_v11 = vld [vmem:[%s16761_s25 + $0x2ba0] ss:$8 sps:$4 sm:$0xff]  }
 0x4f7   : > { %11931 = vmatpush1.bf16.msra.mxu0 %v15973_v12  ;;  %10948 = vmatprep.subr.bf16.mxu1 %v15978_v13  ;;  %v16062_v12 = vld [vmem:[%s16761_s25 + $0x13b4] ss:$8 sps:$4 sm:$0xff]  }
 0x4f8   : > { %11932 = vmatprep.subr.bf16.mxu0 %v15981_v14  ;;  %v16065_v13 = vld [vmem:[%s16761_s25 + $0x2bb4] ss:$8 sps:$4 sm:$0xff]   ;;  %v16060_v14 = vld [vmem:[%s16761_s25 + $0x13b0] ss:$8 sps:$4 sm:$0xff]  }
 0x4fa   : > { %10949 = vmatpush1.bf16.msra.mxu1 %v15976_v16  ;;  %v16063_v16 = vld [vmem:[%s16761_s25 + $0x2bb0] ss:$8 sps:$4 sm:$0xff]  }
 0x4fb   : > { %11933 = vmatpush1.bf16.msra.mxu0 %v15979_v27  ;;  %10950 = vmatprep.subr.bf16.mxu1 %v15984_v19  ;;  %v16068_v27 = vld [vmem:[%s16761_s25 + $0x13c4] ss:$8 sps:$4 sm:$0xff]  }
 0x4fc   : > { %11934 = vmatprep.subr.bf16.mxu0 %v15987_v20  ;;  %v16071_v19 = vld [vmem:[%s16761_s25 + $0x2bc4] ss:$8 sps:$4 sm:$0xff]   ;;  %v16066_v20 = vld [vmem:[%s16761_s25 + $0x13c0] ss:$8 sps:$4 sm:$0xff]  }
 0x4fe   : > { %10951 = vmatpush1.bf16.msra.mxu1 %v15982_v21  ;;  %v16069_v21 = vld [vmem:[%s16761_s25 + $0x2bc0] ss:$8 sps:$4 sm:$0xff]  }
 0x4ff   : > { %11935 = vmatpush1.bf16.msra.mxu0 %v15985_v7  ;;  %10952 = vmatprep.subr.bf16.mxu1 %v15990_v6  ;;  %v16074_v7 = vld [vmem:[%s16761_s25 + $0x13d4] ss:$8 sps:$4 sm:$0xff]  }
 0x500   : > { %11936 = vmatprep.subr.bf16.mxu0 %v15993_v9  ;;  %v16077_v6 = vld [vmem:[%s16761_s25 + $0x2bd4] ss:$8 sps:$4 sm:$0xff]   ;;  %v16072_v9 = vld [vmem:[%s16761_s25 + $0x13d0] ss:$8 sps:$4 sm:$0xff]  }
 0x502   : > { %10953 = vmatpush1.bf16.msra.mxu1 %v15988_v28  ;;  %v16083_v28 = vld [vmem:[%s16761_s25 + $0x2be4] ss:$8 sps:$4 sm:$0xff]  }
 0x503   : > { %11937 = vmatpush1.bf16.msra.mxu0 %v15991_v31  ;;  %10963 = vmatprep.subr.bf16.mxu1 %v15996_v32  ;;  %v16078_v31 = vld [vmem:[%s16761_s25 + $0x13e0] ss:$8 sps:$4 sm:$0xff]  }
 0x504   : > { %11947 = vmatprep.subr.bf16.mxu0 %v15999_v33  ;;  %v16081_v32 = vld [vmem:[%s16761_s25 + $0x2be0] ss:$8 sps:$4 sm:$0xff]   ;;  %v16086_v33 = vld [vmem:[%s16761_s25 + $0x13f4] ss:$8 sps:$4 sm:$0xff]  }
 0x505   : > { %10955 = vmatmul.mubr.bf16.vlgmr.msra.gmra.mrb[0].mxu1 %v18246_v22  ;;  %v16006_v22 = vld [vmem:[%s16761_s25 + $0x1320] ss:$8 sps:$4 sm:$0xff]  }
 0x506   : > { %11939 = vmatmul.mubr.bf16.vlgmr.msra.gmra.mrb[0].mxu0 %v18250_v25  ;;  %10964 = vmatpush1.bf16.msra.mxu1 %v15994_v17  ;;  %v16009_v25 = vld [vmem:[%s16761_s25 + $0x2b20] ss:$8 sps:$4 sm:$0xff]   ;;  %v16089_v17 = vld [vmem:[%s16761_s25 + $0x2bf4] ss:$8 sps:$4 sm:$0xff]  }
 0x507   : > { %11948 = vmatpush1.bf16.msra.mxu0 %v15997_v51  ;;  %10965 = vmatprep.subr.bf16.mxu1 %v16002_v1  ;;  %v18399_v51 = vld [vmem:[%s16777_s23 + $0x50] sm:$0xff] }
 0x508   : > { %11949 = vmatprep.subr.bf16.mxu0 %v16005_v18  ;;  %10995 = vmatprep.mubr.bf16.mxu1 %v1999_v36  ;;  %v18402_v1 = vld [vmem:[%s16777_s23 + $0xb0] sm:$0xff]  ;;  %v16084_v18 = vld [vmem:[%s16761_s25 + $0x13f0] ss:$8 sps:$4 sm:$0xff]  }
 0x509   : > { %11979 = vmatprep.mubr.bf16.mxu0 %v2203_v38  ;;  %v16087_v36 = vld [vmem:[%s16761_s25 + $0x2bf0] ss:$8 sps:$4 sm:$0xff]   ;;  %v16093_v38 = vld [vmem:[%s16761_s25 + $0x1404] ss:$8 sps:$4 sm:$0xff]  }
 0x50a   : > { %10966 = vmatpush1.bf16.msra.mxu1 %v16000_v39  ;;  %v16097_v39 = vld [vmem:[%s16761_s25 + $0x2c04] ss:$8 sps:$4 sm:$0xff]  }
 0x50b   : > { %11950 = vmatpush1.bf16.msra.mxu0 %v16003_v40  ;;  %10967 = vmatprep.subr.bf16.mxu1 %v16008_v45  ;;  %v18410_v40 = vrot.slane %v18399_v51, %v16824_v50  ;;  %v18414_v45 = vrot.slane %v18402_v1, %v16824_v50 }
 0x50c   : > { %11951 = vmatprep.subr.bf16.mxu0 %v16011_v23  ;;  %v16091_v23 = vld [vmem:[%s16761_s25 + $0x1400] ss:$8 sps:$4 sm:$0xff]  }
 0x50e   : > { %10968 = vmatpush1.bf16.msra.mxu1 %v16006_v22  ;;  %v16095_v22 = vld [vmem:[%s16761_s25 + $0x2c00] ss:$8 sps:$4 sm:$0xff]  }
 0x50f   : > { %11952 = vmatpush1.bf16.msra.mxu0 %v16009_v25  ;;  %10969 = vmatprep.subr.bf16.mxu1 %v16014_v24  ;;  %v16100_v25 = vld [vmem:[%s16761_s25 + $0x1414] ss:$8 sps:$4 sm:$0xff]  }
 0x510   : > { %11953 = vmatprep.subr.bf16.mxu0 %v16017_v29  ;;  %v16103_v24 = vld [vmem:[%s16761_s25 + $0x2c14] ss:$8 sps:$4 sm:$0xff]   ;;  %v2015_v29 = vcombine.high %v18410_v40, %v18410_v40 }
 0x512   : > { %10970 = vmatpush1.bf16.msra.mxu1 %v16012_v34  ;;  %v2219_v34 = vcombine.high %v18414_v45, %v18414_v45 }
 0x513   : > { %11954 = vmatpush1.bf16.msra.mxu0 %v16015_v46  ;;  %10971 = vmatprep.subr.bf16.mxu1 %v16020_v47  ;;  %v16098_v46 = vld [vmem:[%s16761_s25 + $0x1410] ss:$8 sps:$4 sm:$0xff]  }
 0x514   : > { %11955 = vmatprep.subr.bf16.mxu0 %v16023_v48  ;;  %v16101_v47 = vld [vmem:[%s16761_s25 + $0x2c10] ss:$8 sps:$4 sm:$0xff]   ;;  %v16106_v48 = vld [vmem:[%s16761_s25 + $0x1424] ss:$8 sps:$4 sm:$0xff]  }
 0x516   : > { %10972 = vmatpush1.bf16.msra.mxu1 %v16018_v49  ;;  %v16109_v49 = vld [vmem:[%s16761_s25 + $0x2c24] ss:$8 sps:$4 sm:$0xff]  }
 0x517   : > { %11956 = vmatpush1.bf16.msra.mxu0 %v16021_v52  ;;  %10973 = vmatprep.subr.bf16.mxu1 %v16026_v30  ;;  %v16112_v52 = vld [vmem:[%s16761_s25 + $0x1434] ss:$8 sps:$4 sm:$0xff]  }
 0x518   : > { %11957 = vmatprep.subr.bf16.mxu0 %v16029_v53  ;;  %v16115_v30 = vld [vmem:[%s16761_s25 + $0x2c34] ss:$8 sps:$4 sm:$0xff]   ;;  %v16110_v53 = vld [vmem:[%s16761_s25 + $0x1430] ss:$8 sps:$4 sm:$0xff]  }
 0x51a   : > { %10974 = vmatpush1.bf16.msra.mxu1 %v16024_v54  ;;  %v16113_v54 = vld [vmem:[%s16761_s25 + $0x2c30] ss:$8 sps:$4 sm:$0xff]  }
 0x51b   : > { %11958 = vmatpush1.bf16.msra.mxu0 %v16027_v55  ;;  %10975 = vmatprep.subr.bf16.mxu1 %v16032_v42  ;;  %v16118_v55 = vld [vmem:[%s16761_s25 + $0x1444] ss:$8 sps:$4 sm:$0xff]  }
 0x51c   : > { %11959 = vmatprep.subr.bf16.mxu0 %v16035_v41  ;;  %v16121_v42 = vld [vmem:[%s16761_s25 + $0x2c44] ss:$8 sps:$4 sm:$0xff]   ;;  %v16116_v41 = vld [vmem:[%s16761_s25 + $0x1440] ss:$8 sps:$4 sm:$0xff]  }
 0x51e   : > { %10976 = vmatpush1.bf16.msra.mxu1 %v16030_v44  ;;  %v16119_v44 = vld [vmem:[%s16761_s25 + $0x2c40] ss:$8 sps:$4 sm:$0xff]  }
 0x51f   : > { %11960 = vmatpush1.bf16.msra.mxu0 %v16033_v43  ;;  %10977 = vmatprep.subr.bf16.mxu1 %v16038_v60  ;;  %v16124_v43 = vld [vmem:[%s16761_s25 + $0x1454] ss:$8 sps:$4 sm:$0xff]  }
 0x520   : > { %11961 = vmatprep.subr.bf16.mxu0 %v16041_v61  ;;  %v16127_v60 = vld [vmem:[%s16761_s25 + $0x2c54] ss:$8 sps:$4 sm:$0xff]   ;;  %v16122_v61 = vld [vmem:[%s16761_s25 + $0x1450] ss:$8 sps:$4 sm:$0xff]  }
 0x522   : > { %10978 = vmatpush1.bf16.msra.mxu1 %v16036_v62  ;;  %v16125_v62 = vld [vmem:[%s16761_s25 + $0x2c50] ss:$8 sps:$4 sm:$0xff]  }
 0x523   : > { %11962 = vmatpush1.bf16.msra.mxu0 %v16039_v63  ;;  %10979 = vmatprep.subr.bf16.mxu1 %v16044_v0  ;;  %v16130_v63 = vld [vmem:[%s16761_s25 + $0x1464] ss:$8 sps:$4 sm:$0xff]  }
 0x524   : > { %11963 = vmatprep.subr.bf16.mxu0 %v16047_v2  ;;  %v16133_v0 = vld [vmem:[%s16761_s25 + $0x2c64] ss:$8 sps:$4 sm:$0xff]   ;;  %v16128_v2 = vld [vmem:[%s16761_s25 + $0x1460] ss:$8 sps:$4 sm:$0xff]  }
 0x526   : > { %10980 = vmatpush1.bf16.msra.mxu1 %v16042_v37  ;;  %v16131_v37 = vld [vmem:[%s16761_s25 + $0x2c60] ss:$8 sps:$4 sm:$0xff]  }
 0x527   : > { %11964 = vmatpush1.bf16.msra.mxu0 %v16045_v3  ;;  %10981 = vmatprep.subr.bf16.mxu1 %v16050_v4  ;;  %v16136_v3 = vld [vmem:[%s16761_s25 + $0x1474] ss:$8 sps:$4 sm:$0xff]  }
 0x528   : > { %11965 = vmatprep.subr.bf16.mxu0 %v16053_v5  ;;  %v16139_v4 = vld [vmem:[%s16761_s25 + $0x2c74] ss:$8 sps:$4 sm:$0xff]   ;;  %v16134_v5 = vld [vmem:[%s16761_s25 + $0x1470] ss:$8 sps:$4 sm:$0xff]  }
 0x52a   : > { %10982 = vmatpush1.bf16.msra.mxu1 %v16048_v57  ;;  %v16137_v57 = vld [vmem:[%s16761_s25 + $0x2c70] ss:$8 sps:$4 sm:$0xff]  }
 0x52b   : > { %11966 = vmatpush1.bf16.msra.mxu0 %v16051_v56  ;;  %10983 = vmatprep.subr.bf16.mxu1 %v16056_v59  ;;  %v16142_v56 = vld [vmem:[%s16761_s25 + $0x1484] ss:$8 sps:$4 sm:$0xff]  }
 0x52c   : > { %11967 = vmatprep.subr.bf16.mxu0 %v16059_v58  ;;  %v16145_v59 = vld [vmem:[%s16761_s25 + $0x2c84] ss:$8 sps:$4 sm:$0xff]   ;;  %v16140_v58 = vld [vmem:[%s16761_s25 + $0x1480] ss:$8 sps:$4 sm:$0xff]  }
 0x52e   : > { %10984 = vmatpush1.bf16.msra.mxu1 %v16054_v10  ;;  %v16143_v10 = vld [vmem:[%s16761_s25 + $0x2c80] ss:$8 sps:$4 sm:$0xff]  }
 0x52f   : > { %11968 = vmatpush1.bf16.msra.mxu0 %v16057_v11  ;;  %10985 = vmatprep.subr.bf16.mxu1 %v16062_v12  ;;  %v16148_v11 = vld [vmem:[%s16761_s25 + $0x1494] ss:$8 sps:$4 sm:$0xff]  }
 0x530   : > { %11969 = vmatprep.subr.bf16.mxu0 %v16065_v13  ;;  %v16151_v12 = vld [vmem:[%s16761_s25 + $0x2c94] ss:$8 sps:$4 sm:$0xff]   ;;  %v16146_v13 = vld [vmem:[%s16761_s25 + $0x1490] ss:$8 sps:$4 sm:$0xff]  }
 0x532   : > { %10986 = vmatpush1.bf16.msra.mxu1 %v16060_v14  ;;  %v16149_v14 = vld [vmem:[%s16761_s25 + $0x2c90] ss:$8 sps:$4 sm:$0xff]  }
 0x533   : > { %11970 = vmatpush1.bf16.msra.mxu0 %v16063_v16  ;;  %10987 = vmatprep.subr.bf16.mxu1 %v16068_v27  ;;  %v16154_v16 = vld [vmem:[%s16761_s25 + $0x14a4] ss:$8 sps:$4 sm:$0xff]  }
 0x534   : > { %11971 = vmatprep.subr.bf16.mxu0 %v16071_v19  ;;  %v16157_v27 = vld [vmem:[%s16761_s25 + $0x2ca4] ss:$8 sps:$4 sm:$0xff]   ;;  %v16152_v19 = vld [vmem:[%s16761_s25 + $0x14a0] ss:$8 sps:$4 sm:$0xff]  }
 0x536   : > { %10988 = vmatpush1.bf16.msra.mxu1 %v16066_v20  ;;  %v16155_v20 = vld [vmem:[%s16761_s25 + $0x2ca0] ss:$8 sps:$4 sm:$0xff]  }
 0x537   : > { %11972 = vmatpush1.bf16.msra.mxu0 %v16069_v21  ;;  %10989 = vmatprep.subr.bf16.mxu1 %v16074_v7  ;;  %v16160_v21 = vld [vmem:[%s16761_s25 + $0x14b4] ss:$8 sps:$4 sm:$0xff]  }
 0x538   : > { %11973 = vmatprep.subr.bf16.mxu0 %v16077_v6  ;;  %v16163_v7 = vld [vmem:[%s16761_s25 + $0x2cb4] ss:$8 sps:$4 sm:$0xff]   ;;  %v16158_v6 = vld [vmem:[%s16761_s25 + $0x14b0] ss:$8 sps:$4 sm:$0xff]  }
 0x53a   : > { %10990 = vmatpush1.bf16.msra.mxu1 %v16072_v9  ;;  %v16161_v9 = vld [vmem:[%s16761_s25 + $0x2cb0] ss:$8 sps:$4 sm:$0xff]  }
 0x53b   : > { %11974 = vmatpush1.bf16.msra.mxu0 %v16075_v8  ;;  %10991 = vmatprep.subr.bf16.mxu1 %v16080_v26  ;;  %v16166_v8 = vld [vmem:[%s16761_s25 + $0x14c4] ss:$8 sps:$4 sm:$0xff]  }
 0x53c   : > { %11975 = vmatprep.subr.bf16.mxu0 %v16083_v28  ;;  %v16169_v26 = vld [vmem:[%s16761_s25 + $0x2cc4] ss:$8 sps:$4 sm:$0xff]   ;;  %v16164_v28 = vld [vmem:[%s16761_s25 + $0x14c0] ss:$8 sps:$4 sm:$0xff]  }
 0x53e   : > { %10992 = vmatpush1.bf16.msra.mxu1 %v16078_v31  ;;  %v16167_v31 = vld [vmem:[%s16761_s25 + $0x2cc0] ss:$8 sps:$4 sm:$0xff]  }
 0x53f   : > { %11976 = vmatpush1.bf16.msra.mxu0 %v16081_v32  ;;  %10993 = vmatprep.subr.bf16.mxu1 %v16086_v33  ;;  %v16172_v32 = vld [vmem:[%s16761_s25 + $0x14d4] ss:$8 sps:$4 sm:$0xff]  }
 0x540   : > { %11977 = vmatprep.subr.bf16.mxu0 %v16089_v17  ;;  %v16175_v33 = vld [vmem:[%s16761_s25 + $0x2cd4] ss:$8 sps:$4 sm:$0xff]   ;;  %v16170_v17 = vld [vmem:[%s16761_s25 + $0x14d0] ss:$8 sps:$4 sm:$0xff]  }
 0x542   : > { %10994 = vmatpush1.bf16.msra.mxu1 %v16084_v18  ;;  %v16173_v18 = vld [vmem:[%s16761_s25 + $0x2cd0] ss:$8 sps:$4 sm:$0xff]  }
 0x543   : > { %11978 = vmatpush1.bf16.msra.mxu0 %v16087_v36  ;;  %11004 = vmatprep.subr.bf16.mxu1 %v16093_v38  ;;  %v16178_v36 = vld [vmem:[%s16761_s25 + $0x14e4] ss:$8 sps:$4 sm:$0xff]  }
 0x544   : > { %11988 = vmatprep.subr.bf16.mxu0 %v16097_v39  ;;  %v16181_v38 = vld [vmem:[%s16761_s25 + $0x2ce4] ss:$8 sps:$4 sm:$0xff]   ;;  %v16176_v39 = vld [vmem:[%s16761_s25 + $0x14e0] ss:$8 sps:$4 sm:$0xff]  }
 0x545   : > { %10996 = vmatmul.mubr.bf16.vlgmr.msra.gmra.mrb[0].mxu1 %v18327_v35  ;;  %v16104_v35 = vld [vmem:[%s16761_s25 + $0x1420] ss:$8 sps:$4 sm:$0xff]  }
 0x546   : > { %11980 = vmatmul.mubr.bf16.vlgmr.msra.gmra.mrb[0].mxu0 %v18330_v15  ;;  %11005 = vmatpush1.bf16.msra.mxu1 %v16091_v23  ;;  %v16107_v15 = vld [vmem:[%s16761_s25 + $0x2c20] ss:$8 sps:$4 sm:$0xff]  }
 0x547   : > { %11989 = vmatpush1.bf16.msra.mxu0 %v16095_v22  ;;  %11006 = vmatprep.subr.bf16.mxu1 %v16100_v25  ;;  %v16179_v23 = vld [vmem:[%s16761_s25 + $0x2ce0] ss:$8 sps:$4 sm:$0xff]   ;;  %v16184_v22 = vld [vmem:[%s16761_s25 + $0x14f4] ss:$8 sps:$4 sm:$0xff]  }
 0x548   : > { %11990 = vmatprep.subr.bf16.mxu0 %v16103_v24  ;;  %11036 = vmatprep.mubr.bf16.mxu1 %v2015_v29  ;;  %v16187_v25 = vld [vmem:[%s16761_s25 + $0x2cf4] ss:$8 sps:$4 sm:$0xff]   ;;  %v2000_v24 = vcombine.high %v18399_v51, %v18399_v51  ;;  %v2204_v29 = vcombine.high %v18402_v1, %v18402_v1  ;;  %v16188_v51 = vld [vmem:[%s16761_s25 + $0x1500] ss:$8 sps:$4 sm:$0xff]  }
 0x549   : > { %12020 = vmatprep.mubr.bf16.mxu0 %v2219_v34  ;;  %v16182_v34 = vld [vmem:[%s16761_s25 + $0x14f0] ss:$8 sps:$4 sm:$0xff]   ;;  %v16191_v1 = vld [vmem:[%s16761_s25 + $0x2d00] ss:$8 sps:$4 sm:$0xff]  }
 0x54a   : > { %11007 = vmatpush1.bf16.msra.mxu1 %v16098_v46  ;;  %v16185_v46 = vld [vmem:[%s16761_s25 + $0x2cf0] ss:$8 sps:$4 sm:$0xff]  }
 0x54b   : > { %11991 = vmatpush1.bf16.msra.mxu0 %v16101_v47  ;;  %11008 = vmatprep.subr.bf16.mxu1 %v16106_v48  ;;  %v16190_v47 = vld [vmem:[%s16761_s25 + $0x1504] ss:$8 sps:$4 sm:$0xff]  }
 0x54c   : > { %11992 = vmatprep.subr.bf16.mxu0 %v16109_v49  ;;  %v16193_v48 = vld [vmem:[%s16761_s25 + $0x2d04] ss:$8 sps:$4 sm:$0xff]   ;;  %v18491_v49 = vrot.slane %v2000_v24, %v16824_v50  ;;  %v16269_v24 = vld [vmem:[%s16761_s25 + $0x2dd0] ss:$8 sps:$4 sm:$0xff]  }
 0x54e   : > { %11009 = vmatpush1.bf16.msra.mxu1 %v16104_v35  ;;  %v18494_v35 = vrot.slane %v2204_v29, %v16824_v50  ;;  %v16274_v29 = vld [vmem:[%s16761_s25 + $0x15e4] ss:$8 sps:$4 sm:$0xff]  }
 0x54f   : > { %11993 = vmatpush1.bf16.msra.mxu0 %v16107_v15  ;;  %11010 = vmatprep.subr.bf16.mxu1 %v16112_v52  ;;  %v16196_v15 = vld [vmem:[%s16761_s25 + $0x1514] ss:$8 sps:$4 sm:$0xff]  }
 0x550   : > { %11994 = vmatprep.subr.bf16.mxu0 %v16115_v30  ;;  %v16199_v52 = vld [vmem:[%s16761_s25 + $0x2d14] ss:$8 sps:$4 sm:$0xff]   ;;  %v2016_v30 = vcombine.high %v18491_v49, %v18491_v49 }
 0x552   : > { %11011 = vmatpush1.bf16.msra.mxu1 %v16110_v53  ;;  %v2220_v53 = vcombine.high %v18494_v35, %v18494_v35 }
 0x553   : > { %11995 = vmatpush1.bf16.msra.mxu0 %v16113_v54  ;;  %11012 = vmatprep.subr.bf16.mxu1 %v16118_v55  ;;  %v16194_v54 = vld [vmem:[%s16761_s25 + $0x1510] ss:$8 sps:$4 sm:$0xff]  }
 0x554   : > { %11996 = vmatprep.subr.bf16.mxu0 %v16121_v42  ;;  %v16197_v55 = vld [vmem:[%s16761_s25 + $0x2d10] ss:$8 sps:$4 sm:$0xff]   ;;  %v16202_v42 = vld [vmem:[%s16761_s25 + $0x1524] ss:$8 sps:$4 sm:$0xff]  }
 0x556   : > { %11013 = vmatpush1.bf16.msra.mxu1 %v16116_v41  ;;  %v16205_v41 = vld [vmem:[%s16761_s25 + $0x2d24] ss:$8 sps:$4 sm:$0xff]  }
 0x557   : > { %11997 = vmatpush1.bf16.msra.mxu0 %v16119_v44  ;;  %11014 = vmatprep.subr.bf16.mxu1 %v16124_v43  ;;  %v16208_v44 = vld [vmem:[%s16761_s25 + $0x1534] ss:$8 sps:$4 sm:$0xff]  }
 0x558   : > { %11998 = vmatprep.subr.bf16.mxu0 %v16127_v60  ;;  %v16211_v43 = vld [vmem:[%s16761_s25 + $0x2d34] ss:$8 sps:$4 sm:$0xff]   ;;  %v16206_v60 = vld [vmem:[%s16761_s25 + $0x1530] ss:$8 sps:$4 sm:$0xff]  }
 0x55a   : > { %11015 = vmatpush1.bf16.msra.mxu1 %v16122_v61  ;;  %v16209_v61 = vld [vmem:[%s16761_s25 + $0x2d30] ss:$8 sps:$4 sm:$0xff]  }
 0x55b   : > { %11999 = vmatpush1.bf16.msra.mxu0 %v16125_v62  ;;  %11016 = vmatprep.subr.bf16.mxu1 %v16130_v63  ;;  %v16214_v62 = vld [vmem:[%s16761_s25 + $0x1544] ss:$8 sps:$4 sm:$0xff]  }
 0x55c   : > { %12000 = vmatprep.subr.bf16.mxu0 %v16133_v0  ;;  %v16217_v63 = vld [vmem:[%s16761_s25 + $0x2d44] ss:$8 sps:$4 sm:$0xff]   ;;  %v16212_v0 = vld [vmem:[%s16761_s25 + $0x1540] ss:$8 sps:$4 sm:$0xff]  }
 0x55e   : > { %11017 = vmatpush1.bf16.msra.mxu1 %v16128_v2  ;;  %v16215_v2 = vld [vmem:[%s16761_s25 + $0x2d40] ss:$8 sps:$4 sm:$0xff]  }
 0x55f   : > { %12001 = vmatpush1.bf16.msra.mxu0 %v16131_v37  ;;  %11018 = vmatprep.subr.bf16.mxu1 %v16136_v3  ;;  %v16220_v37 = vld [vmem:[%s16761_s25 + $0x1554] ss:$8 sps:$4 sm:$0xff]  }
 0x560   : > { %12002 = vmatprep.subr.bf16.mxu0 %v16139_v4  ;;  %v16223_v3 = vld [vmem:[%s16761_s25 + $0x2d54] ss:$8 sps:$4 sm:$0xff]   ;;  %v16218_v4 = vld [vmem:[%s16761_s25 + $0x1550] ss:$8 sps:$4 sm:$0xff]  }
 0x562   : > { %11019 = vmatpush1.bf16.msra.mxu1 %v16134_v5  ;;  %v16221_v5 = vld [vmem:[%s16761_s25 + $0x2d50] ss:$8 sps:$4 sm:$0xff]  }
 0x563   : > { %12003 = vmatpush1.bf16.msra.mxu0 %v16137_v57  ;;  %11020 = vmatprep.subr.bf16.mxu1 %v16142_v56  ;;  %v16226_v57 = vld [vmem:[%s16761_s25 + $0x1564] ss:$8 sps:$4 sm:$0xff]  }
 0x564   : > { %12004 = vmatprep.subr.bf16.mxu0 %v16145_v59  ;;  %v16229_v56 = vld [vmem:[%s16761_s25 + $0x2d64] ss:$8 sps:$4 sm:$0xff]   ;;  %v16224_v59 = vld [vmem:[%s16761_s25 + $0x1560] ss:$8 sps:$4 sm:$0xff]  }
 0x566   : > { %11021 = vmatpush1.bf16.msra.mxu1 %v16140_v58  ;;  %v16227_v58 = vld [vmem:[%s16761_s25 + $0x2d60] ss:$8 sps:$4 sm:$0xff]  }
 0x567   : > { %12005 = vmatpush1.bf16.msra.mxu0 %v16143_v10  ;;  %11022 = vmatprep.subr.bf16.mxu1 %v16148_v11  ;;  %v16232_v10 = vld [vmem:[%s16761_s25 + $0x1574] ss:$8 sps:$4 sm:$0xff]  }
 0x568   : > { %12006 = vmatprep.subr.bf16.mxu0 %v16151_v12  ;;  %v16235_v11 = vld [vmem:[%s16761_s25 + $0x2d74] ss:$8 sps:$4 sm:$0xff]   ;;  %v16230_v12 = vld [vmem:[%s16761_s25 + $0x1570] ss:$8 sps:$4 sm:$0xff]  }
 0x56a   : > { %11023 = vmatpush1.bf16.msra.mxu1 %v16146_v13  ;;  %v16233_v13 = vld [vmem:[%s16761_s25 + $0x2d70] ss:$8 sps:$4 sm:$0xff]  }
 0x56b   : > { %12007 = vmatpush1.bf16.msra.mxu0 %v16149_v14  ;;  %11024 = vmatprep.subr.bf16.mxu1 %v16154_v16  ;;  %v16238_v14 = vld [vmem:[%s16761_s25 + $0x1584] ss:$8 sps:$4 sm:$0xff]  }
 0x56c   : > { %12008 = vmatprep.subr.bf16.mxu0 %v16157_v27  ;;  %v16241_v16 = vld [vmem:[%s16761_s25 + $0x2d84] ss:$8 sps:$4 sm:$0xff]   ;;  %v16236_v27 = vld [vmem:[%s16761_s25 + $0x1580] ss:$8 sps:$4 sm:$0xff]  }
 0x56e   : > { %11025 = vmatpush1.bf16.msra.mxu1 %v16152_v19  ;;  %v16239_v19 = vld [vmem:[%s16761_s25 + $0x2d80] ss:$8 sps:$4 sm:$0xff]  }
 0x56f   : > { %12009 = vmatpush1.bf16.msra.mxu0 %v16155_v20  ;;  %11026 = vmatprep.subr.bf16.mxu1 %v16160_v21  ;;  %v16244_v20 = vld [vmem:[%s16761_s25 + $0x1594] ss:$8 sps:$4 sm:$0xff]  }
 0x570   : > { %12010 = vmatprep.subr.bf16.mxu0 %v16163_v7  ;;  %v16247_v21 = vld [vmem:[%s16761_s25 + $0x2d94] ss:$8 sps:$4 sm:$0xff]   ;;  %v16242_v7 = vld [vmem:[%s16761_s25 + $0x1590] ss:$8 sps:$4 sm:$0xff]  }
 0x572   : > { %11027 = vmatpush1.bf16.msra.mxu1 %v16158_v6  ;;  %v16245_v6 = vld [vmem:[%s16761_s25 + $0x2d90] ss:$8 sps:$4 sm:$0xff]  }
 0x573   : > { %12011 = vmatpush1.bf16.msra.mxu0 %v16161_v9  ;;  %11028 = vmatprep.subr.bf16.mxu1 %v16166_v8  ;;  %v16250_v9 = vld [vmem:[%s16761_s25 + $0x15a4] ss:$8 sps:$4 sm:$0xff]  }
 0x574   : > { %12012 = vmatprep.subr.bf16.mxu0 %v16169_v26  ;;  %v16253_v8 = vld [vmem:[%s16761_s25 + $0x2da4] ss:$8 sps:$4 sm:$0xff]   ;;  %v16248_v26 = vld [vmem:[%s16761_s25 + $0x15a0] ss:$8 sps:$4 sm:$0xff]  }
 0x576   : > { %11029 = vmatpush1.bf16.msra.mxu1 %v16164_v28  ;;  %v16251_v28 = vld [vmem:[%s16761_s25 + $0x2da0] ss:$8 sps:$4 sm:$0xff]  }
 0x577   : > { %12013 = vmatpush1.bf16.msra.mxu0 %v16167_v31  ;;  %11030 = vmatprep.subr.bf16.mxu1 %v16172_v32  ;;  %v16256_v31 = vld [vmem:[%s16761_s25 + $0x15b4] ss:$8 sps:$4 sm:$0xff]  }
 0x578   : > { %12014 = vmatprep.subr.bf16.mxu0 %v16175_v33  ;;  %v16259_v32 = vld [vmem:[%s16761_s25 + $0x2db4] ss:$8 sps:$4 sm:$0xff]   ;;  %v16254_v33 = vld [vmem:[%s16761_s25 + $0x15b0] ss:$8 sps:$4 sm:$0xff]  }
 0x57a   : > { %11031 = vmatpush1.bf16.msra.mxu1 %v16170_v17  ;;  %v16257_v17 = vld [vmem:[%s16761_s25 + $0x2db0] ss:$8 sps:$4 sm:$0xff]  }
 0x57b   : > { %12015 = vmatpush1.bf16.msra.mxu0 %v16173_v18  ;;  %11032 = vmatprep.subr.bf16.mxu1 %v16178_v36  ;;  %v16262_v18 = vld [vmem:[%s16761_s25 + $0x15c4] ss:$8 sps:$4 sm:$0xff]  }
 0x57c   : > { %12016 = vmatprep.subr.bf16.mxu0 %v16181_v38  ;;  %v16265_v36 = vld [vmem:[%s16761_s25 + $0x2dc4] ss:$8 sps:$4 sm:$0xff]   ;;  %v16260_v38 = vld [vmem:[%s16761_s25 + $0x15c0] ss:$8 sps:$4 sm:$0xff]  }
 0x57e   : > { %11033 = vmatpush1.bf16.msra.mxu1 %v16176_v39  ;;  %v16263_v39 = vld [vmem:[%s16761_s25 + $0x2dc0] ss:$8 sps:$4 sm:$0xff]  }
 0x57f   : > { %12017 = vmatpush1.bf16.msra.mxu0 %v16179_v23  ;;  %11034 = vmatprep.subr.bf16.mxu1 %v16184_v22  ;;  %v16268_v23 = vld [vmem:[%s16761_s25 + $0x15d4] ss:$8 sps:$4 sm:$0xff]  }
 0x580   : > { %12018 = vmatprep.subr.bf16.mxu0 %v16187_v25  ;;  %v16271_v22 = vld [vmem:[%s16761_s25 + $0x2dd4] ss:$8 sps:$4 sm:$0xff]   ;;  %v16266_v25 = vld [vmem:[%s16761_s25 + $0x15d0] ss:$8 sps:$4 sm:$0xff]  }
 0x582   : > { %11035 = vmatpush1.bf16.msra.mxu1 %v16182_v34  ;;  %v16277_v34 = vld [vmem:[%s16761_s25 + $0x2de4] ss:$8 sps:$4 sm:$0xff]  }
 0x583   : > { %12019 = vmatpush1.bf16.msra.mxu0 %v16185_v46  ;;  %11045 = vmatprep.subr.bf16.mxu1 %v16190_v47  ;;  %v16272_v46 = vld [vmem:[%s16761_s25 + $0x15e0] ss:$8 sps:$4 sm:$0xff]  }
 0x584   : > { %12029 = vmatprep.subr.bf16.mxu0 %v16193_v48  ;;  %v16275_v47 = vld [vmem:[%s16761_s25 + $0x2de0] ss:$8 sps:$4 sm:$0xff]   ;;  %v16280_v48 = vld [vmem:[%s16761_s25 + $0x15f4] ss:$8 sps:$4 sm:$0xff]  }
 0x585   : > { %11037 = vmatmul.mubr.bf16.vlgmr.msra.gmra.mrb[0].mxu1 %v18410_v40  ;;  %v16200_v40 = vld [vmem:[%s16761_s25 + $0x1520] ss:$8 sps:$4 sm:$0xff]  }
 0x586   : > { %12021 = vmatmul.mubr.bf16.vlgmr.msra.gmra.mrb[0].mxu0 %v18414_v45  ;;  %11046 = vmatpush1.bf16.msra.mxu1 %v16188_v51  ;;  %v16203_v45 = vld [vmem:[%s16761_s25 + $0x2d20] ss:$8 sps:$4 sm:$0xff]   ;;  %v16283_v51 = vld [vmem:[%s16761_s25 + $0x2df4] ss:$8 sps:$4 sm:$0xff]  }
 0x587   : > { %12030 = vmatpush1.bf16.msra.mxu0 %v16191_v1  ;;  %11047 = vmatprep.subr.bf16.mxu1 %v16196_v15  ;;  %v18563_v1 = vld [vmem:[%s16777_s23 + $0x58] sm:$0xff] }
 0x588   : > { %12031 = vmatprep.subr.bf16.mxu0 %v16199_v52  ;;  %11077 = vmatprep.mubr.bf16.mxu1 %v2016_v30  ;;  %v18566_v15 = vld [vmem:[%s16777_s23 + $0xb8] sm:$0xff] }
 0x589   : > { %12061 = vmatprep.mubr.bf16.mxu0 %v2220_v53  ;;  %v16278_v52 = vld [vmem:[%s16761_s25 + $0x15f0] ss:$8 sps:$4 sm:$0xff]   ;;  %v16287_v53 = vld [vmem:[%s16761_s25 + $0x1604] ss:$8 sps:$4 sm:$0xff]  }
 0x58a   : > { %11048 = vmatpush1.bf16.msra.mxu1 %v16194_v54  ;;  %v16281_v30 = vld [vmem:[%s16761_s25 + $0x2df0] ss:$8 sps:$4 sm:$0xff]   ;;  %v16291_v54 = vld [vmem:[%s16761_s25 + $0x2e04] ss:$8 sps:$4 sm:$0xff]  }
 0x58b   : > { %12032 = vmatpush1.bf16.msra.mxu0 %v16197_v55  ;;  %11049 = vmatprep.subr.bf16.mxu1 %v16202_v42  ;;  %v18574_v55 = vrot.slane %v18563_v1, %v16824_v50  ;;  %v18578_v42 = vrot.slane %v18566_v15, %v16824_v50 }
 0x58c   : > { %12033 = vmatprep.subr.bf16.mxu0 %v16205_v41  ;;  %v16285_v41 = vld [vmem:[%s16761_s25 + $0x1600] ss:$8 sps:$4 sm:$0xff]  }
 0x58e   : > { %11050 = vmatpush1.bf16.msra.mxu1 %v16200_v40  ;;  %v16289_v40 = vld [vmem:[%s16761_s25 + $0x2e00] ss:$8 sps:$4 sm:$0xff]  }
 0x58f   : > { %12034 = vmatpush1.bf16.msra.mxu0 %v16203_v45  ;;  %11051 = vmatprep.subr.bf16.mxu1 %v16208_v44  ;;  %v16294_v45 = vld [vmem:[%s16761_s25 + $0x1614] ss:$8 sps:$4 sm:$0xff]  }
 0x590   : > { %12035 = vmatprep.subr.bf16.mxu0 %v16211_v43  ;;  %v16297_v44 = vld [vmem:[%s16761_s25 + $0x2e14] ss:$8 sps:$4 sm:$0xff]   ;;  %v2032_v43 = vcombine.high %v18574_v55, %v18574_v55 }
 0x592   : > { %11052 = vmatpush1.bf16.msra.mxu1 %v16206_v60  ;;  %v2236_v60 = vcombine.high %v18578_v42, %v18578_v42 }
 0x593   : > { %12036 = vmatpush1.bf16.msra.mxu0 %v16209_v61  ;;  %11053 = vmatprep.subr.bf16.mxu1 %v16214_v62  ;;  %v16292_v61 = vld [vmem:[%s16761_s25 + $0x1610] ss:$8 sps:$4 sm:$0xff]  }
 0x594   : > { %12037 = vmatprep.subr.bf16.mxu0 %v16217_v63  ;;  %v16295_v62 = vld [vmem:[%s16761_s25 + $0x2e10] ss:$8 sps:$4 sm:$0xff]   ;;  %v16300_v63 = vld [vmem:[%s16761_s25 + $0x1624] ss:$8 sps:$4 sm:$0xff]  }
 0x596   : > { %11054 = vmatpush1.bf16.msra.mxu1 %v16212_v0  ;;  %v16303_v0 = vld [vmem:[%s16761_s25 + $0x2e24] ss:$8 sps:$4 sm:$0xff]  }
 0x597   : > { %12038 = vmatpush1.bf16.msra.mxu0 %v16215_v2  ;;  %11055 = vmatprep.subr.bf16.mxu1 %v16220_v37  ;;  %v16306_v2 = vld [vmem:[%s16761_s25 + $0x1634] ss:$8 sps:$4 sm:$0xff]  }
 0x598   : > { %12039 = vmatprep.subr.bf16.mxu0 %v16223_v3  ;;  %v16309_v37 = vld [vmem:[%s16761_s25 + $0x2e34] ss:$8 sps:$4 sm:$0xff]   ;;  %v16304_v3 = vld [vmem:[%s16761_s25 + $0x1630] ss:$8 sps:$4 sm:$0xff]  }
 0x59a   : > { %11056 = vmatpush1.bf16.msra.mxu1 %v16218_v4  ;;  %v16307_v4 = vld [vmem:[%s16761_s25 + $0x2e30] ss:$8 sps:$4 sm:$0xff]  }
 0x59b   : > { %12040 = vmatpush1.bf16.msra.mxu0 %v16221_v5  ;;  %11057 = vmatprep.subr.bf16.mxu1 %v16226_v57  ;;  %v16312_v5 = vld [vmem:[%s16761_s25 + $0x1644] ss:$8 sps:$4 sm:$0xff]  }
 0x59c   : > { %12041 = vmatprep.subr.bf16.mxu0 %v16229_v56  ;;  %v16315_v57 = vld [vmem:[%s16761_s25 + $0x2e44] ss:$8 sps:$4 sm:$0xff]   ;;  %v16310_v56 = vld [vmem:[%s16761_s25 + $0x1640] ss:$8 sps:$4 sm:$0xff]  }
 0x59e   : > { %11058 = vmatpush1.bf16.msra.mxu1 %v16224_v59  ;;  %v16313_v59 = vld [vmem:[%s16761_s25 + $0x2e40] ss:$8 sps:$4 sm:$0xff]  }
 0x59f   : > { %12042 = vmatpush1.bf16.msra.mxu0 %v16227_v58  ;;  %11059 = vmatprep.subr.bf16.mxu1 %v16232_v10  ;;  %v16318_v58 = vld [vmem:[%s16761_s25 + $0x1654] ss:$8 sps:$4 sm:$0xff]  }
 0x5a0   : > { %12043 = vmatprep.subr.bf16.mxu0 %v16235_v11  ;;  %v16321_v10 = vld [vmem:[%s16761_s25 + $0x2e54] ss:$8 sps:$4 sm:$0xff]   ;;  %v16316_v11 = vld [vmem:[%s16761_s25 + $0x1650] ss:$8 sps:$4 sm:$0xff]  }
 0x5a2   : > { %11060 = vmatpush1.bf16.msra.mxu1 %v16230_v12  ;;  %v16319_v12 = vld [vmem:[%s16761_s25 + $0x2e50] ss:$8 sps:$4 sm:$0xff]  }
 0x5a3   : > { %12044 = vmatpush1.bf16.msra.mxu0 %v16233_v13  ;;  %11061 = vmatprep.subr.bf16.mxu1 %v16238_v14  ;;  %v16324_v13 = vld [vmem:[%s16761_s25 + $0x1664] ss:$8 sps:$4 sm:$0xff]  }
 0x5a4   : > { %12045 = vmatprep.subr.bf16.mxu0 %v16241_v16  ;;  %v16327_v14 = vld [vmem:[%s16761_s25 + $0x2e64] ss:$8 sps:$4 sm:$0xff]   ;;  %v16322_v16 = vld [vmem:[%s16761_s25 + $0x1660] ss:$8 sps:$4 sm:$0xff]  }
 0x5a6   : > { %11062 = vmatpush1.bf16.msra.mxu1 %v16236_v27  ;;  %v16325_v27 = vld [vmem:[%s16761_s25 + $0x2e60] ss:$8 sps:$4 sm:$0xff]  }
 0x5a7   : > { %12046 = vmatpush1.bf16.msra.mxu0 %v16239_v19  ;;  %11063 = vmatprep.subr.bf16.mxu1 %v16244_v20  ;;  %v16330_v19 = vld [vmem:[%s16761_s25 + $0x1674] ss:$8 sps:$4 sm:$0xff]  }
 0x5a8   : > { %12047 = vmatprep.subr.bf16.mxu0 %v16247_v21  ;;  %v16333_v20 = vld [vmem:[%s16761_s25 + $0x2e74] ss:$8 sps:$4 sm:$0xff]   ;;  %v16328_v21 = vld [vmem:[%s16761_s25 + $0x1670] ss:$8 sps:$4 sm:$0xff]  }
 0x5aa   : > { %11064 = vmatpush1.bf16.msra.mxu1 %v16242_v7  ;;  %v16331_v7 = vld [vmem:[%s16761_s25 + $0x2e70] ss:$8 sps:$4 sm:$0xff]  }
 0x5ab   : > { %12048 = vmatpush1.bf16.msra.mxu0 %v16245_v6  ;;  %11065 = vmatprep.subr.bf16.mxu1 %v16250_v9  ;;  %v16336_v6 = vld [vmem:[%s16761_s25 + $0x1684] ss:$8 sps:$4 sm:$0xff]  }
 0x5ac   : > { %12049 = vmatprep.subr.bf16.mxu0 %v16253_v8  ;;  %v16339_v9 = vld [vmem:[%s16761_s25 + $0x2e84] ss:$8 sps:$4 sm:$0xff]   ;;  %v16334_v8 = vld [vmem:[%s16761_s25 + $0x1680] ss:$8 sps:$4 sm:$0xff]  }
 0x5ae   : > { %11066 = vmatpush1.bf16.msra.mxu1 %v16248_v26  ;;  %v16337_v26 = vld [vmem:[%s16761_s25 + $0x2e80] ss:$8 sps:$4 sm:$0xff]  }
 0x5af   : > { %12050 = vmatpush1.bf16.msra.mxu0 %v16251_v28  ;;  %11067 = vmatprep.subr.bf16.mxu1 %v16256_v31  ;;  %v16342_v28 = vld [vmem:[%s16761_s25 + $0x1694] ss:$8 sps:$4 sm:$0xff]  }
 0x5b0   : > { %12051 = vmatprep.subr.bf16.mxu0 %v16259_v32  ;;  %v16345_v31 = vld [vmem:[%s16761_s25 + $0x2e94] ss:$8 sps:$4 sm:$0xff]   ;;  %v16340_v32 = vld [vmem:[%s16761_s25 + $0x1690] ss:$8 sps:$4 sm:$0xff]  }
 0x5b2   : > { %11068 = vmatpush1.bf16.msra.mxu1 %v16254_v33  ;;  %v16343_v33 = vld [vmem:[%s16761_s25 + $0x2e90] ss:$8 sps:$4 sm:$0xff]  }
 0x5b3   : > { %12052 = vmatpush1.bf16.msra.mxu0 %v16257_v17  ;;  %11069 = vmatprep.subr.bf16.mxu1 %v16262_v18  ;;  %v16348_v17 = vld [vmem:[%s16761_s25 + $0x16a4] ss:$8 sps:$4 sm:$0xff]  }
 0x5b4   : > { %12053 = vmatprep.subr.bf16.mxu0 %v16265_v36  ;;  %v16351_v18 = vld [vmem:[%s16761_s25 + $0x2ea4] ss:$8 sps:$4 sm:$0xff]   ;;  %v16346_v36 = vld [vmem:[%s16761_s25 + $0x16a0] ss:$8 sps:$4 sm:$0xff]  }
 0x5b6   : > { %11070 = vmatpush1.bf16.msra.mxu1 %v16260_v38  ;;  %v16349_v38 = vld [vmem:[%s16761_s25 + $0x2ea0] ss:$8 sps:$4 sm:$0xff]  }
 0x5b7   : > { %12054 = vmatpush1.bf16.msra.mxu0 %v16263_v39  ;;  %11071 = vmatprep.subr.bf16.mxu1 %v16268_v23  ;;  %v16354_v39 = vld [vmem:[%s16761_s25 + $0x16b4] ss:$8 sps:$4 sm:$0xff]  }
 0x5b8   : > { %12055 = vmatprep.subr.bf16.mxu0 %v16271_v22  ;;  %v16357_v23 = vld [vmem:[%s16761_s25 + $0x2eb4] ss:$8 sps:$4 sm:$0xff]   ;;  %v16352_v22 = vld [vmem:[%s16761_s25 + $0x16b0] ss:$8 sps:$4 sm:$0xff]  }
 0x5ba   : > { %11072 = vmatpush1.bf16.msra.mxu1 %v16266_v25  ;;  %v16355_v25 = vld [vmem:[%s16761_s25 + $0x2eb0] ss:$8 sps:$4 sm:$0xff]  }
 0x5bb   : > { %12056 = vmatpush1.bf16.msra.mxu0 %v16269_v24  ;;  %11073 = vmatprep.subr.bf16.mxu1 %v16274_v29  ;;  %v16360_v24 = vld [vmem:[%s16761_s25 + $0x16c4] ss:$8 sps:$4 sm:$0xff]  }
 0x5bc   : > { %12057 = vmatprep.subr.bf16.mxu0 %v16277_v34  ;;  %v16363_v29 = vld [vmem:[%s16761_s25 + $0x2ec4] ss:$8 sps:$4 sm:$0xff]   ;;  %v16358_v34 = vld [vmem:[%s16761_s25 + $0x16c0] ss:$8 sps:$4 sm:$0xff]  }
 0x5be   : > { %11074 = vmatpush1.bf16.msra.mxu1 %v16272_v46  ;;  %v16361_v46 = vld [vmem:[%s16761_s25 + $0x2ec0] ss:$8 sps:$4 sm:$0xff]  }
 0x5bf   : > { %12058 = vmatpush1.bf16.msra.mxu0 %v16275_v47  ;;  %11075 = vmatprep.subr.bf16.mxu1 %v16280_v48  ;;  %v16366_v47 = vld [vmem:[%s16761_s25 + $0x16d4] ss:$8 sps:$4 sm:$0xff]  }
 0x5c0   : > { %12059 = vmatprep.subr.bf16.mxu0 %v16283_v51  ;;  %v16369_v48 = vld [vmem:[%s16761_s25 + $0x2ed4] ss:$8 sps:$4 sm:$0xff]   ;;  %v16364_v51 = vld [vmem:[%s16761_s25 + $0x16d0] ss:$8 sps:$4 sm:$0xff]  }
 0x5c2   : > { %11076 = vmatpush1.bf16.msra.mxu1 %v16278_v52  ;;  %v16367_v52 = vld [vmem:[%s16761_s25 + $0x2ed0] ss:$8 sps:$4 sm:$0xff]  }
 0x5c3   : > { %12060 = vmatpush1.bf16.msra.mxu0 %v16281_v30  ;;  %11086 = vmatprep.subr.bf16.mxu1 %v16287_v53  ;;  %v16372_v30 = vld [vmem:[%s16761_s25 + $0x16e4] ss:$8 sps:$4 sm:$0xff]  }
 0x5c4   : > { %12070 = vmatprep.subr.bf16.mxu0 %v16291_v54  ;;  %v16375_v53 = vld [vmem:[%s16761_s25 + $0x2ee4] ss:$8 sps:$4 sm:$0xff]   ;;  %v16370_v54 = vld [vmem:[%s16761_s25 + $0x16e0] ss:$8 sps:$4 sm:$0xff]  }
 0x5c5   : > { %11078 = vmatmul.mubr.bf16.vlgmr.msra.gmra.mrb[0].mxu1 %v18491_v49  ;;  %v16298_v49 = vld [vmem:[%s16761_s25 + $0x1620] ss:$8 sps:$4 sm:$0xff]  }
 0x5c6   : > { %12062 = vmatmul.mubr.bf16.vlgmr.msra.gmra.mrb[0].mxu0 %v18494_v35  ;;  %11087 = vmatpush1.bf16.msra.mxu1 %v16285_v41  ;;  %v16301_v35 = vld [vmem:[%s16761_s25 + $0x2e20] ss:$8 sps:$4 sm:$0xff]  }
 0x5c7   : > { %12071 = vmatpush1.bf16.msra.mxu0 %v16289_v40  ;;  %11088 = vmatprep.subr.bf16.mxu1 %v16294_v45  ;;  %v16373_v41 = vld [vmem:[%s16761_s25 + $0x2ee0] ss:$8 sps:$4 sm:$0xff]   ;;  %v16378_v40 = vld [vmem:[%s16761_s25 + $0x16f4] ss:$8 sps:$4 sm:$0xff]  }
 0x5c8   : > { %12072 = vmatprep.subr.bf16.mxu0 %v16297_v44  ;;  %11118 = vmatprep.mubr.bf16.mxu1 %v2032_v43  ;;  %v16381_v45 = vld [vmem:[%s16761_s25 + $0x2ef4] ss:$8 sps:$4 sm:$0xff]   ;;  %v2017_v44 = vcombine.high %v18563_v1, %v18563_v1  ;;  %v2221_v43 = vcombine.high %v18566_v15, %v18566_v15  ;;  %v16382_v1 = vld [vmem:[%s16761_s25 + $0x1700] ss:$8 sps:$4 sm:$0xff]  }
 0x5c9   : > { %12102 = vmatprep.mubr.bf16.mxu0 %v2236_v60  ;;  %v16376_v60 = vld [vmem:[%s16761_s25 + $0x16f0] ss:$8 sps:$4 sm:$0xff]   ;;  %v16385_v15 = vld [vmem:[%s16761_s25 + $0x2f00] ss:$8 sps:$4 sm:$0xff]  }
 0x5ca   : > { %11089 = vmatpush1.bf16.msra.mxu1 %v16292_v61  ;;  %v16379_v61 = vld [vmem:[%s16761_s25 + $0x2ef0] ss:$8 sps:$4 sm:$0xff]  }
 0x5cb   : > { %12073 = vmatpush1.bf16.msra.mxu0 %v16295_v62  ;;  %11090 = vmatprep.subr.bf16.mxu1 %v16300_v63  ;;  %v16384_v62 = vld [vmem:[%s16761_s25 + $0x1704] ss:$8 sps:$4 sm:$0xff]  }
 0x5cc   : > { %12074 = vmatprep.subr.bf16.mxu0 %v16303_v0  ;;  %v16387_v63 = vld [vmem:[%s16761_s25 + $0x2f04] ss:$8 sps:$4 sm:$0xff]   ;;  %v18655_v0 = vrot.slane %v2017_v44, %v16824_v50 }
 0x5cd   : > { %v16468_v44 = vld [vmem:[%s16761_s25 + $0x17e4] ss:$8 sps:$4 sm:$0xff]  }
 0x5ce   : > { %11091 = vmatpush1.bf16.msra.mxu1 %v16298_v49  ;;  %v18658_v49 = vrot.slane %v2221_v43, %v16824_v50  ;;  %v16388_v50 = vld [vmem:[%s16761_s25 + $0x1710] ss:$8 sps:$4 sm:$0xff]   ;;  %v16471_v43 = vld [vmem:[%s16761_s25 + $0x2fe4] ss:$8 sps:$4 sm:$0xff]  }
 0x5cf   : > { %12075 = vmatpush1.bf16.msra.mxu0 %v16301_v35  ;;  %11092 = vmatprep.subr.bf16.mxu1 %v16306_v2  ;;  %v16390_v35 = vld [vmem:[%s16761_s25 + $0x1714] ss:$8 sps:$4 sm:$0xff]  }
 0x5d0   : > { %12076 = vmatprep.subr.bf16.mxu0 %v16309_v37  ;;  %v16393_v2 = vld [vmem:[%s16761_s25 + $0x2f14] ss:$8 sps:$4 sm:$0xff]   ;;  %v2033_v37 = vcombine.high %v18655_v0, %v18655_v0 }
 0x5d2   : > { %11093 = vmatpush1.bf16.msra.mxu1 %v16304_v3  ;;  %v2237_v3 = vcombine.high %v18658_v49, %v18658_v49 }
 0x5d3   : > { %12077 = vmatpush1.bf16.msra.mxu0 %v16307_v4  ;;  %11094 = vmatprep.subr.bf16.mxu1 %v16312_v5  ;;  %v16391_v4 = vld [vmem:[%s16761_s25 + $0x2f10] ss:$8 sps:$4 sm:$0xff]   ;;  %v16396_v5 = vld [vmem:[%s16761_s25 + $0x1724] ss:$8 sps:$4 sm:$0xff]  }
 0x5d4   : > { %12078 = vmatprep.subr.bf16.mxu0 %v16315_v57  ;;  %v16399_v57 = vld [vmem:[%s16761_s25 + $0x2f24] ss:$8 sps:$4 sm:$0xff]  }
 0x5d6   : > { %11095 = vmatpush1.bf16.msra.mxu1 %v16310_v56  ;;  %v16402_v56 = vld [vmem:[%s16761_s25 + $0x1734] ss:$8 sps:$4 sm:$0xff]  }
 0x5d7   : > { %12079 = vmatpush1.bf16.msra.mxu0 %v16313_v59  ;;  %11096 = vmatprep.subr.bf16.mxu1 %v16318_v58  ;;  %v16405_v59 = vld [vmem:[%s16761_s25 + $0x2f34] ss:$8 sps:$4 sm:$0xff]   ;;  %v16400_v58 = vld [vmem:[%s16761_s25 + $0x1730] ss:$8 sps:$4 sm:$0xff]  }
 0x5d8   : > { %12080 = vmatprep.subr.bf16.mxu0 %v16321_v10  ;;  %v16403_v10 = vld [vmem:[%s16761_s25 + $0x2f30] ss:$8 sps:$4 sm:$0xff]  }
 0x5da   : > { %11097 = vmatpush1.bf16.msra.mxu1 %v16316_v11  ;;  %v16408_v11 = vld [vmem:[%s16761_s25 + $0x1744] ss:$8 sps:$4 sm:$0xff]  }
 0x5db   : > { %12081 = vmatpush1.bf16.msra.mxu0 %v16319_v12  ;;  %11098 = vmatprep.subr.bf16.mxu1 %v16324_v13  ;;  %v16411_v12 = vld [vmem:[%s16761_s25 + $0x2f44] ss:$8 sps:$4 sm:$0xff]   ;;  %v16406_v13 = vld [vmem:[%s16761_s25 + $0x1740] ss:$8 sps:$4 sm:$0xff]  }
 0x5dc   : > { %12082 = vmatprep.subr.bf16.mxu0 %v16327_v14  ;;  %v16409_v14 = vld [vmem:[%s16761_s25 + $0x2f40] ss:$8 sps:$4 sm:$0xff]  }
 0x5de   : > { %11099 = vmatpush1.bf16.msra.mxu1 %v16322_v16  ;;  %v16414_v16 = vld [vmem:[%s16761_s25 + $0x1754] ss:$8 sps:$4 sm:$0xff]  }
 0x5df   : > { %12083 = vmatpush1.bf16.msra.mxu0 %v16325_v27  ;;  %11100 = vmatprep.subr.bf16.mxu1 %v16330_v19  ;;  %v16417_v27 = vld [vmem:[%s16761_s25 + $0x2f54] ss:$8 sps:$4 sm:$0xff]   ;;  %v16412_v19 = vld [vmem:[%s16761_s25 + $0x1750] ss:$8 sps:$4 sm:$0xff]  }
 0x5e0   : > { %12084 = vmatprep.subr.bf16.mxu0 %v16333_v20  ;;  %v16415_v20 = vld [vmem:[%s16761_s25 + $0x2f50] ss:$8 sps:$4 sm:$0xff]  }
 0x5e2   : > { %11101 = vmatpush1.bf16.msra.mxu1 %v16328_v21  ;;  %v16420_v21 = vld [vmem:[%s16761_s25 + $0x1764] ss:$8 sps:$4 sm:$0xff]  }
 0x5e3   : > { %12085 = vmatpush1.bf16.msra.mxu0 %v16331_v7  ;;  %11102 = vmatprep.subr.bf16.mxu1 %v16336_v6  ;;  %v16423_v7 = vld [vmem:[%s16761_s25 + $0x2f64] ss:$8 sps:$4 sm:$0xff]   ;;  %v16418_v6 = vld [vmem:[%s16761_s25 + $0x1760] ss:$8 sps:$4 sm:$0xff]  }
 0x5e4   : > { %12086 = vmatprep.subr.bf16.mxu0 %v16339_v9  ;;  %v16421_v9 = vld [vmem:[%s16761_s25 + $0x2f60] ss:$8 sps:$4 sm:$0xff]  }
 0x5e6   : > { %11103 = vmatpush1.bf16.msra.mxu1 %v16334_v8  ;;  %v16426_v8 = vld [vmem:[%s16761_s25 + $0x1774] ss:$8 sps:$4 sm:$0xff]  }
 0x5e7   : > { %12087 = vmatpush1.bf16.msra.mxu0 %v16337_v26  ;;  %11104 = vmatprep.subr.bf16.mxu1 %v16342_v28  ;;  %v16429_v26 = vld [vmem:[%s16761_s25 + $0x2f74] ss:$8 sps:$4 sm:$0xff]   ;;  %v16424_v28 = vld [vmem:[%s16761_s25 + $0x1770] ss:$8 sps:$4 sm:$0xff]  }
 0x5e8   : > { %12088 = vmatprep.subr.bf16.mxu0 %v16345_v31  ;;  %v16427_v31 = vld [vmem:[%s16761_s25 + $0x2f70] ss:$8 sps:$4 sm:$0xff]  }
 0x5ea   : > { %11105 = vmatpush1.bf16.msra.mxu1 %v16340_v32  ;;  %v16432_v32 = vld [vmem:[%s16761_s25 + $0x1784] ss:$8 sps:$4 sm:$0xff]  }
 0x5eb   : > { %12089 = vmatpush1.bf16.msra.mxu0 %v16343_v33  ;;  %11106 = vmatprep.subr.bf16.mxu1 %v16348_v17  ;;  %v16435_v33 = vld [vmem:[%s16761_s25 + $0x2f84] ss:$8 sps:$4 sm:$0xff]   ;;  %v16430_v17 = vld [vmem:[%s16761_s25 + $0x1780] ss:$8 sps:$4 sm:$0xff]  }
 0x5ec   : > { %12090 = vmatprep.subr.bf16.mxu0 %v16351_v18  ;;  %v16433_v18 = vld [vmem:[%s16761_s25 + $0x2f80] ss:$8 sps:$4 sm:$0xff]  }
 0x5ee   : > { %11107 = vmatpush1.bf16.msra.mxu1 %v16346_v36  ;;  %v16438_v36 = vld [vmem:[%s16761_s25 + $0x1794] ss:$8 sps:$4 sm:$0xff]  }
 0x5ef   : > { %12091 = vmatpush1.bf16.msra.mxu0 %v16349_v38  ;;  %11108 = vmatprep.subr.bf16.mxu1 %v16354_v39  ;;  %v16441_v38 = vld [vmem:[%s16761_s25 + $0x2f94] ss:$8 sps:$4 sm:$0xff]   ;;  %v16436_v39 = vld [vmem:[%s16761_s25 + $0x1790] ss:$8 sps:$4 sm:$0xff]  }
 0x5f0   : > { %12092 = vmatprep.subr.bf16.mxu0 %v16357_v23  ;;  %v16439_v23 = vld [vmem:[%s16761_s25 + $0x2f90] ss:$8 sps:$4 sm:$0xff]  }
 0x5f2   : > { %11109 = vmatpush1.bf16.msra.mxu1 %v16352_v22  ;;  %v16444_v22 = vld [vmem:[%s16761_s25 + $0x17a4] ss:$8 sps:$4 sm:$0xff]  }
 0x5f3   : > { %12093 = vmatpush1.bf16.msra.mxu0 %v16355_v25  ;;  %11110 = vmatprep.subr.bf16.mxu1 %v16360_v24  ;;  %v16447_v25 = vld [vmem:[%s16761_s25 + $0x2fa4] ss:$8 sps:$4 sm:$0xff]   ;;  %v16442_v24 = vld [vmem:[%s16761_s25 + $0x17a0] ss:$8 sps:$4 sm:$0xff]  }
 0x5f4   : > { %12094 = vmatprep.subr.bf16.mxu0 %v16363_v29  ;;  %v16445_v29 = vld [vmem:[%s16761_s25 + $0x2fa0] ss:$8 sps:$4 sm:$0xff]  }
 0x5f6   : > { %11111 = vmatpush1.bf16.msra.mxu1 %v16358_v34  ;;  %v16450_v34 = vld [vmem:[%s16761_s25 + $0x17b4] ss:$8 sps:$4 sm:$0xff]  }
 0x5f7   : > { %12095 = vmatpush1.bf16.msra.mxu0 %v16361_v46  ;;  %11112 = vmatprep.subr.bf16.mxu1 %v16366_v47  ;;  %v16453_v46 = vld [vmem:[%s16761_s25 + $0x2fb4] ss:$8 sps:$4 sm:$0xff]   ;;  %v16448_v47 = vld [vmem:[%s16761_s25 + $0x17b0] ss:$8 sps:$4 sm:$0xff]  }
 0x5f8   : > { %12096 = vmatprep.subr.bf16.mxu0 %v16369_v48  ;;  %v16451_v48 = vld [vmem:[%s16761_s25 + $0x2fb0] ss:$8 sps:$4 sm:$0xff]  }
 0x5fa   : > { %11113 = vmatpush1.bf16.msra.mxu1 %v16364_v51  ;;  %v16456_v51 = vld [vmem:[%s16761_s25 + $0x17c4] ss:$8 sps:$4 sm:$0xff]  }
 0x5fb   : > { %12097 = vmatpush1.bf16.msra.mxu0 %v16367_v52  ;;  %11114 = vmatprep.subr.bf16.mxu1 %v16372_v30  ;;  %v16459_v52 = vld [vmem:[%s16761_s25 + $0x2fc4] ss:$8 sps:$4 sm:$0xff]   ;;  %v16454_v30 = vld [vmem:[%s16761_s25 + $0x17c0] ss:$8 sps:$4 sm:$0xff]  }
 0x5fc   : > { %12098 = vmatprep.subr.bf16.mxu0 %v16375_v53  ;;  %v16457_v53 = vld [vmem:[%s16761_s25 + $0x2fc0] ss:$8 sps:$4 sm:$0xff]  }
 0x5fe   : > { %11115 = vmatpush1.bf16.msra.mxu1 %v16370_v54  ;;  %v16462_v54 = vld [vmem:[%s16761_s25 + $0x17d4] ss:$8 sps:$4 sm:$0xff]  }
 0x5ff   : > { %12099 = vmatpush1.bf16.msra.mxu0 %v16373_v41  ;;  %11116 = vmatprep.subr.bf16.mxu1 %v16378_v40  ;;  %v16465_v41 = vld [vmem:[%s16761_s25 + $0x2fd4] ss:$8 sps:$4 sm:$0xff]   ;;  %v16460_v40 = vld [vmem:[%s16761_s25 + $0x17d0] ss:$8 sps:$4 sm:$0xff]  }
 0x600   : > { %12100 = vmatprep.subr.bf16.mxu0 %v16381_v45  ;;  %v16463_v45 = vld [vmem:[%s16761_s25 + $0x2fd0] ss:$8 sps:$4 sm:$0xff]  }
 0x602   : > { %11117 = vmatpush1.bf16.msra.mxu1 %v16376_v60  ;;  %v16466_v60 = vld [vmem:[%s16761_s25 + $0x17e0] ss:$8 sps:$4 sm:$0xff]  }
 0x603   : > { %12101 = vmatpush1.bf16.msra.mxu0 %v16379_v61  ;;  %11127 = vmatprep.subr.bf16.mxu1 %v16384_v62  ;;  %v16469_v61 = vld [vmem:[%s16761_s25 + $0x2fe0] ss:$8 sps:$4 sm:$0xff]   ;;  %v16474_v62 = vld [vmem:[%s16761_s25 + $0x17f4] ss:$8 sps:$4 sm:$0xff]  }
 0x604   : > { %12111 = vmatprep.subr.bf16.mxu0 %v16387_v63  ;;  %v16477_v63 = vld [vmem:[%s16761_s25 + $0x2ff4] ss:$8 sps:$4 sm:$0xff]  }
 0x605   : > { %11119 = vmatmul.mubr.bf16.vlgmr.msra.gmra.mrb[0].mxu1 %v18574_v55  ;;  %v16394_v55 = vld [vmem:[%s16761_s25 + $0x1720] ss:$8 sps:$4 sm:$0xff]  }
 0x606   : > { %12103 = vmatmul.mubr.bf16.vlgmr.msra.gmra.mrb[0].mxu0 %v18578_v42  ;;  %11128 = vmatpush1.bf16.msra.mxu1 %v16382_v1  ;;  %v16397_v42 = vld [vmem:[%s16761_s25 + $0x2f20] ss:$8 sps:$4 sm:$0xff]   ;;  %v16472_v1 = vld [vmem:[%s16761_s25 + $0x17f0] ss:$8 sps:$4 sm:$0xff]  }
 0x607   : > { %12112 = vmatpush1.bf16.msra.mxu0 %v16385_v15  ;;  %11129 = vmatprep.subr.bf16.mxu1 %v16390_v35  ;;  %v16475_v15 = vld [vmem:[%s16761_s25 + $0x2ff0] ss:$8 sps:$4 sm:$0xff]   ;;  %v16482_v35 = vld [vmem:[%s16761_s25 + $0x3004] ss:$8 sps:$4 sm:$0xff]  }
 0x608   : > { %12113 = vmatprep.subr.bf16.mxu0 %v16393_v2  ;;  %11159 = vmatprep.mubr.bf16.mxu1 %v2033_v37  ;;  %v18730_v2 = vld.sshfl [vmem:[%s16777_s23 + $0xc0] sm:$0x33 pattern:$0x76325410]  ;;  %v16480_v37 = vld [vmem:[%s16761_s25 + $0x3000] ss:$8 sps:$4 sm:$0xff]  }
 0x609   : > { %12143 = vmatprep.mubr.bf16.mxu0 %v2237_v3  ;;  %v2245_v3 = vcombine.high %v18730_v2, %v18730_v2 }
 0x60a   : > { %11130 = vmatpush1.bf16.msra.mxu1 %v16388_v50  ;;  %v16485_v50 = vld [vmem:[%s16761_s25 + $0x3014] ss:$8 sps:$4 sm:$0xff]  }
 0x60b   : > { %12114 = vmatpush1.bf16.msra.mxu0 %v16391_v4  ;;  %11131 = vmatprep.subr.bf16.mxu1 %v16396_v5  ;;  %v16483_v4 = vld [vmem:[%s16761_s25 + $0x3010] ss:$8 sps:$4 sm:$0xff]   ;;  %v16488_v5 = vld [vmem:[%s16761_s25 + $0x3024] ss:$8 sps:$4 sm:$0xff]  }
 0x60c   : > { %12115 = vmatprep.subr.bf16.mxu0 %v16399_v57  ;;  %v16486_v57 = vld [vmem:[%s16761_s25 + $0x3020] ss:$8 sps:$4 sm:$0xff]  }
 0x60e   : > { %11132 = vmatpush1.bf16.msra.mxu1 %v16394_v55  ;;  %v16491_v55 = vld [vmem:[%s16761_s25 + $0x3034] ss:$8 sps:$4 sm:$0xff]  }
 0x60f   : > { %12116 = vmatpush1.bf16.msra.mxu0 %v16397_v42  ;;  %11133 = vmatprep.subr.bf16.mxu1 %v16402_v56  ;;  %v16489_v42 = vld [vmem:[%s16761_s25 + $0x3030] ss:$8 sps:$4 sm:$0xff]   ;;  %v16497_v56 = vld [vmem:[%s16761_s25 + $0x3054] ss:$8 sps:$4 sm:$0xff]  }
 0x610   : > { %12117 = vmatprep.subr.bf16.mxu0 %v16405_v59  ;;  %v16495_v59 = vld [vmem:[%s16761_s25 + $0x3050] ss:$8 sps:$4 sm:$0xff]  }
 0x612   : > { %11134 = vmatpush1.bf16.msra.mxu1 %v16400_v58  ;;  %v16500_v58 = vld [vmem:[%s16761_s25 + $0x3064] ss:$8 sps:$4 sm:$0xff]  }
 0x613   : > { %12118 = vmatpush1.bf16.msra.mxu0 %v16403_v10  ;;  %11135 = vmatprep.subr.bf16.mxu1 %v16408_v11  ;;  %v16498_v10 = vld [vmem:[%s16761_s25 + $0x3060] ss:$8 sps:$4 sm:$0xff]   ;;  %v16503_v11 = vld [vmem:[%s16761_s25 + $0x3074] ss:$8 sps:$4 sm:$0xff]  }
 0x614   : > { %12119 = vmatprep.subr.bf16.mxu0 %v16411_v12  ;;  %v16501_v12 = vld [vmem:[%s16761_s25 + $0x3070] ss:$8 sps:$4 sm:$0xff]  }
 0x616   : > { %11136 = vmatpush1.bf16.msra.mxu1 %v16406_v13  ;;  %v16506_v13 = vld [vmem:[%s16761_s25 + $0x3084] ss:$8 sps:$4 sm:$0xff]  }
 0x617   : > { %12120 = vmatpush1.bf16.msra.mxu0 %v16409_v14  ;;  %11137 = vmatprep.subr.bf16.mxu1 %v16414_v16  ;;  %v16504_v14 = vld [vmem:[%s16761_s25 + $0x3080] ss:$8 sps:$4 sm:$0xff]   ;;  %v16509_v16 = vld [vmem:[%s16761_s25 + $0x3094] ss:$8 sps:$4 sm:$0xff]  }
 0x618   : > { %12121 = vmatprep.subr.bf16.mxu0 %v16417_v27  ;;  %v16507_v27 = vld [vmem:[%s16761_s25 + $0x3090] ss:$8 sps:$4 sm:$0xff]  }
 0x61a   : > { %11138 = vmatpush1.bf16.msra.mxu1 %v16412_v19  ;;  %v16512_v19 = vld [vmem:[%s16761_s25 + $0x30a4] ss:$8 sps:$4 sm:$0xff]  }
 0x61b   : > { %12122 = vmatpush1.bf16.msra.mxu0 %v16415_v20  ;;  %11139 = vmatprep.subr.bf16.mxu1 %v16420_v21  ;;  %v16510_v20 = vld [vmem:[%s16761_s25 + $0x30a0] ss:$8 sps:$4 sm:$0xff]   ;;  %v16515_v21 = vld [vmem:[%s16761_s25 + $0x30b4] ss:$8 sps:$4 sm:$0xff]  }
 0x61c   : > { %12123 = vmatprep.subr.bf16.mxu0 %v16423_v7  ;;  %v16513_v7 = vld [vmem:[%s16761_s25 + $0x30b0] ss:$8 sps:$4 sm:$0xff]  }
 0x61e   : > { %11140 = vmatpush1.bf16.msra.mxu1 %v16418_v6  ;;  %v16518_v6 = vld [vmem:[%s16761_s25 + $0x30c4] ss:$8 sps:$4 sm:$0xff]  }
 0x61f   : > { %12124 = vmatpush1.bf16.msra.mxu0 %v16421_v9  ;;  %11141 = vmatprep.subr.bf16.mxu1 %v16426_v8  ;;  %v16516_v9 = vld [vmem:[%s16761_s25 + $0x30c0] ss:$8 sps:$4 sm:$0xff]   ;;  %v16521_v8 = vld [vmem:[%s16761_s25 + $0x30d4] ss:$8 sps:$4 sm:$0xff]  }
 0x620   : > { %12125 = vmatprep.subr.bf16.mxu0 %v16429_v26  ;;  %v16519_v26 = vld [vmem:[%s16761_s25 + $0x30d0] ss:$8 sps:$4 sm:$0xff]  }
 0x622   : > { %11142 = vmatpush1.bf16.msra.mxu1 %v16424_v28  ;;  %v16524_v28 = vld [vmem:[%s16761_s25 + $0x30e4] ss:$8 sps:$4 sm:$0xff]  }
 0x623   : > { %12126 = vmatpush1.bf16.msra.mxu0 %v16427_v31  ;;  %11143 = vmatprep.subr.bf16.mxu1 %v16432_v32  ;;  %v16522_v31 = vld [vmem:[%s16761_s25 + $0x30e0] ss:$8 sps:$4 sm:$0xff]   ;;  %v16527_v32 = vld [vmem:[%s16761_s25 + $0x30f4] ss:$8 sps:$4 sm:$0xff]  }
 0x624   : > { %12127 = vmatprep.subr.bf16.mxu0 %v16435_v33  ;;  %v16525_v33 = vld [vmem:[%s16761_s25 + $0x30f0] ss:$8 sps:$4 sm:$0xff]  }
 0x626   : > { %11144 = vmatpush1.bf16.msra.mxu1 %v16430_v17 }
 0x627   : > { %12128 = vmatpush1.bf16.msra.mxu0 %v16433_v18  ;;  %11145 = vmatprep.subr.bf16.mxu1 %v16438_v36 }
 0x628   : > { %12129 = vmatprep.subr.bf16.mxu0 %v16441_v38 }
 0x62a   : > { %11146 = vmatpush1.bf16.msra.mxu1 %v16436_v39 }
 0x62b   : > { %12130 = vmatpush1.bf16.msra.mxu0 %v16439_v23  ;;  %11147 = vmatprep.subr.bf16.mxu1 %v16444_v22 }
 0x62c   : > { %12131 = vmatprep.subr.bf16.mxu0 %v16447_v25 }
 0x62e   : > { %11148 = vmatpush1.bf16.msra.mxu1 %v16442_v24 }
 0x62f   : > { %12132 = vmatpush1.bf16.msra.mxu0 %v16445_v29  ;;  %11149 = vmatprep.subr.bf16.mxu1 %v16450_v34  ;;  %v211_v29 = vld [vmem:[#allocation2] sm:$0xff] }
 0x630   : > { %12133 = vmatprep.subr.bf16.mxu0 %v16453_v46 }
 0x632   : > { %11150 = vmatpush1.bf16.msra.mxu1 %v16448_v47 }
 0x633   : > { %12134 = vmatpush1.bf16.msra.mxu0 %v16451_v48  ;;  %11151 = vmatprep.subr.bf16.mxu1 %v16456_v51 }
 0x634   : > { %12135 = vmatprep.subr.bf16.mxu0 %v16459_v52 }
 0x636   : > { %11152 = vmatpush1.bf16.msra.mxu1 %v16454_v30 }
 0x637   : > { %12136 = vmatpush1.bf16.msra.mxu0 %v16457_v53  ;;  %11153 = vmatprep.subr.bf16.mxu1 %v16462_v54 }
 0x638   : > { %12137 = vmatprep.subr.bf16.mxu0 %v16465_v41 }
 0x63a   : > { %11154 = vmatpush1.bf16.msra.mxu1 %v16460_v40 }
 0x63b   : > { %12138 = vmatpush1.bf16.msra.mxu0 %v16463_v45  ;;  %11155 = vmatprep.subr.bf16.mxu1 %v16468_v44 }
 0x63c   : > { %12139 = vmatprep.subr.bf16.mxu0 %v16471_v43 }
 0x63e   : > { %11156 = vmatpush1.bf16.msra.mxu1 %v16466_v60 }
 0x63f   : > { %12140 = vmatpush1.bf16.msra.mxu0 %v16469_v61  ;;  %11157 = vmatprep.subr.bf16.mxu1 %v16474_v62 }
 0x640   : > { %12141 = vmatprep.subr.bf16.mxu0 %v16477_v63 }
 0x642   : > { %11158 = vmatpush1.bf16.msra.mxu1 %v16472_v1 }
 0x643   : > { %12142 = vmatpush1.bf16.msra.mxu0 %v16475_v15 }
 0x644   : > { %12152 = vmatprep.subr.bf16.mxu0 %v16482_v35 }
 0x645   : > { %11160 = vmatmul.mubr.bf16.vlgmr.msra.gmra.mrb[0].mxu1 %v18655_v0  ;;  %v16494_v0 = vld [vmem:[%s16761_s25 + $0x3044] ss:$8 sps:$4 sm:$0xff]  }
 0x646   : > { %12144 = vmatmul.mubr.bf16.vlgmr.msra.gmra.mrb[0].mxu0 %v18658_v49  ;;  %v16492_v49 = vld [vmem:[%s16761_s25 + $0x3040] ss:$8 sps:$4 sm:$0xff]  }
 0x647   : > { %12153 = vmatpush1.bf16.msra.mxu0 %v16480_v37  ;;  %12184 = vmatprep.mubr.bf16.mxu0 %v2245_v3 }
 0x648   : > { %12154 = vmatprep.subr.bf16.mxu0 %v16485_v50 }
 0x64b   : > { %12155 = vmatpush1.bf16.msra.mxu0 %v16483_v4 }
 0x64c   : > { %12156 = vmatprep.subr.bf16.mxu0 %v16488_v5 }
 0x64f   : > { %12157 = vmatpush1.bf16.msra.mxu0 %v16486_v57 }
 0x650   : > { %12158 = vmatprep.subr.bf16.mxu0 %v16491_v55 }
 0x653   : > { %12159 = vmatpush1.bf16.msra.mxu0 %v16489_v42 }
 0x654   : > { %12160 = vmatprep.subr.bf16.mxu0 %v16494_v0 }
 0x657   : > { %12161 = vmatpush1.bf16.msra.mxu0 %v16492_v49 }
 0x658   : > { %12162 = vmatprep.subr.bf16.mxu0 %v16497_v56 }
 0x65b   : > { %12163 = vmatpush1.bf16.msra.mxu0 %v16495_v59 }
 0x65c   : > { %12164 = vmatprep.subr.bf16.mxu0 %v16500_v58 }
 0x65f   : > { %12165 = vmatpush1.bf16.msra.mxu0 %v16498_v10 }
 0x660   : > { %12166 = vmatprep.subr.bf16.mxu0 %v16503_v11 }
 0x663   : > { %12167 = vmatpush1.bf16.msra.mxu0 %v16501_v12 }
 0x664   : > { %12168 = vmatprep.subr.bf16.mxu0 %v16506_v13 }
 0x667   : > { %12169 = vmatpush1.bf16.msra.mxu0 %v16504_v14 }
 0x668   : > { %12170 = vmatprep.subr.bf16.mxu0 %v16509_v16 }
 0x66b   : > { %12171 = vmatpush1.bf16.msra.mxu0 %v16507_v27 }
 0x66c   : > { %12172 = vmatprep.subr.bf16.mxu0 %v16512_v19 }
 0x66f   : > { %12173 = vmatpush1.bf16.msra.mxu0 %v16510_v20 }
 0x670   : > { %12174 = vmatprep.subr.bf16.mxu0 %v16515_v21 }
 0x673   : > { %12175 = vmatpush1.bf16.msra.mxu0 %v16513_v7 }
 0x674   : > { %12176 = vmatprep.subr.bf16.mxu0 %v16518_v6 }
 0x677   : > { %12177 = vmatpush1.bf16.msra.mxu0 %v16516_v9 }
 0x678   : > { %12178 = vmatprep.subr.bf16.mxu0 %v16521_v8 }
 0x67b   : > { %12179 = vmatpush1.bf16.msra.mxu0 %v16519_v26 }
 0x67c   : > { %12180 = vmatprep.subr.bf16.mxu0 %v16524_v28 }
 0x67f   : > { %12181 = vmatpush1.bf16.msra.mxu0 %v16522_v31 }
 0x680   : > { %12182 = vmatprep.subr.bf16.mxu0 %v16527_v32 }
 0x683   : > { %12183 = vmatpush1.bf16.msra.mxu0 %v16525_v33 }
 0x686   : > { %12185 = vmatmul.mubr.bf16.vlgmr.msra.gmra.mrb[0].mxu0 %v18730_v2 }
 0x718   : > { %v11161_v17 = vpop.f32.mrb[0].mxu1 }
 0x719   : > { %v11163_v18 = vpop.f32.mrb[1].mxu1 }
 0x71a   : > { %v11165_v36 = vpop.f32.mrb[2].mxu1 }
 0x71b   : > { %v11166_v38 = vpop.f32.mrb[3].mxu1 }
 0x759   : > { %v12186_v39 = vpop.f32.mrb[0].mxu0 }
 0x75a   : > { %v13884_v23 = vadd.f32 %v12186_v39, %v11161_v17  ;;  %v12188_v22 = vpop.f32.mrb[1].mxu0 }
 0x75b   : > { %v13885_v25 = vadd.f32 %v12188_v22, %v11163_v18  ;;  %v12190_v24 = vpop.f32.mrb[2].mxu0  ;;  %12202 = sbr.rel (%p13880_p6) target bundleno = 1898 (0x76a), region = 40 }
 0x75c   : > { %v12191_v34 = vpop.f32.mrb[3].mxu0 }
 0x75d   : > { %v12195_v46 = vcombine.low %v13884_v23, %v13885_v25 }
 0x75f   : > { %v12197_v47 = vadd.f32 %v12195_v46, %v211_v29 }
 0x761   : > { %12198 = vst [vmem:[#allocation2] sm:$0xff] %v12197_v47 }
 0x768   : > { %v12203_v48 = vld [vmem:[#allocation2] sm:$0xff] }
 0x769   : > { %12204 = vst [vmem:[%s16772_s26] sm:$0xff] %v12203_v48 }
 0x76a PF: > { %s15_s16 = sadd.s32 1, %s16624_s16   ;;  %s18800_s9 = smov %s16600_s10 }
 0x76b   : > { %p12_p8 = scmp.ge.s32.totalorder %s15_s16, 8   ;;  %s18801_s10 = smov %s16604_s11 }
 0x76c   : > { %s18802_s11 = smov %s16714_s29  ;;  %s18803_s12 = smov %s16616_s14 }
 0x76d   : > { %s18804_s13 = smov %s16620_s15  ;;  %s18805_s14 = smov %s18808_s18 }
 0x76e   : > { %s18806_s15 = smov %s18812_s19  ;;  %14 = sbr.rel (!%p12_p8) target bundleno = 5 (0x5), region = 79 }
 0x775   :  { %12227 = vsyncpa [#allocation4], 1 }
 0x776   :  { %12229 = vsyncpa [#allocation4 + $0x1], 1 }

</bundles_post_ra>
